<compile_context>
chip_gen: v7x
topology: tpu7x:2x2x1
jax: 0.10.0
libtpu: 0.0.40
codegen_flags: <defaults>
</compile_context>

<pallas_src>
import functools

import jax
import jax.numpy as jnp
from jax.experimental import pallas as pl
from jax.experimental.pallas import tpu as pltpu

_OUT_LANES = 128   # lane-dense output row (class c in lane c)


# ----------------------------------------------------------------------------
# in-kernel helpers
# ----------------------------------------------------------------------------

def _nt16(a, b):
    """a (M,K) x b (N,K) -> (M,N); bf16 MXU operands, f32 accumulation."""
    return jax.lax.dot_general(a.astype(jnp.bfloat16), b.astype(jnp.bfloat16),
                               (((1,), (1,)), ((), ())),
                               preferred_element_type=jnp.float32)


def _mm16(a, b):
    """a (M,K) @ b (K,N); bf16 MXU operands, f32 accumulation."""
    return jax.lax.dot_general(a.astype(jnp.bfloat16), b.astype(jnp.bfloat16),
                               (((1,), (0,)), ((), ())),
                               preferred_element_type=jnp.float32)


def _mm32(a, b):
    """Tiny exact f32 matmul (selectors / means)."""
    return jax.lax.dot_general(a.astype(jnp.float32), b.astype(jnp.float32),
                               (((1,), (0,)), ((), ())),
                               preferred_element_type=jnp.float32)


def _l2norm(x):
    """F.normalize(x, dim=-1): rsqrt (EUP) instead of sqrt + divide."""
    ss = jnp.sum(x * x, axis=-1, keepdims=True)
    return x * jax.lax.rsqrt(jnp.maximum(ss, 1e-24))


def _iota(shape, dim):
    return jax.lax.broadcasted_iota(jnp.int32, shape, dim)


def _pad_rows(top, total, fill):
    extra = total - top.shape[0]
    if extra == 0:
        return top
    pad = jnp.full((extra,) + top.shape[1:], fill, top.dtype)
    return jnp.concatenate([top, pad], axis=0)


def _pad_row_lanes(row):
    pad = _OUT_LANES - row.shape[1]
    if pad == 0:
        return row
    return jnp.concatenate([row, jnp.zeros((1, pad), jnp.float32)], axis=1)


def _gcn_dense(a_hat, x, w, b, relu):
    """Dense GCNConv (big branch, nb x nb graph).
    a_hat[t, s] = weight of edge s->t (+ self loops); deg = row sums == PyG
    gcn_norm in-degrees;  out = D^-1/2 a_hat D^-1/2 (x @ w) + b."""
    deg = jnp.sum(a_hat, axis=1, keepdims=True)
    dinv = jax.lax.rsqrt(jnp.maximum(deg, 1e-12))
    y = dinv * _mm16(a_hat, dinv * _mm16(x, w)) + b
    return jnp.maximum(y, 0.0) if relu else y


def _topk_mean_row(x, t, n_class, s, k):
    """Mean of the k largest entries of each class pool of (x @ t.T).reshape(-1, n_class).
    Pool c (matching torch's row-major view) = { x[i]·t[a*n_class + c] : i, a },
    pool size p = s * N.  Pools are built with contiguous row-slice matmuls of t
    (no transposes); per class ONE (p,p) all-pairs compare and ONE MXU rank
    reduce select exactly k elements (index tie-break).  Returns (1, n_class)."""
    f32 = jnp.float32
    t = t.astype(f32)
    n = x.shape[0]
    p = s * n
    pc_parts, pr_parts = [], []
    for a in range(s):
        ts = t[a * n_class:(a + 1) * n_class, :]          # rows j = a*n_class + c
        pc_parts.append(_nt16(x, ts))                     # (n, n_class): pool values (column c)
        pr_parts.append(_nt16(ts, x))                     # (n_class, n): same values, lane dense
    pc = pc_parts[0] if s == 1 else jnp.concatenate(pc_parts, axis=0)   # (p, n_class)
    pr = pr_parts[0] if s == 1 else jnp.concatenate(pr_parts, axis=1)   # (n_class, p)

    mi = _iota((p, p), 0)            # index of the element being ranked (self)
    ni = _iota((p, p), 1)            # index of the element compared against (other)
    off_diag = ni != mi
    tie_lo = ni < mi
    ones_col = jnp.ones((p, 1), f32)

    keep_cols = []
    for c in range(n_class):         # NOTE: convert to lax.fori_loop at non-toy n_class
        col = pc[:, c:c + 1]                              # (p, 1)
        row = pr[c:c + 1, :]                              # (1, p)
        gt = jnp.logical_and(row > col, off_diag)
        eq = jnp.logical_and(row == col, tie_lo)
        cmp = jnp.logical_or(gt, eq).astype(f32)          # (p, p)
        rank = _mm16(cmp, ones_col)                       # (p, 1) rank via MXU (0/1 exact)
        keep_cols.append((rank < k).astype(f32))          # exactly k kept
    keep = keep_cols[0] if n_class == 1 else jnp.concatenate(keep_cols, axis=1)
    return jnp.sum(pc * keep, axis=0, keepdims=True) * (1.0 / k)        # (1, n_class)


# ----------------------------------------------------------------------------
# fused forward kernel: program 0 = big-magnification branch, program 1 = small
# ----------------------------------------------------------------------------

def _mscpt_fused_kernel(small_ref, wvp_ref, tfzs_ref, prompt_ref, wtp_ref,
                        big_ref, wpe_ref,
                        gbw1_ref, gbb1_ref, gbw2_ref, gbb2_ref,
                        gsw1_ref, gsb1_ref, gsw2_ref, gsb2_ref,
                        mean_i_ref, tft_ref, eye_b_ref, low_b_ref, low_m_ref,
                        ls_ref, out_ref, *, n_class, n_big_desc, n_small_desc):
    f32 = jnp.float32

    # logit_scale.exp(): scalar read from SMEM, exp applied on a (1,1) vector.
    scale = jnp.exp(jnp.full((1, 1), ls_ref[0, 0], f32))

    # TODO(synk): full CLIP text transformer (MYPromptLearner + TextEncoder with
    # p_ori/p_ins/p_uni prompt injection, masks, tokenizer) not ported; a single
    # projection over synthetic prompt embeddings stands in.
    text_features = _l2norm(_mm16(prompt_ref[...], wtp_ref[...]))   # (n_class*n_big_desc, D)

    pid = pl.program_id(0)

    # ------------------------- big-magnification branch ----------------------
    @pl.when(pid == 0)
    def _big_branch():
        # TODO(synk): full CLIP ViT (VisionPromptLearner + VisionEncoder prompt
        # injection) not ported; whole-image patch-embed matmul + normalize stands in.
        img_f = _l2norm(_mm16(big_ref[...], wpe_ref[...]))          # (nb, D)
        tfzs = tfzs_ref[...]                                        # (n_class*n_small_desc, D) bf16
        nb = img_f.shape[0]

        sim_big = _nt16(img_f, tfzs)                                # (nb, q_s) f32
        m_big = None
        for c in range(n_class):                                    # tiny; batch at real n_class
            s_c = sim_big[:, c * n_small_desc:(c + 1) * n_small_desc]
            g = _nt16(s_c, s_c)                                     # (nb, nb) per-class gram
            m_big = g if m_big is None else jnp.maximum(m_big, g)
        # m_big is symmetric -> softmax over axis 0 == softmax(dim=-1).T; its
        # strict lower triangle gives the dense directed [target, source] edges.
        p_big = jnp.exp(m_big - jnp.max(m_big, axis=0, keepdims=True))
        p_big = p_big / jnp.sum(p_big, axis=0, keepdims=True)
        eye_b = eye_b_ref[...]
        low_b = low_b_ref[...]                                      # strict lower triangle ones
        x1 = _gcn_dense(low_b * p_big + eye_b, img_f,
                        gbw1_ref[...], gbb1_ref[...], relu=True)
        # TODO(synk): F.dropout(p=0.5, training=True) between the GCN layers omitted.
        x_big = _gcn_dense(low_b + eye_b, x1,
                           gbw2_ref[...], gbb2_ref[...], relu=False)

        tf_i = _mm32(mean_i_ref[...], text_features)                # per-class mean (n_class, D)
        row = (_topk_mean_row(x_big, tfzs, n_class, n_small_desc, 5)
               + _topk_mean_row(x_big, tf_i, n_class, 1, 5))
        out_ref[...] = _pad_row_lanes(scale * row)                  # logits_i, lane dense

    # ------------------------ small-magnification branch ---------------------
    @pl.when(pid == 1)
    def _small_branch():
        xzs = _l2norm(_mm16(small_ref[...], wvp_ref[...]))          # (ns, D)
        ns, d_model = xzs.shape
        m = n_big_desc                                              # graph has only m edged nodes

        simt = _nt16(text_features, xzs)                            # (q_b, ns)
        m_small = None
        for c in range(n_class):
            t_c = simt[c * m:(c + 1) * m, :]
            g = _nt16(t_c, t_c)                                     # (m, m) per-class gram
            m_small = g if m_small is None else jnp.maximum(m_small, g)
        p_small = jnp.exp(m_small - jnp.max(m_small, axis=0, keepdims=True))
        p_small = p_small / jnp.sum(p_small, axis=0, keepdims=True)
        low_m = low_m_ref[...]
        blk = low_m * p_small                                       # (m, m) [target, source] weights

        def sparse_gcn(x, w, b, adj_blk, relu):
            # Edges only among the first m of ns nodes (num_nodes_small ==
            # A_small.shape[0] == n_big_desc in the reference): rows >= m get
            # the self-loop path only -> (m,m) correction instead of (ns,ns).
            y = _mm16(x, w)                                         # (ns, D)
            deg_top = 1.0 + jnp.sum(adj_blk, axis=1, keepdims=True) # (m, 1) in-degree + self-loop
            dis = jax.lax.rsqrt(deg_top)
            corr = dis * _mm16(adj_blk, dis * y[:m, :])             # (m, D)
            invdeg = _pad_rows(1.0 / deg_top, ns, 1.0)              # (ns, 1)
            out = invdeg * y + _pad_rows(corr, ns, 0.0) + b
            return jnp.maximum(out, 0.0) if relu else out

        h = sparse_gcn(xzs, gsw1_ref[...], gsb1_ref[...], blk, relu=True)
        # TODO(synk): dropout omitted (see above).
        x_small = sparse_gcn(h, gsw2_ref[...], gsb2_ref[...], low_m, relu=False)

        row = (_topk_mean_row(x_small, text_features, n_class, n_big_desc, 100)
               + _topk_mean_row(x_small, tft_ref[...], n_class, 1, 100))
        out_ref[...] = _pad_row_lanes(scale * row)                  # logits_t, lane dense


# ----------------------------------------------------------------------------
# host-side wrapper: one pallas_call, 2 parallel programs (v7x: one per core)
# ----------------------------------------------------------------------------

@functools.partial(jax.jit, static_argnames=("n_class",))
def mscpt_forward(params, big_image, small_embeddings, *, n_class):
    bf16 = jnp.bfloat16
    f32 = jnp.float32

    big_image = big_image[0]                               # .squeeze(0) -> (Nb, 3, H, W)
    small_emb = small_embeddings[0].astype(bf16)           # (Ns, Dv)
    nb = big_image.shape[0]
    big_flat = big_image.reshape(nb, -1).astype(bf16)      # NCHW row-major flatten

    tfzs3 = params['text_features_zs']                     # (n_class, n_small_desc, D)
    n_small_desc = tfzs3.shape[1]
    tfzs = tfzs3.reshape(-1, tfzs3.shape[-1]).astype(bf16)
    n_big_desc = params['prompt_emb'].shape[0] // n_class
    ns = small_emb.shape[0]

    assert n_class <= _OUT_LANES
    assert nb >= 5 and nb * n_small_desc >= 5              # torch.topk(k=5) validity
    assert ns >= 100 and ns * n_big_desc >= 100            # torch.topk(k=100) validity

    # host-precomputed constants (review: keep mask/selector building off the VPU)
    q_b = n_class * n_big_desc
    eye_b = jnp.eye(nb, dtype=f32)
    low_b = jnp.tril(jnp.ones((nb, nb), f32), k=-1)
    low_m = jnp.tril(jnp.ones((n_big_desc, n_big_desc), f32), k=-1)
    r_i = jnp.arange(n_class)[:, None]
    c_i = jnp.arange(q_b)[None, :]
    mean_i = (((c_i >= r_i * n_big_desc) & (c_i < (r_i + 1) * n_big_desc))
              .astype(f32) / n_big_desc)                   # per-class mean of text_features
    tft = tfzs3.mean(axis=1).astype(f32)                   # text_features_t (n_class, D)

    operands = [
        small_emb,
        params['w_visual_proj'].astype(bf16),
        tfzs,
        params['prompt_emb'].astype(bf16),
        params['w_text_proj'].astype(bf16),
        big_flat,
        params['w_patch_embed'].astype(bf16),
        params['gcn_big_w1'].astype(bf16),
        params['gcn_big_b1'].reshape(1, -1).astype(f32),
        params['gcn_big_w2'].astype(bf16),
        params['gcn_big_b2'].reshape(1, -1).astype(f32),
        params['gcn_small_w1'].astype(bf16),
        params['gcn_small_b1'].reshape(1, -1).astype(f32),
        params['gcn_small_w2'].astype(bf16),
        params['gcn_small_b2'].reshape(1, -1).astype(f32),
        mean_i,
        tft,
        eye_b,
        low_b,
        low_m,
        params['logit_scale'].reshape(1, 1).astype(f32),   # SMEM scalar (last)
    ]

    vm = pl.BlockSpec(memory_space=pltpu.MemorySpace.VMEM)   # single VMEM copy, no double buffer
    sm = pl.BlockSpec(memory_space=pltpu.MemorySpace.SMEM)
    in_specs = [vm] * (len(operands) - 1) + [sm]

    kernel = functools.partial(_mscpt_fused_kernel, n_class=n_class,
                               n_big_desc=n_big_desc,
                               n_small_desc=n_small_desc)
    out = pl.pallas_call(
        kernel,
        grid=(2,),                                          # program 0: big, program 1: small
        in_specs=in_specs,
        out_specs=pl.BlockSpec((None, 1, _OUT_LANES), lambda i: (i, 0, 0)),
        out_shape=jax.ShapeDtypeStruct((2, 1, _OUT_LANES), jnp.float32),
        compiler_params=pltpu.CompilerParams(
            dimension_semantics=("parallel",),              # v7x: one branch per TensorCore
            vmem_limit_bytes=48 * 1024 * 1024),
    )(*operands)

    logits_i = out[0, 0, :n_class][None]                    # Mscpt train branch: unsqueeze(0)
    logits_t = out[1, 0, :n_class][None]
    logits = 0.5 * (logits_i + logits_t)
    return logits, logits_i, logits_t


# ----------------------------------------------------------------------------
# deterministic synthetic parameters
# ----------------------------------------------------------------------------

def init_params(key, *, n_class, n_big_desc, n_small_desc, D, Dv, img_flat):
    ks = jax.random.split(key, 10)
    p = {}
    p['w_visual_proj'] = jax.random.normal(ks[0], (Dv, D), jnp.float32) * (Dv ** -0.5)
    p['logit_scale'] = jnp.float32(jnp.log(1.0 / 0.07))            # CLIP init
    tfzs = jax.random.normal(ks[1], (n_class * n_small_desc, D), jnp.float32)
    tfzs = tfzs / jnp.maximum(jnp.linalg.norm(tfzs, axis=-1, keepdims=True), 1e-12)
    p['text_features_zs'] = tfzs.reshape(n_class, n_small_desc, D)
    p['prompt_emb'] = jax.random.normal(ks[2], (n_class * n_big_desc, D), jnp.float32) * 0.02
    p['w_text_proj'] = jax.random.normal(ks[3], (D, D), jnp.float32) * (D ** -0.5)
    p['w_patch_embed'] = jax.random.normal(ks[4], (img_flat, D), jnp.float32) * (img_flat ** -0.5)
    g_std = (2.0 / (D + D)) ** 0.5
    p['gcn_big_w1'] = jax.random.normal(ks[5], (D, D), jnp.float32) * g_std
    p['gcn_big_b1'] = jnp.zeros((D,), jnp.float32)
    p['gcn_big_w2'] = jax.random.normal(ks[6], (D, D), jnp.float32) * g_std
    p['gcn_big_b2'] = jnp.zeros((D,), jnp.float32)
    p['gcn_small_w1'] = jax.random.normal(ks[7], (D, D), jnp.float32) * g_std
    p['gcn_small_b1'] = jnp.zeros((D,), jnp.float32)
    p['gcn_small_w2'] = jax.random.normal(ks[8], (D, D), jnp.float32) * g_std
    p['gcn_small_b2'] = jnp.zeros((D,), jnp.float32)
    return p


if __name__ == "__main__":
    key = jax.random.PRNGKey(0)
    n_class, n_big_desc, n_small_desc = 2, 2, 4
    D, Dv = 128, 128
    Nb, Ns = 8, 128
    C_img, H, W = 3, 16, 16

    k_par, k_big, k_small = jax.random.split(key, 3)
    params = init_params(k_par, n_class=n_class, n_big_desc=n_big_desc,
                         n_small_desc=n_small_desc, D=D, Dv=Dv,
                         img_flat=C_img * H * W)

    big_image = jax.random.normal(k_big, (1, Nb, C_img, H, W), jnp.float32)
    small_embeddings = jax.random.normal(k_small, (1, Ns, Dv), jnp.float32)

    logits, logits_i, logits_t = mscpt_forward(
        params, big_image, small_embeddings, n_class=n_class)
    jax.block_until_ready((logits, logits_i, logits_t))

    assert logits.shape == (1, n_class)
    assert logits_i.shape == (1, n_class)
    assert logits_t.shape == (1, n_class)
    assert bool(jnp.all(jnp.isfinite(logits)))
    assert bool(jnp.all(jnp.isfinite(logits_i)))
    assert bool(jnp.all(jnp.isfinite(logits_t)))
    print("KERNEL_OK")
</pallas_src>

<mosaic_0001>
module attributes {stable_mosaic.version = 11 : i64} {
  func.func @_mscpt_fused_kernel(%arg0: i32, %arg1: memref<128x128xbf16, #tpu.memory_space<vmem>>, %arg2: memref<128x128xbf16, #tpu.memory_space<vmem>>, %arg3: memref<8x128xbf16, #tpu.memory_space<vmem>>, %arg4: memref<4x128xbf16, #tpu.memory_space<vmem>>, %arg5: memref<128x128xbf16, #tpu.memory_space<vmem>>, %arg6: memref<8x768xbf16, #tpu.memory_space<vmem>>, %arg7: memref<768x128xbf16, #tpu.memory_space<vmem>>, %arg8: memref<128x128xbf16, #tpu.memory_space<vmem>>, %arg9: memref<1x128xf32, #tpu.memory_space<vmem>>, %arg10: memref<128x128xbf16, #tpu.memory_space<vmem>>, %arg11: memref<1x128xf32, #tpu.memory_space<vmem>>, %arg12: memref<128x128xbf16, #tpu.memory_space<vmem>>, %arg13: memref<1x128xf32, #tpu.memory_space<vmem>>, %arg14: memref<128x128xbf16, #tpu.memory_space<vmem>>, %arg15: memref<1x128xf32, #tpu.memory_space<vmem>>, %arg16: memref<2x4xf32, #tpu.memory_space<vmem>>, %arg17: memref<2x128xf32, #tpu.memory_space<vmem>>, %arg18: memref<8x8xf32, #tpu.memory_space<vmem>>, %arg19: memref<8x8xf32, #tpu.memory_space<vmem>>, %arg20: memref<2x2xf32, #tpu.memory_space<vmem>>, %arg21: memref<1x1xf32, #tpu.memory_space<smem>>, %arg22: memref<1x1x128xf32, #tpu.memory_space<vmem>>) attributes {dimension_semantics = [#tpu.dimension_semantics<parallel>], iteration_bounds = array<i64: 2>, scalar_prefetch = 0 : i64, scratch_operands = 0 : i64, tpu.core_type = #tpu.core_type<tc>, window_params = [{pipeline_mode = #tpu.pipeline_mode<synchronous>, transform_indices = @transform_0, window_bounds = array<i64: 128, 128>}, {pipeline_mode = #tpu.pipeline_mode<synchronous>, transform_indices = @transform_1, window_bounds = array<i64: 128, 128>}, {pipeline_mode = #tpu.pipeline_mode<synchronous>, transform_indices = @transform_2, window_bounds = array<i64: 8, 128>}, {pipeline_mode = #tpu.pipeline_mode<synchronous>, transform_indices = @transform_3, window_bounds = array<i64: 4, 128>}, {pipeline_mode = #tpu.pipeline_mode<synchronous>, transform_indices = @transform_4, window_bounds = array<i64: 128, 128>}, {pipeline_mode = #tpu.pipeline_mode<synchronous>, transform_indices = @transform_5, window_bounds = array<i64: 8, 768>}, {pipeline_mode = #tpu.pipeline_mode<synchronous>, transform_indices = @transform_6, window_bounds = array<i64: 768, 128>}, {pipeline_mode = #tpu.pipeline_mode<synchronous>, transform_indices = @transform_7, window_bounds = array<i64: 128, 128>}, {pipeline_mode = #tpu.pipeline_mode<synchronous>, transform_indices = @transform_8, window_bounds = array<i64: 1, 128>}, {pipeline_mode = #tpu.pipeline_mode<synchronous>, transform_indices = @transform_9, window_bounds = array<i64: 128, 128>}, {pipeline_mode = #tpu.pipeline_mode<synchronous>, transform_indices = @transform_10, window_bounds = array<i64: 1, 128>}, {pipeline_mode = #tpu.pipeline_mode<synchronous>, transform_indices = @transform_11, window_bounds = array<i64: 128, 128>}, {pipeline_mode = #tpu.pipeline_mode<synchronous>, transform_indices = @transform_12, window_bounds = array<i64: 1, 128>}, {pipeline_mode = #tpu.pipeline_mode<synchronous>, transform_indices = @transform_13, window_bounds = array<i64: 128, 128>}, {pipeline_mode = #tpu.pipeline_mode<synchronous>, transform_indices = @transform_14, window_bounds = array<i64: 1, 128>}, {pipeline_mode = #tpu.pipeline_mode<synchronous>, transform_indices = @transform_15, window_bounds = array<i64: 2, 4>}, {pipeline_mode = #tpu.pipeline_mode<synchronous>, transform_indices = @transform_16, window_bounds = array<i64: 2, 128>}, {pipeline_mode = #tpu.pipeline_mode<synchronous>, transform_indices = @transform_17, window_bounds = array<i64: 8, 8>}, {pipeline_mode = #tpu.pipeline_mode<synchronous>, transform_indices = @transform_18, window_bounds = array<i64: 8, 8>}, {pipeline_mode = #tpu.pipeline_mode<synchronous>, transform_indices = @transform_19, window_bounds = array<i64: 2, 2>}, {transform_indices = @transform_20, window_bounds = array<i64: 1, 1>}, {transform_indices = @transform_21, window_bounds = array<i64: 1, 1, 128>}]} {
    %c0 = arith.constant 0 : index
    %c0_0 = arith.constant 0 : index
    %0 = memref.load %arg21[%c0, %c0_0] : memref<1x1xf32, #tpu.memory_space<smem>>
    %1 = vector.broadcast %0 : f32 to vector<1x1xf32>
    %2 = math.exp %1 : vector<1x1xf32>
    %c0_1 = arith.constant 0 : index
    %c0_2 = arith.constant 0 : index
    %3 = vector.load %arg4[%c0_1, %c0_2] : memref<4x128xbf16, #tpu.memory_space<vmem>>, vector<4x128xbf16>
    %c0_3 = arith.constant 0 : index
    %c0_4 = arith.constant 0 : index
    %4 = vector.load %arg5[%c0_3, %c0_4] : memref<128x128xbf16, #tpu.memory_space<vmem>>, vector<128x128xbf16>
    %cst = arith.constant dense<0.000000e+00> : vector<4x128xf32>
    %5 = tpu.matmul %3, %4, %cst {dimension_numbers = #tpu.dot_dimension_numbers<[1], [0], [0], [1], [0, 0, 1, 1], [], []>} : vector<4x128xbf16>, vector<128x128xbf16>, vector<4x128xf32> -> vector<4x128xf32>
    %6 = arith.mulf %5, %5 : vector<4x128xf32>
    %cst_5 = arith.constant dense<0.000000e+00> : vector<4xf32>
    %7 = vector.multi_reduction <add>, %6, %cst_5 [1] : vector<4x128xf32> to vector<4xf32>
    %8 = vector.shape_cast %7 : vector<4xf32> to vector<4x1xf32>
    %cst_6 = arith.constant 1.000000e-24 : f32
    %9 = vector.broadcast %cst_6 : f32 to vector<4x1xf32>
    %10 = arith.maximumf %8, %9 : vector<4x1xf32>
    %11 = math.rsqrt %10 : vector<4x1xf32>
    %12 = vector.broadcast %11 : vector<4x1xf32> to vector<4x128xf32>
    %13 = arith.mulf %5, %12 : vector<4x128xf32>
    %c0_i32 = arith.constant 0 : i32
    %14 = arith.cmpi eq, %arg0, %c0_i32 : i32
    %15 = arith.extui %14 : i1 to i32
    %c0_i32_7 = arith.constant 0 : i32
    %16 = arith.cmpi ne, %15, %c0_i32_7 : i32
    scf.if %16 {
      %c0_9 = arith.constant 0 : index
      %c0_10 = arith.constant 0 : index
      %20 = vector.load %arg6[%c0_9, %c0_10] : memref<8x768xbf16, #tpu.memory_space<vmem>>, vector<8x768xbf16>
      %c0_11 = arith.constant 0 : index
      %c0_12 = arith.constant 0 : index
      %21 = vector.load %arg7[%c0_11, %c0_12] : memref<768x128xbf16, #tpu.memory_space<vmem>>, vector<768x128xbf16>
      %cst_13 = arith.constant dense<0.000000e+00> : vector<8x128xf32>
      %22 = tpu.matmul %20, %21, %cst_13 {dimension_numbers = #tpu.dot_dimension_numbers<[1], [0], [0], [1], [0, 0, 1, 1], [], []>} : vector<8x768xbf16>, vector<768x128xbf16>, vector<8x128xf32> -> vector<8x128xf32>
      %23 = arith.mulf %22, %22 : vector<8x128xf32>
      %cst_14 = arith.constant dense<0.000000e+00> : vector<8xf32>
      %24 = vector.multi_reduction <add>, %23, %cst_14 [1] : vector<8x128xf32> to vector<8xf32>
      %25 = vector.shape_cast %24 : vector<8xf32> to vector<8x1xf32>
      %cst_15 = arith.constant 1.000000e-24 : f32
      %26 = vector.broadcast %cst_15 : f32 to vector<8x1xf32>
      %27 = arith.maximumf %25, %26 : vector<8x1xf32>
      %28 = math.rsqrt %27 : vector<8x1xf32>
      %29 = vector.broadcast %28 : vector<8x1xf32> to vector<8x128xf32>
      %30 = arith.mulf %22, %29 : vector<8x128xf32>
      %c0_16 = arith.constant 0 : index
      %c0_17 = arith.constant 0 : index
      %31 = vector.load %arg3[%c0_16, %c0_17] : memref<8x128xbf16, #tpu.memory_space<vmem>>, vector<8x128xbf16>
      %32 = arith.truncf %30 : vector<8x128xf32> to vector<8x128xbf16>
      %cst_18 = arith.constant dense<0.000000e+00> : vector<8x8xf32>
      %33 = tpu.matmul %32, %31, %cst_18 {dimension_numbers = #tpu.dot_dimension_numbers<[1], [1], [0], [0], [0, 0, 1, 0], [], []>} : vector<8x128xbf16>, vector<8x128xbf16>, vector<8x8xf32> -> vector<8x8xf32>
      %34 = vector.extract_strided_slice %33 {offsets = [0, 0], sizes = [8, 4], strides = [1, 1]} : vector<8x8xf32> to vector<8x4xf32>
      %35 = arith.truncf %34 : vector<8x4xf32> to vector<8x4xbf16>
      %36 = arith.truncf %34 : vector<8x4xf32> to vector<8x4xbf16>
      %cst_19 = arith.constant dense<0.000000e+00> : vector<8x8xf32>
      %37 = tpu.matmul %35, %36, %cst_19 {dimension_numbers = #tpu.dot_dimension_numbers<[1], [1], [0], [0], [0, 0, 1, 0], [], []>} : vector<8x4xbf16>, vector<8x4xbf16>, vector<8x8xf32> -> vector<8x8xf32>
      %38 = vector.extract_strided_slice %33 {offsets = [0, 4], sizes = [8, 4], strides = [1, 1]} : vector<8x8xf32> to vector<8x4xf32>
      %39 = arith.truncf %38 : vector<8x4xf32> to vector<8x4xbf16>
      %40 = arith.truncf %38 : vector<8x4xf32> to vector<8x4xbf16>
      %cst_20 = arith.constant dense<0.000000e+00> : vector<8x8xf32>
      %41 = tpu.matmul %39, %40, %cst_20 {dimension_numbers = #tpu.dot_dimension_numbers<[1], [1], [0], [0], [0, 0, 1, 0], [], []>} : vector<8x4xbf16>, vector<8x4xbf16>, vector<8x8xf32> -> vector<8x8xf32>
      %42 = arith.maximumf %37, %41 : vector<8x8xf32>
      %cst_21 = arith.constant dense<0xFF800000> : vector<8xf32>
      %43 = vector.multi_reduction <maximumf>, %42, %cst_21 [0] : vector<8x8xf32> to vector<8xf32>
      %44 = vector.shape_cast %43 : vector<8xf32> to vector<1x8xf32>
      %45 = vector.broadcast %44 : vector<1x8xf32> to vector<8x8xf32>
      %46 = arith.subf %42, %45 : vector<8x8xf32>
      %47 = math.exp %46 : vector<8x8xf32>
      %cst_22 = arith.constant dense<0.000000e+00> : vector<8xf32>
      %48 = vector.multi_reduction <add>, %47, %cst_22 [0] : vector<8x8xf32> to vector<8xf32>
      %49 = vector.shape_cast %48 : vector<8xf32> to vector<1x8xf32>
      %50 = vector.broadcast %49 : vector<1x8xf32> to vector<8x8xf32>
      %51 = arith.divf %47, %50 : vector<8x8xf32>
      %c0_23 = arith.constant 0 : index
      %c0_24 = arith.constant 0 : index
      %52 = vector.load %arg18[%c0_23, %c0_24] : memref<8x8xf32, #tpu.memory_space<vmem>>, vector<8x8xf32>
      %c0_25 = arith.constant 0 : index
      %c0_26 = arith.constant 0 : index
      %53 = vector.load %arg19[%c0_25, %c0_26] : memref<8x8xf32, #tpu.memory_space<vmem>>, vector<8x8xf32>
      %54 = arith.mulf %53, %51 : vector<8x8xf32>
      %55 = arith.addf %54, %52 : vector<8x8xf32>
      %c0_27 = arith.constant 0 : index
      %c0_28 = arith.constant 0 : index
      %56 = vector.load %arg8[%c0_27, %c0_28] : memref<128x128xbf16, #tpu.memory_space<vmem>>, vector<128x128xbf16>
      %c0_29 = arith.constant 0 : index
      %c0_30 = arith.constant 0 : index
      %57 = vector.load %arg9[%c0_29, %c0_30] : memref<1x128xf32, #tpu.memory_space<vmem>>, vector<1x128xf32>
      %cst_31 = arith.constant dense<0.000000e+00> : vector<8xf32>
      %58 = vector.multi_reduction <add>, %55, %cst_31 [1] : vector<8x8xf32> to vector<8xf32>
      %59 = vector.shape_cast %58 : vector<8xf32> to vector<8x1xf32>
      %cst_32 = arith.constant 9.99999996E-13 : f32
      %60 = vector.broadcast %cst_32 : f32 to vector<8x1xf32>
      %61 = arith.maximumf %59, %60 : vector<8x1xf32>
      %62 = math.rsqrt %61 : vector<8x1xf32>
      %63 = arith.truncf %30 : vector<8x128xf32> to vector<8x128xbf16>
      %cst_33 = arith.constant dense<0.000000e+00> : vector<8x128xf32>
      %64 = tpu.matmul %63, %56, %cst_33 {dimension_numbers = #tpu.dot_dimension_numbers<[1], [0], [0], [1], [0, 0, 1, 1], [], []>} : vector<8x128xbf16>, vector<128x128xbf16>, vector<8x128xf32> -> vector<8x128xf32>
      %65 = vector.broadcast %62 : vector<8x1xf32> to vector<8x128xf32>
      %66 = arith.mulf %65, %64 : vector<8x128xf32>
      %67 = arith.truncf %55 : vector<8x8xf32> to vector<8x8xbf16>
      %68 = arith.truncf %66 : vector<8x128xf32> to vector<8x128xbf16>
      %cst_34 = arith.constant dense<0.000000e+00> : vector<8x128xf32>
      %69 = tpu.matmul %67, %68, %cst_34 {dimension_numbers = #tpu.dot_dimension_numbers<[1], [0], [0], [1], [0, 0, 1, 1], [], []>} : vector<8x8xbf16>, vector<8x128xbf16>, vector<8x128xf32> -> vector<8x128xf32>
      %70 = vector.broadcast %62 : vector<8x1xf32> to vector<8x128xf32>
      %71 = arith.mulf %70, %69 : vector<8x128xf32>
      %72 = vector.broadcast %57 : vector<1x128xf32> to vector<8x128xf32>
      %73 = arith.addf %71, %72 : vector<8x128xf32>
      %cst_35 = arith.constant 0.000000e+00 : f32
      %74 = vector.broadcast %cst_35 : f32 to vector<8x128xf32>
      %75 = arith.maximumf %73, %74 : vector<8x128xf32>
      %76 = arith.addf %53, %52 : vector<8x8xf32>
      %c0_36 = arith.constant 0 : index
      %c0_37 = arith.constant 0 : index
      %77 = vector.load %arg10[%c0_36, %c0_37] : memref<128x128xbf16, #tpu.memory_space<vmem>>, vector<128x128xbf16>
      %c0_38 = arith.constant 0 : index
      %c0_39 = arith.constant 0 : index
      %78 = vector.load %arg11[%c0_38, %c0_39] : memref<1x128xf32, #tpu.memory_space<vmem>>, vector<1x128xf32>
      %cst_40 = arith.constant dense<0.000000e+00> : vector<8xf32>
      %79 = vector.multi_reduction <add>, %76, %cst_40 [1] : vector<8x8xf32> to vector<8xf32>
      %80 = vector.shape_cast %79 : vector<8xf32> to vector<8x1xf32>
      %cst_41 = arith.constant 9.99999996E-13 : f32
      %81 = vector.broadcast %cst_41 : f32 to vector<8x1xf32>
      %82 = arith.maximumf %80, %81 : vector<8x1xf32>
      %83 = math.rsqrt %82 : vector<8x1xf32>
      %84 = arith.truncf %75 : vector<8x128xf32> to vector<8x128xbf16>
      %cst_42 = arith.constant dense<0.000000e+00> : vector<8x128xf32>
      %85 = tpu.matmul %84, %77, %cst_42 {dimension_numbers = #tpu.dot_dimension_numbers<[1], [0], [0], [1], [0, 0, 1, 1], [], []>} : vector<8x128xbf16>, vector<128x128xbf16>, vector<8x128xf32> -> vector<8x128xf32>
      %86 = vector.broadcast %83 : vector<8x1xf32> to vector<8x128xf32>
      %87 = arith.mulf %86, %85 : vector<8x128xf32>
      %88 = arith.truncf %76 : vector<8x8xf32> to vector<8x8xbf16>
      %89 = arith.truncf %87 : vector<8x128xf32> to vector<8x128xbf16>
      %cst_43 = arith.constant dense<0.000000e+00> : vector<8x128xf32>
      %90 = tpu.matmul %88, %89, %cst_43 {dimension_numbers = #tpu.dot_dimension_numbers<[1], [0], [0], [1], [0, 0, 1, 1], [], []>} : vector<8x8xbf16>, vector<8x128xbf16>, vector<8x128xf32> -> vector<8x128xf32>
      %91 = vector.broadcast %83 : vector<8x1xf32> to vector<8x128xf32>
      %92 = arith.mulf %91, %90 : vector<8x128xf32>
      %93 = vector.broadcast %78 : vector<1x128xf32> to vector<8x128xf32>
      %94 = arith.addf %92, %93 : vector<8x128xf32>
      %c0_44 = arith.constant 0 : index
      %c0_45 = arith.constant 0 : index
      %95 = vector.load %arg16[%c0_44, %c0_45] : memref<2x4xf32, #tpu.memory_space<vmem>>, vector<2x4xf32>
      %cst_46 = arith.constant dense<0.000000e+00> : vector<2x128xf32>
      %96 = tpu.matmul %95, %13, %cst_46 {dimension_numbers = #tpu.dot_dimension_numbers<[1], [0], [0], [1], [0, 0, 1, 1], [], []>} : vector<2x4xf32>, vector<4x128xf32>, vector<2x128xf32> -> vector<2x128xf32>
      %97 = arith.extf %31 : vector<8x128xbf16> to vector<8x128xf32>
      %98 = vector.extract_strided_slice %97 {offsets = [0, 0], sizes = [2, 128], strides = [1, 1]} : vector<8x128xf32> to vector<2x128xf32>
      %99 = arith.truncf %94 : vector<8x128xf32> to vector<8x128xbf16>
      %100 = arith.truncf %98 : vector<2x128xf32> to vector<2x128xbf16>
      %cst_47 = arith.constant dense<0.000000e+00> : vector<8x2xf32>
      %101 = tpu.matmul %99, %100, %cst_47 {dimension_numbers = #tpu.dot_dimension_numbers<[1], [1], [0], [0], [0, 0, 1, 0], [], []>} : vector<8x128xbf16>, vector<2x128xbf16>, vector<8x2xf32> -> vector<8x2xf32>
      %102 = arith.truncf %98 : vector<2x128xf32> to vector<2x128xbf16>
      %103 = arith.truncf %94 : vector<8x128xf32> to vector<8x128xbf16>
      %cst_48 = arith.constant dense<0.000000e+00> : vector<2x8xf32>
      %104 = tpu.matmul %102, %103, %cst_48 {dimension_numbers = #tpu.dot_dimension_numbers<[1], [1], [0], [0], [0, 0, 1, 0], [], []>} : vector<2x128xbf16>, vector<8x128xbf16>, vector<2x8xf32> -> vector<2x8xf32>
      %105 = vector.extract_strided_slice %97 {offsets = [2, 0], sizes = [2, 128], strides = [1, 1]} : vector<8x128xf32> to vector<2x128xf32>
      %106 = arith.truncf %94 : vector<8x128xf32> to vector<8x128xbf16>
      %107 = arith.truncf %105 : vector<2x128xf32> to vector<2x128xbf16>
      %cst_49 = arith.constant dense<0.000000e+00> : vector<8x2xf32>
      %108 = tpu.matmul %106, %107, %cst_49 {dimension_numbers = #tpu.dot_dimension_numbers<[1], [1], [0], [0], [0, 0, 1, 0], [], []>} : vector<8x128xbf16>, vector<2x128xbf16>, vector<8x2xf32> -> vector<8x2xf32>
      %109 = arith.truncf %105 : vector<2x128xf32> to vector<2x128xbf16>
      %110 = arith.truncf %94 : vector<8x128xf32> to vector<8x128xbf16>
      %cst_50 = arith.constant dense<0.000000e+00> : vector<2x8xf32>
      %111 = tpu.matmul %109, %110, %cst_50 {dimension_numbers = #tpu.dot_dimension_numbers<[1], [1], [0], [0], [0, 0, 1, 0], [], []>} : vector<2x128xbf16>, vector<8x128xbf16>, vector<2x8xf32> -> vector<2x8xf32>
      %112 = vector.extract_strided_slice %97 {offsets = [4, 0], sizes = [2, 128], strides = [1, 1]} : vector<8x128xf32> to vector<2x128xf32>
      %113 = arith.truncf %94 : vector<8x128xf32> to vector<8x128xbf16>
      %114 = arith.truncf %112 : vector<2x128xf32> to vector<2x128xbf16>
      %cst_51 = arith.constant dense<0.000000e+00> : vector<8x2xf32>
      %115 = tpu.matmul %113, %114, %cst_51 {dimension_numbers = #tpu.dot_dimension_numbers<[1], [1], [0], [0], [0, 0, 1, 0], [], []>} : vector<8x128xbf16>, vector<2x128xbf16>, vector<8x2xf32> -> vector<8x2xf32>
      %116 = arith.truncf %112 : vector<2x128xf32> to vector<2x128xbf16>
      %117 = arith.truncf %94 : vector<8x128xf32> to vector<8x128xbf16>
      %cst_52 = arith.constant dense<0.000000e+00> : vector<2x8xf32>
      %118 = tpu.matmul %116, %117, %cst_52 {dimension_numbers = #tpu.dot_dimension_numbers<[1], [1], [0], [0], [0, 0, 1, 0], [], []>} : vector<2x128xbf16>, vector<8x128xbf16>, vector<2x8xf32> -> vector<2x8xf32>
      %119 = vector.extract_strided_slice %97 {offsets = [6, 0], sizes = [2, 128], strides = [1, 1]} : vector<8x128xf32> to vector<2x128xf32>
      %120 = arith.truncf %94 : vector<8x128xf32> to vector<8x128xbf16>
      %121 = arith.truncf %119 : vector<2x128xf32> to vector<2x128xbf16>
      %cst_53 = arith.constant dense<0.000000e+00> : vector<8x2xf32>
      %122 = tpu.matmul %120, %121, %cst_53 {dimension_numbers = #tpu.dot_dimension_numbers<[1], [1], [0], [0], [0, 0, 1, 0], [], []>} : vector<8x128xbf16>, vector<2x128xbf16>, vector<8x2xf32> -> vector<8x2xf32>
      %123 = arith.truncf %119 : vector<2x128xf32> to vector<2x128xbf16>
      %124 = arith.truncf %94 : vector<8x128xf32> to vector<8x128xbf16>
      %cst_54 = arith.constant dense<0.000000e+00> : vector<2x8xf32>
      %125 = tpu.matmul %123, %124, %cst_54 {dimension_numbers = #tpu.dot_dimension_numbers<[1], [1], [0], [0], [0, 0, 1, 0], [], []>} : vector<2x128xbf16>, vector<8x128xbf16>, vector<2x8xf32> -> vector<2x8xf32>
      %126 = tpu.concatenate %101, %108, %115, %122 in 0 : vector<8x2xf32>, vector<8x2xf32>, vector<8x2xf32>, vector<8x2xf32> -> vector<32x2xf32>
      %127 = tpu.concatenate %104, %111, %118, %125 in 1 : vector<2x8xf32>, vector<2x8xf32>, vector<2x8xf32>, vector<2x8xf32> -> vector<2x32xf32>
      %128 = tpu.iota {dimensions = array<i32: 0>} : vector<32x32xi32>
      %129 = tpu.iota {dimensions = array<i32: 1>} : vector<32x32xi32>
      %130 = arith.cmpi ne, %129, %128 : vector<32x32xi32>
      %131 = arith.cmpi slt, %129, %128 : vector<32x32xi32>
      %cst_55 = arith.constant 1.000000e+00 : f32
      %132 = vector.broadcast %cst_55 : f32 to vector<32x1xf32>
      %133 = vector.extract_strided_slice %126 {offsets = [0, 0], sizes = [32, 1], strides = [1, 1]} : vector<32x2xf32> to vector<32x1xf32>
      %134 = vector.extract_strided_slice %127 {offsets = [0, 0], sizes = [1, 32], strides = [1, 1]} : vector<2x32xf32> to vector<1x32xf32>
      %135 = vector.broadcast %134 : vector<1x32xf32> to vector<32x32xf32>
      %136 = vector.broadcast %133 : vector<32x1xf32> to vector<32x32xf32>
      %137 = arith.cmpf ogt, %135, %136 : vector<32x32xf32>
      %138 = arith.andi %137, %130 : vector<32x32xi1>
      %139 = vector.broadcast %134 : vector<1x32xf32> to vector<32x32xf32>
      %140 = vector.broadcast %133 : vector<32x1xf32> to vector<32x32xf32>
      %141 = arith.cmpf oeq, %139, %140 : vector<32x32xf32>
      %142 = arith.andi %141, %131 : vector<32x32xi1>
      %143 = arith.ori %138, %142 : vector<32x32xi1>
      %144 = arith.extui %143 : vector<32x32xi1> to vector<32x32xi32>
      %145 = arith.sitofp %144 : vector<32x32xi32> to vector<32x32xf32>
      %146 = arith.truncf %145 : vector<32x32xf32> to vector<32x32xbf16>
      %147 = arith.truncf %132 : vector<32x1xf32> to vector<32x1xbf16>
      %cst_56 = arith.constant dense<0.000000e+00> : vector<32x1xf32>
      %148 = tpu.matmul %146, %147, %cst_56 {dimension_numbers = #tpu.dot_dimension_numbers<[1], [0], [0], [1], [0, 0, 1, 1], [], []>} : vector<32x32xbf16>, vector<32x1xbf16>, vector<32x1xf32> -> vector<32x1xf32>
      %cst_57 = arith.constant 5.000000e+00 : f32
      %149 = vector.broadcast %cst_57 : f32 to vector<32x1xf32>
      %150 = arith.cmpf olt, %148, %149 : vector<32x1xf32>
      %151 = arith.extui %150 : vector<32x1xi1> to vector<32x1xi32>
      %152 = arith.sitofp %151 : vector<32x1xi32> to vector<32x1xf32>
      %153 = vector.extract_strided_slice %126 {offsets = [0, 1], sizes = [32, 1], strides = [1, 1]} : vector<32x2xf32> to vector<32x1xf32>
      %154 = vector.extract_strided_slice %127 {offsets = [1, 0], sizes = [1, 32], strides = [1, 1]} : vector<2x32xf32> to vector<1x32xf32>
      %155 = vector.broadcast %154 : vector<1x32xf32> to vector<32x32xf32>
      %156 = vector.broadcast %153 : vector<32x1xf32> to vector<32x32xf32>
      %157 = arith.cmpf ogt, %155, %156 : vector<32x32xf32>
      %158 = arith.andi %157, %130 : vector<32x32xi1>
      %159 = vector.broadcast %154 : vector<1x32xf32> to vector<32x32xf32>
      %160 = vector.broadcast %153 : vector<32x1xf32> to vector<32x32xf32>
      %161 = arith.cmpf oeq, %159, %160 : vector<32x32xf32>
      %162 = arith.andi %161, %131 : vector<32x32xi1>
      %163 = arith.ori %158, %162 : vector<32x32xi1>
      %164 = arith.extui %163 : vector<32x32xi1> to vector<32x32xi32>
      %165 = arith.sitofp %164 : vector<32x32xi32> to vector<32x32xf32>
      %166 = arith.truncf %165 : vector<32x32xf32> to vector<32x32xbf16>
      %167 = arith.truncf %132 : vector<32x1xf32> to vector<32x1xbf16>
      %cst_58 = arith.constant dense<0.000000e+00> : vector<32x1xf32>
      %168 = tpu.matmul %166, %167, %cst_58 {dimension_numbers = #tpu.dot_dimension_numbers<[1], [0], [0], [1], [0, 0, 1, 1], [], []>} : vector<32x32xbf16>, vector<32x1xbf16>, vector<32x1xf32> -> vector<32x1xf32>
      %cst_59 = arith.constant 5.000000e+00 : f32
      %169 = vector.broadcast %cst_59 : f32 to vector<32x1xf32>
      %170 = arith.cmpf olt, %168, %169 : vector<32x1xf32>
      %171 = arith.extui %170 : vector<32x1xi1> to vector<32x1xi32>
      %172 = arith.sitofp %171 : vector<32x1xi32> to vector<32x1xf32>
      %173 = tpu.concatenate %152, %172 in 1 : vector<32x1xf32>, vector<32x1xf32> -> vector<32x2xf32>
      %174 = arith.mulf %126, %173 : vector<32x2xf32>
      %cst_60 = arith.constant dense<0.000000e+00> : vector<2xf32>
      %175 = vector.multi_reduction <add>, %174, %cst_60 [0] : vector<32x2xf32> to vector<2xf32>
      %176 = vector.shape_cast %175 : vector<2xf32> to vector<1x2xf32>
      %cst_61 = arith.constant 2.000000e-01 : f32
      %177 = vector.broadcast %cst_61 : f32 to vector<1x2xf32>
      %178 = arith.mulf %176, %177 : vector<1x2xf32>
      %179 = arith.truncf %94 : vector<8x128xf32> to vector<8x128xbf16>
      %180 = arith.truncf %96 : vector<2x128xf32> to vector<2x128xbf16>
      %cst_62 = arith.constant dense<0.000000e+00> : vector<8x2xf32>
      %181 = tpu.matmul %179, %180, %cst_62 {dimension_numbers = #tpu.dot_dimension_numbers<[1], [1], [0], [0], [0, 0, 1, 0], [], []>} : vector<8x128xbf16>, vector<2x128xbf16>, vector<8x2xf32> -> vector<8x2xf32>
      %182 = arith.truncf %96 : vector<2x128xf32> to vector<2x128xbf16>
      %183 = arith.truncf %94 : vector<8x128xf32> to vector<8x128xbf16>
      %cst_63 = arith.constant dense<0.000000e+00> : vector<2x8xf32>
      %184 = tpu.matmul %182, %183, %cst_63 {dimension_numbers = #tpu.dot_dimension_numbers<[1], [1], [0], [0], [0, 0, 1, 0], [], []>} : vector<2x128xbf16>, vector<8x128xbf16>, vector<2x8xf32> -> vector<2x8xf32>
      %185 = tpu.iota {dimensions = array<i32: 0>} : vector<8x8xi32>
      %186 = tpu.iota {dimensions = array<i32: 1>} : vector<8x8xi32>
      %187 = arith.cmpi ne, %186, %185 : vector<8x8xi32>
      %188 = arith.cmpi slt, %186, %185 : vector<8x8xi32>
      %cst_64 = arith.constant 1.000000e+00 : f32
      %189 = vector.broadcast %cst_64 : f32 to vector<8x1xf32>
      %190 = vector.extract_strided_slice %181 {offsets = [0, 0], sizes = [8, 1], strides = [1, 1]} : vector<8x2xf32> to vector<8x1xf32>
      %191 = vector.extract_strided_slice %184 {offsets = [0, 0], sizes = [1, 8], strides = [1, 1]} : vector<2x8xf32> to vector<1x8xf32>
      %192 = vector.broadcast %191 : vector<1x8xf32> to vector<8x8xf32>
      %193 = vector.broadcast %190 : vector<8x1xf32> to vector<8x8xf32>
      %194 = arith.cmpf ogt, %192, %193 : vector<8x8xf32>
      %195 = arith.andi %194, %187 : vector<8x8xi1>
      %196 = vector.broadcast %191 : vector<1x8xf32> to vector<8x8xf32>
      %197 = vector.broadcast %190 : vector<8x1xf32> to vector<8x8xf32>
      %198 = arith.cmpf oeq, %196, %197 : vector<8x8xf32>
      %199 = arith.andi %198, %188 : vector<8x8xi1>
      %200 = arith.ori %195, %199 : vector<8x8xi1>
      %201 = arith.extui %200 : vector<8x8xi1> to vector<8x8xi32>
      %202 = arith.sitofp %201 : vector<8x8xi32> to vector<8x8xf32>
      %203 = arith.truncf %202 : vector<8x8xf32> to vector<8x8xbf16>
      %204 = arith.truncf %189 : vector<8x1xf32> to vector<8x1xbf16>
      %cst_65 = arith.constant dense<0.000000e+00> : vector<8x1xf32>
      %205 = tpu.matmul %203, %204, %cst_65 {dimension_numbers = #tpu.dot_dimension_numbers<[1], [0], [0], [1], [0, 0, 1, 1], [], []>} : vector<8x8xbf16>, vector<8x1xbf16>, vector<8x1xf32> -> vector<8x1xf32>
      %cst_66 = arith.constant 5.000000e+00 : f32
      %206 = vector.broadcast %cst_66 : f32 to vector<8x1xf32>
      %207 = arith.cmpf olt, %205, %206 : vector<8x1xf32>
      %208 = arith.extui %207 : vector<8x1xi1> to vector<8x1xi32>
      %209 = arith.sitofp %208 : vector<8x1xi32> to vector<8x1xf32>
      %210 = vector.extract_strided_slice %181 {offsets = [0, 1], sizes = [8, 1], strides = [1, 1]} : vector<8x2xf32> to vector<8x1xf32>
      %211 = vector.extract_strided_slice %184 {offsets = [1, 0], sizes = [1, 8], strides = [1, 1]} : vector<2x8xf32> to vector<1x8xf32>
      %212 = vector.broadcast %211 : vector<1x8xf32> to vector<8x8xf32>
      %213 = vector.broadcast %210 : vector<8x1xf32> to vector<8x8xf32>
      %214 = arith.cmpf ogt, %212, %213 : vector<8x8xf32>
      %215 = arith.andi %214, %187 : vector<8x8xi1>
      %216 = vector.broadcast %211 : vector<1x8xf32> to vector<8x8xf32>
      %217 = vector.broadcast %210 : vector<8x1xf32> to vector<8x8xf32>
      %218 = arith.cmpf oeq, %216, %217 : vector<8x8xf32>
      %219 = arith.andi %218, %188 : vector<8x8xi1>
      %220 = arith.ori %215, %219 : vector<8x8xi1>
      %221 = arith.extui %220 : vector<8x8xi1> to vector<8x8xi32>
      %222 = arith.sitofp %221 : vector<8x8xi32> to vector<8x8xf32>
      %223 = arith.truncf %222 : vector<8x8xf32> to vector<8x8xbf16>
      %224 = arith.truncf %189 : vector<8x1xf32> to vector<8x1xbf16>
      %cst_67 = arith.constant dense<0.000000e+00> : vector<8x1xf32>
      %225 = tpu.matmul %223, %224, %cst_67 {dimension_numbers = #tpu.dot_dimension_numbers<[1], [0], [0], [1], [0, 0, 1, 1], [], []>} : vector<8x8xbf16>, vector<8x1xbf16>, vector<8x1xf32> -> vector<8x1xf32>
      %cst_68 = arith.constant 5.000000e+00 : f32
      %226 = vector.broadcast %cst_68 : f32 to vector<8x1xf32>
      %227 = arith.cmpf olt, %225, %226 : vector<8x1xf32>
      %228 = arith.extui %227 : vector<8x1xi1> to vector<8x1xi32>
      %229 = arith.sitofp %228 : vector<8x1xi32> to vector<8x1xf32>
      %230 = tpu.concatenate %209, %229 in 1 : vector<8x1xf32>, vector<8x1xf32> -> vector<8x2xf32>
      %231 = arith.mulf %181, %230 : vector<8x2xf32>
      %cst_69 = arith.constant dense<0.000000e+00> : vector<2xf32>
      %232 = vector.multi_reduction <add>, %231, %cst_69 [0] : vector<8x2xf32> to vector<2xf32>
      %233 = vector.shape_cast %232 : vector<2xf32> to vector<1x2xf32>
      %cst_70 = arith.constant 2.000000e-01 : f32
      %234 = vector.broadcast %cst_70 : f32 to vector<1x2xf32>
      %235 = arith.mulf %233, %234 : vector<1x2xf32>
      %236 = arith.addf %178, %235 : vector<1x2xf32>
      %237 = vector.broadcast %2 : vector<1x1xf32> to vector<1x2xf32>
      %238 = arith.mulf %237, %236 : vector<1x2xf32>
      %cst_71 = arith.constant 0.000000e+00 : f32
      %239 = vector.broadcast %cst_71 : f32 to vector<1x126xf32>
      %240 = tpu.concatenate %238, %239 in 1 : vector<1x2xf32>, vector<1x126xf32> -> vector<1x128xf32>
      %c0_72 = arith.constant 0 : index
      %c0_73 = arith.constant 0 : index
      %c0_74 = arith.constant 0 : index
      %241 = vector.load %arg22[%c0_72, %c0_73, %c0_74] : memref<1x1x128xf32, #tpu.memory_space<vmem>>, vector<1x1x128xf32>
      %242 = vector.shape_cast %241 : vector<1x1x128xf32> to vector<1x128xf32>
      %243 = vector.shape_cast %240 : vector<1x128xf32> to vector<1x1x128xf32>
      tpu.vector_store %arg22[%c0_72, %c0_73, %c0_74], %243 {strides = array<i32>} : memref<1x1x128xf32, #tpu.memory_space<vmem>>, vector<1x1x128xf32>,
    } else {
    }
    %c1_i32 = arith.constant 1 : i32
    %17 = arith.cmpi eq, %arg0, %c1_i32 : i32
    %18 = arith.extui %17 : i1 to i32
    %c0_i32_8 = arith.constant 0 : i32
    %19 = arith.cmpi ne, %18, %c0_i32_8 : i32
    scf.if %19 {
      %c0_9 = arith.constant 0 : index
      %c0_10 = arith.constant 0 : index
      %20 = vector.load %arg1[%c0_9, %c0_10] : memref<128x128xbf16, #tpu.memory_space<vmem>>, vector<128x128xbf16>
      %c0_11 = arith.constant 0 : index
      %c0_12 = arith.constant 0 : index
      %21 = vector.load %arg2[%c0_11, %c0_12] : memref<128x128xbf16, #tpu.memory_space<vmem>>, vector<128x128xbf16>
      %cst_13 = arith.constant dense<0.000000e+00> : vector<128x128xf32>
      %22 = tpu.matmul %20, %21, %cst_13 {dimension_numbers = #tpu.dot_dimension_numbers<[1], [0], [0], [1], [0, 0, 1, 1], [], []>} : vector<128x128xbf16>, vector<128x128xbf16>, vector<128x128xf32> -> vector<128x128xf32>
      %23 = arith.mulf %22, %22 : vector<128x128xf32>
      %cst_14 = arith.constant dense<0.000000e+00> : vector<128xf32>
      %24 = vector.multi_reduction <add>, %23, %cst_14 [1] : vector<128x128xf32> to vector<128xf32>
      %25 = vector.shape_cast %24 : vector<128xf32> to vector<128x1xf32>
      %cst_15 = arith.constant 1.000000e-24 : f32
      %26 = vector.broadcast %cst_15 : f32 to vector<128x1xf32>
      %27 = arith.maximumf %25, %26 : vector<128x1xf32>
      %28 = math.rsqrt %27 : vector<128x1xf32>
      %29 = vector.broadcast %28 : vector<128x1xf32> to vector<128x128xf32>
      %30 = arith.mulf %22, %29 : vector<128x128xf32>
      %31 = arith.truncf %13 : vector<4x128xf32> to vector<4x128xbf16>
      %32 = arith.truncf %30 : vector<128x128xf32> to vector<128x128xbf16>
      %cst_16 = arith.constant dense<0.000000e+00> : vector<4x128xf32>
      %33 = tpu.matmul %31, %32, %cst_16 {dimension_numbers = #tpu.dot_dimension_numbers<[1], [1], [0], [0], [0, 0, 1, 0], [], []>} : vector<4x128xbf16>, vector<128x128xbf16>, vector<4x128xf32> -> vector<4x128xf32>
      %34 = vector.extract_strided_slice %33 {offsets = [0, 0], sizes = [2, 128], strides = [1, 1]} : vector<4x128xf32> to vector<2x128xf32>
      %35 = arith.truncf %34 : vector<2x128xf32> to vector<2x128xbf16>
      %36 = arith.truncf %34 : vector<2x128xf32> to vector<2x128xbf16>
      %cst_17 = arith.constant dense<0.000000e+00> : vector<2x2xf32>
      %37 = tpu.matmul %35, %36, %cst_17 {dimension_numbers = #tpu.dot_dimension_numbers<[1], [1], [0], [0], [0, 0, 1, 0], [], []>} : vector<2x128xbf16>, vector<2x128xbf16>, vector<2x2xf32> -> vector<2x2xf32>
      %38 = vector.extract_strided_slice %33 {offsets = [2, 0], sizes = [2, 128], strides = [1, 1]} : vector<4x128xf32> to vector<2x128xf32>
      %39 = arith.truncf %38 : vector<2x128xf32> to vector<2x128xbf16>
      %40 = arith.truncf %38 : vector<2x128xf32> to vector<2x128xbf16>
      %cst_18 = arith.constant dense<0.000000e+00> : vector<2x2xf32>
      %41 = tpu.matmul %39, %40, %cst_18 {dimension_numbers = #tpu.dot_dimension_numbers<[1], [1], [0], [0], [0, 0, 1, 0], [], []>} : vector<2x128xbf16>, vector<2x128xbf16>, vector<2x2xf32> -> vector<2x2xf32>
      %42 = arith.maximumf %37, %41 : vector<2x2xf32>
      %cst_19 = arith.constant dense<0xFF800000> : vector<2xf32>
      %43 = vector.multi_reduction <maximumf>, %42, %cst_19 [0] : vector<2x2xf32> to vector<2xf32>
      %44 = vector.shape_cast %43 : vector<2xf32> to vector<1x2xf32>
      %45 = vector.broadcast %44 : vector<1x2xf32> to vector<2x2xf32>
      %46 = arith.subf %42, %45 : vector<2x2xf32>
      %47 = math.exp %46 : vector<2x2xf32>
      %cst_20 = arith.constant dense<0.000000e+00> : vector<2xf32>
      %48 = vector.multi_reduction <add>, %47, %cst_20 [0] : vector<2x2xf32> to vector<2xf32>
      %49 = vector.shape_cast %48 : vector<2xf32> to vector<1x2xf32>
      %50 = vector.broadcast %49 : vector<1x2xf32> to vector<2x2xf32>
      %51 = arith.divf %47, %50 : vector<2x2xf32>
      %c0_21 = arith.constant 0 : index
      %c0_22 = arith.constant 0 : index
      %52 = vector.load %arg20[%c0_21, %c0_22] : memref<2x2xf32, #tpu.memory_space<vmem>>, vector<2x2xf32>
      %53 = arith.mulf %52, %51 : vector<2x2xf32>
      %c0_23 = arith.constant 0 : index
      %c0_24 = arith.constant 0 : index
      %54 = vector.load %arg12[%c0_23, %c0_24] : memref<128x128xbf16, #tpu.memory_space<vmem>>, vector<128x128xbf16>
      %c0_25 = arith.constant 0 : index
      %c0_26 = arith.constant 0 : index
      %55 = vector.load %arg13[%c0_25, %c0_26] : memref<1x128xf32, #tpu.memory_space<vmem>>, vector<1x128xf32>
      %56 = arith.truncf %30 : vector<128x128xf32> to vector<128x128xbf16>
      %cst_27 = arith.constant dense<0.000000e+00> : vector<128x128xf32>
      %57 = tpu.matmul %56, %54, %cst_27 {dimension_numbers = #tpu.dot_dimension_numbers<[1], [0], [0], [1], [0, 0, 1, 1], [], []>} : vector<128x128xbf16>, vector<128x128xbf16>, vector<128x128xf32> -> vector<128x128xf32>
      %cst_28 = arith.constant dense<0.000000e+00> : vector<2xf32>
      %58 = vector.multi_reduction <add>, %53, %cst_28 [1] : vector<2x2xf32> to vector<2xf32>
      %59 = vector.shape_cast %58 : vector<2xf32> to vector<2x1xf32>
      %cst_29 = arith.constant 1.000000e+00 : f32
      %60 = vector.broadcast %cst_29 : f32 to vector<2x1xf32>
      %61 = arith.addf %60, %59 : vector<2x1xf32>
      %62 = math.rsqrt %61 : vector<2x1xf32>
      %63 = vector.extract_strided_slice %57 {offsets = [0, 0], sizes = [2, 128], strides = [1, 1]} : vector<128x128xf32> to vector<2x128xf32>
      %64 = vector.broadcast %62 : vector<2x1xf32> to vector<2x128xf32>
      %65 = arith.mulf %64, %63 : vector<2x128xf32>
      %66 = arith.truncf %53 : vector<2x2xf32> to vector<2x2xbf16>
      %67 = arith.truncf %65 : vector<2x128xf32> to vector<2x128xbf16>
      %cst_30 = arith.constant dense<0.000000e+00> : vector<2x128xf32>
      %68 = tpu.matmul %66, %67, %cst_30 {dimension_numbers = #tpu.dot_dimension_numbers<[1], [0], [0], [1], [0, 0, 1, 1], [], []>} : vector<2x2xbf16>, vector<2x128xbf16>, vector<2x128xf32> -> vector<2x128xf32>
      %69 = vector.broadcast %62 : vector<2x1xf32> to vector<2x128xf32>
      %70 = arith.mulf %69, %68 : vector<2x128xf32>
      %cst_31 = arith.constant 1.000000e+00 : f32
      %71 = vector.broadcast %cst_31 : f32 to vector<2x1xf32>
      %72 = arith.divf %71, %61 : vector<2x1xf32>
      %cst_32 = arith.constant 1.000000e+00 : f32
      %73 = vector.broadcast %cst_32 : f32 to vector<126x1xf32>
      %74 = tpu.concatenate %72, %73 in 0 : vector<2x1xf32>, vector<126x1xf32> -> vector<128x1xf32>
      %75 = vector.broadcast %74 : vector<128x1xf32> to vector<128x128xf32>
      %76 = arith.mulf %75, %57 : vector<128x128xf32>
      %cst_33 = arith.constant 0.000000e+00 : f32
      %77 = vector.broadcast %cst_33 : f32 to vector<126x128xf32>
      %78 = tpu.concatenate %70, %77 in 0 : vector<2x128xf32>, vector<126x128xf32> -> vector<128x128xf32>
      %79 = arith.addf %76, %78 : vector<128x128xf32>
      %80 = vector.broadcast %55 : vector<1x128xf32> to vector<128x128xf32>
      %81 = arith.addf %79, %80 : vector<128x128xf32>
      %cst_34 = arith.constant 0.000000e+00 : f32
      %82 = vector.broadcast %cst_34 : f32 to vector<128x128xf32>
      %83 = arith.maximumf %81, %82 : vector<128x128xf32>
      %c0_35 = arith.constant 0 : index
      %c0_36 = arith.constant 0 : index
      %84 = vector.load %arg14[%c0_35, %c0_36] : memref<128x128xbf16, #tpu.memory_space<vmem>>, vector<128x128xbf16>
      %c0_37 = arith.constant 0 : index
      %c0_38 = arith.constant 0 : index
      %85 = vector.load %arg15[%c0_37, %c0_38] : memref<1x128xf32, #tpu.memory_space<vmem>>, vector<1x128xf32>
      %86 = arith.truncf %83 : vector<128x128xf32> to vector<128x128xbf16>
      %cst_39 = arith.constant dense<0.000000e+00> : vector<128x128xf32>
      %87 = tpu.matmul %86, %84, %cst_39 {dimension_numbers = #tpu.dot_dimension_numbers<[1], [0], [0], [1], [0, 0, 1, 1], [], []>} : vector<128x128xbf16>, vector<128x128xbf16>, vector<128x128xf32> -> vector<128x128xf32>
      %cst_40 = arith.constant dense<0.000000e+00> : vector<2xf32>
      %88 = vector.multi_reduction <add>, %52, %cst_40 [1] : vector<2x2xf32> to vector<2xf32>
      %89 = vector.shape_cast %88 : vector<2xf32> to vector<2x1xf32>
      %cst_41 = arith.constant 1.000000e+00 : f32
      %90 = vector.broadcast %cst_41 : f32 to vector<2x1xf32>
      %91 = arith.addf %90, %89 : vector<2x1xf32>
      %92 = math.rsqrt %91 : vector<2x1xf32>
      %93 = vector.extract_strided_slice %87 {offsets = [0, 0], sizes = [2, 128], strides = [1, 1]} : vector<128x128xf32> to vector<2x128xf32>
      %94 = vector.broadcast %92 : vector<2x1xf32> to vector<2x128xf32>
      %95 = arith.mulf %94, %93 : vector<2x128xf32>
      %96 = arith.truncf %52 : vector<2x2xf32> to vector<2x2xbf16>
      %97 = arith.truncf %95 : vector<2x128xf32> to vector<2x128xbf16>
      %cst_42 = arith.constant dense<0.000000e+00> : vector<2x128xf32>
      %98 = tpu.matmul %96, %97, %cst_42 {dimension_numbers = #tpu.dot_dimension_numbers<[1], [0], [0], [1], [0, 0, 1, 1], [], []>} : vector<2x2xbf16>, vector<2x128xbf16>, vector<2x128xf32> -> vector<2x128xf32>
      %99 = vector.broadcast %92 : vector<2x1xf32> to vector<2x128xf32>
      %100 = arith.mulf %99, %98 : vector<2x128xf32>
      %cst_43 = arith.constant 1.000000e+00 : f32
      %101 = vector.broadcast %cst_43 : f32 to vector<2x1xf32>
      %102 = arith.divf %101, %91 : vector<2x1xf32>
      %cst_44 = arith.constant 1.000000e+00 : f32
      %103 = vector.broadcast %cst_44 : f32 to vector<126x1xf32>
      %104 = tpu.concatenate %102, %103 in 0 : vector<2x1xf32>, vector<126x1xf32> -> vector<128x1xf32>
      %105 = vector.broadcast %104 : vector<128x1xf32> to vector<128x128xf32>
      %106 = arith.mulf %105, %87 : vector<128x128xf32>
      %cst_45 = arith.constant 0.000000e+00 : f32
      %107 = vector.broadcast %cst_45 : f32 to vector<126x128xf32>
      %108 = tpu.concatenate %100, %107 in 0 : vector<2x128xf32>, vector<126x128xf32> -> vector<128x128xf32>
      %109 = arith.addf %106, %108 : vector<128x128xf32>
      %110 = vector.broadcast %85 : vector<1x128xf32> to vector<128x128xf32>
      %111 = arith.addf %109, %110 : vector<128x128xf32>
      %112 = vector.extract_strided_slice %13 {offsets = [0, 0], sizes = [2, 128], strides = [1, 1]} : vector<4x128xf32> to vector<2x128xf32>
      %113 = arith.truncf %111 : vector<128x128xf32> to vector<128x128xbf16>
      %114 = arith.truncf %112 : vector<2x128xf32> to vector<2x128xbf16>
      %cst_46 = arith.constant dense<0.000000e+00> : vector<128x2xf32>
      %115 = tpu.matmul %113, %114, %cst_46 {dimension_numbers = #tpu.dot_dimension_numbers<[1], [1], [0], [0], [0, 0, 1, 0], [], []>} : vector<128x128xbf16>, vector<2x128xbf16>, vector<128x2xf32> -> vector<128x2xf32>
      %116 = arith.truncf %112 : vector<2x128xf32> to vector<2x128xbf16>
      %117 = arith.truncf %111 : vector<128x128xf32> to vector<128x128xbf16>
      %cst_47 = arith.constant dense<0.000000e+00> : vector<2x128xf32>
      %118 = tpu.matmul %116, %117, %cst_47 {dimension_numbers = #tpu.dot_dimension_numbers<[1], [1], [0], [0], [0, 0, 1, 0], [], []>} : vector<2x128xbf16>, vector<128x128xbf16>, vector<2x128xf32> -> vector<2x128xf32>
      %119 = vector.extract_strided_slice %13 {offsets = [2, 0], sizes = [2, 128], strides = [1, 1]} : vector<4x128xf32> to vector<2x128xf32>
      %120 = arith.truncf %111 : vector<128x128xf32> to vector<128x128xbf16>
      %121 = arith.truncf %119 : vector<2x128xf32> to vector<2x128xbf16>
      %cst_48 = arith.constant dense<0.000000e+00> : vector<128x2xf32>
      %122 = tpu.matmul %120, %121, %cst_48 {dimension_numbers = #tpu.dot_dimension_numbers<[1], [1], [0], [0], [0, 0, 1, 0], [], []>} : vector<128x128xbf16>, vector<2x128xbf16>, vector<128x2xf32> -> vector<128x2xf32>
      %123 = arith.truncf %119 : vector<2x128xf32> to vector<2x128xbf16>
      %124 = arith.truncf %111 : vector<128x128xf32> to vector<128x128xbf16>
      %cst_49 = arith.constant dense<0.000000e+00> : vector<2x128xf32>
      %125 = tpu.matmul %123, %124, %cst_49 {dimension_numbers = #tpu.dot_dimension_numbers<[1], [1], [0], [0], [0, 0, 1, 0], [], []>} : vector<2x128xbf16>, vector<128x128xbf16>, vector<2x128xf32> -> vector<2x128xf32>
      %126 = tpu.concatenate %115, %122 in 0 : vector<128x2xf32>, vector<128x2xf32> -> vector<256x2xf32>
      %127 = tpu.concatenate %118, %125 in 1 : vector<2x128xf32>, vector<2x128xf32> -> vector<2x256xf32>
      %128 = tpu.iota {dimensions = array<i32: 0>} : vector<256x256xi32>
      %129 = tpu.iota {dimensions = array<i32: 1>} : vector<256x256xi32>
      %130 = arith.cmpi ne, %129, %128 : vector<256x256xi32>
      %131 = arith.cmpi slt, %129, %128 : vector<256x256xi32>
      %cst_50 = arith.constant 1.000000e+00 : f32
      %132 = vector.broadcast %cst_50 : f32 to vector<256x1xf32>
      %133 = vector.extract_strided_slice %126 {offsets = [0, 0], sizes = [256, 1], strides = [1, 1]} : vector<256x2xf32> to vector<256x1xf32>
      %134 = vector.extract_strided_slice %127 {offsets = [0, 0], sizes = [1, 256], strides = [1, 1]} : vector<2x256xf32> to vector<1x256xf32>
      %135 = vector.broadcast %134 : vector<1x256xf32> to vector<256x256xf32>
      %136 = vector.broadcast %133 : vector<256x1xf32> to vector<256x256xf32>
      %137 = arith.cmpf ogt, %135, %136 : vector<256x256xf32>
      %138 = arith.andi %137, %130 : vector<256x256xi1>
      %139 = vector.broadcast %134 : vector<1x256xf32> to vector<256x256xf32>
      %140 = vector.broadcast %133 : vector<256x1xf32> to vector<256x256xf32>
      %141 = arith.cmpf oeq, %139, %140 : vector<256x256xf32>
      %142 = arith.andi %141, %131 : vector<256x256xi1>
      %143 = arith.ori %138, %142 : vector<256x256xi1>
      %144 = arith.extui %143 : vector<256x256xi1> to vector<256x256xi32>
      %145 = arith.sitofp %144 : vector<256x256xi32> to vector<256x256xf32>
      %146 = arith.truncf %145 : vector<256x256xf32> to vector<256x256xbf16>
      %147 = arith.truncf %132 : vector<256x1xf32> to vector<256x1xbf16>
      %cst_51 = arith.constant dense<0.000000e+00> : vector<256x1xf32>
      %148 = tpu.matmul %146, %147, %cst_51 {dimension_numbers = #tpu.dot_dimension_numbers<[1], [0], [0], [1], [0, 0, 1, 1], [], []>} : vector<256x256xbf16>, vector<256x1xbf16>, vector<256x1xf32> -> vector<256x1xf32>
      %cst_52 = arith.constant 1.000000e+02 : f32
      %149 = vector.broadcast %cst_52 : f32 to vector<256x1xf32>
      %150 = arith.cmpf olt, %148, %149 : vector<256x1xf32>
      %151 = arith.extui %150 : vector<256x1xi1> to vector<256x1xi32>
      %152 = arith.sitofp %151 : vector<256x1xi32> to vector<256x1xf32>
      %153 = vector.extract_strided_slice %126 {offsets = [0, 1], sizes = [256, 1], strides = [1, 1]} : vector<256x2xf32> to vector<256x1xf32>
      %154 = vector.extract_strided_slice %127 {offsets = [1, 0], sizes = [1, 256], strides = [1, 1]} : vector<2x256xf32> to vector<1x256xf32>
      %155 = vector.broadcast %154 : vector<1x256xf32> to vector<256x256xf32>
      %156 = vector.broadcast %153 : vector<256x1xf32> to vector<256x256xf32>
      %157 = arith.cmpf ogt, %155, %156 : vector<256x256xf32>
      %158 = arith.andi %157, %130 : vector<256x256xi1>
      %159 = vector.broadcast %154 : vector<1x256xf32> to vector<256x256xf32>
      %160 = vector.broadcast %153 : vector<256x1xf32> to vector<256x256xf32>
      %161 = arith.cmpf oeq, %159, %160 : vector<256x256xf32>
      %162 = arith.andi %161, %131 : vector<256x256xi1>
      %163 = arith.ori %158, %162 : vector<256x256xi1>
      %164 = arith.extui %163 : vector<256x256xi1> to vector<256x256xi32>
      %165 = arith.sitofp %164 : vector<256x256xi32> to vector<256x256xf32>
      %166 = arith.truncf %165 : vector<256x256xf32> to vector<256x256xbf16>
      %167 = arith.truncf %132 : vector<256x1xf32> to vector<256x1xbf16>
      %cst_53 = arith.constant dense<0.000000e+00> : vector<256x1xf32>
      %168 = tpu.matmul %166, %167, %cst_53 {dimension_numbers = #tpu.dot_dimension_numbers<[1], [0], [0], [1], [0, 0, 1, 1], [], []>} : vector<256x256xbf16>, vector<256x1xbf16>, vector<256x1xf32> -> vector<256x1xf32>
      %cst_54 = arith.constant 1.000000e+02 : f32
      %169 = vector.broadcast %cst_54 : f32 to vector<256x1xf32>
      %170 = arith.cmpf olt, %168, %169 : vector<256x1xf32>
      %171 = arith.extui %170 : vector<256x1xi1> to vector<256x1xi32>
      %172 = arith.sitofp %171 : vector<256x1xi32> to vector<256x1xf32>
      %173 = tpu.concatenate %152, %172 in 1 : vector<256x1xf32>, vector<256x1xf32> -> vector<256x2xf32>
      %174 = arith.mulf %126, %173 : vector<256x2xf32>
      %cst_55 = arith.constant dense<0.000000e+00> : vector<2xf32>
      %175 = vector.multi_reduction <add>, %174, %cst_55 [0] : vector<256x2xf32> to vector<2xf32>
      %176 = vector.shape_cast %175 : vector<2xf32> to vector<1x2xf32>
      %cst_56 = arith.constant 0.00999999977 : f32
      %177 = vector.broadcast %cst_56 : f32 to vector<1x2xf32>
      %178 = arith.mulf %176, %177 : vector<1x2xf32>
      %c0_57 = arith.constant 0 : index
      %c0_58 = arith.constant 0 : index
      %179 = vector.load %arg17[%c0_57, %c0_58] : memref<2x128xf32, #tpu.memory_space<vmem>>, vector<2x128xf32>
      %180 = arith.truncf %111 : vector<128x128xf32> to vector<128x128xbf16>
      %181 = arith.truncf %179 : vector<2x128xf32> to vector<2x128xbf16>
      %cst_59 = arith.constant dense<0.000000e+00> : vector<128x2xf32>
      %182 = tpu.matmul %180, %181, %cst_59 {dimension_numbers = #tpu.dot_dimension_numbers<[1], [1], [0], [0], [0, 0, 1, 0], [], []>} : vector<128x128xbf16>, vector<2x128xbf16>, vector<128x2xf32> -> vector<128x2xf32>
      %183 = arith.truncf %179 : vector<2x128xf32> to vector<2x128xbf16>
      %184 = arith.truncf %111 : vector<128x128xf32> to vector<128x128xbf16>
      %cst_60 = arith.constant dense<0.000000e+00> : vector<2x128xf32>
      %185 = tpu.matmul %183, %184, %cst_60 {dimension_numbers = #tpu.dot_dimension_numbers<[1], [1], [0], [0], [0, 0, 1, 0], [], []>} : vector<2x128xbf16>, vector<128x128xbf16>, vector<2x128xf32> -> vector<2x128xf32>
      %186 = tpu.iota {dimensions = array<i32: 0>} : vector<128x128xi32>
      %187 = tpu.iota {dimensions = array<i32: 1>} : vector<128x128xi32>
      %188 = arith.cmpi ne, %187, %186 : vector<128x128xi32>
      %189 = arith.cmpi slt, %187, %186 : vector<128x128xi32>
      %cst_61 = arith.constant 1.000000e+00 : f32
      %190 = vector.broadcast %cst_61 : f32 to vector<128x1xf32>
      %191 = vector.extract_strided_slice %182 {offsets = [0, 0], sizes = [128, 1], strides = [1, 1]} : vector<128x2xf32> to vector<128x1xf32>
      %192 = vector.extract_strided_slice %185 {offsets = [0, 0], sizes = [1, 128], strides = [1, 1]} : vector<2x128xf32> to vector<1x128xf32>
      %193 = vector.broadcast %192 : vector<1x128xf32> to vector<128x128xf32>
      %194 = vector.broadcast %191 : vector<128x1xf32> to vector<128x128xf32>
      %195 = arith.cmpf ogt, %193, %194 : vector<128x128xf32>
      %196 = arith.andi %195, %188 : vector<128x128xi1>
      %197 = vector.broadcast %192 : vector<1x128xf32> to vector<128x128xf32>
      %198 = vector.broadcast %191 : vector<128x1xf32> to vector<128x128xf32>
      %199 = arith.cmpf oeq, %197, %198 : vector<128x128xf32>
      %200 = arith.andi %199, %189 : vector<128x128xi1>
      %201 = arith.ori %196, %200 : vector<128x128xi1>
      %202 = arith.extui %201 : vector<128x128xi1> to vector<128x128xi32>
      %203 = arith.sitofp %202 : vector<128x128xi32> to vector<128x128xf32>
      %204 = arith.truncf %203 : vector<128x128xf32> to vector<128x128xbf16>
      %205 = arith.truncf %190 : vector<128x1xf32> to vector<128x1xbf16>
      %cst_62 = arith.constant dense<0.000000e+00> : vector<128x1xf32>
      %206 = tpu.matmul %204, %205, %cst_62 {dimension_numbers = #tpu.dot_dimension_numbers<[1], [0], [0], [1], [0, 0, 1, 1], [], []>} : vector<128x128xbf16>, vector<128x1xbf16>, vector<128x1xf32> -> vector<128x1xf32>
      %cst_63 = arith.constant 1.000000e+02 : f32
      %207 = vector.broadcast %cst_63 : f32 to vector<128x1xf32>
      %208 = arith.cmpf olt, %206, %207 : vector<128x1xf32>
      %209 = arith.extui %208 : vector<128x1xi1> to vector<128x1xi32>
      %210 = arith.sitofp %209 : vector<128x1xi32> to vector<128x1xf32>
      %211 = vector.extract_strided_slice %182 {offsets = [0, 1], sizes = [128, 1], strides = [1, 1]} : vector<128x2xf32> to vector<128x1xf32>
      %212 = vector.extract_strided_slice %185 {offsets = [1, 0], sizes = [1, 128], strides = [1, 1]} : vector<2x128xf32> to vector<1x128xf32>
      %213 = vector.broadcast %212 : vector<1x128xf32> to vector<128x128xf32>
      %214 = vector.broadcast %211 : vector<128x1xf32> to vector<128x128xf32>
      %215 = arith.cmpf ogt, %213, %214 : vector<128x128xf32>
      %216 = arith.andi %215, %188 : vector<128x128xi1>
      %217 = vector.broadcast %212 : vector<1x128xf32> to vector<128x128xf32>
      %218 = vector.broadcast %211 : vector<128x1xf32> to vector<128x128xf32>
      %219 = arith.cmpf oeq, %217, %218 : vector<128x128xf32>
      %220 = arith.andi %219, %189 : vector<128x128xi1>
      %221 = arith.ori %216, %220 : vector<128x128xi1>
      %222 = arith.extui %221 : vector<128x128xi1> to vector<128x128xi32>
      %223 = arith.sitofp %222 : vector<128x128xi32> to vector<128x128xf32>
      %224 = arith.truncf %223 : vector<128x128xf32> to vector<128x128xbf16>
      %225 = arith.truncf %190 : vector<128x1xf32> to vector<128x1xbf16>
      %cst_64 = arith.constant dense<0.000000e+00> : vector<128x1xf32>
      %226 = tpu.matmul %224, %225, %cst_64 {dimension_numbers = #tpu.dot_dimension_numbers<[1], [0], [0], [1], [0, 0, 1, 1], [], []>} : vector<128x128xbf16>, vector<128x1xbf16>, vector<128x1xf32> -> vector<128x1xf32>
      %cst_65 = arith.constant 1.000000e+02 : f32
      %227 = vector.broadcast %cst_65 : f32 to vector<128x1xf32>
      %228 = arith.cmpf olt, %226, %227 : vector<128x1xf32>
      %229 = arith.extui %228 : vector<128x1xi1> to vector<128x1xi32>
      %230 = arith.sitofp %229 : vector<128x1xi32> to vector<128x1xf32>
      %231 = tpu.concatenate %210, %230 in 1 : vector<128x1xf32>, vector<128x1xf32> -> vector<128x2xf32>
      %232 = arith.mulf %182, %231 : vector<128x2xf32>
      %cst_66 = arith.constant dense<0.000000e+00> : vector<2xf32>
      %233 = vector.multi_reduction <add>, %232, %cst_66 [0] : vector<128x2xf32> to vector<2xf32>
      %234 = vector.shape_cast %233 : vector<2xf32> to vector<1x2xf32>
      %cst_67 = arith.constant 0.00999999977 : f32
      %235 = vector.broadcast %cst_67 : f32 to vector<1x2xf32>
      %236 = arith.mulf %234, %235 : vector<1x2xf32>
      %237 = arith.addf %178, %236 : vector<1x2xf32>
      %238 = vector.broadcast %2 : vector<1x1xf32> to vector<1x2xf32>
      %239 = arith.mulf %238, %237 : vector<1x2xf32>
      %cst_68 = arith.constant 0.000000e+00 : f32
      %240 = vector.broadcast %cst_68 : f32 to vector<1x126xf32>
      %241 = tpu.concatenate %239, %240 in 1 : vector<1x2xf32>, vector<1x126xf32> -> vector<1x128xf32>
      %c0_69 = arith.constant 0 : index
      %c0_70 = arith.constant 0 : index
      %c0_71 = arith.constant 0 : index
      %242 = vector.load %arg22[%c0_69, %c0_70, %c0_71] : memref<1x1x128xf32, #tpu.memory_space<vmem>>, vector<1x1x128xf32>
      %243 = vector.shape_cast %242 : vector<1x1x128xf32> to vector<1x128xf32>
      %244 = vector.shape_cast %241 : vector<1x128xf32> to vector<1x1x128xf32>
      tpu.vector_store %arg22[%c0_69, %c0_70, %c0_71], %244 {strides = array<i32>} : memref<1x1x128xf32, #tpu.memory_space<vmem>>, vector<1x1x128xf32>,
    } else {
    }
    return
  }
  func.func @transform_0(%arg0: i32) -> (i32, i32) {
    %c0_i32 = arith.constant 0 : i32
    %c0_i32_0 = arith.constant 0 : i32
    %c0_i32_1 = arith.constant 0 : i32
    return %c0_i32, %c0_i32_0 : i32, i32
  }
  func.func @transform_1(%arg0: i32) -> (i32, i32) {
    %c0_i32 = arith.constant 0 : i32
    %c0_i32_0 = arith.constant 0 : i32
    %c0_i32_1 = arith.constant 0 : i32
    return %c0_i32, %c0_i32_0 : i32, i32
  }
  func.func @transform_2(%arg0: i32) -> (i32, i32) {
    %c0_i32 = arith.constant 0 : i32
    %c0_i32_0 = arith.constant 0 : i32
    %c0_i32_1 = arith.constant 0 : i32
    return %c0_i32, %c0_i32_0 : i32, i32
  }
  func.func @transform_3(%arg0: i32) -> (i32, i32) {
    %c0_i32 = arith.constant 0 : i32
    %c0_i32_0 = arith.constant 0 : i32
    %c0_i32_1 = arith.constant 0 : i32
    return %c0_i32, %c0_i32_0 : i32, i32
  }
  func.func @transform_4(%arg0: i32) -> (i32, i32) {
    %c0_i32 = arith.constant 0 : i32
    %c0_i32_0 = arith.constant 0 : i32
    %c0_i32_1 = arith.constant 0 : i32
    return %c0_i32, %c0_i32_0 : i32, i32
  }
  func.func @transform_5(%arg0: i32) -> (i32, i32) {
    %c0_i32 = arith.constant 0 : i32
    %c0_i32_0 = arith.constant 0 : i32
    %c0_i32_1 = arith.constant 0 : i32
    return %c0_i32, %c0_i32_0 : i32, i32
  }
  func.func @transform_6(%arg0: i32) -> (i32, i32) {
    %c0_i32 = arith.constant 0 : i32
    %c0_i32_0 = arith.constant 0 : i32
    %c0_i32_1 = arith.constant 0 : i32
    return %c0_i32, %c0_i32_0 : i32, i32
  }
  func.func @transform_7(%arg0: i32) -> (i32, i32) {
    %c0_i32 = arith.constant 0 : i32
    %c0_i32_0 = arith.constant 0 : i32
    %c0_i32_1 = arith.constant 0 : i32
    return %c0_i32, %c0_i32_0 : i32, i32
  }
  func.func @transform_8(%arg0: i32) -> (i32, i32) {
    %c0_i32 = arith.constant 0 : i32
    %c0_i32_0 = arith.constant 0 : i32
    %c0_i32_1 = arith.constant 0 : i32
    return %c0_i32, %c0_i32_0 : i32, i32
  }
  func.func @transform_9(%arg0: i32) -> (i32, i32) {
    %c0_i32 = arith.constant 0 : i32
    %c0_i32_0 = arith.constant 0 : i32
    %c0_i32_1 = arith.constant 0 : i32
    return %c0_i32, %c0_i32_0 : i32, i32
  }
  func.func @transform_10(%arg0: i32) -> (i32, i32) {
    %c0_i32 = arith.constant 0 : i32
    %c0_i32_0 = arith.constant 0 : i32
    %c0_i32_1 = arith.constant 0 : i32
    return %c0_i32, %c0_i32_0 : i32, i32
  }
  func.func @transform_11(%arg0: i32) -> (i32, i32) {
    %c0_i32 = arith.constant 0 : i32
    %c0_i32_0 = arith.constant 0 : i32
    %c0_i32_1 = arith.constant 0 : i32
    return %c0_i32, %c0_i32_0 : i32, i32
  }
  func.func @transform_12(%arg0: i32) -> (i32, i32) {
    %c0_i32 = arith.constant 0 : i32
    %c0_i32_0 = arith.constant 0 : i32
    %c0_i32_1 = arith.constant 0 : i32
    return %c0_i32, %c0_i32_0 : i32, i32
  }
  func.func @transform_13(%arg0: i32) -> (i32, i32) {
    %c0_i32 = arith.constant 0 : i32
    %c0_i32_0 = arith.constant 0 : i32
    %c0_i32_1 = arith.constant 0 : i32
    return %c0_i32, %c0_i32_0 : i32, i32
  }
  func.func @transform_14(%arg0: i32) -> (i32, i32) {
    %c0_i32 = arith.constant 0 : i32
    %c0_i32_0 = arith.constant 0 : i32
    %c0_i32_1 = arith.constant 0 : i32
    return %c0_i32, %c0_i32_0 : i32, i32
  }
  func.func @transform_15(%arg0: i32) -> (i32, i32) {
    %c0_i32 = arith.constant 0 : i32
    %c0_i32_0 = arith.constant 0 : i32
    %c0_i32_1 = arith.constant 0 : i32
    return %c0_i32, %c0_i32_0 : i32, i32
  }
  func.func @transform_16(%arg0: i32) -> (i32, i32) {
    %c0_i32 = arith.constant 0 : i32
    %c0_i32_0 = arith.constant 0 : i32
    %c0_i32_1 = arith.constant 0 : i32
    return %c0_i32, %c0_i32_0 : i32, i32
  }
  func.func @transform_17(%arg0: i32) -> (i32, i32) {
    %c0_i32 = arith.constant 0 : i32
    %c0_i32_0 = arith.constant 0 : i32
    %c0_i32_1 = arith.constant 0 : i32
    return %c0_i32, %c0_i32_0 : i32, i32
  }
  func.func @transform_18(%arg0: i32) -> (i32, i32) {
    %c0_i32 = arith.constant 0 : i32
    %c0_i32_0 = arith.constant 0 : i32
    %c0_i32_1 = arith.constant 0 : i32
    return %c0_i32, %c0_i32_0 : i32, i32
  }
  func.func @transform_19(%arg0: i32) -> (i32, i32) {
    %c0_i32 = arith.constant 0 : i32
    %c0_i32_0 = arith.constant 0 : i32
    %c0_i32_1 = arith.constant 0 : i32
    return %c0_i32, %c0_i32_0 : i32, i32
  }
  func.func @transform_20(%arg0: i32) -> (i32, i32) {
    %c0_i32 = arith.constant 0 : i32
    %c0_i32_0 = arith.constant 0 : i32
    %c0_i32_1 = arith.constant 0 : i32
    return %c0_i32, %c0_i32_0 : i32, i32
  }
  func.func @transform_21(%arg0: i32) -> (i32, i32, i32) {
    %c0_i32 = arith.constant 0 : i32
    %c0_i32_0 = arith.constant 0 : i32
    %c0_i32_1 = arith.constant 0 : i32
    return %arg0, %c0_i32, %c0_i32_0 : i32, i32, i32
  }
}

</mosaic_0001>

<bundles_post_ra>
// kernel: mscpt_forward.1
= control target key start
LH: loop header
LB: loop body
LE: loop exit
PB: predicated region body
PF: predicated region fallthrough
CT: control target
= control target key end

     0   :  { %s9367_s26 = smov 0   ;;  %s13550_s0 = inlined_call_operand.vmem [shape: bf16[128,128], index: 0, kind: input, shape index: {}]   ;;  %s13551_s1 = inlined_call_operand.vmem [shape: bf16[128,128], index: 1, kind: input, shape index: {}]   ;;  %s13552_s2 = inlined_call_operand.vmem [shape: bf16[8,128], index: 2, kind: input, shape index: {}]   ;;  %s13553_s3 = inlined_call_operand.vmem [shape: bf16[4,128], index: 3, kind: input, shape index: {}]   ;;  %s13554_s4 = inlined_call_operand.vmem [shape: bf16[128,128], index: 4, kind: input, shape index: {}]   ;;  %s13555_s5 = inlined_call_operand.vmem [shape: bf16[8,768], index: 5, kind: input, shape index: {}]   ;;  %s13556_s6 = inlined_call_operand.vmem [shape: bf16[768,128], index: 6, kind: input, shape index: {}]   ;;  %s13557_s7 = inlined_call_operand.vmem [shape: bf16[128,128], index: 7, kind: input, shape index: {}]   ;;  %s13558_s8 = inlined_call_operand.vmem [shape: f32[1,128], index: 8, kind: input, shape index: {}]   ;;  %s13559_s9 = inlined_call_operand.vmem [shape: bf16[128,128], index: 9, kind: input, shape index: {}]   ;;  %s13560_s10 = inlined_call_operand.vmem [shape: f32[1,128], index: 10, kind: input, shape index: {}]   ;;  %s13561_s11 = inlined_call_operand.vmem [shape: bf16[128,128], index: 11, kind: input, shape index: {}]   ;;  %s13562_s12 = inlined_call_operand.vmem [shape: f32[1,128], index: 12, kind: input, shape index: {}]   ;;  %s13563_s13 = inlined_call_operand.vmem [shape: bf16[128,128], index: 13, kind: input, shape index: {}]   ;;  %s13564_s14 = inlined_call_operand.vmem [shape: f32[1,128], index: 14, kind: input, shape index: {}]   ;;  %s13565_s15 = inlined_call_operand.vmem [shape: f32[2,4], index: 15, kind: input, shape index: {}]   ;;  %s13566_s16 = inlined_call_operand.vmem [shape: f32[2,128], index: 16, kind: input, shape index: {}]   ;;  %s13567_s17 = inlined_call_operand.vmem [shape: f32[8,8], index: 17, kind: input, shape index: {}]   ;;  %s13568_s18 = inlined_call_operand.vmem [shape: f32[8,8], index: 18, kind: input, shape index: {}]   ;;  %s13569_s19 = inlined_call_operand.vmem [shape: f32[2,2], index: 19, kind: input, shape index: {}]   ;;  %s13570_s20 = inlined_call_operand.<no memory space> [shape: f32[1,1], index: 20, kind: input, shape index: {}]   ;;  %s13571_s21 = inlined_call_operand.vmem [shape: f32[2,1,128], index: 21, kind: output, shape index: {}]  }
   0x1   :  { %13738 = sst [smem:[#allocation94_spill]] %s13550_s0 }
   0x2   :  { %13739 = sst [smem:[#allocation95_spill]] %s13551_s1 }
   0x3   :  { %13740 = sst [smem:[#allocation96_spill]] %s13552_s2 }
   0x4   :  { %13741 = sst [smem:[#allocation97_spill]] %s13553_s3 }
   0x5   :  { %13742 = sst [smem:[#allocation98_spill]] %s13554_s4 }
   0x6   :  { %13743 = sst [smem:[#allocation99_spill]] %s13555_s5 }
   0x7   :  { %26 = sst [smem:[#allocation2]] %s13570_s20 }
   0x8 LB: > { %s9373_s27 = sadd.s32 4294967295, %s9233_s26   ;;  %p7291_p0 = scmp.ge.s32.totalorder %s9233_s26, 1  ;;  %s9233_s26 = sphi %s9367_s26, %s32_s26  }
   0x9   : > { %p578_p1 = scmp.lt.s32.totalorder %s9233_s26, 3 }
   0xb   : > { %p579_p2 = pnand %p7291_p0, %p578_p1 }
   0xd   : > { %582 = sbr.rel (%p579_p2) target bundleno = 6568 (0x19a8), region = 104 }
  0x14   : > { %p631_p3 = scmp.lt.s32.totalorder %s9373_s27, 1  ;;  %s636_s20 = sld [smem:[#allocation2]]  ;;  %v9235_v0 = vmov 0.0   ;;  %vm9236_vm0 = vmmov 0   ;;  %vm13577_vm1 = vcmask 1043456  }
  0x15   : > { %8373 = vmatprep.subr.bf16.mxu0 %v9235_v0  ;;  %s13744_s29 = sld [smem:[#allocation98_spill]]  ;;  %8389 = vmatprep.mubr.msk.bf16.mxu0 %vm9236_vm0, %v9235_v0  ;;  %s13746_s2 = sld [smem:[#allocation97_spill]] }
  0x16   : > { %s632_s0 = scalar_select %p631_p3, %s9373_s27, 1 }
  0x17   : > { %p7300_p4 = scmp.ne.s32.totalorder %s9373_s27, 0 }
  0x18   : > { %s9388_s23 = scalar_lea.vmem %s13571_s21, %s632_s0  ;;  %v8924_v23 = vld [vmem:[%s13556_s6 + $0x40] sm:$0xff] (!%p7300_p4)   ;;  %v8928_v27 = vld [vmem:[%s13556_s6 + $0x48] sm:$0xff] (!%p7300_p4)   ;;  %v8932_v31 = vld [vmem:[%s13556_s6 + $0x50] sm:$0xff] (!%p7300_p4)   ;;  %s13747_s30 = sld [smem:[#allocation99_spill]] (!%p7300_p4)  ;;  %vm13578_vm2 = vmmov (!%p7300_p4), 0   ;;  %vm1334_vm3 = vcmask (!%p7300_p4), 31744  }
  0x19   : > { %v8925_v24 = vld [vmem:[%s13556_s6 + $0xc0] sm:$0xff] (!%p7300_p4)   ;;  %v8929_v28 = vld [vmem:[%s13556_s6 + $0xc8] sm:$0xff] (!%p7300_p4)   ;;  %v8933_v32 = vld [vmem:[%s13556_s6 + $0xd0] sm:$0xff] (!%p7300_p4)   ;;  %s13748_s25 = sld [smem:[#allocation96_spill]] (!%p7300_p4)  ;;  %s9239_s3 = smov (!%p7300_p4), 124   ;;  %vm13576_vm4 = vcmask (!%p7300_p4), 64512  }
  0x1a   : > { %v637_v3 = vstv %s636_s20  ;;  %v8926_v25 = vld [vmem:[%s13556_s6] sm:$0xff] (!%p7300_p4)   ;;  %7892 = vmatprep.subr.bf16.mxu1 (!%p7300_p4), %v8925_v24  ;;  %v8930_v29 = vld [vmem:[%s13556_s6 + $0x8] sm:$0xff] (!%p7300_p4)   ;;  %v8934_v33 = vld [vmem:[%s13556_s6 + $0x10] sm:$0xff] (!%p7300_p4)   ;;  %s9245_s28 = smov (!%p7300_p4), 24   ;;  %vm2206_vm5 = vcmask (!%p7300_p4), 130048   ;;  %vm2208_vm6 = vcmask (!%p7300_p4), 195584  }
  0x1b   : > { %v8901_v1 = vld [vmem:[%s13744_s29] sm:$0xff]   ;;  %v8902_v2 = vld [vmem:[%s13744_s29 + $0x8] sm:$0xff]   ;;  %v638_v4 = vmul.f32 1.442695, %v637_v3  ;;  %v8903_v5 = vld [vmem:[%s13744_s29 + $0x10] sm:$0xff]   ;;  %s9246_s20 = smov (!%p7300_p4), 1  }
  0x1c   : > { %8374 = vmatpush3.bf16.msra.mxu0 %v8901_v1  ;;  %v8904_v6 = vld [vmem:[%s13744_s29 + $0x18] sm:$0xff]   ;;  %v8905_v7 = vld [vmem:[%s13744_s29 + $0x20] sm:$0xff]   ;;  %v8906_v9 = vld [vmem:[%s13744_s29 + $0x28] sm:$0xff]  }
  0x1d   : > { %8375 = vmatprep.subr.bf16.mxu0 %v9235_v0  ;;  %8909 = vpow2.f32 %v638_v4  ;;  %v8907_v10 = vld [vmem:[%s13744_s29 + $0x30] sm:$0xff]   ;;  %v8908_v11 = vld [vmem:[%s13744_s29 + $0x38] sm:$0xff]   ;;  %v640_v12 = vld [vmem:[%s13746_s2] sm:$0x3] }
  0x1e   : > { %v8927_v26 = vld [vmem:[%s13556_s6 + $0x80] sm:$0xff] (!%p7300_p4)   ;;  %v8931_v30 = vld [vmem:[%s13556_s6 + $0x88] sm:$0xff] (!%p7300_p4)   ;;  %v8935_v34 = vld [vmem:[%s13556_s6 + $0x90] sm:$0xff] (!%p7300_p4)  }
  0x1f   : > { %7893 = vmatpush3.bf16.msra.mxu1 (!%p7300_p4), %v8927_v26  ;;  %v8936_v35 = vld [vmem:[%s13556_s6 + $0x58] sm:$0xff] (!%p7300_p4)   ;;  %v8940_v39 = vld [vmem:[%s13556_s6 + $0x60] sm:$0xff] (!%p7300_p4)   ;;  %v8944_v43 = vld [vmem:[%s13556_s6 + $0x68] sm:$0xff] (!%p7300_p4)  }
  0x20   : > { %8376 = vmatpush3.bf16.msra.mxu0 %v8902_v2  ;;  %7894 = vmatprep.subr.bf16.mxu1 (!%p7300_p4), %v8929_v28  ;;  %v8937_v36 = vld [vmem:[%s13556_s6 + $0xd8] sm:$0xff] (!%p7300_p4)   ;;  %v8941_v40 = vld [vmem:[%s13556_s6 + $0xe0] sm:$0xff] (!%p7300_p4)   ;;  %v8945_v44 = vld [vmem:[%s13556_s6 + $0xe8] sm:$0xff] (!%p7300_p4)  }
  0x21   : > { %8377 = vmatprep.subr.bf16.mxu0 %v9235_v0  ;;  %v8938_v37 = vld [vmem:[%s13556_s6 + $0x18] sm:$0xff] (!%p7300_p4)   ;;  %v8942_v41 = vld [vmem:[%s13556_s6 + $0x20] sm:$0xff] (!%p7300_p4)   ;;  %v8946_v45 = vld [vmem:[%s13556_s6 + $0x28] sm:$0xff] (!%p7300_p4)  }
  0x22   : > { %v8939_v38 = vld [vmem:[%s13556_s6 + $0x98] sm:$0xff] (!%p7300_p4)   ;;  %v8943_v42 = vld [vmem:[%s13556_s6 + $0xa0] sm:$0xff] (!%p7300_p4)   ;;  %v8947_v46 = vld [vmem:[%s13556_s6 + $0xa8] sm:$0xff] (!%p7300_p4)  }
  0x23   : > { %7895 = vmatpush3.bf16.msra.mxu1 (!%p7300_p4), %v8931_v30  ;;  %v8948_v47 = vld [vmem:[%s13556_s6 + $0x70] sm:$0xff] (!%p7300_p4)   ;;  %v8952_v51 = vld [vmem:[%s13556_s6 + $0x78] sm:$0xff] (!%p7300_p4)   ;;  %v757_v55 = vld [vmem:[%s13747_s30] sm:$0xff] (!%p7300_p4) }
  0x24   : > { %8378 = vmatpush3.bf16.msra.mxu0 %v8903_v5  ;;  %7896 = vmatprep.subr.bf16.mxu1 (!%p7300_p4), %v8933_v32  ;;  %v8949_v48 = vld [vmem:[%s13556_s6 + $0xf0] sm:$0xff] (!%p7300_p4)   ;;  %v8953_v52 = vld [vmem:[%s13556_s6 + $0xf8] sm:$0xff] (!%p7300_p4)   ;;  %v758_v56 = vld [vmem:[%s13747_s30 + $0x8] sm:$0xff] (!%p7300_p4)  ;;  %v7301_v57 = vcombine.low (!%p7300_p4), %v757_v55, %v757_v55  ;;  %v7302_v58 = vcombine.high (!%p7300_p4), %v757_v55, %v757_v55 }
  0x25   : > { %8379 = vmatprep.subr.bf16.mxu0 %v9235_v0  ;;  %v8950_v49 = vld [vmem:[%s13556_s6 + $0x30] sm:$0xff] (!%p7300_p4)   ;;  %v8954_v53 = vld [vmem:[%s13556_s6 + $0x38] sm:$0xff] (!%p7300_p4)   ;;  %v7303_v59 = vcombine.low (!%p7300_p4), %v758_v56, %v758_v56  ;;  %v7304_v60 = vcombine.high (!%p7300_p4), %v758_v56, %v758_v56  ;;  %v8960_v61 = vld [vmem:[%s13556_s6 + $0x140] sm:$0xff] (!%p7300_p4)  }
  0x26   : > { %v8951_v50 = vld [vmem:[%s13556_s6 + $0xb0] sm:$0xff] (!%p7300_p4)   ;;  %v8955_v54 = vld [vmem:[%s13556_s6 + $0xb8] sm:$0xff] (!%p7300_p4)   ;;  %v8961_v62 = vld [vmem:[%s13556_s6 + $0x100] sm:$0xff] (!%p7300_p4)  }
  0x27   : > { %v9399_v8 = vpop.eup %8909  ;;  %7897 = vmatpush3.bf16.msra.mxu1 (!%p7300_p4), %v8935_v34  ;;  %1237 = vmatprep.mubr.bf16.mxu1 (!%p7300_p4), %v7304_v60  ;;  %v8962_v63 = vld [vmem:[%s13556_s6 + $0x148] sm:$0xff] (!%p7300_p4)   ;;  %v8964_v1 = vld [vmem:[%s13556_s6 + $0x150] sm:$0xff] (!%p7300_p4)   ;;  %v8966_v3 = vld [vmem:[%s13556_s6 + $0x158] sm:$0xff] (!%p7300_p4)  }
  0x28   : > { %8380 = vmatpush3.bf16.msra.mxu0 %v8904_v6  ;;  %13745 = vst [vmem:[#allocation3_spill] sm:$0xff] %v9399_v8  ;;  %7898 = vmatprep.subr.bf16.mxu1 (!%p7300_p4), %v8937_v36  ;;  %v8965_v2 = vld [vmem:[%s13556_s6 + $0x110] sm:$0xff] (!%p7300_p4)   ;;  %v8967_v4 = vld [vmem:[%s13556_s6 + $0x118] sm:$0xff] (!%p7300_p4)   ;;  %v8968_v5 = vld [vmem:[%s13556_s6 + $0x160] sm:$0xff] (!%p7300_p4)  }
  0x29   : > { %8381 = vmatprep.subr.bf16.mxu0 %v9235_v0  ;;  %v8969_v6 = vld [vmem:[%s13556_s6 + $0x120] sm:$0xff] (!%p7300_p4)   ;;  %v8984_v56 = vld [vmem:[%s13557_s7 + $0x28] sm:$0xff] (!%p7300_p4)  }
  0x2a   : > { %v9573_v36 = vld [vmem:[%s13748_s25] sm:$0xf] (!%p7300_p4)  ;;  %s9241_s25 = smov (!%p7300_p4), 8  }
  0x2b   : > { %7899 = vmatpush3.bf16.msra.mxu1 (!%p7300_p4), %v8939_v38  ;;  %v8983_v55 = vld [vmem:[%s13557_s7 + $0x20] sm:$0xff] (!%p7300_p4)  }
  0x2c   : > { %8382 = vmatpush3.bf16.msra.mxu0 %v8905_v7  ;;  %7900 = vmatprep.subr.bf16.mxu1 (!%p7300_p4), %v8941_v40  ;;  %v759_v7 = vld [vmem:[%s13747_s30 + $0x10] sm:$0xff] (!%p7300_p4) }
  0x2d   : > { %8383 = vmatprep.subr.bf16.mxu0 %v9235_v0 }
  0x2f   : > { %7901 = vmatpush3.bf16.msra.mxu1 (!%p7300_p4), %v8943_v42 }
  0x30   : > { %8384 = vmatpush3.bf16.msra.mxu0 %v8906_v9  ;;  %7902 = vmatprep.subr.bf16.mxu1 (!%p7300_p4), %v8945_v44  ;;  %v8970_v9 = vld [vmem:[%s13556_s6 + $0x168] sm:$0xff] (!%p7300_p4)  }
  0x31   : > { %8385 = vmatprep.subr.bf16.mxu0 %v9235_v0 }
  0x33   : > { %7903 = vmatpush3.bf16.msra.mxu1 (!%p7300_p4), %v8947_v46 }
  0x34   : > { %8386 = vmatpush3.bf16.msra.mxu0 %v8907_v10  ;;  %7904 = vmatprep.subr.bf16.mxu1 (!%p7300_p4), %v8949_v48  ;;  %v7306_v10 = vcombine.high (!%p7300_p4), %v759_v7, %v759_v7 }
  0x35   : > { %8387 = vmatprep.subr.bf16.mxu0 %v9235_v0  ;;  %v8963_v0 = vld [vmem:[%s13556_s6 + $0x108] sm:$0xff] (!%p7300_p4)  }
  0x37   : > { %7905 = vmatpush3.bf16.msra.mxu1 (!%p7300_p4), %v8951_v50 }
  0x38   : > { %8388 = vmatpush3.bf16.msra.mxu0 %v8908_v11  ;;  %7906 = vmatprep.subr.bf16.mxu1 (!%p7300_p4), %v8953_v52  ;;  %v8971_v11 = vld [vmem:[%s13556_s6 + $0x128] sm:$0xff] (!%p7300_p4)  }
  0x39   : > { %7870 = vmatprep.subr.bf16.mxu0 (!%p7300_p4), %v8924_v23  ;;  %v8980_v52 = vld [vmem:[%s13557_s7 + $0x8] sm:$0xff] (!%p7300_p4)  }
  0x3b   : > { %8390 = vmatmul.mubr.bf16.vlgmr.msra.gmra.mrb[0].mxu0 %v640_v12  ;;  %7907 = vmatpush3.bf16.msra.mxu1 (!%p7300_p4), %v8955_v54  ;;  %v8972_v12 = vld [vmem:[%s13556_s6 + $0x170] sm:$0xff] (!%p7300_p4)   ;;  %v8982_v54 = vld [vmem:[%s13557_s7 + $0x18] sm:$0xff] (!%p7300_p4)  }
  0x3c   : > { %7871 = vmatpush3.bf16.msra.mxu0 (!%p7300_p4), %v8926_v25  ;;  %1197 = vmatprep.mubr.bf16.mxu0 (!%p7300_p4), %v7302_v58  ;;  %v8986_v58 = vld [vmem:[%s13557_s7 + $0x38] sm:$0xff] (!%p7300_p4)  }
  0x3d   : > { %7872 = vmatprep.subr.bf16.mxu0 (!%p7300_p4), %v8928_v27 }
  0x3e   : > { %1238 = vmatmul.mubr.bf16.vlgmr.msra.gmra.mrb[0].mxu1 (!%p7300_p4), %v7303_v59 }
  0x40   : > { %7873 = vmatpush3.bf16.msra.mxu0 (!%p7300_p4), %v8930_v29 }
  0x41   : > { %7874 = vmatprep.subr.bf16.mxu0 (!%p7300_p4), %v8932_v31 }
  0x44   : > { %7875 = vmatpush3.bf16.msra.mxu0 (!%p7300_p4), %v8934_v33 }
  0x45   : > { %7876 = vmatprep.subr.bf16.mxu0 (!%p7300_p4), %v8936_v35 }
  0x48   : > { %7877 = vmatpush3.bf16.msra.mxu0 (!%p7300_p4), %v8938_v37  ;;  %v9237_v37 = vmov (!%p7300_p4), 0.0  }
  0x49   : > { %7878 = vmatprep.subr.bf16.mxu0 (!%p7300_p4), %v8940_v39  ;;  %8393 = vmatprep.subr.bf16.mxu1 (!%p7300_p4), %v9237_v37 }
  0x4a   : > { %8395 = vmatprep.mubr.msk.bf16.mxu1 (!%p7300_p4), %vm13578_vm2, %v9237_v37  ;;  %8394 = vmatpush3.bf16.xpose.msra.mxu1 (!%p7300_p4), %v9573_v36 }
  0x4b   : > { %8399 = vmatprep.subr.bf16.mxu1 (!%p7300_p4), %v9237_v37 }
  0x4c   : > { %7879 = vmatpush3.bf16.msra.mxu0 (!%p7300_p4), %v8942_v41 }
  0x4d   : > { %7880 = vmatprep.subr.bf16.mxu0 (!%p7300_p4), %v8944_v43 }
  0x50   : > { %7881 = vmatpush3.bf16.msra.mxu0 (!%p7300_p4), %v8946_v45 }
  0x51   : > { %7882 = vmatprep.subr.bf16.mxu0 (!%p7300_p4), %v8948_v47 }
  0x54   : > { %7883 = vmatpush3.bf16.msra.mxu0 (!%p7300_p4), %v8950_v49 }
  0x55   : > { %7884 = vmatprep.subr.bf16.mxu0 (!%p7300_p4), %v8952_v51  ;;  %v8979_v51 = vld [vmem:[%s13557_s7] sm:$0xff] (!%p7300_p4)  }
  0x58   : > { %7885 = vmatpush3.bf16.msra.mxu0 (!%p7300_p4), %v8954_v53  ;;  %v8981_v53 = vld [vmem:[%s13557_s7 + $0x10] sm:$0xff] (!%p7300_p4)  }
  0x59   : > { %7914 = vmatprep.subr.bf16.mxu0 (!%p7300_p4), %v8960_v61 }
 0x10e   : > { %v739_v13 = vpop.f32.mrb[0].mxu0 }
 0x10f   : > { %v8391_v14 = vpop.f32.mrb[1].mxu0  ;;  %v745_v15 = vmul.f32 %v739_v13, %v739_v13 }
 0x110   : > { %v742_v16 = vpop.f32.mrb[2].mxu0  ;;  %v8974_v14 = vld [vmem:[%s13556_s6 + $0x178] sm:$0xff] (!%p7300_p4)  }
 0x111   : > { %v8392_v17 = vpop.f32.mrb[3].mxu0  ;;  %v747_v18 = vsel %vm13577_vm1, %v745_v15, 0.0  ;;  %1198 = vmatmul.mubr.bf16.vlgmr.msra.gmra.mrb[0].mxu0 (!%p7300_p4), %v7301_v57  ;;  %v8975_v15 = vld [vmem:[%s13556_s6 + $0x138] sm:$0xff] (!%p7300_p4)   ;;  %v7305_v16 = vcombine.low (!%p7300_p4), %v759_v7, %v759_v7  ;;  %v8985_v57 = vld [vmem:[%s13557_s7 + $0x30] sm:$0xff] (!%p7300_p4)  }
 0x112   : > { %748 = vadd.xlane.f32.xlu0 %v747_v18  ;;  %7915 = vmatpush3.bf16.msra.mxu0 (!%p7300_p4), %v8961_v62  ;;  %v7908_v18 = vpop.f32.mrb[0].mxu1 (!%p7300_p4) }
 0x113   : > { %7916 = vmatprep.subr.bf16.mxu0 (!%p7300_p4), %v8962_v63  ;;  %1277 = vmatprep.mubr.bf16.mxu0 (!%p7300_p4), %v7306_v10 }
 0x116   : > { %7917 = vmatpush3.bf16.msra.mxu0 (!%p7300_p4), %v8963_v0 }
 0x117   : > { %7918 = vmatprep.subr.bf16.mxu0 (!%p7300_p4), %v8964_v1 }
 0x11a   : > { %7919 = vmatpush3.bf16.msra.mxu0 (!%p7300_p4), %v8965_v2 }
 0x11b   : > { %7920 = vmatprep.subr.bf16.mxu0 (!%p7300_p4), %v8966_v3 }
 0x11e   : > { %7921 = vmatpush3.bf16.msra.mxu0 (!%p7300_p4), %v8967_v4 }
 0x11f   : > { %7922 = vmatprep.subr.bf16.mxu0 (!%p7300_p4), %v8968_v5 }
 0x122   : > { %7923 = vmatpush3.bf16.msra.mxu0 (!%p7300_p4), %v8969_v6 }
 0x123   : > { %7924 = vmatprep.subr.bf16.mxu0 (!%p7300_p4), %v8970_v9 }
 0x126   : > { %7925 = vmatpush3.bf16.msra.mxu0 (!%p7300_p4), %v8971_v11 }
 0x127   : > { %7926 = vmatprep.subr.bf16.mxu0 (!%p7300_p4), %v8972_v12 }
 0x19f   : > { %v749_v19 = vpop.xlane.xlu0 %748 }
 0x1a0   : > { %v750_v20 = vmax.f32 %v749_v19, 1e-24 }
 0x1a2   : > { %8911 = vrsqrt.f32 %v750_v20  ;;  %v7909_v20 = vpop.f32.mrb[1].mxu1 (!%p7300_p4) }
 0x1a3   : > { %v7910_v23 = vadd.f32 (!%p7300_p4), %v7909_v20, %v7908_v18  ;;  %v7911_v25 = vpop.f32.mrb[2].mxu1 (!%p7300_p4) }
 0x1a4   : > { %v7912_v27 = vpop.f32.mrb[3].mxu1 (!%p7300_p4) }
 0x1a7   : > { %756 = sbr.rel (%p7300_p4) target bundleno = 3353 (0xd19), region = 108 }
 0x1ac   : > { %v8912_v21 = vpop.eup %8911 }
 0x1ad   : > { %v9414_v22 = vmul.f32 %v8912_v21, %v739_v13  ;;  %v8973_v13 = vld [vmem:[%s13556_s6 + $0x130] sm:$0xff] (!%p7300_p4)  }
 0x1ae   : > { %7927 = vmatpush3.bf16.msra.mxu0 %v8973_v13 }
 0x1af   : > { %7928 = vmatprep.subr.bf16.mxu0 %v8974_v14 }
 0x1b2   : > { %7929 = vmatpush3.bf16.msra.mxu0 %v8975_v15 }
 0x1b3   : > { %8431 = vmatprep.subr.bf16.mxu0 %v9237_v37 }
 0x1b5   : > { %1278 = vmatmul.mubr.bf16.vlgmr.msra.gmra.mrb[4].mxu0 %v7305_v16 }
 0x1b6   : > { %8433 = vmatprep.mubr.msk.bf16.mxu0 %vm13578_vm2, %v9237_v37 }
 0x1e4   : > { %v7886_v17 = vpop.f32.mrb[0].mxu0 }
 0x1e5   : > { %v7887_v19 = vpop.f32.mrb[1].mxu0 }
 0x1e6   : > { %v7888_v21 = vadd.f32 %v7887_v19, %v7886_v17  ;;  %v7889_v24 = vpop.f32.mrb[2].mxu0 }
 0x1e7   : > { %v7890_v26 = vpop.f32.mrb[3].mxu0 }
 0x1e8   : > { %v1240_v28 = vadd.f32 %v7910_v23, %v7888_v21 }
 0x288   : > { %v7930_v29 = vpop.f32.mrb[4].mxu0 }
 0x289   : > { %v7931_v30 = vpop.f32.mrb[5].mxu0 }
 0x28a   : > { %v7932_v31 = vadd.f32 %v7931_v30, %v7930_v29  ;;  %v7933_v32 = vpop.f32.mrb[6].mxu0  ;;  %v1445_v30 = vld [vmem:[%s13567_s17] sm:$0xff] }
 0x28b   : > { %v7934_v33 = vpop.f32.mrb[7].mxu0 }
 0x28c   : > { %v1280_v34 = vadd.f32 %v7932_v31, %v1240_v28  ;;  %v1446_v28 = vld [vmem:[%s13568_s18] sm:$0xff] }
 0x28e   : > { %v1285_v35 = vmul.f32 %v1280_v34, %v1280_v34 }
 0x290   : > { %1286 = vadd.xlane.f32.xlu0 %v1285_v35 }
 0x31d   : > { %v1287_v38 = vpop.xlane.xlu0 %1286 }
 0x31e   : > { %v1288_v39 = vmax.f32 %v1287_v38, 1e-24 }
 0x320   : > { %8995 = vrsqrt.f32 %v1288_v39 }
 0x32a   : > { %v8996_v40 = vpop.eup %8995 }
 0x32b   : > { %v1290_v41 = vmul.f32 %v8996_v40, %v1280_v34 }
 0x32d   : > { %v1292_v42 = vpack.c.bf16 %v1290_v41, %v1290_v41 }
 0x32f   : > { %8396 = vmatmul.mubr.bf16.vlgmr.msra.gmra.mrb[4].mxu1 %v1292_v42 }
 0x330   : > { %8401 = vmatprep.mubr.msk.bf16.mxu1 %vm13578_vm2, %v9237_v37 }
 0x402   : > { %v1327_v43 = vpop.f32.mrb[4].mxu1 }
 0x403   : > { %v1333_v44 = vpack.c.bf16 %v1327_v43, %v1327_v43  ;;  %v8397_v45 = vpop.f32.mrb[5].mxu1 }
 0x404   : > { %v1330_v46 = vpop.f32.mrb[6].mxu1  ;;  %v8989_v45 = vld [vmem:[%s13559_s9 + $0x10] sm:$0xff]  }
 0x405   : > { %1379 = vrot.lane.b32.xlu0 %v1333_v44, %s9239_s3  ;;  %v8398_v47 = vpop.f32.mrb[7].mxu1  ;;  %v1336_v48 = vsel %vm1334_vm3, %v1333_v44, 0  ;;  %v8990_v46 = vld [vmem:[%s13559_s9 + $0x18] sm:$0xff]   ;;  %s9243_s3 = smov 16  }
 0x406   : > { %8400 = vmatpush3.bf16.xpose.msra.mxu1 %v1336_v48  ;;  %v8991_v47 = vld [vmem:[%s13559_s9 + $0x20] sm:$0xff]   ;;  %v8992_v48 = vld [vmem:[%s13559_s9 + $0x28] sm:$0xff]  }
 0x407   : > { %8405 = vmatprep.subr.bf16.mxu1 %v9237_v37 }
 0x40d   : > { %8402 = vmatmul.mubr.msk.bf16.vlgmr.msra.gmra.mrb[8].mxu1 %vm1334_vm3, %v1333_v44  ;;  %v8988_v44 = vld [vmem:[%s13559_s9 + $0x8] sm:$0xff]  }
 0x40e   : > { %8407 = vmatprep.mubr.msk.bf16.mxu1 %vm13578_vm2, %v9237_v37 }
 0x477   : > { %v1380_v49 = vpop.permute.xlu0 %1379 }
 0x478   : > { %v1382_v50 = vsel %vm1334_vm3, %v1380_v49, 0 }
 0x479   : > { %8406 = vmatpush3.bf16.xpose.msra.mxu1 %v1382_v50  ;;  %v8994_v50 = vld [vmem:[%s13559_s9 + $0x38] sm:$0xff]  }
 0x47a   : > { %8411 = vmatprep.subr.bf16.mxu1 %v9237_v37 }
 0x480   : > { %8408 = vmatmul.mubr.msk.bf16.vlgmr.msra.gmra.mrb[12].mxu1 %vm1334_vm3, %v1380_v49  ;;  %v8993_v49 = vld [vmem:[%s13559_s9 + $0x30] sm:$0xff]  }
 0x481   : > { %8412 = vmatpush3.bf16.msra.mxu1 %v8979_v51  ;;  %8427 = vmatprep.mubr.msk.bf16.mxu1 %vm13578_vm2, %v9237_v37  ;;  %v1617_v51 = vadd.f32 %v1446_v28, %v1445_v30 }
 0x482   : > { %8413 = vmatprep.subr.bf16.mxu1 %v9237_v37 }
 0x485   : > { %8414 = vmatpush3.bf16.msra.mxu1 %v8980_v52  ;;  %v1635_v52 = vsel %vm13576_vm4, %v1617_v51, 0.0 }
 0x486   : > { %8415 = vmatprep.subr.bf16.mxu1 %v9237_v37 }
 0x489   : > { %8416 = vmatpush3.bf16.msra.mxu1 %v8981_v53  ;;  %v7366_v53 = vld [vmem:[%s13558_s8] ss:$0 sm:$0xff] }
 0x48a   : > { %8417 = vmatprep.subr.bf16.mxu1 %v9237_v37 }
 0x48d   : > { %8418 = vmatpush3.bf16.msra.mxu1 %v8982_v54 }
 0x48e   : > { %8419 = vmatprep.subr.bf16.mxu1 %v9237_v37 }
 0x491   : > { %8420 = vmatpush3.bf16.msra.mxu1 %v8983_v55 }
 0x492   : > { %8421 = vmatprep.subr.bf16.mxu1 %v9237_v37 }
 0x495   : > { %8422 = vmatpush3.bf16.msra.mxu1 %v8984_v56 }
 0x496   : > { %8423 = vmatprep.subr.bf16.mxu1 %v9237_v37 }
 0x499   : > { %8424 = vmatpush3.bf16.msra.mxu1 %v8985_v57 }
 0x49a   : > { %8425 = vmatprep.subr.bf16.mxu1 %v9237_v37 }
 0x49d   : > { %8426 = vmatpush3.bf16.msra.mxu1 %v8986_v58 }
 0x49e   : > { %8457 = vmatprep.subr.bf16.mxu1 %v9237_v37 }
 0x4a0   : > { %8428 = vmatmul.mubr.bf16.vlgmr.msra.gmra.mrb[16].mxu1 %v1292_v42  ;;  %v8987_v42 = vld [vmem:[%s13559_s9] sm:$0xff]  }
 0x4a1   : > { %8459 = vmatprep.mubr.msk.bf16.mxu1 %vm13578_vm2, %v9237_v37 }
 0x4e0   : > { %v1372_v59 = vpop.f32.mrb[8].mxu1 }
 0x4e1   : > { %v8403_v60 = vpop.f32.mrb[9].mxu1 }
 0x4e2   : > { %v1375_v61 = vpop.f32.mrb[10].mxu1 }
 0x4e3   : > { %v8404_v62 = vpop.f32.mrb[11].mxu1  ;;  %v9681_v61 = vcombine.low %v9573_v36, %v9573_v36 }
 0x553   : > { %v1418_v63 = vpop.f32.mrb[12].mxu1 }
 0x554   : > { %v1424_v0 = vmax.f32 %v1372_v59, %v1418_v63  ;;  %v8409_v1 = vpop.f32.mrb[13].mxu1 }
 0x555   : > { %v1421_v2 = vpop.f32.mrb[14].mxu1 }
 0x556   : > { %v1426_v3 = vsel %vm13576_vm4, %v1424_v0, -inf  ;;  %v8410_v4 = vpop.f32.mrb[15].mxu1 }
 0x557   : > { %v1427_v5 = vrot.slane %v1426_v3, 4 }
 0x559   : > { %v1428_v6 = vmax.f32 %v1426_v3, %v1427_v5 }
 0x55b   : > { %v1429_v7 = vrot.slane %v1428_v6, 2 }
 0x55d   : > { %v1430_v9 = vmax.f32 %v1428_v6, %v1429_v7  ;;  %v1730_v7 = vpack.c.bf16 %v1617_v51, %v1617_v51 }
 0x55f   : > { %v1431_v10 = vrot.slane %v1430_v9, 1 }
 0x561   : > { %v1432_v11 = vmax.f32 %v1430_v9, %v1431_v10  ;;  %v1786_v10 = vld [vmem:[%s13565_s15] sm:$0x3] }
 0x563   : > { %v1433_v12 = vsub.f32 %v1424_v0, %v1432_v11  ;;  %v9240_v11 = vmov 0  }
 0x564   : > { %8913 = vset.pattern.permute.xlu1 %v9240_v11  ;;  %8914 = vset.pattern.permute.xlu0 %v9240_v11 }
 0x565   : > { %v1434_v13 = vmul.f32 1.442695, %v1433_v12  ;;  %v7376_v12 = vld [vmem:[%s13560_s10] ss:$0 sm:$0xff] }
 0x567   : > { %8997 = vpow2.f32 %v1434_v13 }
 0x571   : > { %v8998_v14 = vpop.eup %8997 }
 0x572   : > { %v1436_v15 = vsel %vm13576_vm4, %v8998_v14, 0.0 }
 0x573   : > { %v1437_v16 = vrot.slane %v1436_v15, 4  ;;  %v1553_v17 = vpop.f32.mrb[16].mxu1 }
 0x574   : > { %v8429_v18 = vpop.f32.mrb[17].mxu1 }
 0x575   : > { %v1438_v19 = vadd.f32 %v1437_v16, %v1436_v15  ;;  %v1556_v20 = vpop.f32.mrb[18].mxu1 }
 0x576   : > { %v8430_v21 = vpop.f32.mrb[19].mxu1 }
 0x577   : > { %v1439_v23 = vrot.slane %v1438_v19, 2  ;;  %v2029_v21 = vrot.slane %v9681_v61, 2 }
 0x579   : > { %v1440_v24 = vadd.f32 %v1439_v23, %v1438_v19  ;;  %v1947_v19 = vrot.slane %v9681_v61, 1  ;;  %v2111_v23 = vrot.slane %v9681_v61, 3 }
 0x57b   : > { %v1441_v25 = vrot.slane %v1440_v24, 1 }
 0x57d   : > { %v1442_v26 = vadd.f32 %v1441_v25, %v1440_v24 }
 0x57f   : > { %8999 = vrcp.f32 %v1442_v26 }
 0x589   : > { %v9000_v27 = vpop.eup %8999 }
 0x58a   : > { %v1444_v29 = vmul.f32 %v9000_v27, %v8998_v14 }
 0x58c   : > { %v1447_v31 = vmul.f32 %v1446_v28, %v1444_v29 }
 0x58e   : > { %v1448_v32 = vadd.f32 %v1447_v31, %v1445_v30 }
 0x590   : > { %v1466_v33 = vsel %vm13576_vm4, %v1448_v32, 0.0  ;;  %v1560_v43 = vpack.c.bf16 %v1448_v32, %v1448_v32 }
 0x591   : > { %1467 = vadd.xlane.f32.xlu1 %v1466_v33 }
 0x595   : > { %1636 = vadd.xlane.f32.xlu1 %v1635_v52 }
 0x61e   : > { %v1468_v34 = vpop.xlane.xlu1 %1467 }
 0x61f   : > { %v1469_v35 = vmax.f32 %v1468_v34, 1e-12 }
 0x621   : > { %9001 = vrsqrt.f32 %v1469_v35 }
 0x622   : > { %v1637_v63 = vpop.xlane.xlu1 %1636 }
 0x623   : > { %v1638_v0 = vmax.f32 %v1637_v63, 1e-12 }
 0x625   : > { %9003 = vrsqrt.f32 %v1638_v0 }
 0x62b   : > { %v9002_v38 = vpop.eup %9001 }
 0x62c   : > { %v1559_v39 = vmul.f32 %v9002_v38, %v1553_v17 }
 0x62e   : > { %v1561_v40 = vpack.c.bf16 %v1559_v39, %v1559_v39 }
 0x62f   : > { %v9004_v1 = vpop.eup %9003 }
 0x630   : > { %v1566_v41 = vsel %vm13577_vm1, %v1561_v40, 0 }
 0x631   : > { %8432 = vmatpush3.bf16.msra.mxu0 %v1566_v41 }
 0x632   : > { %8437 = vmatprep.subr.bf16.mxu0 %v9237_v37 }
 0x634   : > { %8434 = vmatmul.mubr.msk.bf16.vlgmr.msra.gmra.mrb[8].mxu0 %vm13576_vm4, %v1560_v43 }
 0x635   : > { %8438 = vmatpush3.bf16.msra.mxu0 %v8987_v42  ;;  %8453 = vmatprep.mubr.msk.bf16.mxu0 %vm13578_vm2, %v9237_v37 }
 0x636   : > { %8439 = vmatprep.subr.bf16.mxu0 %v9237_v37 }
 0x639   : > { %8440 = vmatpush3.bf16.msra.mxu0 %v8988_v44 }
 0x63a   : > { %8441 = vmatprep.subr.bf16.mxu0 %v9237_v37 }
 0x63d   : > { %8442 = vmatpush3.bf16.msra.mxu0 %v8989_v45 }
 0x63e   : > { %8443 = vmatprep.subr.bf16.mxu0 %v9237_v37 }
 0x641   : > { %8444 = vmatpush3.bf16.msra.mxu0 %v8990_v46 }
 0x642   : > { %8445 = vmatprep.subr.bf16.mxu0 %v9237_v37 }
 0x645   : > { %8446 = vmatpush3.bf16.msra.mxu0 %v8991_v47 }
 0x646   : > { %8447 = vmatprep.subr.bf16.mxu0 %v9237_v37 }
 0x649   : > { %8448 = vmatpush3.bf16.msra.mxu0 %v8992_v48  ;;  %v9242_v48 = vmov 1  }
 0x64a   : > { %8449 = vmatprep.subr.bf16.mxu0 %v9237_v37 }
 0x64d   : > { %8450 = vmatpush3.bf16.msra.mxu0 %v8993_v49 }
 0x64e   : > { %8451 = vmatprep.subr.bf16.mxu0 %v9237_v37 }
 0x651   : > { %8452 = vmatpush3.bf16.msra.mxu0 %v8994_v50 }
 0x652   : > { %8468 = vmatprep.subr.bf16.mxu0 %v9237_v37 }
 0x707   : > { %v1602_v54 = vpop.f32.mrb[8].mxu0 }
 0x708   : > { %v1608_v55 = vmul.f32 %v9002_v38, %v1602_v54  ;;  %v8435_v56 = vpop.f32.mrb[9].mxu0  ;;  %v9244_v54 = vmov 1065369472  }
 0x709   : > { %v1605_v57 = vpop.f32.mrb[10].mxu0 }
 0x70a   : > { %v1615_v58 = vadd.f32 %v7366_v53, %v1608_v55  ;;  %v8436_v59 = vpop.f32.mrb[11].mxu0 }
 0x70c   : > { %v1616_v60 = vmax.f32 %v1615_v58, 0.0 }
 0x70e   : > { %v1640_v62 = vpack.c.bf16 %v1616_v60, %v1616_v60 }
 0x710   : > { %8454 = vmatmul.mubr.bf16.vlgmr.msra.gmra.mrb[12].mxu0 %v1640_v62 }
 0x711   : > { %8469 = vmatpush3.bf16.xpose.msra.mxu0 %v9681_v61  ;;  %8470 = vmatprep.mubr.msk.bf16.mxu0 %vm13578_vm2, %v9237_v37 }
 0x712   : > { %8480 = vmatprep.subr.bf16.mxu0 %v9237_v37 }
 0x7e3   : > { %v1723_v2 = vpop.f32.mrb[12].mxu0 }
 0x7e4   : > { %v1729_v3 = vmul.f32 %v9004_v1, %v1723_v2  ;;  %v8455_v4 = vpop.f32.mrb[13].mxu0 }
 0x7e5   : > { %v1726_v5 = vpop.f32.mrb[14].mxu0 }
 0x7e6   : > { %v1731_v6 = vpack.c.bf16 %v1729_v3, %v1729_v3  ;;  %v8456_v36 = vpop.f32.mrb[15].mxu0 }
 0x7e8   : > { %v1736_v9 = vsel %vm13577_vm1, %v1731_v6, 0 }
 0x7e9   : > { %8458 = vmatpush3.bf16.msra.mxu1 %v1736_v9 }
 0x7ea   : > { %8463 = vmatprep.subr.mxu1 %v9237_v37 }
 0x7ec   : > { %8460 = vmatmul.mubr.msk.bf16.vlgmr.msra.gmra.mrb[20].mxu1 %vm13576_vm4, %v1730_v7 }
 0x7ed   : > { %8464 = vmatpush3.msk.msra.mxu1 %vm13577_vm1, %v9414_v22  ;;  %8465 = vmatprep.mubr.msk.f32.mxu1 %vm13578_vm2, %v9237_v37 }
 0x7ee   : > { %8474 = vmatprep.subr.bf16.mxu1 %v9237_v37 }
 0x7f4   : > { %8466 = vmatmul.mubr.msk.f32.vlgmr.msra.gmra.mrb[24].mxu1 %vm1334_vm3, %v1786_v10 }
 0x7f5   : > { %8476 = vmatprep.mubr.msk.bf16.mxu1 %vm13578_vm2, %v9237_v37 }
 0x8bf   : > { %v1772_v13 = vpop.f32.mrb[20].mxu1 }
 0x8c0   : > { %v1778_v14 = vmul.f32 %v9004_v1, %v1772_v13  ;;  %v8461_v15 = vpop.f32.mrb[21].mxu1  ;;  %v2210_v1 = vlaneseq }
 0x8c1   : > { %v1775_v16 = vpop.f32.mrb[22].mxu1 }
 0x8c2   : > { %v1785_v17 = vadd.f32 %v7376_v12, %v1778_v14  ;;  %v8462_v18 = vpop.f32.mrb[23].mxu1  ;;  %v9764_v3 = vshrl.u32 %v2210_v1, 7  ;;  %v9769_v7 = vand.u32 127, %v2210_v1 }
 0x8c4   : > { %v9707_v20 = vpack.c.bf16 %v1785_v17, %v1785_v17  ;;  %v2227_v6 = vsub.s32 0, %v9764_v3  ;;  %v9772_v9 = vadd.s32 16, %v9764_v3  ;;  %v2214_v14 = vadd.s32 24, %v9764_v3 }
 0x8c5   : > { %v2349_v15 = vsub.s32 1, %v9764_v3 }
 0x8c6   : > { %8471 = vmatmul.mubr.bf16.vlgmr.msra.gmra.mrb[16].mxu0 %v9707_v20  ;;  %8475 = vmatpush3.bf16.xpose.msra.mxu1 %v9707_v20  ;;  %vm13581_vm7 = vcmp.ne.s32.totalorder %v9769_v7, %v9772_v9  ;;  %vm2220_vm8 = vcmp.ne.s32.totalorder %v9769_v7, %v2214_v14  ;;  %vm13580_vm11 = vcmp.lt.s32.totalorder %v9769_v7, %v9772_v9 }
 0x8c7   : > { %8481 = vmatpush3.bf16.xpose.msra.mxu0 %v1947_v19  ;;  %8482 = vmatprep.mubr.msk.bf16.mxu0 %vm13578_vm2, %v9237_v37  ;;  %v9737_v24 = vpop.f32.mrb[24].mxu1  ;;  %vm2224_vm13 = vcmp.lt.s32.totalorder %v9769_v7, %v2214_v14 }
 0x8c8   : > { %8486 = vmatprep.subr.bf16.mxu1 %v9237_v37  ;;  %8492 = vmatprep.subr.bf16.mxu0 %v9237_v37  ;;  %v8467_v25 = vpop.f32.mrb[25].mxu1 }
 0x8c9   : > { %v2212_v25 = vadd.s32 8, %v9764_v3 }
 0x8cd   : > { %8477 = vmatmul.mubr.bf16.vlgmr.msra.gmra.mrb[28].mxu1 %v9681_v61 }
 0x8ce   : > { %8483 = vmatmul.mubr.bf16.vlgmr.msra.gmra.mrb[20].mxu0 %v9707_v20  ;;  %8487 = vmatpush3.bf16.xpose.msra.mxu1 %v9707_v20 }
 0x8cf   : > { %8493 = vmatpush3.bf16.xpose.msra.mxu0 %v2029_v21  ;;  %8488 = vmatprep.mubr.msk.bf16.mxu1 %vm13578_vm2, %v9237_v37 }
 0x8d0   : > { %8494 = vmatprep.mubr.msk.bf16.mxu0 %vm13578_vm2, %v9237_v37  ;;  %8498 = vmatprep.subr.bf16.mxu1 %v9237_v37 }
 0x8d1   : > { %8504 = vmatprep.subr.bf16.mxu0 %v9237_v37 }
 0x8d5   : > { %8489 = vmatmul.mubr.bf16.vlgmr.msra.gmra.mrb[32].mxu1 %v1947_v19 }
 0x8d6   : > { %8495 = vmatmul.mubr.bf16.vlgmr.msra.gmra.mrb[24].mxu0 %v9707_v20  ;;  %8499 = vmatpush3.bf16.xpose.msra.mxu1 %v9707_v20 }
 0x8d7   : > { %8505 = vmatpush3.bf16.xpose.msra.mxu0 %v2111_v23  ;;  %8500 = vmatprep.mubr.msk.bf16.mxu1 %vm13578_vm2, %v9237_v37 }
 0x8d8   : > { %8506 = vmatprep.mubr.msk.bf16.mxu0 %vm13578_vm2, %v9237_v37  ;;  %8510 = vmatprep.subr.bf16.mxu1 %v9237_v37 }
 0x8d9   : > { %8516 = vmatprep.subr.bf16.mxu0 %v9244_v54 }
 0x8dd   : > { %8501 = vmatmul.mubr.bf16.vlgmr.msra.gmra.mrb[36].mxu1 %v2029_v21  ;;  %v13749_v21 = vmov 0 }
 0x8de   : > { %8507 = vmatmul.mubr.bf16.vlgmr.msra.gmra.mrb[28].mxu0 %v9707_v20  ;;  %8511 = vmatpush3.bf16.xpose.msra.mxu1 %v9707_v20 }
 0x8df   : > { %8512 = vmatprep.mubr.msk.bf16.mxu1 %vm13578_vm2, %v9237_v37  ;;  %8517 = vmatpush3.bf16.msra.mxu0 %v9244_v54  ;;  %vm13584_vm2 = vcmp.lt.s32.totalorder %v9769_v7, %v2212_v25 }
 0x8e0   : > { %8524 = vmatprep.subr.bf16.mxu1 %v9244_v54  ;;  %8518 = vmatprep.subr.bf16.mxu0 %v9244_v54 }
 0x8e3   : > { %8519 = vmatpush3.bf16.msra.mxu0 %v9244_v54 }
 0x8e4   : > { %8532 = vmatprep.subr.bf16.mxu0 %v9237_v37 }
 0x8e5   : > { %8513 = vmatmul.mubr.bf16.vlgmr.msra.gmra.mrb[40].mxu1 %v2111_v23  ;;  %v13751_v23 = vmov 0 }
 0x8e6   : > { %8525 = vmatpush3.bf16.msra.mxu1 %v9244_v54 }
 0x8e7   : > { %8526 = vmatprep.subr.bf16.mxu1 %v9244_v54 }
 0x8ea   : > { %8527 = vmatpush3.bf16.msra.mxu1 %v9244_v54 }
 0x8eb   : > { %8538 = vmatprep.subr.bf16.mxu1 %v9237_v37 }
 0x999   : > { %v9739_v26 = vpop.f32.mrb[16].mxu0 }
 0x99a   : > { %2231 = vperm.xlu1 %8913, %v9739_v26   ;;  %v8472_v27 = vpop.f32.mrb[17].mxu0 }
 0x99b   : > { %v1903_v28 = vpop.f32.mrb[18].mxu0  ;;  %v13753_v27 = vmov 0 }
 0x99c   : > { %v8473_v29 = vpop.f32.mrb[19].mxu0  ;;  %v13755_v28 = vmov 0 }
 0x99d   : > { %v13757_v29 = vmov 0 }
 0x9a0   : > { %v9742_v30 = vpop.f32.mrb[28].mxu1 }
 0x9a1   : > { %v9744_v31 = vpop.f32.mrb[20].mxu0  ;;  %v8478_v32 = vpop.f32.mrb[29].mxu1 }
 0x9a2   : > { %2236 = vperm.xlu1 %8913, %v9744_v31   ;;  %v8484_v33 = vpop.f32.mrb[21].mxu0  ;;  %v1943_v34 = vpop.f32.mrb[30].mxu1  ;;  %v13761_v32 = vmov 0 }
 0x9a3   : > { %v1986_v35 = vpop.f32.mrb[22].mxu0  ;;  %v8479_v38 = vpop.f32.mrb[31].mxu1  ;;  %v13763_v34 = vmov 0 }
 0x9a4   : > { %v8485_v39 = vpop.f32.mrb[23].mxu0 }
 0x9a8   : > { %v2023_v40 = vpop.f32.mrb[32].mxu1 }
 0x9a9   : > { %v9747_v41 = vpop.f32.mrb[24].mxu0  ;;  %v8490_v42 = vpop.f32.mrb[33].mxu1  ;;  %2194 = vrot.lane.b32.xlu1 %v2023_v40, %s9241_s25 }
 0x9aa   : > { %2241 = vperm.xlu0 %8914, %v9747_v41   ;;  %v8496_v43 = vpop.f32.mrb[25].mxu0  ;;  %v2026_v44 = vpop.f32.mrb[34].mxu1 }
 0x9ab   : > { %v2068_v45 = vpop.f32.mrb[26].mxu0  ;;  %v8491_v46 = vpop.f32.mrb[35].mxu1 }
 0x9ac   : > { %v8497_v47 = vpop.f32.mrb[27].mxu0 }
 0x9ae   : > { %8915 = vset.pattern.permute.xlu0 %v9242_v48 }
 0x9b0   : > { %v2105_v49 = vpop.f32.mrb[36].mxu1 }
 0x9b1   : > { %v9751_v50 = vpop.f32.mrb[28].mxu0  ;;  %2198 = vrot.lane.b32.xlu0 %v2105_v49, %s9243_s3  ;;  %v8502_v51 = vpop.f32.mrb[37].mxu1  ;;  %v2504_v49 = vpack.c.bf16 %v9737_v24, %v9737_v24 }
 0x9b2   : > { %v8508_v52 = vpop.f32.mrb[29].mxu0  ;;  %2246 = vperm.xlu1 %8913, %v9751_v50   ;;  %v2108_v53 = vpop.f32.mrb[38].mxu1 }
 0x9b3   : > { %v2150_v55 = vpop.f32.mrb[30].mxu0  ;;  %v8503_v56 = vpop.f32.mrb[39].mxu1 }
 0x9b4   : > { %v8509_v57 = vpop.f32.mrb[31].mxu0 }
 0x9b5   : > { %2352 = vperm.xlu0 %8915, %v9739_v26  }
 0x9b6   : > { %8916 = vset.pattern.permute.xlu1 %v9242_v48 }
 0x9b8   : > { %v2187_v58 = vpop.f32.mrb[40].mxu1 }
 0x9b9   : > { %2364 = vperm.xlu0 %8915, %v9751_v50   ;;  %2202 = vrot.lane.b32.xlu1 %v2187_v58, %s9245_s28  ;;  %v8514_v59 = vpop.f32.mrb[41].mxu1 }
 0x9ba   : > { %v2190_v60 = vpop.f32.mrb[42].mxu1 }
 0x9bb   : > { %v8515_v61 = vpop.f32.mrb[43].mxu1 }
 0x9bd   : > { %2356 = vperm.xlu1 %8916, %v9744_v31   ;;  %8917 = vset.pattern.permute.xlu0 %v9240_v11 }
 0x9c1   : > { %2360 = vperm.xlu1 %8916, %v9747_v41  }
 0xa19   : > { %v9762_v62 = vpop.permute.xlu1 %2231 }
 0xa21   : > { %v2237_v63 = vpop.permute.xlu1 %2236 }
 0xa25   : > { %v2195_v2 = vpop.permute.xlu1 %2194 }
 0xa26   : > { %v2205_v36 = vsel %vm13576_vm4, %v9742_v30, %v2195_v2  ;;  %vm13582_vm4 = vcmp.ne.s32.totalorder %v9769_v7, %v2212_v25  ;;  %v13759_v30 = vmov 0 }
 0xa29   : > { %v2242_v0 = vpop.permute.xlu0 %2241 }
 0xa2d   : > { %v2199_v4 = vpop.permute.xlu0 %2198 }
 0xa2e   : > { %v2207_v10 = vsel %vm2206_vm5, %v2205_v36, %v2199_v4 }
 0xa31   : > { %v2247_v5 = vpop.permute.xlu1 %2246 }
 0xa34   : > { %v2353_v12 = vpop.permute.xlu0 %2352 }
 0xa35   : > { %v2203_v13 = vpop.permute.xlu1 %2202 }
 0xa36   : > { %v2209_v16 = vsel %vm2208_vm6, %v2207_v10, %v2203_v13 }
 0xa37   : > { %v2228_v17 = vrot.slane %v2209_v16, %v2227_v6  ;;  %v2350_v18 = vrot.slane %v2209_v16, %v2349_v15 }
 0xa38   : > { %v2365_v19 = vpop.permute.xlu0 %2364 }
 0xa39   : > { %vm2251_vm9 = vcmp.gt.f32.partialorder %v2228_v17, %v2242_v0  ;;  %vm2252_vm10 = vcmp.gt.f32.partialorder %v2228_v17, %v2247_v5  ;;  %vm2259_vm12 = vcmp.eq.f32.partialorder %v2228_v17, %v2242_v0  ;;  %vm2260_vm15 = vcmp.eq.f32.partialorder %v2228_v17, %v2247_v5 }
 0xa3a   : > { %vm9789_vm14 = vmand %vm2251_vm9, %vm13581_vm7  ;;  %vm2370_vm6 = vcmp.gt.f32.partialorder %v2350_v18, %v2365_v19  ;;  %vm2378_vm9 = vcmp.eq.f32.partialorder %v2350_v18, %v2365_v19  ;;  %vm2250_vm1 = vcmp.gt.f32.partialorder %v2228_v17, %v2237_v63 }
 0xa3b   : > { %v13750_v21 = vsel %vm9789_vm14, 4294967295, %v13749_v21  ;;  %vm9795_vm0 = vmand %vm2252_vm10, %vm2220_vm8  ;;  %vm13589_vm10 = vcmp.ne.s32.totalorder %v9769_v7, %v9764_v3  ;;  %vm13766_vm14 = vcmp.ne.s32.totalorder %v9769_v7, %v2212_v25 }
 0xa3c   : > { %v13752_v23 = vsel %vm9795_vm0, 4294967295, %v13751_v23  ;;  %vm9803_vm3 = vmand %vm2259_vm12, %vm13580_vm11  ;;  %vm2258_vm11 = vcmp.eq.f32.partialorder %v2228_v17, %v2237_v63  ;;  %v2357_v33 = vpop.permute.xlu1 %2356 }
 0xa3d   : > { %v13754_v27 = vsel %vm9803_vm3, 4294967295, %v13753_v27  ;;  %vm9809_vm5 = vmand %vm2260_vm15, %vm2224_vm13  ;;  %vm2376_vm0 = vcmp.eq.f32.partialorder %v2350_v18, %v2357_v33 }
 0xa3e   : > { %v13756_v28 = vsel %vm9809_vm5, 4294967295, %v13755_v28  ;;  %vm9824_vm15 = vmand %vm2370_vm6, %vm2220_vm8  ;;  %vm2367_vm8 = vcmp.gt.f32.partialorder %v2350_v18, %v2353_v12  ;;  %vm2368_vm5 = vcmp.gt.f32.partialorder %v2350_v18, %v2357_v33  ;;  %vm13768_vm6 = vnez %v13750_v21 }
 0xa3f   : > { %v13758_v29 = vsel %vm9824_vm15, 4294967295, %v13757_v29  ;;  %vm9831_vm7 = vmand %vm2378_vm9, %vm2224_vm13  ;;  %vm2375_vm9 = vcmp.eq.f32.partialorder %v2350_v18, %v2353_v12 }
 0xa40   : > { %v13760_v30 = vsel %vm9831_vm7, 4294967295, %v13759_v30  ;;  %vm9839_vm12 = vmand %vm2250_vm1, %vm13582_vm4  ;;  %v2361_v35 = vpop.permute.xlu1 %2360  ;;  %vm13769_vm7 = vnez %v13754_v27 }
 0xa41   : > { %v13762_v32 = vsel %vm9839_vm12, 4294967295, %v13761_v32  ;;  %vm9847_vm13 = vmand %vm2258_vm11, %vm13584_vm2  ;;  %vm13765_vm11 = vcmp.lt.s32.totalorder %v9769_v7, %v9764_v3  ;;  %vm2257_vm12 = vcmp.eq.f32.partialorder %v2228_v17, %v9762_v62 }
 0xa42   : > { %v13764_v34 = vsel %vm9847_vm13, 4294967295, %v13763_v34  ;;  %vm2371_vm4 = vmand %vm2367_vm8, %vm13589_vm10  ;;  %vm2249_vm13 = vcmp.gt.f32.partialorder %v2228_v17, %v9762_v62  ;;  %vm13767_vm8 = vcmp.lt.s32.totalorder %v9769_v7, %v2212_v25 }
 0xa43   : > { %vm2379_vm2 = vmand %vm2375_vm9, %vm13765_vm11  ;;  %vm2369_vm11 = vcmp.gt.f32.partialorder %v2350_v18, %v2361_v35 }
 0xa44   : > { %vm2383_vm3 = vmor %vm2371_vm4, %vm2379_vm2  ;;  %vm13771_vm2 = vnez %v13752_v23  ;;  %vm13772_vm4 = vnez %v13756_v28 }
 0xa45   : > { %vm2372_vm1 = vmand %vm2368_vm5, %vm13766_vm14  ;;  %v7390_v40 = vsel %vm2383_vm3, 1.0, %v9237_v37  ;;  %vm2377_vm3 = vcmp.eq.f32.partialorder %v2350_v18, %v2361_v35 }
 0xa46   : > { %vm2380_vm10 = vmand %vm2376_vm0, %vm13767_vm8  ;;  %vm13774_vm0 = vcmp.ne.s32.totalorder %v9769_v7, %v9764_v3 }
 0xa47   : > { %vm13770_vm15 = vmor %vm13768_vm6, %vm13769_vm7  ;;  %vm13775_vm7 = vnez %v13762_v32  ;;  %vm13778_vm6 = vcmp.lt.s32.totalorder %v9769_v7, %v9764_v3 }
 0xa48   : > { %v7382_v38 = vsel %vm13770_vm15, 1.0, %v9237_v37  ;;  %vm2384_vm9 = vmor %vm2372_vm1, %vm2380_vm10  ;;  %vm13776_vm10 = vnez %v13764_v34 }
 0xa49   : > { %vm13773_vm14 = vmor %vm13771_vm2, %vm13772_vm4  ;;  %v7391_v42 = vsel %vm2384_vm9, 1.0, %v9237_v37  ;;  %vm2279_vm9 = vcmask 261120   ;;  %vm13780_vm4 = vcmp.lt.s32.totalorder %v9769_v7, %v9772_v9 }
 0xa4a   : > { %v7383_v39 = vsel %vm13773_vm14, 1.0, %v9237_v37  ;;  %vm2253_vm5 = vmand %vm2249_vm13, %vm13774_vm0  ;;  %v2395_v44 = vpack.c.bf16 %v7391_v42, %v7390_v40  ;;  %vm13779_vm13 = vcmp.ne.s32.totalorder %v9769_v7, %v9772_v9 }
 0xa4b   : > { %vm13777_vm15 = vmor %vm13775_vm7, %vm13776_vm10  ;;  %v2278_v45 = vpack.c.bf16 %v7383_v39, %v7382_v38 }
 0xa4c   : > { %v7381_v43 = vsel %vm13777_vm15, 1.0, %v9237_v37  ;;  %vm2261_vm1 = vmand %vm2257_vm12, %vm13778_vm6  ;;  %8528 = vmatprep.mubr.msk.bf16.mxu1 %vm2279_vm9, %v2395_v44  ;;  %vm13781_vm12 = vnez %v13758_v29 }
 0xa4d   : > { %vm2265_vm8 = vmor %vm2253_vm5, %vm2261_vm1  ;;  %vm13782_vm5 = vnez %v13760_v30 }
 0xa4e   : > { %v7380_v46 = vsel %vm2265_vm8, 1.0, %v9237_v37  ;;  %vm2373_vm2 = vmand %vm2369_vm11, %vm13779_vm13  ;;  %vm13784_vm11 = vmmov 0  }
 0xa4f   : > { %v2277_v47 = vpack.c.bf16 %v7381_v43, %v7380_v46  ;;  %vm2381_vm14 = vmand %vm2377_vm3, %vm13780_vm4  ;;  %vm13785_vm3 = vcmask 1043456  }
 0xa50   : > { %vm2385_vm0 = vmor %vm2373_vm2, %vm2381_vm14  ;;  %v2606_v12 = vsel %vm13785_vm3, 1065369472, %v9240_v11  ;;  %vm13786_vm2 = vcmp.ne.s32.totalorder %v9769_v7, %v9764_v3 }
 0xa51   : > { %vm13783_vm7 = vmor %vm13781_vm12, %vm13782_vm5  ;;  %8520 = vmatprep.mubr.msk.bf16.mxu0 %vm2279_vm9, %v2277_v47  ;;  %v7392_v52 = vsel %vm2385_vm0, 1.0, %v9237_v37  ;;  %vm2480_vm0 = vcmask 7168  }
 0xa52   : > { %v7393_v51 = vsel %vm13783_vm7, 1.0, %v9237_v37  ;;  %8521 = vmatmul.mubr.msk.bf16.vlgmr.msra.gmra.mrb[32].mxu0 %vm2279_vm9, %v2278_v45  ;;  %vm13787_vm7 = vcmp.lt.s32.totalorder %v9769_v7, %v9764_v3 }
 0xa53   : > { %v2396_v53 = vpack.c.bf16 %v7393_v51, %v7392_v52  ;;  %8533 = vmatpush3.bf16.xpose.msra.mxu0 %v2504_v49  ;;  %8534 = vmatprep.mubr.msk.bf16.mxu0 %vm13784_vm11, %v9237_v37 }
 0xa54   : > { %8544 = vmatprep.subr.bf16.mxu0 %v9237_v37 }
 0xa55   : > { %8529 = vmatmul.mubr.msk.bf16.vlgmr.msra.gmra.mrb[44].mxu1 %vm2279_vm9, %v2396_v53 }
 0xa56   : > { %8539 = vmatpush3.bf16.xpose.msra.mxu1 %v9707_v20  ;;  %8540 = vmatprep.mubr.msk.bf16.mxu1 %vm13784_vm11, %v9237_v37 }
 0xa57   : > { %8550 = vmatprep.subr.bf16.mxu1 %v9237_v37 }
 0xa5a   : > { %8535 = vmatmul.mubr.bf16.vlgmr.msra.gmra.mrb[36].mxu0 %v9707_v20 }
 0xa5b   : > { %8546 = vmatprep.mubr.msk.bf16.mxu0 %vm13784_vm11, %v9237_v37  ;;  %8545 = vmatpush3.bf16.msra.mxu0 %v2606_v12 }
 0xa5d   : > { %8541 = vmatmul.mubr.bf16.vlgmr.msra.gmra.mrb[48].mxu1 %v2504_v49 }
 0xa5e   : > { %8552 = vmatprep.mubr.msk.bf16.mxu1 %vm13784_vm11, %v9237_v37  ;;  %8551 = vmatpush3.bf16.msra.mxu1 %v2606_v12 }
 0xb25   : > { %v9929_v24 = vpop.f32.mrb[32].mxu0 }
 0xb26   : > { %v2320_v54 = vpop.f32.mrb[33].mxu0 }
 0xb27   : > { %v8523_v55 = vpop.f32.mrb[34].mxu0  ;;  %vm2335_vm12 = vcmp.lt.f32.partialorder %v2320_v54, 5.0 }
 0xb28   : > { %v8530_v56 = vpop.f32.mrb[44].mxu1  ;;  %v2323_v57 = vpop.f32.mrb[35].mxu0  ;;  %vm2338_vm8 = vcmp.lt.f32.partialorder %v8523_v55, 5.0  ;;  %v7386_v25 = vsel %vm2335_vm12, 1.0, %v9237_v37 }
 0xb29   : > { %v2437_v58 = vpop.f32.mrb[45].mxu1  ;;  %vm2454_vm1 = vcmp.lt.f32.partialorder %v8530_v56, 5.0  ;;  %vm2336_vm5 = vcmp.lt.f32.partialorder %v2323_v57, 5.0  ;;  %v7389_v11 = vsel %vm2338_vm8, 1.0, %v9237_v37  ;;  %vm13789_vm8 = vmmov %vm13787_vm7 }
 0xb2a   : > { %vm2452_vm10 = vcmp.lt.f32.partialorder %v2437_v58, 5.0  ;;  %v8531_v59 = vpop.f32.mrb[46].mxu1  ;;  %v7398_v13 = vsel %vm2454_vm1, 1.0, %v9237_v37  ;;  %vm13788_vm1 = vmmov %vm13786_vm2  ;;  %v7387_v27 = vsel %vm2336_vm5, 1.0, %v9237_v37 }
 0xb2b   : > { %v2440_v60 = vpop.f32.mrb[47].mxu1  ;;  %v7396_v20 = vsel %vm2452_vm10, 1.0, %v9237_v37  ;;  %vm2455_vm6 = vcmp.lt.f32.partialorder %v8531_v59, 5.0 }
 0xb2c   : > { %vm2453_vm15 = vcmp.lt.f32.partialorder %v2440_v60, 5.0  ;;  %v7399_v1 = vsel %vm2455_vm6, 1.0, %v9237_v37 }
 0xb2d   : > { %v7397_v61 = vsel %vm2453_vm15, 1.0, %v9237_v37  ;;  %v9933_v62 = vpop.f32.mrb[36].mxu0  ;;  %vm2337_vm15 = vcmp.lt.f32.partialorder %v9929_v24, 5.0 }
 0xb2e   : > { %v8918_v63 = vpack.i.bf16 %v7397_v61, %v7396_v20  ;;  %2591 = vperm.xlu0 %8917, %v9933_v62   ;;  %2656 = vperm.xlu1 %8916, %v9933_v62   ;;  %v8536_v0 = vpop.f32.mrb[37].mxu0  ;;  %v7388_v33 = vsel %vm2337_vm15, 1.0, %v9237_v37 }
 0xb2f   : > { %v2542_v2 = vpop.f32.mrb[38].mxu0 }
 0xb30   : > { %v2579_v4 = vpop.f32.mrb[48].mxu1  ;;  %v8537_v5 = vpop.f32.mrb[39].mxu0 }
 0xb31   : > { %v8542_v36 = vpop.f32.mrb[49].mxu1  ;;  %v2588_v14 = vrot.slane %v2579_v4, %v2227_v6  ;;  %v2654_v16 = vrot.slane %v2579_v4, %v2349_v15 }
 0xb32   : > { %v2582_v9 = vpop.f32.mrb[50].mxu1  ;;  %2474 = vrot.lane.b32.xlu0 %v7399_v1, %s9246_s20  ;;  %8919 = vrot.lane.b32.xlu1 %v8918_v63, %s9246_s20 }
 0xb33   : > { %v8543_v10 = vpop.f32.mrb[51].mxu1  ;;  %8923 = vset.pattern.permute.xlu0 %v9242_v48 }
 0xb36   : > { %2472 = vrot.lane.b32.xlu1 %v7398_v13, %s9246_s20 }
 0xbad   : > { %v2592_v17 = vpop.permute.xlu0 %2591  ;;  %v2657_v18 = vpop.permute.xlu1 %2656 }
 0xbae   : > { %vm2594_vm9 = vcmp.gt.f32.partialorder %v2588_v14, %v2592_v17  ;;  %vm2596_vm13 = vcmp.eq.f32.partialorder %v2588_v14, %v2592_v17  ;;  %vm2659_vm14 = vcmp.gt.f32.partialorder %v2654_v16, %v2657_v18  ;;  %vm2661_vm10 = vcmp.eq.f32.partialorder %v2654_v16, %v2657_v18 }
 0xbaf   : > { %vm2595_vm4 = vmand %vm2594_vm9, %vm13786_vm2  ;;  %vm13790_vm2 = vcmask 64512  }
 0xbb0   : > { %vm2597_vm11 = vmand %vm2596_vm13, %vm13787_vm7 }
 0xbb1   : > { %vm2598_vm6 = vmor %vm2595_vm4, %vm2597_vm11  ;;  %v2475_v48 = vpop.permute.xlu0 %2474  ;;  %v8920_v6 = vpop.permute.xlu1 %8919  ;;  %vm2489_vm4 = vcmask 15360  }
 0xbb2   : > { %v7400_v15 = vsel %vm2598_vm6, 1.0, %v9237_v37  ;;  %vm2660_vm3 = vmand %vm2659_vm14, %vm13788_vm1  ;;  %v2484_v19 = vsel %vm2480_vm0, %v7389_v11, %v2475_v48  ;;  %v8922_v21 = vunpack.i.h.bf16 %v8920_v6  ;;  %v8921_v23 = vunpack.i.l.bf16 %v8920_v6 }
 0xbb3   : > { %v2601_v28 = vpack.c.bf16 %v7400_v15, %v7400_v15  ;;  %vm2662_vm9 = vmand %vm2661_vm10, %vm13789_vm8  ;;  %v2488_v29 = vmul.f32 %v2484_v19, %v9751_v50 }
 0xbb4   : > { %vm2663_vm13 = vmor %vm2660_vm3, %vm2662_vm9  ;;  %v2482_v30 = vsel %vm2480_vm0, %v7387_v27, %v8922_v21  ;;  %v2481_v32 = vsel %vm2480_vm0, %v7386_v25, %v8921_v23 }
 0xbb5   : > { %v7403_v34 = vsel %vm2663_vm13, 1.0, %v9237_v37  ;;  %v2486_v35 = vmul.f32 %v2482_v30, %v9744_v31  ;;  %v2485_v38 = vmul.f32 %v2481_v32, %v9739_v26  ;;  %8547 = vmatmul.mubr.msk.bf16.vlgmr.msra.gmra.mrb[40].mxu0 %vm13790_vm2, %v2601_v28  ;;  %v2473_v3 = vpop.permute.xlu1 %2472  ;;  %vm13791_vm14 = vmmov %vm13790_vm2  ;;  %v2495_v26 = vsel %vm2489_vm4, %v2488_v29, 0.0 }
 0xbb6   : > { %v2666_v7 = vpack.c.bf16 %v7403_v34, %v7403_v34  ;;  %v2483_v50 = vsel %vm2480_vm0, %v7388_v33, %v2473_v3 }
 0xbb7   : > { %v2487_v39 = vmul.f32 %v2483_v50, %v9747_v41  ;;  %v2490_v40 = vsel %vm2489_vm4, %v2485_v38, 0.0  ;;  %v2491_v42 = vsel %vm2489_vm4, %v2486_v35, 0.0 }
 0xbb8   : > { %8553 = vmatmul.mubr.msk.bf16.vlgmr.msra.gmra.mrb[52].mxu1 %vm13791_vm14, %v2666_v7  ;;  %v2492_v43 = vadd.f32 %v2491_v42, %v2490_v40 }
 0xbb9   : > { %v2493_v31 = vsel %vm2489_vm4, %v2487_v39, 0.0 }
 0xbba   : > { %v2494_v44 = vadd.f32 %v2493_v31, %v2492_v43 }
 0xbbc   : > { %v2496_v45 = vadd.f32 %v2495_v26, %v2494_v44 }
 0xbbe   : > { %v2497_v55 = vrot.slane %v2496_v45, 4 }
 0xbc0   : > { %v2498_v56 = vadd.f32 %v2497_v55, %v2496_v45 }
 0xbc2   : > { %v2499_v59 = vrot.slane %v2498_v56, 2 }
 0xbc4   : > { %v2500_v63 = vadd.f32 %v2499_v59, %v2498_v56 }
 0xbc6   : > { %v2501_v2 = vrot.slane %v2500_v63, 1 }
 0xbc8   : > { %v2502_v36 = vadd.f32 %v2501_v2, %v2500_v63 }
 0xbca   : > { %v2503_v12 = vmul.f32 0.2, %v2502_v36 }
 0xc88   : > { %v2642_v46 = vpop.f32.mrb[40].mxu0 }
 0xc89   : > { %v8548_v47 = vpop.f32.mrb[41].mxu0  ;;  %vm2648_vm5 = vcmp.lt.f32.partialorder %v2642_v46, 5.0 }
 0xc8a   : > { %v2645_v49 = vpop.f32.mrb[42].mxu0  ;;  %v7402_v57 = vsel %vm2648_vm5, 1.0, %v9237_v37 }
 0xc8b   : > { %v2704_v51 = vpop.f32.mrb[52].mxu1  ;;  %v8549_v52 = vpop.f32.mrb[43].mxu0 }
 0xc8c   : > { %vm2710_vm12 = vcmp.lt.f32.partialorder %v2704_v51, 5.0  ;;  %v8554_v41 = vpop.f32.mrb[53].mxu1 }
 0xc8d   : > { %v7405_v53 = vsel %vm2710_vm12, 1.0, %v9237_v37  ;;  %v2707_v24 = vpop.f32.mrb[54].mxu1 }
 0xc8e   : > { %v8555_v54 = vpop.f32.mrb[55].mxu1  ;;  %2714 = vrot.lane.b32.xlu1 %v7405_v53, %s9246_s20 }
 0xd00   : > { %v2715_v58 = vpop.permute.xlu1 %2714 }
 0xd01   : > { %v2717_v60 = vsel %vm2480_vm0, %v7402_v57, %v2715_v58 }
 0xd02   : > { %v2718_v20 = vmul.f32 %v2717_v60, %v9933_v62 }
 0xd04   : > { %v2719_v61 = vsel %vm2489_vm4, %v2718_v20, 0.0 }
 0xd05   : > { %v2720_v0 = vrot.slane %v2719_v61, 4 }
 0xd07   : > { %v2721_v1 = vadd.f32 %v2720_v0, %v2719_v61 }
 0xd09   : > { %v2722_v4 = vrot.slane %v2721_v1, 2 }
 0xd0b   : > { %v2723_v5 = vadd.f32 %v2722_v4, %v2721_v1 }
 0xd0d   : > { %v2724_v9 = vrot.slane %v2723_v5, 1 }
 0xd0f   : > { %v2725_v10 = vadd.f32 %v2724_v9, %v2723_v5 }
 0xd11   : > { %v2726_v37 = vmul.f32 0.2, %v2725_v10 }
 0xd13   : > { %v2727_v13 = vadd.f32 %v2726_v37, %v2503_v12 }
 0xd15   : > { %v2728_v14 = vmul.f32 %v9399_v8, %v2727_v13 }
 0xd17   : > { %v2729_v16 = vsel %vm2489_vm4, %v2728_v14, 0.0 }
 0xd18   : > { %2730 = vst [vmem:[%s9388_s23] sm:$0x1] %v2729_v16 }
 0xd19 PF: > { %p7406_p5 = scmp.ne.s32.totalorder %s9373_s27, 1 }
 0xd1b   : > { %2734 = sbr.rel (%p7406_p5) target bundleno = 6568 (0x19a8), region = 112 }
 0xd22   : > { %s13792_s5 = sld [smem:[#allocation95_spill]]  ;;  %s13793_s20 = sld [smem:[#allocation94_spill]]  ;;  %v13605_v63 = vmov 0.0   ;;  %vm13594_vm0 = vmmov 0   ;;  %vm3190_vm7 = vcmask 9216   ;;  %vm3433_vm11 = vcmask 1041408  }
 0xd23   : > { %8588 = vmatprep.subr.bf16.mxu1 %v13605_v63  ;;  %8604 = vmatprep.mubr.msk.bf16.mxu1 %vm13594_vm0, %v13605_v63  ;;  %vm3386_vm10 = vcmask 1040384   ;;  %vm13593_vm15 = vcmask 15360   ;;  %v13841_v8 = vmov 1.0|1.0   ;;  %s9253_s22 = smov 1  }
 0xd28   : > { %v9151_v62 = vld [vmem:[%s13792_s5] sm:$0xff]   ;;  %v9152_v17 = vld [vmem:[%s13792_s5 + $0x8] sm:$0xff]   ;;  %v9153_v18 = vld [vmem:[%s13792_s5 + $0x10] sm:$0xff]  }
 0xd29   : > { %8556 = vmatprep.subr.bf16.mxu0 %v9151_v62  ;;  %v9154_v11 = vld [vmem:[%s13792_s5 + $0x18] sm:$0xff]   ;;  %v9159_v48 = vld [vmem:[%s13793_s20] sm:$0xff]   ;;  %v9156_v15 = vld [vmem:[%s13792_s5 + $0x28] sm:$0xff]  }
 0xd2a   : > { %8557 = vmatpush3.bf16.msra.mxu0 %v9151_v62  ;;  %8572 = vmatprep.mubr.bf16.mxu0 %v9159_v48  ;;  %v9155_v6 = vld [vmem:[%s13792_s5 + $0x20] sm:$0xff]   ;;  %v9157_v19 = vld [vmem:[%s13792_s5 + $0x30] sm:$0xff]   ;;  %v9158_v21 = vld [vmem:[%s13792_s5 + $0x38] sm:$0xff]  }
 0xd2b   : > { %8558 = vmatprep.subr.bf16.mxu0 %v9152_v17  ;;  %v9160_v23 = vld [vmem:[%s13793_s20 + $0x8] sm:$0xff]   ;;  %v9161_v25 = vld [vmem:[%s13793_s20 + $0x10] sm:$0xff]   ;;  %v9162_v27 = vld [vmem:[%s13793_s20 + $0x18] sm:$0xff]  }
 0xd2c   : > { %v9163_v28 = vld [vmem:[%s13793_s20 + $0x20] sm:$0xff]   ;;  %v9164_v29 = vld [vmem:[%s13793_s20 + $0x28] sm:$0xff]   ;;  %v9165_v30 = vld [vmem:[%s13793_s20 + $0x30] sm:$0xff]  }
 0xd2d   : > { %v9166_v32 = vld [vmem:[%s13793_s20 + $0x38] sm:$0xff]  }
 0xd2e   : > { %8559 = vmatpush3.bf16.msra.mxu0 %v9152_v17 }
 0xd2f   : > { %8560 = vmatprep.subr.bf16.mxu0 %v9153_v18 }
 0xd32   : > { %8561 = vmatpush3.bf16.msra.mxu0 %v9153_v18 }
 0xd33   : > { %8562 = vmatprep.subr.bf16.mxu0 %v9154_v11 }
 0xd36   : > { %8563 = vmatpush3.bf16.msra.mxu0 %v9154_v11 }
 0xd37   : > { %8564 = vmatprep.subr.bf16.mxu0 %v9155_v6 }
 0xd3a   : > { %8565 = vmatpush3.bf16.msra.mxu0 %v9155_v6 }
 0xd3b   : > { %8566 = vmatprep.subr.bf16.mxu0 %v9156_v15 }
 0xd3e   : > { %8567 = vmatpush3.bf16.msra.mxu0 %v9156_v15 }
 0xd3f   : > { %8568 = vmatprep.subr.bf16.mxu0 %v9157_v19 }
 0xd42   : > { %8569 = vmatpush3.bf16.msra.mxu0 %v9157_v19 }
 0xd43   : > { %8570 = vmatprep.subr.bf16.mxu0 %v9158_v21 }
 0xd46   : > { %8571 = vmatpush3.bf16.msra.mxu0 %v9158_v21 }
 0xd47   : > { %8652 = vmatprep.subr.bf16.mxu0 %v13605_v63 }
 0xd49   : > { %8573 = vmatmul.mubr.bf16.vlgmr.msra.gmra.mrb[0].mxu0 %v9160_v23 }
 0xd4a   : > { %8576 = vmatprep.mubr.bf16.mxu0 %v9161_v25 }
 0xd51   : > { %8577 = vmatmul.mubr.bf16.gmra.mrb[4].mxu0 %v9162_v27 }
 0xd52   : > { %8580 = vmatprep.mubr.bf16.mxu0 %v9163_v28 }
 0xd59   : > { %8581 = vmatmul.mubr.bf16.gmra.mrb[8].mxu0 %v9164_v29 }
 0xd5a   : > { %8584 = vmatprep.mubr.bf16.mxu0 %v9165_v30 }
 0xd61   : > { %8585 = vmatmul.mubr.bf16.gmra.mrb[12].mxu0 %v9166_v32 }
 0xd62   : > { %8654 = vmatprep.mubr.msk.bf16.mxu0 %vm13594_vm0, %v13605_v63 }
 0xe1c   : > { %v10042_v33 = vpop.f32.mrb[0].mxu0 }
 0xe1d   : > { %v10044_v34 = vpop.f32.mrb[1].mxu0  ;;  %v2962_v35 = vmul.f32 %v10042_v33, %v10042_v33 }
 0xe1e   : > { %v10048_v38 = vpop.f32.mrb[2].mxu0  ;;  %v2960_v3 = vmul.f32 %v10044_v34, %v10044_v34 }
 0xe1f   : > { %2980 = vadd.xlane.f32.xlu1 %v2962_v35  ;;  %v10052_v7 = vpop.f32.mrb[3].mxu0  ;;  %v2963_v50 = vmul.f32 %v10048_v38, %v10048_v38 }
 0xe20   : > { %2976 = vadd.xlane.f32.xlu0 %v2960_v3  ;;  %v2961_v39 = vmul.f32 %v10052_v7, %v10052_v7 }
 0xe23   : > { %2982 = vadd.xlane.f32.xlu1 %v2963_v50 }
 0xe24   : > { %2978 = vadd.xlane.f32.xlu0 %v2961_v39  ;;  %v10058_v40 = vpop.f32.mrb[4].mxu0 }
 0xe25   : > { %v10060_v42 = vpop.f32.mrb[5].mxu0  ;;  %v2966_v45 = vmul.f32 %v10058_v40, %v10058_v40 }
 0xe26   : > { %v10062_v43 = vpop.f32.mrb[6].mxu0  ;;  %v2964_v31 = vmul.f32 %v10060_v42, %v10060_v42 }
 0xe27   : > { %v10066_v44 = vpop.f32.mrb[7].mxu0  ;;  %v2967_v46 = vmul.f32 %v10062_v43, %v10062_v43 }
 0xe28   : > { %2984 = vadd.xlane.f32.xlu0 %v2964_v31  ;;  %v2965_v26 = vmul.f32 %v10066_v44, %v10066_v44 }
 0xe2a   : > { %2986 = vadd.xlane.f32.xlu1 %v2965_v26 }
 0xe2c   : > { %2988 = vadd.xlane.f32.xlu0 %v2966_v45  ;;  %v10074_v47 = vpop.f32.mrb[8].mxu0 }
 0xe2d   : > { %v10076_v49 = vpop.f32.mrb[9].mxu0  ;;  %v2970_v24 = vmul.f32 %v10074_v47, %v10074_v47 }
 0xe2e   : > { %2990 = vadd.xlane.f32.xlu1 %v2967_v46  ;;  %v10078_v51 = vpop.f32.mrb[10].mxu0  ;;  %v2968_v52 = vmul.f32 %v10076_v49, %v10076_v49 }
 0xe2f   : > { %v10082_v41 = vpop.f32.mrb[11].mxu0  ;;  %v2971_v54 = vmul.f32 %v10078_v51, %v10078_v51 }
 0xe30   : > { %2992 = vadd.xlane.f32.xlu0 %v2968_v52  ;;  %v2969_v53 = vmul.f32 %v10082_v41, %v10082_v41 }
 0xe32   : > { %2994 = vadd.xlane.f32.xlu1 %v2969_v53 }
 0xe34   : > { %2996 = vadd.xlane.f32.xlu0 %v2970_v24  ;;  %v10090_v55 = vpop.f32.mrb[12].mxu0 }
 0xe35   : > { %v10092_v56 = vpop.f32.mrb[13].mxu0  ;;  %v2974_v20 = vmul.f32 %v10090_v55, %v10090_v55 }
 0xe36   : > { %2998 = vadd.xlane.f32.xlu1 %v2971_v54  ;;  %v10094_v57 = vpop.f32.mrb[14].mxu0  ;;  %v2972_v58 = vmul.f32 %v10092_v56, %v10092_v56 }
 0xe37   : > { %v10098_v59 = vpop.f32.mrb[15].mxu0  ;;  %v2975_v61 = vmul.f32 %v10094_v57, %v10094_v57 }
 0xe38   : > { %3000 = vadd.xlane.f32.xlu0 %v2972_v58  ;;  %v2973_v60 = vmul.f32 %v10098_v59, %v10098_v59 }
 0xe3a   : > { %3002 = vadd.xlane.f32.xlu1 %v2973_v60 }
 0xe3c   : > { %3004 = vadd.xlane.f32.xlu0 %v2974_v20 }
 0xe3e   : > { %3006 = vadd.xlane.f32.xlu1 %v2975_v61 }
 0xeac   : > { %v2981_v0 = vpop.xlane.xlu1 %2980 }
 0xead   : > { %v3010_v1 = vmax.f32 %v2981_v0, 1e-24  ;;  %v2977_v2 = vpop.xlane.xlu0 %2976 }
 0xeae   : > { %v3008_v4 = vmax.f32 %v2977_v2, 1e-24 }
 0xeaf   : > { %9183 = vrsqrt.f32 %v3010_v1 }
 0xeb0   : > { %v2983_v5 = vpop.xlane.xlu1 %2982  ;;  %9185 = vrsqrt.f32 %v3008_v4 }
 0xeb1   : > { %v3011_v36 = vmax.f32 %v2983_v5, 1e-24  ;;  %v2979_v9 = vpop.xlane.xlu0 %2978 }
 0xeb2   : > { %v3009_v10 = vmax.f32 %v2979_v9, 1e-24 }
 0xeb3   : > { %9187 = vrsqrt.f32 %v3011_v36 }
 0xeb4   : > { %9189 = vrsqrt.f32 %v3009_v10 }
 0xeb5   : > { %v2985_v12 = vpop.xlane.xlu0 %2984 }
 0xeb6   : > { %v3012_v37 = vmax.f32 %v2985_v12, 1e-24 }
 0xeb7   : > { %v2987_v13 = vpop.xlane.xlu1 %2986 }
 0xeb8   : > { %9191 = vrsqrt.f32 %v3012_v37  ;;  %v3013_v14 = vmax.f32 %v2987_v13, 1e-24 }
 0xeb9   : > { %v2989_v16 = vpop.xlane.xlu0 %2988  ;;  %v9184_v17 = vpop.eup %9183 }
 0xeba   : > { %9193 = vrsqrt.f32 %v3013_v14  ;;  %v3014_v62 = vmax.f32 %v2989_v16, 1e-24  ;;  %v9186_v11 = vpop.eup %9185  ;;  %v3042_v23 = vmul.f32 %v9184_v17, %v10042_v33 }
 0xebb   : > { %v2991_v18 = vpop.xlane.xlu1 %2990  ;;  %v3040_v28 = vmul.f32 %v9186_v11, %v10044_v34 }
 0xebc   : > { %9195 = vrsqrt.f32 %v3014_v62  ;;  %v3015_v48 = vmax.f32 %v2991_v18, 1e-24 }
 0xebd   : > { %v9188_v6 = vpop.eup %9187  ;;  %v2993_v15 = vpop.xlane.xlu0 %2992 }
 0xebe   : > { %v9190_v19 = vpop.eup %9189  ;;  %9197 = vrsqrt.f32 %v3015_v48  ;;  %v3016_v21 = vmax.f32 %v2993_v15, 1e-24  ;;  %v3043_v25 = vmul.f32 %v9188_v6, %v10048_v38  ;;  %v9167_v48 = vld [vmem:[%s13561_s11] sm:$0xff]   ;;  %v9169_v15 = vld [vmem:[%s13561_s11 + $0x10] sm:$0xff]  }
 0xebf   : > { %v2995_v27 = vpop.xlane.xlu1 %2994  ;;  %v3041_v29 = vmul.f32 %v9190_v19, %v10052_v7  ;;  %v9170_v19 = vld [vmem:[%s13561_s11 + $0x18] sm:$0xff]  }
 0xec0   : > { %9199 = vrsqrt.f32 %v3016_v21  ;;  %v3017_v30 = vmax.f32 %v2995_v27, 1e-24  ;;  %v10116_v32 = vpack.c.bf16 %v3043_v25, %v3042_v23  ;;  %v9171_v21 = vld [vmem:[%s13561_s11 + $0x20] sm:$0xff]   ;;  %v9172_v23 = vld [vmem:[%s13561_s11 + $0x28] sm:$0xff]   ;;  %v9173_v25 = vld [vmem:[%s13561_s11 + $0x30] sm:$0xff]  }
 0xec1   : > { %v2997_v35 = vpop.xlane.xlu0 %2996  ;;  %v10118_v3 = vpack.c.bf16 %v3041_v29, %v3040_v28  ;;  %v9174_v27 = vld [vmem:[%s13561_s11 + $0x38] sm:$0xff]  }
 0xec2   : > { %v9192_v50 = vpop.eup %9191  ;;  %9201 = vrsqrt.f32 %v3017_v30  ;;  %v3018_v39 = vmax.f32 %v2997_v35, 1e-24 }
 0xec3   : > { %8589 = vmatpush3.bf16.xpose.msra.mxu1 %v10118_v3  ;;  %v2999_v33 = vpop.xlane.xlu1 %2998  ;;  %v3044_v7 = vmul.f32 %v9192_v50, %v10060_v42 }
 0xec4   : > { %v9194_v31 = vpop.eup %9193  ;;  %9203 = vrsqrt.f32 %v3018_v39  ;;  %v3019_v38 = vmax.f32 %v2999_v33, 1e-24  ;;  %8590 = vmatprep.subr.bf16.mxu1 %v13605_v63 }
 0xec5   : > { %v3001_v34 = vpop.xlane.xlu0 %3000  ;;  %v3045_v26 = vmul.f32 %v9194_v31, %v10066_v44 }
 0xec6   : > { %v9196_v45 = vpop.eup %9195  ;;  %9205 = vrsqrt.f32 %v3019_v38  ;;  %v3020_v46 = vmax.f32 %v3001_v34, 1e-24 }
 0xec7   : > { %v3003_v52 = vpop.xlane.xlu1 %3002  ;;  %v10124_v53 = vpack.c.bf16 %v3045_v26, %v3044_v7  ;;  %v3046_v60 = vmul.f32 %v9196_v45, %v10058_v40 }
 0xec8   : > { %v9198_v24 = vpop.eup %9197  ;;  %9207 = vrsqrt.f32 %v3020_v46  ;;  %v3021_v54 = vmax.f32 %v3003_v52, 1e-24 }
 0xec9   : > { %v3005_v58 = vpop.xlane.xlu0 %3004  ;;  %v3047_v20 = vmul.f32 %v9198_v24, %v10062_v43 }
 0xeca   : > { %v9200_v61 = vpop.eup %9199  ;;  %9209 = vrsqrt.f32 %v3021_v54  ;;  %v3022_v0 = vmax.f32 %v3005_v58, 1e-24  ;;  %v10201_v54 = vld [vmem:[%s13562_s12] ss:$0 sm:$0xff] }
 0xecb   : > { %8591 = vmatpush3.bf16.xpose.msra.mxu1 %v10116_v32  ;;  %v3007_v42 = vpop.xlane.xlu1 %3006  ;;  %v10129_v44 = vpack.c.bf16 %v3047_v20, %v3046_v60  ;;  %v3048_v4 = vmul.f32 %v9200_v61, %v10076_v49 }
 0xecc   : > { %v9202_v1 = vpop.eup %9201  ;;  %9211 = vrsqrt.f32 %v3022_v0  ;;  %v3023_v2 = vmax.f32 %v3007_v42, 1e-24  ;;  %8592 = vmatprep.subr.bf16.mxu1 %v13605_v63 }
 0xecd   : > { %v3049_v5 = vmul.f32 %v9202_v1, %v10082_v41 }
 0xece   : > { %v9204_v40 = vpop.eup %9203  ;;  %9213 = vrsqrt.f32 %v3023_v2 }
 0xecf   : > { %v10134_v43 = vpack.c.bf16 %v3049_v5, %v3048_v4  ;;  %v3050_v9 = vmul.f32 %v9204_v40, %v10074_v47 }
 0xed0   : > { %v9206_v36 = vpop.eup %9205 }
 0xed1   : > { %v3051_v10 = vmul.f32 %v9206_v36, %v10078_v51 }
 0xed2   : > { %v9208_v12 = vpop.eup %9207 }
 0xed3   : > { %8593 = vmatpush3.bf16.xpose.msra.mxu1 %v10124_v53  ;;  %v10139_v37 = vpack.c.bf16 %v3051_v10, %v3050_v9  ;;  %v3052_v49 = vmul.f32 %v9208_v12, %v10092_v56 }
 0xed4   : > { %v9210_v13 = vpop.eup %9209  ;;  %8594 = vmatprep.subr.bf16.mxu1 %v13605_v63 }
 0xed5   : > { %v3053_v41 = vmul.f32 %v9210_v13, %v10098_v59 }
 0xed6   : > { %v9212_v14 = vpop.eup %9211 }
 0xed7   : > { %v3063_v16 = vpack.c.bf16 %v3053_v41, %v3052_v49  ;;  %v3054_v17 = vmul.f32 %v9212_v14, %v10090_v55  ;;  %v10156_v55 = vpack.c.bf16 %v9414_v22, %v9414_v22  ;;  %v9168_v22 = vld [vmem:[%s13561_s11 + $0x8] sm:$0xff]  }
 0xed8   : > { %v9214_v62 = vpop.eup %9213 }
 0xed9   : > { %v3055_v47 = vmul.f32 %v9214_v62, %v10094_v57 }
 0xedb   : > { %8595 = vmatpush3.bf16.xpose.msra.mxu1 %v10129_v44  ;;  %v3064_v51 = vpack.c.bf16 %v3055_v47, %v3054_v17 }
 0xedc   : > { %8596 = vmatprep.subr.bf16.mxu1 %v13605_v63 }
 0xee3   : > { %8597 = vmatpush3.bf16.xpose.msra.mxu1 %v10134_v43 }
 0xee4   : > { %8598 = vmatprep.subr.bf16.mxu1 %v13605_v63 }
 0xeeb   : > { %8599 = vmatpush3.bf16.xpose.msra.mxu1 %v10139_v37 }
 0xeec   : > { %8600 = vmatprep.subr.bf16.mxu1 %v13605_v63 }
 0xef3   : > { %8601 = vmatpush3.bf16.xpose.msra.mxu1 %v3063_v16 }
 0xef4   : > { %8602 = vmatprep.subr.bf16.mxu1 %v13605_v63 }
 0xefb   : > { %8603 = vmatpush3.bf16.xpose.msra.mxu1 %v3064_v51 }
 0xefc   : > { %8608 = vmatprep.subr.bf16.mxu1 %v13605_v63 }
 0xf02   : > { %8605 = vmatmul.mubr.bf16.vlgmr.msra.gmra.mrb[0].mxu1 %v10156_v55 }
 0xf03   : > { %8610 = vmatprep.mubr.msk.bf16.mxu1 %vm13594_vm0, %v13605_v63 }
 0xfd5   : > { %v3099_v56 = vpop.f32.mrb[0].mxu1 }
 0xfd6   : > { %v3105_v57 = vpack.c.bf16 %v3099_v56, %v3099_v56  ;;  %v8606_v59 = vpop.f32.mrb[1].mxu1 }
 0xfd7   : > { %v3102_v18 = vpop.f32.mrb[2].mxu1 }
 0xfd8   : > { %v8607_v11 = vpop.f32.mrb[3].mxu1  ;;  %8609 = vmatpush3.bf16.xpose.msra.mxu1 %v3105_v57  ;;  %v3147_v6 = vrot.slane %v3105_v57, 1 }
 0xfd9   : > { %8614 = vmatprep.subr.bf16.mxu1 %v13605_v63 }
 0xfdf   : > { %8611 = vmatmul.mubr.bf16.vlgmr.msra.gmra.mrb[4].mxu1 %v3105_v57 }
 0xfe0   : > { %8615 = vmatpush3.bf16.xpose.msra.mxu1 %v3147_v6  ;;  %8616 = vmatprep.mubr.msk.bf16.mxu1 %vm13594_vm0, %v13605_v63 }
 0xfe1   : > { %8620 = vmatprep.subr.bf16.mxu1 %v9167_v48 }
 0xfe7   : > { %8617 = vmatmul.mubr.bf16.vlgmr.msra.gmra.mrb[8].mxu1 %v3147_v6 }
 0xfe8   : > { %8621 = vmatpush3.bf16.msra.mxu1 %v9167_v48  ;;  %8636 = vmatprep.mubr.bf16.mxu1 %v10118_v3 }
 0xfe9   : > { %8622 = vmatprep.subr.bf16.mxu1 %v9168_v22 }
 0xfec   : > { %8623 = vmatpush3.bf16.msra.mxu1 %v9168_v22 }
 0xfed   : > { %8624 = vmatprep.subr.bf16.mxu1 %v9169_v15 }
 0xff0   : > { %8625 = vmatpush3.bf16.msra.mxu1 %v9169_v15 }
 0xff1   : > { %8626 = vmatprep.subr.bf16.mxu1 %v9170_v19 }
 0xff4   : > { %8627 = vmatpush3.bf16.msra.mxu1 %v9170_v19 }
 0xff5   : > { %8628 = vmatprep.subr.bf16.mxu1 %v9171_v21 }
 0xff8   : > { %8629 = vmatpush3.bf16.msra.mxu1 %v9171_v21 }
 0xff9   : > { %8630 = vmatprep.subr.bf16.mxu1 %v9172_v23 }
 0xffc   : > { %8631 = vmatpush3.bf16.msra.mxu1 %v9172_v23 }
 0xffd   : > { %8632 = vmatprep.subr.bf16.mxu1 %v9173_v25 }
0x1000   : > { %8633 = vmatpush3.bf16.msra.mxu1 %v9173_v25 }
0x1001   : > { %8634 = vmatprep.subr.bf16.mxu1 %v9174_v27 }
0x1004   : > { %8635 = vmatpush3.bf16.msra.mxu1 %v9174_v27 }
0x1005   : > { %8690 = vmatprep.subr.bf16.mxu1 %v13605_v63 }
0x1007   : > { %8637 = vmatmul.mubr.bf16.vlgmr.msra.gmra.mrb[12].mxu1 %v10116_v32 }
0x1008   : > { %8640 = vmatprep.mubr.bf16.mxu1 %v10124_v53 }
0x100f   : > { %8641 = vmatmul.mubr.bf16.gmra.mrb[16].mxu1 %v10129_v44 }
0x1010   : > { %8644 = vmatprep.mubr.bf16.mxu1 %v10134_v43 }
0x1017   : > { %8645 = vmatmul.mubr.bf16.gmra.mrb[20].mxu1 %v10139_v37 }
0x1018   : > { %8648 = vmatprep.mubr.bf16.mxu1 %v3063_v16 }
0x101f   : > { %8649 = vmatmul.mubr.bf16.gmra.mrb[24].mxu1 %v3064_v51 }
0x1020   : > { %8692 = vmatprep.mubr.msk.bf16.mxu1 %vm13594_vm0, %v13605_v63 }
0x10b2   : > { %v3140_v28 = vpop.f32.mrb[4].mxu1 }
0x10b3   : > { %v8612_v29 = vpop.f32.mrb[5].mxu1 }
0x10b4   : > { %v3143_v30 = vpop.f32.mrb[6].mxu1 }
0x10b5   : > { %v8613_v35 = vpop.f32.mrb[7].mxu1  ;;  %v10227_v30 = vld [vmem:[%s13569_s19] sm:$0x3] }
0x10ba   : > { %v3183_v3 = vpop.f32.mrb[8].mxu1 }
0x10bb   : > { %v3189_v32 = vmax.f32 %v3140_v28, %v3183_v3  ;;  %v8618_v50 = vpop.f32.mrb[9].mxu1 }
0x10bc   : > { %v3186_v39 = vpop.f32.mrb[10].mxu1 }
0x10bd   : > { %v3191_v33 = vsel %vm3190_vm7, %v3189_v32, -inf  ;;  %v8619_v31 = vpop.f32.mrb[11].mxu1 }
0x10be   : > { %v3192_v38 = vrot.slane %v3191_v33, 4 }
0x10c0   : > { %v3193_v34 = vmax.f32 %v3191_v33, %v3192_v38 }
0x10c2   : > { %v3194_v7 = vrot.slane %v3193_v34, 2 }
0x10c4   : > { %v3195_v26 = vmax.f32 %v3193_v34, %v3194_v7 }
0x10c6   : > { %v3196_v45 = vrot.slane %v3195_v26, 1 }
0x10c8   : > { %v3197_v46 = vmax.f32 %v3195_v26, %v3196_v45 }
0x10ca   : > { %v3198_v52 = vsub.f32 %v3189_v32, %v3197_v46 }
0x10cc   : > { %v3199_v53 = vmul.f32 1.442695, %v3198_v52 }
0x10ce   : > { %9215 = vpow2.f32 %v3199_v53 }
0x10d8   : > { %v9216_v24 = vpop.eup %9215 }
0x10d9   : > { %v3201_v58 = vsel %vm3190_vm7, %v9216_v24, 0.0 }
0x10da   : > { %v3202_v60 = vrot.slane %v3201_v58, 4  ;;  %v8638_v20 = vpop.f32.mrb[12].mxu1 }
0x10db   : > { %v3486_v61 = vadd.f32 %v8638_v20, %v10201_v54  ;;  %v10205_v0 = vpop.f32.mrb[13].mxu1 }
0x10dc   : > { %v3203_v42 = vadd.f32 %v3202_v60, %v3201_v58  ;;  %v8639_v44 = vpop.f32.mrb[14].mxu1 }
0x10dd   : > { %v3487_v1 = vadd.f32 %v8639_v44, %v10201_v54  ;;  %v10208_v2 = vpop.f32.mrb[15].mxu1  ;;  %v3502_v5 = vmax.f32 %v3486_v61, 0.0  ;;  %v13607_v61 = vmov 0  }
0x10de   : > { %v3204_v4 = vrot.slane %v3203_v42, 2  ;;  %9005 = vset.pattern.permute.xlu1 %v13607_v61  ;;  %9006 = vset.pattern.permute.xlu0 %v13607_v61 }
0x10df   : > { %v3503_v40 = vmax.f32 %v3487_v1, 0.0 }
0x10e0   : > { %v3205_v43 = vadd.f32 %v3204_v4, %v3203_v42 }
0x10e1   : > { %v10210_v36 = vpack.c.bf16 %v3503_v40, %v3502_v5 }
0x10e2   : > { %v3206_v9 = vrot.slane %v3205_v43, 1  ;;  %v8642_v10 = vpop.f32.mrb[16].mxu1 }
0x10e3   : > { %v3490_v12 = vadd.f32 %v8642_v10, %v10201_v54  ;;  %v3327_v37 = vpop.f32.mrb[17].mxu1  ;;  %v9175_v10 = vld [vmem:[%s13563_s13] sm:$0xff]  }
0x10e4   : > { %v3207_v13 = vadd.f32 %v3206_v9, %v3205_v43  ;;  %v3488_v49 = vadd.f32 %v10201_v54, %v3327_v37  ;;  %v8643_v41 = vpop.f32.mrb[18].mxu1  ;;  %v3686_v9 = vsel %vm3190_vm7, %v10227_v30, 0.0 }
0x10e5   : > { %v3491_v14 = vadd.f32 %v8643_v41, %v10201_v54  ;;  %v3330_v16 = vpop.f32.mrb[19].mxu1  ;;  %v3506_v17 = vmax.f32 %v3490_v12, 0.0  ;;  %v9178_v41 = vld [vmem:[%s13563_s13 + $0x18] sm:$0xff]  }
0x10e6   : > { %v3489_v62 = vadd.f32 %v10201_v54, %v3330_v16  ;;  %9217 = vrcp.f32 %v3207_v13  ;;  %v3504_v51 = vmax.f32 %v3488_v49, 0.0  ;;  %v9176_v13 = vld [vmem:[%s13563_s13 + $0x8] sm:$0xff]   ;;  %v9177_v49 = vld [vmem:[%s13563_s13 + $0x10] sm:$0xff]  }
0x10e7   : > { %v3507_v47 = vmax.f32 %v3491_v14, 0.0  ;;  %v9179_v14 = vld [vmem:[%s13563_s13 + $0x20] sm:$0xff]   ;;  %v9180_v16 = vld [vmem:[%s13563_s13 + $0x28] sm:$0xff]  }
0x10e8   : > { %v3505_v56 = vmax.f32 %v3489_v62, 0.0  ;;  %v9181_v62 = vld [vmem:[%s13563_s13 + $0x30] sm:$0xff]  }
0x10e9   : > { %v10216_v57 = vpack.c.bf16 %v3507_v47, %v3506_v17  ;;  %v9182_v17 = vld [vmem:[%s13563_s13 + $0x38] sm:$0xff]  }
0x10ea   : > { %v10218_v59 = vpack.c.bf16 %v3505_v56, %v3504_v51  ;;  %v8646_v18 = vpop.f32.mrb[20].mxu1 }
0x10eb   : > { %v3494_v11 = vadd.f32 %v8646_v18, %v10201_v54  ;;  %v3343_v48 = vpop.f32.mrb[21].mxu1 }
0x10ec   : > { %v3492_v6 = vadd.f32 %v10201_v54, %v3343_v48  ;;  %v8647_v22 = vpop.f32.mrb[22].mxu1 }
0x10ed   : > { %v3495_v15 = vadd.f32 %v8647_v22, %v10201_v54  ;;  %v3346_v19 = vpop.f32.mrb[23].mxu1  ;;  %v3510_v23 = vmax.f32 %v3494_v11, 0.0 }
0x10ee   : > { %v3493_v21 = vadd.f32 %v10201_v54, %v3346_v19  ;;  %v3508_v28 = vmax.f32 %v3492_v6, 0.0 }
0x10ef   : > { %v3511_v25 = vmax.f32 %v3495_v15, 0.0 }
0x10f0   : > { %v9218_v27 = vpop.eup %9217  ;;  %v3509_v29 = vmax.f32 %v3493_v21, 0.0 }
0x10f1   : > { %v10229_v35 = vpack.c.bf16 %v3511_v25, %v3510_v23  ;;  %v3209_v3 = vmul.f32 %v9218_v27, %v9216_v24  ;;  %v3485_v25 = vadd.f32 %v10201_v54, %v10208_v2 }
0x10f2   : > { %v10231_v32 = vpack.c.bf16 %v3509_v29, %v3508_v28  ;;  %v8650_v50 = vpop.f32.mrb[24].mxu1 }
0x10f3   : > { %v3498_v39 = vadd.f32 %v8650_v50, %v10201_v54  ;;  %v3359_v33 = vpop.f32.mrb[25].mxu1  ;;  %v3211_v31 = vmul.f32 %v10227_v30, %v3209_v3  ;;  %v3501_v29 = vmax.f32 %v3485_v25, 0.0 }
0x10f4   : > { %v3496_v38 = vadd.f32 %v10201_v54, %v3359_v33  ;;  %v8651_v34 = vpop.f32.mrb[26].mxu1 }
0x10f5   : > { %v3499_v7 = vadd.f32 %v8651_v34, %v10201_v54  ;;  %v3362_v26 = vpop.f32.mrb[27].mxu1  ;;  %v3374_v45 = vsel %vm3190_vm7, %v3211_v31, 0.0  ;;  %v3514_v52 = vmax.f32 %v3498_v39, 0.0  ;;  %v3380_v37 = vpack.c.bf16 %v3211_v31, %v3211_v31 }
0x10f6   : > { %v3497_v46 = vadd.f32 %v10201_v54, %v3362_v26  ;;  %3375 = vadd.xlane.f32.xlu0 %v3374_v45  ;;  %v3512_v24 = vmax.f32 %v3496_v38, 0.0  ;;  %v3692_v38 = vpack.c.bf16 %v10227_v30, %v10227_v30 }
0x10f7   : > { %v3515_v53 = vmax.f32 %v3499_v7, 0.0 }
0x10f8   : > { %v3513_v58 = vmax.f32 %v3497_v46, 0.0 }
0x10f9   : > { %v10239_v60 = vpack.c.bf16 %v3515_v53, %v3514_v52 }
0x10fa   : > { %v10241_v20 = vpack.c.bf16 %v3513_v58, %v3512_v24  ;;  %3687 = vadd.xlane.f32.xlu0 %v3686_v9 }
0x1183   : > { %v3376_v42 = vpop.xlane.xlu0 %3375 }
0x1184   : > { %v3377_v44 = vadd.f32 1.0, %v3376_v42 }
0x1186   : > { %9219 = vrsqrt.f32 %v3377_v44 }
0x1187   : > { %9221 = vrcp.f32 %v3377_v44  ;;  %v3688_v47 = vpop.xlane.xlu0 %3687 }
0x1188   : > { %v3689_v51 = vadd.f32 1.0, %v3688_v47 }
0x118a   : > { %9223 = vrcp.f32 %v3689_v51 }
0x118b   : > { %9225 = vrsqrt.f32 %v3689_v51  ;;  %v10315_v51 = vrot.slane %v10156_v55, 1 }
0x1190   : > { %v9220_v1 = vpop.eup %9219 }
0x1191   : > { %v9222_v4 = vpop.eup %9221  ;;  %v3379_v5 = vmul.f32 %v9220_v1, %v10205_v0 }
0x1192   : > { %v3434_v40 = vsel %vm3433_vm11, %v9222_v4, 1.0 }
0x1193   : > { %3437 = vperm.xlu1 %9005, %v3434_v40   ;;  %v3381_v43 = vpack.c.bf16 %v3379_v5, %v3379_v5 }
0x1194   : > { %v9224_v56 = vpop.eup %9223 }
0x1195   : > { %v3388_v12 = vsel %vm3386_vm10, %v3381_v43, 0  ;;  %v3743_v18 = vsel %vm3433_vm11, %v9224_v56, 1.0 }
0x1196   : > { %8653 = vmatpush3.bf16.msra.mxu0 %v3388_v12  ;;  %3746 = vperm.xlu0 %9006, %v3743_v18  }
0x1197   : > { %8658 = vmatprep.subr.bf16.mxu0 %v9175_v10 }
0x1199   : > { %8655 = vmatmul.mubr.msk.bf16.vlgmr.msra.gmra.mrb[16].mxu0 %vm13593_vm15, %v3380_v37 }
0x119a   : > { %8659 = vmatpush3.bf16.msra.mxu0 %v9175_v10 }
0x119b   : > { %8660 = vmatprep.subr.bf16.mxu0 %v9176_v13 }
0x119e   : > { %8661 = vmatpush3.bf16.msra.mxu0 %v9176_v13 }
0x119f   : > { %8662 = vmatprep.subr.bf16.mxu0 %v9177_v49 }
0x11a2   : > { %8663 = vmatpush3.bf16.msra.mxu0 %v9177_v49 }
0x11a3   : > { %8664 = vmatprep.subr.bf16.mxu0 %v9178_v41 }
0x11a6   : > { %8665 = vmatpush3.bf16.msra.mxu0 %v9178_v41 }
0x11a7   : > { %8666 = vmatprep.subr.bf16.mxu0 %v9179_v14 }
0x11aa   : > { %8667 = vmatpush3.bf16.msra.mxu0 %v9179_v14 }
0x11ab   : > { %8668 = vmatprep.subr.bf16.mxu0 %v9180_v16 }
0x11ae   : > { %8669 = vmatpush3.bf16.msra.mxu0 %v9180_v16 }
0x11af   : > { %8670 = vmatprep.subr.bf16.mxu0 %v9181_v62 }
0x11b2   : > { %8671 = vmatpush3.bf16.msra.mxu0 %v9181_v62 }
0x11b3   : > { %8672 = vmatprep.subr.bf16.mxu0 %v9182_v17 }
0x11b6   : > { %8673 = vmatpush3.bf16.msra.mxu0 %v9182_v17 }
0x11b7   : > { %8714 = vmatprep.subr.bf16.mxu0 %v13605_v63 }
0x1212   : > { %v3438_v11 = vpop.permute.xlu1 %3437 }
0x1213   : > { %v3445_v15 = vmul.f32 %v3438_v11, %v10205_v0  ;;  %v7442_v0 = vld [vmem:[%s13564_s14] ss:$0 sm:$0xff] }
0x1215   : > { %v3747_v56 = vpop.permute.xlu0 %3746 }
0x126c   : > { %v3424_v48 = vpop.f32.mrb[16].mxu0 }
0x126d   : > { %v3430_v6 = vmul.f32 %v9220_v1, %v3424_v48  ;;  %v8656_v22 = vpop.f32.mrb[17].mxu0 }
0x126e   : > { %v3427_v19 = vpop.f32.mrb[18].mxu0 }
0x126f   : > { %v3461_v21 = vsel %vm3433_vm11, %v3430_v6, 0.0  ;;  %v8657_v23 = vpop.f32.mrb[19].mxu0 }
0x1270   : > { %v3462_v27 = vadd.f32 %v3461_v21, %v3445_v15 }
0x1272   : > { %v3484_v28 = vadd.f32 %v10201_v54, %v3462_v27  ;;  %v9226_v54 = vpop.eup %9225 }
0x1274   : > { %v3500_v3 = vmax.f32 %v3484_v28, 0.0  ;;  %v13601_v28 = vmov 1  }
0x1275   : > { %9008 = vset.pattern.permute.xlu0 %v13601_v28 }
0x1276   : > { %v3533_v50 = vpack.c.bf16 %v3501_v29, %v3500_v3 }
0x1278   : > { %8674 = vmatprep.mubr.bf16.mxu0 %v3533_v50 }
0x1279   : > { %8675 = vmatmul.mubr.bf16.vlgmr.msra.gmra.mrb[20].mxu0 %v10210_v36 }
0x127a   : > { %8678 = vmatprep.mubr.bf16.mxu0 %v10218_v59 }
0x1281   : > { %8679 = vmatmul.mubr.bf16.gmra.mrb[24].mxu0 %v10216_v57 }
0x1282   : > { %8682 = vmatprep.mubr.bf16.mxu0 %v10231_v32 }
0x1289   : > { %8683 = vmatmul.mubr.bf16.gmra.mrb[28].mxu0 %v10229_v35 }
0x128a   : > { %8686 = vmatprep.mubr.bf16.mxu0 %v10241_v20 }
0x1291   : > { %8687 = vmatmul.mubr.bf16.gmra.mrb[32].mxu0 %v10239_v60 }
0x1292   : > { %8730 = vmatprep.mubr.msk.bf16.mxu0 %vm13594_vm0, %v13605_v63 }
0x134c   : > { %v8676_v2 = vpop.f32.mrb[20].mxu0 }
0x134d   : > { %v3623_v36 = vpop.f32.mrb[21].mxu0  ;;  %v3790_v32 = vadd.f32 %v8676_v2, %v7442_v0 }
0x134e   : > { %v3691_v57 = vmul.f32 %v9226_v54, %v3623_v36  ;;  %v8677_v59 = vpop.f32.mrb[22].mxu0  ;;  %v3749_v6 = vmul.f32 %v3747_v56, %v3623_v36 }
0x134f   : > { %v3791_v39 = vadd.f32 %v8677_v59, %v7442_v0  ;;  %v3626_v35 = vpop.f32.mrb[23].mxu0 }
0x1350   : > { %v3693_v33 = vpack.c.bf16 %v3691_v57, %v3691_v57  ;;  %v3789_v23 = vadd.f32 %v7442_v0, %v3626_v35 }
0x1351   : > { %v10294_v31 = vpack.c.bf16 %v3791_v39, %v3790_v32 }
0x1352   : > { %v3698_v34 = vsel %vm3386_vm10, %v3693_v33, 0 }
0x1353   : > { %8691 = vmatpush3.bf16.msra.mxu1 %v3698_v34 }
0x1354   : > { %v8680_v7 = vpop.f32.mrb[24].mxu0  ;;  %8696 = vmatprep.subr.bf16.mxu1 %v10156_v55 }
0x1355   : > { %v3639_v26 = vpop.f32.mrb[25].mxu0  ;;  %v3794_v46 = vadd.f32 %v8680_v7, %v7442_v0 }
0x1356   : > { %v8681_v45 = vpop.f32.mrb[26].mxu0  ;;  %8693 = vmatmul.mubr.msk.bf16.vlgmr.msra.gmra.mrb[28].mxu1 %vm13593_vm15, %v3692_v38  ;;  %v3792_v24 = vadd.f32 %v7442_v0, %v3639_v26 }
0x1357   : > { %v3795_v52 = vadd.f32 %v8681_v45, %v7442_v0  ;;  %v3642_v53 = vpop.f32.mrb[27].mxu0 }
0x1358   : > { %v3793_v58 = vadd.f32 %v7442_v0, %v3642_v53 }
0x1359   : > { %v10301_v60 = vpack.c.bf16 %v3795_v52, %v3794_v46 }
0x135a   : > { %v10303_v20 = vpack.c.bf16 %v3793_v58, %v3792_v24 }
0x135c   : > { %v8684_v30 = vpop.f32.mrb[28].mxu0  ;;  %8697 = vmatpush3.bf16.xpose.msra.mxu1 %v10156_v55 }
0x135d   : > { %v3655_v42 = vpop.f32.mrb[29].mxu0  ;;  %v3798_v1 = vadd.f32 %v8684_v30, %v7442_v0  ;;  %8734 = vmatprep.subr.bf16.mxu1 %v10315_v51 }
0x135e   : > { %v8685_v44 = vpop.f32.mrb[30].mxu0  ;;  %v3796_v40 = vadd.f32 %v7442_v0, %v3655_v42 }
0x135f   : > { %v3799_v4 = vadd.f32 %v8685_v44, %v7442_v0  ;;  %v3658_v5 = vpop.f32.mrb[31].mxu0 }
0x1360   : > { %v3797_v43 = vadd.f32 %v7442_v0, %v3658_v5 }
0x1361   : > { %v10306_v9 = vpack.c.bf16 %v3799_v4, %v3798_v1 }
0x1362   : > { %v10308_v10 = vpack.c.bf16 %v3797_v43, %v3796_v40  ;;  %v6294_v40 = vld [vmem:[%s13566_s16] sm:$0x3] }
0x1364   : > { %v8688_v12 = vpop.f32.mrb[32].mxu0 }
0x1365   : > { %v3671_v37 = vpop.f32.mrb[33].mxu0  ;;  %v3802_v49 = vadd.f32 %v8688_v12, %v7442_v0  ;;  %v10504_v12 = vpack.c.bf16 %v6294_v40, %v6294_v40 }
0x1366   : > { %v8689_v13 = vpop.f32.mrb[34].mxu0  ;;  %v3800_v16 = vadd.f32 %v7442_v0, %v3671_v37 }
0x1367   : > { %v3803_v41 = vadd.f32 %v8689_v13, %v7442_v0  ;;  %v3674_v14 = vpop.f32.mrb[35].mxu0 }
0x1368   : > { %v3801_v62 = vadd.f32 %v7442_v0, %v3674_v14 }
0x1369   : > { %v10310_v17 = vpack.c.bf16 %v3803_v41, %v3802_v49 }
0x136a   : > { %v10312_v47 = vpack.c.bf16 %v3801_v62, %v3800_v16 }
0x1429   : > { %v3734_v18 = vpop.f32.mrb[28].mxu1 }
0x142a   : > { %v3740_v11 = vmul.f32 %v9226_v54, %v3734_v18  ;;  %v8694_v48 = vpop.f32.mrb[29].mxu1 }
0x142b   : > { %v3737_v22 = vpop.f32.mrb[30].mxu1 }
0x142c   : > { %v3765_v15 = vsel %vm3433_vm11, %v3740_v11, 0.0  ;;  %v8695_v19 = vpop.f32.mrb[31].mxu1  ;;  %v4089_v11 = vlaneseq }
0x142d   : > { %v3766_v21 = vadd.f32 %v3765_v15, %v3749_v6 }
0x142e   : > { %v10551_v48 = vshrl.u32 %v4089_v11, 7  ;;  %v10563_v15 = vand.u32 127, %v4089_v11 }
0x142f   : > { %v3788_v25 = vadd.f32 %v7442_v0, %v3766_v21 }
0x1430   : > { %v10556_v6 = vsub.s32 0, %v10551_v48  ;;  %vm13625_vm6 = vcmp.ne.s32.totalorder %v10563_v15, %v10551_v48  ;;  %v10570_v21 = vadd.s32 8, %v10551_v48  ;;  %vm13596_vm3 = vcmp.lt.s32.totalorder %v10563_v15, %v10551_v48 }
0x1431   : > { %v10319_v27 = vpack.c.bf16 %v3789_v23, %v3788_v25 }
0x1432   : > { %vm13630_vm2 = vcmp.ne.s32.totalorder %v10563_v15, %v10570_v21  ;;  %vm13600_vm5 = vcmp.lt.s32.totalorder %v10563_v15, %v10570_v21 }
0x1433   : > { %8698 = vmatprep.mubr.bf16.mxu1 %v10319_v27  ;;  %8715 = vmatpush3.bf16.xpose.msra.mxu0 %v10319_v27 }
0x1434   : > { %8699 = vmatmul.mubr.bf16.vlgmr.msra.gmra.mrb[32].mxu1 %v10294_v31  ;;  %8716 = vmatprep.subr.bf16.mxu0 %v13605_v63 }
0x1435   : > { %8702 = vmatprep.mubr.bf16.mxu1 %v10303_v20  ;;  %8735 = vmatpush3.bf16.xpose.msra.mxu1 %v10315_v51 }
0x1436   : > { %8752 = vmatprep.subr.bf16.mxu1 %v13605_v63 }
0x143b   : > { %8717 = vmatpush3.bf16.xpose.msra.mxu0 %v10294_v31 }
0x143c   : > { %8703 = vmatmul.mubr.bf16.gmra.mrb[36].mxu1 %v10301_v60  ;;  %8718 = vmatprep.subr.bf16.mxu0 %v13605_v63 }
0x143d   : > { %8706 = vmatprep.mubr.bf16.mxu1 %v10308_v10 }
0x1443   : > { %8719 = vmatpush3.bf16.xpose.msra.mxu0 %v10303_v20 }
0x1444   : > { %8707 = vmatmul.mubr.bf16.gmra.mrb[40].mxu1 %v10306_v9  ;;  %8720 = vmatprep.subr.bf16.mxu0 %v13605_v63 }
0x1445   : > { %8710 = vmatprep.mubr.bf16.mxu1 %v10312_v47 }
0x144b   : > { %8721 = vmatpush3.bf16.xpose.msra.mxu0 %v10301_v60 }
0x144c   : > { %8711 = vmatmul.mubr.bf16.gmra.mrb[44].mxu1 %v10310_v17  ;;  %8722 = vmatprep.subr.bf16.mxu0 %v13605_v63 }
0x144d   : > { %8736 = vmatprep.mubr.bf16.mxu1 %v10319_v27 }
0x1453   : > { %8723 = vmatpush3.bf16.xpose.msra.mxu0 %v10308_v10 }
0x1454   : > { %8737 = vmatmul.mubr.bf16.vlgmr.msra.gmra.mrb[48].mxu1 %v10294_v31  ;;  %8724 = vmatprep.subr.bf16.mxu0 %v13605_v63 }
0x1455   : > { %8753 = vmatpush3.bf16.xpose.msra.mxu1 %v10319_v27  ;;  %8740 = vmatprep.mubr.bf16.mxu1 %v10303_v20 }
0x1456   : > { %8754 = vmatprep.subr.bf16.mxu1 %v13605_v63 }
0x145b   : > { %8725 = vmatpush3.bf16.xpose.msra.mxu0 %v10306_v9 }
0x145c   : > { %8741 = vmatmul.mubr.bf16.gmra.mrb[52].mxu1 %v10301_v60  ;;  %8726 = vmatprep.subr.bf16.mxu0 %v13605_v63 }
0x145d   : > { %8755 = vmatpush3.bf16.xpose.msra.mxu1 %v10294_v31  ;;  %8744 = vmatprep.mubr.bf16.mxu1 %v10308_v10 }
0x145e   : > { %8756 = vmatprep.subr.bf16.mxu1 %v13605_v63 }
0x1463   : > { %8727 = vmatpush3.bf16.xpose.msra.mxu0 %v10312_v47 }
0x1464   : > { %8745 = vmatmul.mubr.bf16.gmra.mrb[56].mxu1 %v10306_v9  ;;  %8728 = vmatprep.subr.bf16.mxu0 %v13605_v63 }
0x1465   : > { %8757 = vmatpush3.bf16.xpose.msra.mxu1 %v10303_v20  ;;  %8748 = vmatprep.mubr.bf16.mxu1 %v10312_v47 }
0x1466   : > { %8758 = vmatprep.subr.bf16.mxu1 %v13605_v63 }
0x146b   : > { %8729 = vmatpush3.bf16.xpose.msra.mxu0 %v10310_v17 }
0x146c   : > { %8749 = vmatmul.mubr.bf16.gmra.mrb[60].mxu1 %v10310_v17 }
0x146d   : > { %8759 = vmatpush3.bf16.xpose.msra.mxu1 %v10301_v60  ;;  %8768 = vmatprep.mubr.msk.bf16.mxu1 %vm13594_vm0, %v13605_v63 }
0x146e   : > { %8760 = vmatprep.subr.bf16.mxu1 %v13605_v63 }
0x1472   : > { %8731 = vmatmul.mubr.bf16.vlgmr.msra.gmra.mrb[36].mxu0 %v10156_v55  ;;  %v13603_v55 = vmov 1065369472  }
0x1473   : > { %8099 = vmatprep.subr.bf16.mxu0 %v13603_v55 }
0x1474   : > { %8100 = vmatpush3.bf16.msra.mxu0 %v13603_v55 }
0x1475   : > { %8761 = vmatpush3.bf16.xpose.msra.mxu1 %v10308_v10  ;;  %8101 = vmatprep.subr.bf16.mxu0 %v13603_v55 }
0x1476   : > { %8762 = vmatprep.subr.bf16.mxu1 %v13605_v63 }
0x1478   : > { %8102 = vmatpush3.bf16.msra.mxu0 %v13603_v55 }
0x1479   : > { %8103 = vmatprep.subr.bf16.mxu0 %v13603_v55 }
0x147c   : > { %8104 = vmatpush3.bf16.msra.mxu0 %v13603_v55 }
0x147d   : > { %8763 = vmatpush3.bf16.xpose.msra.mxu1 %v10306_v9  ;;  %8105 = vmatprep.subr.bf16.mxu0 %v13603_v55 }
0x147e   : > { %8764 = vmatprep.subr.bf16.mxu1 %v13605_v63 }
0x1480   : > { %8106 = vmatpush3.bf16.msra.mxu0 %v13603_v55 }
0x1481   : > { %8107 = vmatprep.subr.bf16.mxu0 %v13603_v55 }
0x1484   : > { %8108 = vmatpush3.bf16.msra.mxu0 %v13603_v55 }
0x1485   : > { %8765 = vmatpush3.bf16.xpose.msra.mxu1 %v10312_v47  ;;  %8109 = vmatprep.subr.bf16.mxu0 %v13603_v55 }
0x1486   : > { %8766 = vmatprep.subr.bf16.mxu1 %v13605_v63 }
0x1488   : > { %8110 = vmatpush3.bf16.msra.mxu0 %v13603_v55 }
0x1489   : > { %8111 = vmatprep.subr.bf16.mxu0 %v13603_v55 }
0x148c   : > { %8112 = vmatpush3.bf16.msra.mxu0 %v13603_v55 }
0x148d   : > { %8767 = vmatpush3.bf16.xpose.msra.mxu1 %v10310_v17  ;;  %8113 = vmatprep.subr.bf16.mxu0 %v13603_v55 }
0x148e   : > { %8211 = vmatprep.subr.bf16.mxu1 %v13603_v55 }
0x1490   : > { %8114 = vmatpush3.bf16.msra.mxu0 %v13603_v55 }
0x1491   : > { %8772 = vmatprep.subr.bf16.mxu0 %v10504_v12 }
0x1494   : > { %8769 = vmatmul.mubr.bf16.vlgmr.msra.gmra.mrb[64].mxu1 %v10315_v51 }
0x1495   : > { %8212 = vmatpush3.bf16.msra.mxu1 %v13603_v55 }
0x1496   : > { %8213 = vmatprep.subr.bf16.mxu1 %v13603_v55 }
0x1499   : > { %8214 = vmatpush3.bf16.msra.mxu1 %v13603_v55 }
0x149a   : > { %8215 = vmatprep.subr.bf16.mxu1 %v13603_v55 }
0x149d   : > { %8216 = vmatpush3.bf16.msra.mxu1 %v13603_v55 }
0x149e   : > { %8217 = vmatprep.subr.bf16.mxu1 %v13603_v55 }
0x14a1   : > { %8218 = vmatpush3.bf16.msra.mxu1 %v13603_v55 }
0x14a2   : > { %8219 = vmatprep.subr.bf16.mxu1 %v13603_v55 }
0x14a5   : > { %8220 = vmatpush3.bf16.msra.mxu1 %v13603_v55 }
0x14a6   : > { %8221 = vmatprep.subr.bf16.mxu1 %v13603_v55 }
0x14a9   : > { %8222 = vmatpush3.bf16.msra.mxu1 %v13603_v55 }
0x14aa   : > { %8223 = vmatprep.subr.bf16.mxu1 %v13603_v55 }
0x14ad   : > { %8224 = vmatpush3.bf16.msra.mxu1 %v13603_v55 }
0x14ae   : > { %8225 = vmatprep.subr.bf16.mxu1 %v13603_v55 }
0x14b1   : > { %8226 = vmatpush3.bf16.msra.mxu1 %v13603_v55 }
0x14b2   : > { %8790 = vmatprep.subr.bf16.mxu1 %v13605_v63 }
0x1507   : > { %v10398_v29 = vpop.f32.mrb[32].mxu1 }
0x1508   : > { %13794 = vst [vmem:[#allocation4_spill] sm:$0xff] %v10398_v29  ;;  %v10402_v3 = vpop.f32.mrb[33].mxu1 }
0x1509   : > { %13795 = vst [vmem:[#allocation5_spill] sm:$0xff] %v10402_v3  ;;  %4263 = vperm.xlu1 %9005, %v10402_v3   ;;  %v10405_v50 = vpop.f32.mrb[34].mxu1 }
0x150a   : > { %13796 = vst [vmem:[#allocation6_spill] sm:$0xff] %v10405_v50  ;;  %v10407_v54 = vpop.f32.mrb[35].mxu1 }
0x150b   : > { %13797 = vst [vmem:[#allocation7_spill] sm:$0xff] %v10407_v54  ;;  %5171 = vperm.xlu0 %9008, %v10407_v54  }
0x150d   : > { %4268 = vperm.xlu1 %9005, %v10407_v54  }
0x150f   : > { %5175 = vperm.xlu0 %9008, %v10398_v29   ;;  %v10418_v0 = vpop.f32.mrb[36].mxu1 }
0x1510   : > { %13798 = vst [vmem:[#allocation8_spill] sm:$0xff] %v10418_v0  ;;  %v10421_v2 = vpop.f32.mrb[37].mxu1 }
0x1511   : > { %13799 = vst [vmem:[#allocation9_spill] sm:$0xff] %v10421_v2  ;;  %4273 = vperm.xlu1 %9005, %v10398_v29   ;;  %v10424_v36 = vpop.f32.mrb[38].mxu1  ;;  %v13936_v29 = vmov 0 }
0x1512   : > { %13800 = vst [vmem:[#allocation10_spill] sm:$0xff] %v10424_v36  ;;  %v10426_v57 = vpop.f32.mrb[39].mxu1 }
0x1513   : > { %13801 = vst [vmem:[#allocation11_spill] sm:$0xff] %v10426_v57  ;;  %9009 = vset.pattern.permute.xlu0 %v13607_v61 }
0x1515   : > { %4278 = vperm.xlu1 %9005, %v10405_v50  }
0x1517   : > { %v10430_v59 = vpop.f32.mrb[40].mxu1 }
0x1518   : > { %13802 = vst [vmem:[#allocation12_spill] sm:$0xff] %v10430_v59  ;;  %v10432_v32 = vpop.f32.mrb[41].mxu1 }
0x1519   : > { %13803 = vst [vmem:[#allocation13_spill] sm:$0xff] %v10432_v32  ;;  %4283 = vperm.xlu1 %9005, %v10421_v2   ;;  %v10435_v39 = vpop.f32.mrb[42].mxu1 }
0x151a   : > { %13804 = vst [vmem:[#allocation14_spill] sm:$0xff] %v10435_v39  ;;  %v10437_v35 = vpop.f32.mrb[43].mxu1 }
0x151b   : > { %13805 = vst [vmem:[#allocation15_spill] sm:$0xff] %v10437_v35  ;;  %4308 = vperm.xlu0 %9009, %v10437_v35  }
0x151d   : > { %4288 = vperm.xlu1 %9005, %v10426_v57  }
0x151f   : > { %4318 = vperm.xlu0 %9009, %v10435_v39   ;;  %v10442_v33 = vpop.f32.mrb[44].mxu1 }
0x1520   : > { %13806 = vst [vmem:[#allocation16_spill] sm:$0xff] %v10442_v33  ;;  %v10444_v38 = vpop.f32.mrb[45].mxu1 }
0x1521   : > { %13807 = vst [vmem:[#allocation17_spill] sm:$0xff] %v10444_v38  ;;  %4293 = vperm.xlu1 %9005, %v10418_v0   ;;  %v10447_v34 = vpop.f32.mrb[46].mxu1 }
0x1522   : > { %13808 = vst [vmem:[#allocation18_spill] sm:$0xff] %v10447_v34  ;;  %v10449_v7 = vpop.f32.mrb[47].mxu1 }
0x1523   : > { %13809 = vst [vmem:[#allocation19_spill] sm:$0xff] %v10449_v7  ;;  %4328 = vperm.xlu0 %9009, %v10449_v7  }
0x1525   : > { %4298 = vperm.xlu1 %9005, %v10424_v36  }
0x1527   : > { %9012 = vset.pattern.permute.xlu0 %v13601_v28  ;;  %v10454_v26 = vpop.f32.mrb[48].mxu1 }
0x1528   : > { %13810 = vst [vmem:[#allocation20_spill] sm:$0xff] %v10454_v26  ;;  %5187 = vperm.xlu0 %9012, %v10426_v57   ;;  %v10457_v45 = vpop.f32.mrb[49].mxu1 }
0x1529   : > { %13811 = vst [vmem:[#allocation21_spill] sm:$0xff] %v10457_v45  ;;  %4303 = vperm.xlu1 %9005, %v10432_v32   ;;  %v10460_v46 = vpop.f32.mrb[50].mxu1 }
0x152a   : > { %13812 = vst [vmem:[#allocation22_spill] sm:$0xff] %v10460_v46  ;;  %v10462_v52 = vpop.f32.mrb[51].mxu1 }
0x152b   : > { %13813 = vst [vmem:[#allocation23_spill] sm:$0xff] %v10462_v52 }
0x152c   : > { %9013 = vset.pattern.permute.xlu0 %v13607_v61 }
0x152d   : > { %4313 = vperm.xlu1 %9005, %v10430_v59   ;;  %4338 = vperm.xlu0 %9013, %v10447_v34  }
0x152f   : > { %v10467_v53 = vpop.f32.mrb[52].mxu1 }
0x1530   : > { %13814 = vst [vmem:[#allocation24_spill] sm:$0xff] %v10467_v53  ;;  %v10469_v24 = vpop.f32.mrb[53].mxu1 }
0x1531   : > { %13815 = vst [vmem:[#allocation25_spill] sm:$0xff] %v10469_v24  ;;  %9007 = vset.pattern.permute.xlu1 %v13601_v28  ;;  %4348 = vperm.xlu0 %9013, %v10462_v52   ;;  %v10473_v58 = vpop.f32.mrb[54].mxu1 }
0x1532   : > { %13816 = vst [vmem:[#allocation26_spill] sm:$0xff] %v10473_v58  ;;  %5167 = vperm.xlu1 %9007, %v10402_v3   ;;  %v10476_v30 = vpop.f32.mrb[55].mxu1 }
0x1533   : > { %13817 = vst [vmem:[#allocation27_spill] sm:$0xff] %v10476_v30 }
0x1535   : > { %9015 = vset.pattern.permute.xlu0 %v13601_v28 }
0x1536   : > { %9010 = vset.pattern.permute.xlu1 %v13607_v61  ;;  %5191 = vperm.xlu0 %9015, %v10418_v0   ;;  %v13930_v0 = vmov 0 }
0x1537   : > { %4333 = vperm.xlu1 %9010, %v10442_v33   ;;  %v10482_v42 = vpop.f32.mrb[56].mxu1 }
0x1538   : > { %13818 = vst [vmem:[#allocation28_spill] sm:$0xff] %v10482_v42  ;;  %v10484_v44 = vpop.f32.mrb[57].mxu1 }
0x1539   : > { %13819 = vst [vmem:[#allocation29_spill] sm:$0xff] %v10484_v44  ;;  %v10486_v1 = vpop.f32.mrb[58].mxu1 }
0x153a   : > { %13820 = vst [vmem:[#allocation30_spill] sm:$0xff] %v10486_v1  ;;  %9016 = vset.pattern.permute.xlu0 %v13607_v61  ;;  %v10489_v4 = vpop.f32.mrb[59].mxu1 }
0x153b   : > { %13821 = vst [vmem:[#allocation31_spill] sm:$0xff] %v10489_v4  ;;  %4323 = vperm.xlu1 %9010, %v10444_v38   ;;  %4363 = vperm.xlu0 %9016, %v10469_v24  }
0x153f   : > { %9011 = vset.pattern.permute.xlu1 %v13601_v28  ;;  %9018 = vset.pattern.permute.xlu0 %v13601_v28  ;;  %v10495_v5 = vpop.f32.mrb[60].mxu1 }
0x1540   : > { %13822 = vst [vmem:[#allocation32_spill] sm:$0xff] %v10495_v5  ;;  %5179 = vperm.xlu1 %9011, %v10405_v50   ;;  %5203 = vperm.xlu0 %9018, %v10437_v35   ;;  %v10502_v43 = vpop.f32.mrb[61].mxu1  ;;  %v13939_v50 = vmov 0 }
0x1541   : > { %13823 = vst [vmem:[#allocation33_spill] sm:$0xff] %v10502_v43  ;;  %v10506_v37 = vpop.f32.mrb[62].mxu1 }
0x1542   : > { %13824 = vst [vmem:[#allocation34_spill] sm:$0xff] %v10506_v37  ;;  %v10508_v13 = vpop.f32.mrb[63].mxu1 }
0x1543   : > { %13825 = vst [vmem:[#allocation35_spill] sm:$0xff] %v10508_v13 }
0x1544   : > { %5183 = vperm.xlu1 %9011, %v10421_v2   ;;  %9020 = vset.pattern.permute.xlu0 %v13607_v61  ;;  %v13943_v2 = vmov 0 }
0x1545   : > { %4383 = vperm.xlu0 %9020, %v10484_v44   ;;  %v10514_v49 = vpop.f32.mrb[36].mxu0 }
0x1546   : > { %v8732_v41 = vpop.f32.mrb[37].mxu0  ;;  %v10561_v22 = vrot.slane %v10514_v49, %v10556_v6 }
0x1547   : > { %v3946_v14 = vpop.f32.mrb[38].mxu0  ;;  %v10671_v41 = vadd.s32 40, %v10551_v48 }
0x1548   : > { %9014 = vset.pattern.permute.xlu1 %v13607_v61  ;;  %v8733_v16 = vpop.f32.mrb[39].mxu0 }
0x1549   : > { %4353 = vperm.xlu1 %9014, %v10454_v26   ;;  %9021 = vset.pattern.permute.xlu0 %v13601_v28  ;;  %v10614_v16 = vadd.s32 16, %v10551_v48 }
0x154a   : > { %5207 = vperm.xlu0 %9021, %v10430_v59   ;;  %v11233_v59 = vadd.s32 184, %v10551_v48 }
0x154d   : > { %4343 = vperm.xlu1 %9014, %v10457_v45  }
0x154e   : > { %9023 = vset.pattern.permute.xlu0 %v13607_v61 }
0x154f   : > { %4403 = vperm.xlu0 %9023, %v10502_v43  }
0x1551   : > { %4358 = vperm.xlu1 %9014, %v10460_v46  }
0x1553   : > { %9024 = vset.pattern.permute.xlu0 %v13601_v28 }
0x1554   : > { %5219 = vperm.xlu0 %9024, %v10449_v7  }
0x1555   : > { %4373 = vperm.xlu1 %9014, %v10467_v53  }
0x1558   : > { %5223 = vperm.xlu0 %9024, %v10442_v33   ;;  %v11189_v33 = vadd.s32 168, %v10551_v48 }
0x1559   : > { %4378 = vperm.xlu1 %9014, %v10473_v58  }
0x155c   : > { %5231 = vperm.xlu0 %9024, %v10457_v45   ;;  %v11226_v45 = vadd.s32 176, %v10551_v48 }
0x155d   : > { %4368 = vperm.xlu1 %9014, %v10476_v30  }
0x1560   : > { %5239 = vperm.xlu0 %9024, %v10454_v26  }
0x1561   : > { %9017 = vset.pattern.permute.xlu1 %v13601_v28 }
0x1562   : > { %5195 = vperm.xlu1 %9017, %v10424_v36  }
0x1564   : > { %5247 = vperm.xlu0 %9024, %v10469_v24  }
0x1566   : > { %5199 = vperm.xlu1 %9017, %v10432_v32  }
0x1567   : > { %v10536_v62 = vpop.f32.mrb[64].mxu1 }
0x1568   : > { %5255 = vperm.xlu0 %9024, %v10467_v53   ;;  %v8770_v51 = vpop.f32.mrb[65].mxu1  ;;  %v10577_v23 = vrot.slane %v10536_v62, %v10556_v6  ;;  %v11087_v53 = vadd.s32 136, %v10551_v48 }
0x1569   : > { %v4086_v56 = vpop.f32.mrb[66].mxu1 }
0x156a   : > { %9019 = vset.pattern.permute.xlu1 %v13607_v61  ;;  %v8771_v18 = vpop.f32.mrb[67].mxu1  ;;  %v10617_v56 = vadd.s32 24, %v10551_v48 }
0x156b   : > { %4393 = vperm.xlu1 %9019, %v10482_v42   ;;  %v13611_v18 = vmov 1.0|1.0  }
0x156c   : > { %5263 = vperm.xlu0 %9024, %v10484_v44  }
0x156f   : > { %4388 = vperm.xlu1 %9019, %v10489_v4  }
0x1570   : > { %5271 = vperm.xlu0 %9024, %v10482_v42   ;;  %v10845_v42 = vadd.s32 88, %v10551_v48 }
0x1573   : > { %4398 = vperm.xlu1 %9019, %v10486_v1  }
0x1574   : > { %5279 = vperm.xlu0 %9024, %v10502_v43   ;;  %v10781_v43 = vadd.s32 64, %v10551_v48 }
0x1577   : > { %9022 = vset.pattern.permute.xlu1 %v13601_v28 }
0x1578   : > { %5211 = vperm.xlu1 %9022, %v10435_v39   ;;  %5287 = vperm.xlu0 %9024, %v10495_v5  }
0x157c   : > { %5215 = vperm.xlu1 %9022, %v10444_v38   ;;  %9028 = vset.pattern.permute.xlu0 %v13607_v61 }
0x1580   : > { %9025 = vset.pattern.permute.xlu1 %v13607_v61  ;;  %v10730_v61 = vsub.s32 1, %v10551_v48 }
0x1581   : > { %4408 = vperm.xlu1 %9025, %v10508_v13  }
0x1585   : > { %4413 = vperm.xlu1 %9025, %v10495_v5   ;;  %v10746_v5 = vadd.s32 72, %v10551_v48 }
0x1588   : > { %v4264_v19 = vpop.permute.xlu1 %4263 }
0x1589   : > { %vm4421_vm1 = vcmp.gt.f32.partialorder %v10561_v22, %v4264_v19  ;;  %4418 = vperm.xlu1 %9025, %v10506_v37   ;;  %vm4549_vm8 = vcmp.eq.f32.partialorder %v10561_v22, %v4264_v19  ;;  %vm4422_vm10 = vcmp.gt.f32.partialorder %v10577_v23, %v4264_v19 }
0x158a   : > { %vm10582_vm9 = vmand %vm4421_vm1, %vm13625_vm6  ;;  %v10703_v19 = vpop.permute.xlu0 %5171 }
0x158b   : > { %vm10589_vm13 = vmand %vm4549_vm8, %vm13596_vm3 }
0x158c   : > { %v4269_v40 = vpop.permute.xlu1 %4268 }
0x158d   : > { %vm4423_vm4 = vcmp.gt.f32.partialorder %v10561_v22, %v4269_v40  ;;  %vm4551_vm14 = vcmp.eq.f32.partialorder %v10561_v22, %v4269_v40  ;;  %9026 = vset.pattern.permute.xlu1 %v13601_v28  ;;  %vm4424_vm12 = vcmp.gt.f32.partialorder %v10577_v23, %v4269_v40  ;;  %v10668_v40 = vadd.s32 32, %v10551_v48 }
0x158e   : > { %vm10604_vm7 = vmand %vm4423_vm4, %vm13630_vm2  ;;  %5227 = vperm.xlu1 %9026, %v10447_v34  }
0x158f   : > { %vm4615_vm11 = vmand %vm4551_vm14, %vm13600_vm5 }
0x1590   : > { %vm7507_vm1 = vmpackc.low %vm4424_vm12, %vm4422_vm10  ;;  %v4274_v51 = vpop.permute.xlu1 %4273  ;;  %vm13595_vm10 = vcmp.ne.s32.totalorder %v10563_v15, %v10614_v16 }
0x1591   : > { %7508 = vmatprep.mubr.msk.bf16.mxu0 %vm7507_vm1, %v13611_v18  ;;  %vm4425_vm8 = vcmp.gt.f32.partialorder %v10561_v22, %v4274_v51  ;;  %vm4677_vm4 = vmor %vm10582_vm9, %vm10589_vm13  ;;  %vm4553_vm14 = vcmp.eq.f32.partialorder %v10561_v22, %v4274_v51  ;;  %vm13599_vm1 = vcmp.ne.s32.totalorder %v10563_v15, %v10617_v56  ;;  %vm13597_vm9 = vcmp.lt.s32.totalorder %v10563_v15, %v10614_v16 }
0x1592   : > { %vm4679_vm15 = vmor %vm10604_vm7, %vm4615_vm11  ;;  %5235 = vperm.xlu1 %9026, %v10462_v52   ;;  %vm13598_vm13 = vcmp.lt.s32.totalorder %v10563_v15, %v10617_v56 }
0x1593   : > { %vm7509_vm12 = vmpackc.low %vm4679_vm15, %vm4677_vm4  ;;  %vm4426_vm4 = vcmp.gt.f32.partialorder %v10577_v23, %v4274_v51 }
0x1594   : > { %7510 = vmatmul.mubr.msk.bf16.vlgmr.msra.gmra.mrb[40].mxu0 %vm7509_vm12, %v13611_v18  ;;  %v4279_v11 = vpop.permute.xlu1 %4278  ;;  %vm10641_vm7 = vmand %vm4425_vm8, %vm13595_vm10 }
0x1595   : > { %vm4427_vm15 = vcmp.gt.f32.partialorder %v10561_v22, %v4279_v11  ;;  %vm4555_vm11 = vcmp.eq.f32.partialorder %v10561_v22, %v4279_v11  ;;  %vm4428_vm12 = vcmp.gt.f32.partialorder %v10577_v23, %v4279_v11  ;;  %vm4617_vm0 = vmand %vm4553_vm14, %vm13597_vm9  ;;  %8773 = vmatpush3.bf16.xpose.msra.mxu0 %v10504_v12 }
0x1596   : > { %5243 = vperm.xlu1 %9026, %v10460_v46   ;;  %vm7511_vm8 = vmpackc.low %vm4428_vm12, %vm4426_vm4  ;;  %8810 = vmatprep.subr.bf16.mxu0 %v13603_v55  ;;  %v10718_v55 = vpop.permute.xlu0 %5175  ;;  %v11186_v46 = vadd.s32 160, %v10551_v48 }
0x1597   : > { %7512 = vmatprep.mubr.msk.bf16.mxu0 %vm7511_vm8, %v13611_v18  ;;  %vm4491_vm10 = vmand %vm4427_vm15, %vm13599_vm1  ;;  %vm13608_vm8 = vcmp.lt.s32.totalorder %v10563_v15, %v10668_v40 }
0x1598   : > { %v4284_v25 = vpop.permute.xlu1 %4283  ;;  %vm4619_vm3 = vmand %vm4555_vm11, %vm13598_vm13 }
0x1599   : > { %vm4681_vm14 = vmor %vm10641_vm7, %vm4617_vm0  ;;  %vm4430_vm15 = vcmp.gt.f32.partialorder %v10577_v23, %v4284_v25  ;;  %vm4429_vm12 = vcmp.gt.f32.partialorder %v10561_v22, %v4284_v25  ;;  %vm4557_vm7 = vcmp.eq.f32.partialorder %v10561_v22, %v4284_v25  ;;  %v10707_v25 = vadd.s32 48, %v10551_v48 }
0x159a   : > { %vm4683_vm9 = vmor %vm4491_vm10, %vm4619_vm3  ;;  %5251 = vperm.xlu1 %9026, %v10476_v30   ;;  %vm13620_vm3 = vcmp.ne.s32.totalorder %v10563_v15, %v10668_v40  ;;  %v11090_v30 = vadd.s32 128, %v10563_v15 }
0x159b   : > { %vm7513_vm4 = vmpackc.low %vm4683_vm9, %vm4681_vm14  ;;  %vm13622_vm9 = vcmp.ne.s32.totalorder %v10563_v15, %v10671_v41 }
0x159c   : > { %7514 = vmatmul.mubr.msk.bf16.gmra.mrb[44].mxu0 %vm7513_vm4, %v13611_v18  ;;  %v4289_v14 = vpop.permute.xlu1 %4288  ;;  %vm13621_vm4 = vcmp.lt.s32.totalorder %v10563_v15, %v10671_v41 }
0x159d   : > { %vm4432_vm11 = vcmp.gt.f32.partialorder %v10577_v23, %v4289_v14  ;;  %vm4431_vm10 = vcmp.gt.f32.partialorder %v10561_v22, %v4289_v14  ;;  %vm4559_vm14 = vcmp.eq.f32.partialorder %v10561_v22, %v4289_v14  ;;  %v10710_v14 = vadd.s32 56, %v10551_v48 }
0x159e   : > { %5259 = vperm.xlu1 %9026, %v10473_v58   ;;  %vm7515_vm0 = vmpackc.low %vm4432_vm11, %vm4430_vm15  ;;  %v11016_v58 = vadd.s32 112, %v10551_v48 }
0x159f   : > { %7516 = vmatprep.mubr.msk.bf16.mxu0 %vm7515_vm0, %v13611_v18  ;;  %vm4493_vm15 = vmand %vm4429_vm12, %vm13620_vm3 }
0x15a0   : > { %v4294_v51 = vpop.permute.xlu1 %4293  ;;  %vm4495_vm11 = vmand %vm4431_vm10, %vm13622_vm9 }
0x15a1   : > { %vm4621_vm0 = vmand %vm4557_vm7, %vm13608_vm8  ;;  %vm4433_vm7 = vcmp.gt.f32.partialorder %v10561_v22, %v4294_v51  ;;  %vm13618_vm8 = vcmp.lt.s32.totalorder %v10563_v15, %v10710_v14 }
0x15a2   : > { %5267 = vperm.xlu1 %9026, %v10489_v4   ;;  %vm4623_vm13 = vmand %vm4559_vm14, %vm13621_vm4  ;;  %vm13619_vm14 = vcmp.ne.s32.totalorder %v10563_v15, %v10707_v25  ;;  %v10852_v4 = vrot.slane %v10536_v62, %v10730_v61  ;;  %v10877_v62 = vadd.s32 80, %v10551_v48 }
0x15a3   : > { %vm4685_vm1 = vmor %vm4493_vm15, %vm4621_vm0  ;;  %vm4561_vm15 = vcmp.eq.f32.partialorder %v10561_v22, %v4294_v51  ;;  %vm13616_vm0 = vcmp.lt.s32.totalorder %v10563_v15, %v10707_v25 }
0x15a4   : > { %v4299_v11 = vpop.permute.xlu1 %4298  ;;  %vm4687_vm5 = vmor %vm4495_vm11, %vm4623_vm13 }
0x15a5   : > { %vm7517_vm12 = vmpackc.low %vm4687_vm5, %vm4685_vm1  ;;  %vm4436_vm10 = vcmp.gt.f32.partialorder %v10577_v23, %v4299_v11  ;;  %vm4435_vm13 = vcmp.gt.f32.partialorder %v10561_v22, %v4299_v11  ;;  %vm4434_vm5 = vcmp.gt.f32.partialorder %v10577_v23, %v4294_v51  ;;  %vm13614_vm1 = vcmp.ne.s32.totalorder %v10563_v15, %v10710_v14 }
0x15a6   : > { %5275 = vperm.xlu1 %9026, %v10486_v1   ;;  %7518 = vmatmul.mubr.msk.bf16.gmra.mrb[48].mxu0 %vm7517_vm12, %v13611_v18  ;;  %vm7519_vm11 = vmpackc.low %vm4436_vm10, %vm4434_vm5  ;;  %vm4563_vm12 = vcmp.eq.f32.partialorder %v10561_v22, %v4299_v11  ;;  %v10927_v51 = vadd.s32 96, %v10551_v48 }
0x15a7   : > { %7520 = vmatprep.mubr.msk.bf16.mxu0 %vm7519_vm11, %v13611_v18  ;;  %vm10741_vm10 = vmand %vm4433_vm7, %vm13619_vm14  ;;  %v4309_v18 = vpop.permute.xlu0 %4308 }
0x15a8   : > { %v4304_v28 = vpop.permute.xlu1 %4303  ;;  %vm10751_vm5 = vmand %vm4435_vm13, %vm13614_vm1 }
0x15a9   : > { %vm10759_vm7 = vmand %vm4561_vm15, %vm13616_vm0  ;;  %vm4438_vm1 = vcmp.gt.f32.partialorder %v10577_v23, %v4304_v28  ;;  %vm13624_vm15 = vcmp.ne.s32.totalorder %v10563_v15, %v10746_v5  ;;  %vm4439_vm0 = vcmp.gt.f32.partialorder %v10561_v22, %v4309_v18 }
0x15aa   : > { %5283 = vperm.xlu1 %9026, %v10508_v13   ;;  %vm4627_vm11 = vmand %vm4563_vm12, %vm13618_vm8  ;;  %v10768_v13 = vrot.slane %v10514_v49, %v10730_v61  ;;  %v13840_v49 = vmov 0   ;;  %vm13623_vm8 = vcmp.lt.s32.totalorder %v10563_v15, %v10746_v5 }
0x15ab   : > { %vm4689_vm13 = vmor %vm10741_vm10, %vm10759_vm7  ;;  %vm4440_vm10 = vcmp.gt.f32.partialorder %v10577_v23, %v4309_v18  ;;  %vm4567_vm7 = vcmp.eq.f32.partialorder %v10561_v22, %v4309_v18  ;;  %v4319_v44 = vpop.permute.xlu0 %4318  ;;  %v10912_v18 = vadd.s32 104, %v10551_v48 }
0x15ac   : > { %v10727_v63 = vpop.permute.xlu1 %4313  ;;  %vm4691_vm12 = vmor %vm10751_vm5, %vm4627_vm11  ;;  %vm5296_vm5 = vcmp.gt.f32.partialorder %v10768_v13, %v10703_v19  ;;  %vm5424_vm11 = vcmp.eq.f32.partialorder %v10768_v13, %v10703_v19 }
0x15ad   : > { %vm7521_vm14 = vmpackc.low %vm4691_vm12, %vm4689_vm13  ;;  %vm4437_vm13 = vcmp.gt.f32.partialorder %v10561_v22, %v4304_v28  ;;  %vm13631_vm12 = vcmp.ne.s32.totalorder %v10563_v15, %v10781_v43 }
0x15ae   : > { %5291 = vperm.xlu1 %9026, %v10506_v37   ;;  %7522 = vmatmul.mubr.msk.bf16.gmra.mrb[52].mxu0 %vm7521_vm14, %v13841_v8  ;;  %vm7523_vm3 = vmpackc.low %vm4440_vm10, %vm4438_vm1  ;;  %vm13641_vm10 = vcmp.lt.s32.totalorder %v10563_v15, %v10781_v43 }
0x15af   : > { %vm10797_vm9 = vmand %vm4439_vm0, %vm13624_vm15  ;;  %7524 = vmatprep.mubr.msk.bf16.mxu0 %vm7523_vm3, %v13841_v8  ;;  %vm4565_vm0 = vcmp.eq.f32.partialorder %v10561_v22, %v4304_v28  ;;  %v13851_v28 = vmov 0 }
0x15b0   : > { %vm10806_vm1 = vmand %vm4567_vm7, %vm13623_vm8  ;;  %vm13850_vm8 = vcmp.lt.s32.totalorder %v10563_v15, %v10570_v21 }
0x15b1   : > { %v5168_v37 = vpop.permute.xlu1 %5167  ;;  %vm10826_vm7 = vmand %vm5296_vm5, %vm13630_vm2  ;;  %vm13633_vm2 = vcmp.ne.s32.totalorder %v10563_v15, %v10845_v42 }
0x15b2   : > { %9027 = vset.pattern.permute.xlu1 %v13840_v49  ;;  %vm5294_vm4 = vcmp.gt.f32.partialorder %v10768_v13, %v5168_v37  ;;  %vm5422_vm14 = vcmp.eq.f32.partialorder %v10768_v13, %v5168_v37  ;;  %v13848_v49 = vmov 0  ;;  %vm10833_vm15 = vmand %vm5424_vm11, %vm13850_vm8 }
0x15b3   : > { %vm10817_vm3 = vmand %vm5294_vm4, %vm13625_vm6  ;;  %v13849_v49 = vsel %vm10826_vm7, 4294967295, %v13848_v49  ;;  %v13852_v28 = vsel %vm10833_vm15, 4294967295, %v13851_v28  ;;  %vm13853_vm4 = vcmp.lt.s32.totalorder %v10563_v15, %v10551_v48  ;;  %vm4444_vm7 = vcmp.gt.f32.partialorder %v10577_v23, %v4319_v44 }
0x15b4   : > { %vm10840_vm6 = vmand %vm5422_vm14, %vm13853_vm4  ;;  %vm4442_vm14 = vcmp.gt.f32.partialorder %v10577_v23, %v10727_v63 }
0x15b5   : > { %vm4501_vm5 = vmand %vm4437_vm13, %vm13631_vm12  ;;  %vm5295_vm13 = vcmp.gt.f32.partialorder %v10852_v4, %v5168_v37  ;;  %vm4443_vm12 = vcmp.gt.f32.partialorder %v10561_v22, %v4319_v44 }
0x15b6   : > { %vm4629_vm8 = vmand %vm4565_vm0, %vm13641_vm10  ;;  %vm13632_vm0 = vcmp.lt.s32.totalorder %v10563_v15, %v10845_v42  ;;  %v10874_v37 = vpop.permute.xlu1 %4333  ;;  %vm13880_vm10 = vcmp.lt.s32.totalorder %v10563_v15, %v10671_v41 }
0x15b7   : > { %vm4693_vm11 = vmor %vm4501_vm5, %vm4629_vm8  ;;  %vm4571_vm5 = vcmp.eq.f32.partialorder %v10561_v22, %v4319_v44 }
0x15b8   : > { %vm4695_vm4 = vmor %vm10797_vm9, %vm10806_vm1  ;;  %vm5297_vm9 = vcmp.gt.f32.partialorder %v10852_v4, %v10703_v19  ;;  %v4329_v19 = vpop.permute.xlu0 %4328 }
0x15b9   : > { %vm7525_vm15 = vmpackc.low %vm4695_vm4, %vm4693_vm11  ;;  %vm4569_vm4 = vcmp.eq.f32.partialorder %v10561_v22, %v10727_v63 }
0x15ba   : > { %7526 = vmatmul.mubr.msk.bf16.gmra.mrb[56].mxu0 %vm7525_vm15, %v13841_v8  ;;  %vm7527_vm8 = vmpackc.low %vm4444_vm7, %vm4442_vm14  ;;  %vm4441_vm7 = vcmp.gt.f32.partialorder %v10561_v22, %v10727_v63  ;;  %vm13640_vm14 = vcmp.ne.s32.totalorder %v10563_v15, %v10877_v62  ;;  %v4324_v1 = vpop.permute.xlu1 %4323  ;;  %v10995_v63 = vadd.s32 120, %v10551_v48 }
0x15bb   : > { %7528 = vmatprep.mubr.msk.bf16.mxu0 %vm7527_vm8, %v13841_v8  ;;  %vm7667_vm1 = vmpackc.low %vm5297_vm9, %vm5295_vm13  ;;  %vm13860_vm13 = vnez %v13852_v28  ;;  %vm13634_vm9 = vcmp.lt.s32.totalorder %v10563_v15, %v10877_v62 }
0x15bc   : > { %vm10883_vm11 = vmand %vm4443_vm12, %vm13633_vm2  ;;  %7668 = vmatprep.mubr.msk.bf16.mxu1 %vm7667_vm1, %v13841_v8  ;;  %v5188_v28 = vpop.permute.xlu0 %5187 }
0x15bd   : > { %vm10891_vm15 = vmand %vm4571_vm5, %vm13632_vm0  ;;  %vm13861_vm5 = vnez %v13849_v49  ;;  %v13864_v49 = vmov 0.0   ;;  %vm4445_vm0 = vcmp.gt.f32.partialorder %v10561_v22, %v4324_v1 }
0x15be   : > { %vm5550_vm12 = vmor %vm10817_vm3, %vm10840_vm6 }
0x15bf   : > { %vm5552_vm8 = vmor %vm13861_vm5, %vm13860_vm13  ;;  %vm4446_vm13 = vcmp.gt.f32.partialorder %v10577_v23, %v4324_v1  ;;  %vm4447_vm5 = vcmp.gt.f32.partialorder %v10561_v22, %v4329_v19  ;;  %v5180_v44 = vpop.permute.xlu1 %5179 }
0x15c0   : > { %vm7669_vm1 = vmpackc.low %vm5552_vm8, %vm5550_vm12  ;;  %vm13636_vm8 = vcmp.lt.s32.totalorder %v10563_v15, %v10912_v18 }
0x15c1   : > { %7670 = vmatmul.mubr.msk.bf16.vlgmr.msra.gmra.mrb[68].mxu1 %vm7669_vm1, %v13841_v8  ;;  %vm10918_vm6 = vmand %vm4441_vm7, %vm13640_vm14  ;;  %vm13637_vm7 = vcmp.ne.s32.totalorder %v10563_v15, %v10912_v18  ;;  %vm4448_vm1 = vcmp.gt.f32.partialorder %v10577_v23, %v4329_v19 }
0x15c2   : > { %8791 = vmatpush3.bf16.xpose.msra.mxu1 %v10319_v27  ;;  %vm4633_vm3 = vmand %vm4569_vm4, %vm13634_vm9  ;;  %vm13635_vm9 = vcmp.ne.s32.totalorder %v10563_v15, %v10927_v51 }
0x15c3   : > { %vm4697_vm12 = vmor %vm10918_vm6, %vm4633_vm3  ;;  %8792 = vmatprep.subr.bf16.mxu1 %v13864_v49  ;;  %vm4575_vm6 = vcmp.eq.f32.partialorder %v10561_v22, %v4329_v19  ;;  %v4339_v19 = vpop.permute.xlu0 %4338  ;;  %v5184_v11 = vpop.permute.xlu1 %5183 }
0x15c4   : > { %vm4699_vm4 = vmor %vm10883_vm11, %vm10891_vm15  ;;  %vm4573_vm15 = vcmp.eq.f32.partialorder %v10561_v22, %v4324_v1  ;;  %v11135_v1 = vadd.s32 144, %v10551_v48 }
0x15c5   : > { %vm7529_vm3 = vmpackc.low %vm4699_vm4, %vm4697_vm12  ;;  %vm13639_vm12 = vcmp.lt.s32.totalorder %v10563_v15, %v10927_v51 }
0x15c6   : > { %7530 = vmatmul.mubr.msk.bf16.gmra.mrb[60].mxu0 %vm7529_vm3, %v13841_v8  ;;  %vm7531_vm2 = vmpackc.low %vm4448_vm1, %vm4446_vm13  ;;  %vm4450_vm1 = vcmp.gt.f32.partialorder %v10577_v23, %v10874_v37  ;;  %vm5301_vm3 = vcmp.gt.f32.partialorder %v10852_v4, %v5180_v44 }
0x15c7   : > { %vm10951_vm11 = vmand %vm4447_vm5, %vm13637_vm7  ;;  %7532 = vmatprep.mubr.msk.bf16.mxu0 %vm7531_vm2, %v13841_v8  ;;  %vm5300_vm7 = vcmp.gt.f32.partialorder %v10768_v13, %v5180_v44  ;;  %v4349_v24 = vpop.permute.xlu0 %4348 }
0x15c8   : > { %vm4639_vm13 = vmand %vm4575_vm6, %vm13636_vm8 }
0x15c9   : > { %vm4509_vm4 = vmand %vm4445_vm0, %vm13635_vm9  ;;  %vm5298_vm0 = vcmp.gt.f32.partialorder %v10768_v13, %v10718_v55  ;;  %vm4452_vm9 = vcmp.gt.f32.partialorder %v10577_v23, %v4339_v19 }
0x15ca   : > { %8793 = vmatpush3.bf16.xpose.msra.mxu1 %v10294_v31  ;;  %vm4637_vm5 = vmand %vm4573_vm15, %vm13639_vm12  ;;  %vm4579_vm12 = vcmp.eq.f32.partialorder %v10561_v22, %v4339_v19 }
0x15cb   : > { %vm4701_vm2 = vmor %vm4509_vm4, %vm4637_vm5  ;;  %8794 = vmatprep.subr.bf16.mxu1 %v13864_v49  ;;  %vm5299_vm4 = vcmp.gt.f32.partialorder %v10852_v4, %v10718_v55  ;;  %vm5426_vm5 = vcmp.eq.f32.partialorder %v10768_v13, %v10718_v55  ;;  %v11138_v55 = vadd.s32 152, %v10551_v48 }
0x15cc   : > { %vm4703_vm6 = vmor %vm10951_vm11, %vm4639_vm13  ;;  %vm5428_vm13 = vcmp.eq.f32.partialorder %v10768_v13, %v5180_v44 }
0x15cd   : > { %vm7533_vm8 = vmpackc.low %vm4703_vm6, %vm4701_vm2  ;;  %vm13867_vm2 = vcmp.ne.s32.totalorder %v10563_v15, %v10614_v16 }
0x15ce   : > { %7534 = vmatmul.mubr.msk.bf16.gmra.mrb[64].mxu0 %vm7533_vm8, %v13841_v8  ;;  %vm7535_vm15 = vmpackc.low %vm4452_vm9, %vm4450_vm1  ;;  %vm13870_vm9 = vcmp.ne.s32.totalorder %v10563_v15, %v10617_v56  ;;  %vm13873_vm1 = vcmp.lt.s32.totalorder %v10563_v15, %v10614_v16 }
0x15cf   : > { %7536 = vmatprep.mubr.msk.bf16.mxu0 %vm7535_vm15, %v13841_v8  ;;  %vm7671_vm11 = vmpackc.low %vm5301_vm3, %vm5299_vm4  ;;  %vm5432_vm4 = vcmp.eq.f32.partialorder %v10768_v13, %v5188_v28 }
0x15d0   : > { %7672 = vmatprep.mubr.msk.bf16.mxu1 %vm7671_vm11, %v13841_v8  ;;  %vm10990_vm6 = vmand %vm5298_vm0, %vm13867_vm2  ;;  %vm13876_vm0 = vcmp.lt.s32.totalorder %v10563_v15, %v10617_v56  ;;  %vm5303_vm11 = vcmp.gt.f32.partialorder %v10852_v4, %v5184_v11 }
0x15d1   : > { %vm11000_vm8 = vmand %vm5300_vm7, %vm13870_vm9  ;;  %vm5304_vm7 = vcmp.gt.f32.partialorder %v10768_v13, %v5188_v28 }
0x15d2   : > { %vm11007_vm3 = vmand %vm5426_vm5, %vm13873_vm1  ;;  %8795 = vmatpush3.bf16.xpose.msra.mxu1 %v10303_v20  ;;  %vm5305_vm1 = vcmp.gt.f32.partialorder %v10852_v4, %v5188_v28 }
0x15d3   : > { %vm5492_vm15 = vmand %vm5428_vm13, %vm13876_vm0  ;;  %8796 = vmatprep.subr.bf16.mxu1 %v13864_v49  ;;  %vm4451_vm13 = vcmp.gt.f32.partialorder %v10561_v22, %v4339_v19  ;;  %vm13645_vm0 = vcmp.lt.s32.totalorder %v10563_v15, %v10995_v63  ;;  %v11064_v19 = vpop.permute.xlu1 %4353 }
0x15d4   : > { %vm5554_vm5 = vmor %vm10990_vm6, %vm11007_vm3  ;;  %vm13877_vm6 = vcmp.ne.s32.totalorder %v10563_v15, %v10671_v41 }
0x15d5   : > { %vm5556_vm9 = vmor %vm11000_vm8, %vm5492_vm15  ;;  %vm4449_vm8 = vcmp.gt.f32.partialorder %v10561_v22, %v10874_v37 }
0x15d6   : > { %vm7673_vm14 = vmpackc.low %vm5556_vm9, %vm5554_vm5  ;;  %vm13647_vm5 = vcmp.ne.s32.totalorder %v10563_v15, %v11016_v58 }
0x15d7   : > { %vm11038_vm3 = vmand %vm5304_vm7, %vm13877_vm6  ;;  %7674 = vmatmul.mubr.msk.bf16.gmra.mrb[72].mxu1 %vm7673_vm14, %v13841_v8  ;;  %vm13883_vm7 = vcmp.ne.s32.totalorder %v10563_v15, %v10995_v63  ;;  %vm13646_vm14 = vcmp.lt.s32.totalorder %v10563_v15, %v11016_v58  ;;  %v4344_v44 = vpop.permute.xlu1 %4343 }
0x15d8   : > { %vm11045_vm2 = vmand %vm5432_vm4, %vm13880_vm10  ;;  %vm4577_vm10 = vcmp.eq.f32.partialorder %v10561_v22, %v10874_v37  ;;  %v11084_v37 = vadd.s32 128, %v10551_v48 }
0x15d9   : > { %vm7675_vm15 = vmpackc.low %vm5305_vm1, %vm5303_vm11  ;;  %vm5302_vm1 = vcmp.gt.f32.partialorder %v10768_v13, %v5184_v11 }
0x15da   : > { %vm11057_vm9 = vmand %vm4451_vm13, %vm13883_vm7  ;;  %7676 = vmatprep.mubr.msk.bf16.mxu1 %vm7675_vm15, %v13841_v8  ;;  %8797 = vmatpush3.bf16.xpose.msra.mxu1 %v10301_v60  ;;  %vm5430_vm15 = vcmp.eq.f32.partialorder %v10768_v13, %v5184_v11  ;;  %vm13886_vm7 = vcmp.ne.s32.totalorder %v10563_v15, %v10668_v40 }
0x15db   : > { %vm4643_vm4 = vmand %vm4579_vm12, %vm13645_vm0  ;;  %8798 = vmatprep.subr.bf16.mxu1 %v13864_v49  ;;  %v4359_v11 = vpop.permute.xlu1 %4358  ;;  %vm4453_vm0 = vcmp.gt.f32.partialorder %v10561_v22, %v4344_v44 }
0x15dc   : > { %vm4513_vm11 = vmand %vm4449_vm8, %vm13647_vm5 }
0x15dd   : > { %vm4641_vm13 = vmand %vm4577_vm10, %vm13646_vm14  ;;  %vm4581_vm14 = vcmp.eq.f32.partialorder %v10561_v22, %v4344_v44 }
0x15de   : > { %vm4705_vm6 = vmor %vm4513_vm11, %vm4641_vm13  ;;  %vm13648_vm13 = vcmp.ne.s32.totalorder %v11090_v30, %v11084_v37 }
0x15df   : > { %vm4707_vm12 = vmor %vm11057_vm9, %vm4643_vm4  ;;  %vm13887_vm9 = vcmp.lt.s32.totalorder %v10563_v15, %v10668_v40  ;;  %v11143_v28 = vpop.permute.xlu1 %4373 }
0x15e0   : > { %vm7537_vm8 = vmpackc.low %vm4707_vm12, %vm4705_vm6  ;;  %vm4454_vm6 = vcmp.gt.f32.partialorder %v10577_v23, %v4344_v44  ;;  %vm4456_vm12 = vcmp.gt.f32.partialorder %v10577_v23, %v4349_v24 }
0x15e1   : > { %7538 = vmatmul.mubr.msk.bf16.gmra.mrb[68].mxu0 %vm7537_vm8, %v13841_v8  ;;  %vm5366_vm10 = vmand %vm5302_vm1, %vm13886_vm7  ;;  %vm13666_vm1 = vcmp.ne.s32.totalorder %v11090_v30, %v11087_v53 }
0x15e2   : > { %vm5494_vm4 = vmand %vm5430_vm15, %vm13887_vm9  ;;  %8799 = vmatpush3.bf16.xpose.msra.mxu1 %v10308_v10  ;;  %vm13665_vm15 = vcmp.lt.s32.totalorder %v11090_v30, %v11084_v37  ;;  %vm4584_vm9 = vcmp.eq.f32.partialorder %v10577_v23, %v4349_v24 }
0x15e3   : > { %vm5558_vm11 = vmor %vm5366_vm10, %vm5494_vm4  ;;  %vm4582_vm10 = vcmp.eq.f32.partialorder %v10577_v23, %v4344_v44  ;;  %8800 = vmatprep.subr.bf16.mxu1 %v13864_v49  ;;  %v11175_v44 = vpop.permute.xlu1 %4378 }
0x15e4   : > { %vm5560_vm8 = vmor %vm11038_vm3, %vm11045_vm2  ;;  %vm13664_vm2 = vcmp.lt.s32.totalorder %v11090_v30, %v11087_v53 }
0x15e5   : > { %vm7677_vm7 = vmpackc.low %vm5560_vm8, %vm5558_vm11 }
0x15e6   : > { %7678 = vmatmul.mubr.msk.bf16.gmra.mrb[76].mxu1 %vm7677_vm7, %v13841_v8  ;;  %vm4518_vm3 = vmand %vm4454_vm6, %vm13648_vm13  ;;  %vm4455_vm6 = vcmp.gt.f32.partialorder %v10561_v22, %v4349_v24  ;;  %vm4583_vm13 = vcmp.eq.f32.partialorder %v10561_v22, %v4349_v24  ;;  %v11166_v24 = vpop.permute.xlu0 %5191 }
0x15e7   : > { %vm4520_vm4 = vmand %vm4456_vm12, %vm13666_vm1  ;;  %v4369_v34 = vpop.permute.xlu1 %4368  ;;  %vm4594_vm1 = vcmp.eq.f32.partialorder %v10577_v23, %v11143_v28 }
0x15e8   : > { %vm4646_vm11 = vmand %vm4582_vm10, %vm13665_vm15 }
0x15e9   : > { %vm4648_vm8 = vmand %vm4584_vm9, %vm13664_vm2 }
0x15ea   : > { %vm4710_vm7 = vmor %vm4518_vm3, %vm4646_vm11  ;;  %8801 = vmatpush3.bf16.xpose.msra.mxu1 %v10306_v9  ;;  %vm13650_vm11 = vcmp.ne.s32.totalorder %v11090_v30, %v11138_v55  ;;  %v4364_v26 = vpop.permute.xlu0 %4363 }
0x15eb   : > { %vm4712_vm5 = vmor %vm4520_vm4, %vm4648_vm8  ;;  %8802 = vmatprep.subr.bf16.mxu1 %v13864_v49  ;;  %vm13649_vm4 = vcmp.ne.s32.totalorder %v11090_v30, %v11135_v1  ;;  %vm4460_vm8 = vcmp.gt.f32.partialorder %v10577_v23, %v4359_v11  ;;  %v5196_v52 = vpop.permute.xlu1 %5195 }
0x15ec   : > { %vm7539_vm12 = vmpackc.low %vm4712_vm5, %vm4710_vm7  ;;  %vm4458_vm5 = vcmp.gt.f32.partialorder %v10577_v23, %v11064_v19 }
0x15ed   : > { %7540 = vmatprep.mubr.msk.bf16.mxu0 %vm7539_vm12, %v13841_v8  ;;  %vm4709_vm10 = vmor %vm4453_vm0, %vm4581_vm14  ;;  %vm13651_vm0 = vcmp.lt.s32.totalorder %v11090_v30, %v11135_v1  ;;  %vm4586_vm14 = vcmp.eq.f32.partialorder %v10577_v23, %v11064_v19 }
0x15ee   : > { %vm4711_vm9 = vmor %vm4455_vm6, %vm4583_vm13  ;;  %vm13663_vm13 = vcmp.lt.s32.totalorder %v11090_v30, %v11138_v55  ;;  %vm4588_vm6 = vcmp.eq.f32.partialorder %v10577_v23, %v4359_v11  ;;  %v5204_v38 = vpop.permute.xlu0 %5203 }
0x15ef   : > { %vm7541_vm3 = vmpackc.low %vm4711_vm9, %vm4709_vm10  ;;  %v5200_v7 = vpop.permute.xlu1 %5199 }
0x15f0   : > { %7542 = vmatmul.mubr.msk.bf16.gmra.mrb[72].mxu0 %vm7541_vm3, %v13841_v8  ;;  %vm4522_vm7 = vmand %vm4458_vm5, %vm13649_vm4 }
0x15f1   : > { %vm4524_vm12 = vmand %vm4460_vm8, %vm13650_vm11  ;;  %vm4457_vm8 = vcmp.gt.f32.partialorder %v10561_v22, %v11064_v19  ;;  %vm4585_vm11 = vcmp.eq.f32.partialorder %v10561_v22, %v11064_v19  ;;  %v13899_v19 = vmov 0 }
0x15f2   : > { %vm4650_vm10 = vmand %vm4586_vm14, %vm13651_vm0  ;;  %8803 = vmatpush3.bf16.xpose.msra.mxu1 %v10312_v47  ;;  %vm4459_vm14 = vcmp.gt.f32.partialorder %v10561_v22, %v4359_v11  ;;  %vm4587_vm0 = vcmp.eq.f32.partialorder %v10561_v22, %v4359_v11  ;;  %v13902_v11 = vmov 0 }
0x15f3   : > { %vm4652_vm9 = vmand %vm4588_vm6, %vm13663_vm13  ;;  %8804 = vmatprep.subr.bf16.mxu1 %v13864_v49  ;;  %vm5436_vm13 = vcmp.eq.f32.partialorder %v10768_v13, %v5196_v52  ;;  %v11346_v36 = vpop.permute.xlu1 %4393 }
0x15f4   : > { %vm4714_vm3 = vmor %vm4522_vm7, %vm4650_vm10 }
0x15f5   : > { %vm4716_vm5 = vmor %vm4524_vm12, %vm4652_vm9  ;;  %vm4462_vm12 = vcmp.gt.f32.partialorder %v10577_v23, %v4364_v26  ;;  %vm4464_vm9 = vcmp.gt.f32.partialorder %v10577_v23, %v4369_v34 }
0x15f6   : > { %vm7543_vm4 = vmpackc.low %vm4716_vm5, %vm4714_vm3  ;;  %vm13658_vm3 = vcmp.ne.s32.totalorder %v11090_v30, %v11189_v33  ;;  %vm4590_vm5 = vcmp.eq.f32.partialorder %v10577_v23, %v4364_v26 }
0x15f7   : > { %7544 = vmatprep.mubr.msk.bf16.mxu0 %vm7543_vm4, %v13841_v8  ;;  %vm4713_vm7 = vmor %vm4457_vm8, %vm4585_vm11  ;;  %vm13662_vm4 = vcmp.ne.s32.totalorder %v11090_v30, %v11186_v46  ;;  %vm13660_vm11 = vcmp.lt.s32.totalorder %v11090_v30, %v11186_v46  ;;  %vm13661_vm8 = vcmp.lt.s32.totalorder %v11090_v30, %v11189_v33 }
0x15f8   : > { %vm4715_vm6 = vmor %vm4459_vm14, %vm4587_vm0  ;;  %vm4592_vm0 = vcmp.eq.f32.partialorder %v10577_v23, %v4369_v34 }
0x15f9   : > { %vm7545_vm10 = vmpackc.low %vm4715_vm6, %vm4713_vm7 }
0x15fa   : > { %8805 = vmatpush3.bf16.xpose.msra.mxu1 %v10310_v17  ;;  %7546 = vmatmul.mubr.msk.bf16.gmra.mrb[76].mxu0 %vm7545_vm10, %v13841_v8  ;;  %vm11208_vm14 = vmand %vm4462_vm12, %vm13662_vm4  ;;  %vm5308_vm4 = vcmp.gt.f32.partialorder %v10768_v13, %v5196_v52 }
0x15fb   : > { %vm11215_vm7 = vmand %vm4464_vm9, %vm13658_vm3  ;;  %vm4461_vm9 = vcmp.gt.f32.partialorder %v10561_v22, %v4364_v26  ;;  %vm4589_vm3 = vcmp.eq.f32.partialorder %v10561_v22, %v4364_v26  ;;  %v13896_v26 = vmov 0 }
0x15fc   : > { %vm4654_vm6 = vmand %vm4590_vm5, %vm13660_vm11  ;;  %vm4463_vm11 = vcmp.gt.f32.partialorder %v10561_v22, %v4369_v34 }
0x15fd   : > { %vm4656_vm10 = vmand %vm4592_vm0, %vm13661_vm8  ;;  %vm4591_vm0 = vcmp.eq.f32.partialorder %v10561_v22, %v4369_v34  ;;  %vm5306_vm8 = vcmp.gt.f32.partialorder %v10768_v13, %v11166_v24  ;;  %v13893_v34 = vmov 0 }
0x15fe   : > { %vm4718_vm12 = vmor %vm11208_vm14, %vm4654_vm6  ;;  %vm5434_vm14 = vcmp.eq.f32.partialorder %v10768_v13, %v11166_v24 }
0x15ff   : > { %vm4720_vm5 = vmor %vm11215_vm7, %vm4656_vm10  ;;  %vm13670_vm7 = vcmp.ne.s32.totalorder %v11090_v30, %v11226_v45  ;;  %vm4466_vm10 = vcmp.gt.f32.partialorder %v10577_v23, %v11143_v28 }
0x1600   : > { %vm7547_vm6 = vmpackc.low %vm4720_vm5, %vm4718_vm12  ;;  %vm4468_vm12 = vcmp.gt.f32.partialorder %v10577_v23, %v11175_v44  ;;  %vm13892_vm5 = vcmp.ne.s32.totalorder %v10563_v15, %v10707_v25 }
0x1601   : > { %7548 = vmatprep.mubr.msk.bf16.mxu0 %vm7547_vm6, %v13841_v8  ;;  %vm4717_vm2 = vmor %vm4461_vm9, %vm4589_vm3  ;;  %vm13895_vm3 = vcmp.lt.s32.totalorder %v10563_v15, %v10707_v25 }
0x1602   : > { %vm4719_vm15 = vmor %vm4463_vm11, %vm4591_vm0  ;;  %vm13671_vm0 = vcmp.lt.s32.totalorder %v11090_v30, %v11226_v45 }
0x1603   : > { %vm11257_vm6 = vmand %vm5306_vm8, %vm13892_vm5  ;;  %vm13898_vm8 = vcmp.ne.s32.totalorder %v10563_v15, %v10710_v14 }
0x1604   : > { %v13894_v34 = vsel %vm11257_vm6, 4294967295, %v13893_v34  ;;  %vm11264_vm9 = vmand %vm5434_vm14, %vm13895_vm3  ;;  %vm13901_vm14 = vcmp.lt.s32.totalorder %v10563_v15, %v10710_v14 }
0x1605   : > { %v13897_v26 = vsel %vm11264_vm9, 4294967295, %v13896_v26  ;;  %vm7549_vm11 = vmpackc.low %vm4719_vm15, %vm4717_vm2  ;;  %vm13672_vm15 = vcmp.lt.s32.totalorder %v11090_v30, %v11233_v59  ;;  %vm13910_vm9 = vcmp.lt.s32.totalorder %v10563_v15, %v10746_v5 }
0x1606   : > { %vm11275_vm5 = vmand %vm5308_vm4, %vm13898_vm8  ;;  %7550 = vmatmul.mubr.msk.bf16.gmra.mrb[80].mxu0 %vm7549_vm11, %v13841_v8  ;;  %vm4596_vm4 = vcmp.eq.f32.partialorder %v10577_v23, %v11175_v44 }
0x1607   : > { %v13900_v19 = vsel %vm11275_vm5, 4294967295, %v13899_v19  ;;  %vm11282_vm3 = vmand %vm5436_vm13, %vm13901_vm14  ;;  %vm13906_vm13 = vcmp.ne.s32.totalorder %v11090_v30, %v11233_v59  ;;  %vm5312_vm14 = vcmp.gt.f32.partialorder %v10768_v13, %v5204_v38  ;;  %vm5309_vm5 = vcmp.gt.f32.partialorder %v10852_v4, %v5196_v52 }
0x1608   : > { %v13903_v11 = vsel %vm11282_vm3, 4294967295, %v13902_v11  ;;  %vm11292_vm2 = vmand %vm4466_vm10, %vm13670_vm7  ;;  %vm5440_vm7 = vcmp.eq.f32.partialorder %v10768_v13, %v5204_v38 }
0x1609   : > { %vm4532_vm8 = vmand %vm4468_vm12, %vm13906_vm13  ;;  %vm5310_vm12 = vcmp.gt.f32.partialorder %v10768_v13, %v5200_v7 }
0x160a   : > { %vm4658_vm11 = vmand %vm4594_vm1, %vm13671_vm0  ;;  %vm5307_vm1 = vcmp.gt.f32.partialorder %v10852_v4, %v11166_v24  ;;  %vm5438_vm0 = vcmp.eq.f32.partialorder %v10768_v13, %v5200_v7 }
0x160b   : > { %vm4660_vm10 = vmand %vm4596_vm4, %vm13672_vm15  ;;  %vm13907_vm4 = vcmp.ne.s32.totalorder %v10563_v15, %v10746_v5 }
0x160c   : > { %vm4722_vm3 = vmor %vm11292_vm2, %vm4658_vm11  ;;  %vm13916_vm11 = vcmp.lt.s32.totalorder %v10563_v15, %v10781_v43 }
0x160d   : > { %vm4724_vm6 = vmor %vm4532_vm8, %vm4660_vm10 }
0x160e   : > { %vm7551_vm13 = vmpackc.low %vm4724_vm6, %vm4722_vm3  ;;  %vm13913_vm6 = vcmp.ne.s32.totalorder %v10563_v15, %v10781_v43 }
0x160f   : > { %vm11319_vm15 = vmand %vm5312_vm14, %vm13907_vm4  ;;  %7552 = vmatprep.mubr.msk.bf16.mxu0 %vm7551_vm13, %v13841_v8  ;;  %vm4593_vm4 = vcmp.eq.f32.partialorder %v10561_v22, %v11143_v28 }
0x1610   : > { %vm11326_vm2 = vmand %vm5440_vm7, %vm13910_vm9  ;;  %vm5311_vm7 = vcmp.gt.f32.partialorder %v10852_v4, %v5200_v7  ;;  %vm13919_vm9 = vnez %v13897_v26  ;;  %v11368_v7 = vadd.s32 192, %v10551_v48 }
0x1611   : > { %vm7679_vm8 = vmpackc.low %vm5309_vm5, %vm5307_vm1  ;;  %vm13920_vm5 = vnez %v13894_v34  ;;  %vm13922_vm1 = vnez %v13900_v19  ;;  %v4384_v34 = vpop.permute.xlu0 %4383  ;;  %v11421_v19 = vadd.s32 208, %v10551_v48 }
0x1612   : > { %7680 = vmatprep.mubr.msk.bf16.mxu1 %vm7679_vm8, %v13841_v8  ;;  %vm11335_vm3 = vmand %vm5310_vm12, %vm13913_vm6  ;;  %vm13921_vm12 = vnez %v13903_v11  ;;  %vm5313_vm8 = vcmp.gt.f32.partialorder %v10852_v4, %v5204_v38  ;;  %v4389_v38 = vpop.permute.xlu1 %4388  ;;  %v11424_v11 = vadd.s32 216, %v10551_v48 }
0x1613   : > { %vm11342_vm10 = vmand %vm5438_vm0, %vm13916_vm11  ;;  %vm4465_vm0 = vcmp.gt.f32.partialorder %v10561_v22, %v11143_v28  ;;  %vm4467_vm11 = vcmp.gt.f32.partialorder %v10561_v22, %v11175_v44  ;;  %v11372_v28 = vadd.s32 200, %v10551_v48 }
0x1614   : > { %vm5562_vm14 = vmor %vm13920_vm5, %vm13919_vm9  ;;  %vm4595_vm9 = vcmp.eq.f32.partialorder %v10561_v22, %v11175_v44 }
0x1615   : > { %vm5564_vm13 = vmor %vm13922_vm1, %vm13921_vm12  ;;  %v5208_v44 = vpop.permute.xlu0 %5207 }
0x1616   : > { %vm7681_vm6 = vmpackc.low %vm5564_vm13, %vm5562_vm14  ;;  %vm4470_vm13 = vcmp.gt.f32.partialorder %v10577_v23, %v4384_v34  ;;  %v11406_v26 = vpop.permute.xlu1 %4398 }
0x1617   : > { %7682 = vmatmul.mubr.msk.bf16.gmra.mrb[80].mxu1 %vm7681_vm6, %v13841_v8  ;;  %vm7683_vm5 = vmpackc.low %vm5313_vm8, %vm5311_vm7  ;;  %vm13678_vm8 = vcmp.ne.s32.totalorder %v11090_v30, %v11368_v7  ;;  %vm13677_vm6 = vcmp.ne.s32.totalorder %v11090_v30, %v11372_v28 }
0x1618   : > { %7684 = vmatprep.mubr.msk.bf16.mxu1 %vm7683_vm5, %v13841_v8  ;;  %vm4721_vm12 = vmor %vm4465_vm0, %vm4593_vm4  ;;  %vm4472_vm0 = vcmp.gt.f32.partialorder %v10577_v23, %v4389_v38  ;;  %vm13676_vm5 = vcmp.lt.s32.totalorder %v11090_v30, %v11368_v7 }
0x1619   : > { %vm4723_vm14 = vmor %vm4467_vm11, %vm4595_vm9  ;;  %vm4598_vm11 = vcmp.eq.f32.partialorder %v10577_v23, %v4384_v34  ;;  %v11426_v39 = vpop.permute.xlu0 %4403 }
0x161a   : > { %vm7553_vm1 = vmpackc.low %vm4723_vm14, %vm4721_vm12  ;;  %v5212_v52 = vpop.permute.xlu1 %5211 }
0x161b   : > { %7554 = vmatmul.mubr.msk.bf16.gmra.mrb[84].mxu0 %vm7553_vm1, %v13841_v8  ;;  %vm5566_vm7 = vmor %vm11335_vm3, %vm11342_vm10  ;;  %vm4600_vm3 = vcmp.eq.f32.partialorder %v10577_v23, %v4389_v38  ;;  %vm13675_vm10 = vcmp.lt.s32.totalorder %v11090_v30, %v11372_v28 }
0x161c   : > { %vm5568_vm4 = vmor %vm11319_vm15, %vm11326_vm2 }
0x161d   : > { %vm7685_vm9 = vmpackc.low %vm5568_vm4, %vm5566_vm7  ;;  %vm4597_vm7 = vcmp.eq.f32.partialorder %v10561_v22, %v4384_v34 }
0x161e   : > { %vm11398_vm12 = vmand %vm4470_vm13, %vm13678_vm8  ;;  %vm4469_vm13 = vcmp.gt.f32.partialorder %v10561_v22, %v4384_v34  ;;  %v5220_v34 = vpop.permute.xlu0 %5219  ;;  %v5216_v35 = vpop.permute.xlu1 %5215 }
0x161f   : > { %7686 = vmatmul.mubr.msk.bf16.gmra.mrb[84].mxu1 %vm7685_vm9, %v13841_v8  ;;  %vm4536_vm15 = vmand %vm4472_vm0, %vm13677_vm6  ;;  %vm4471_vm0 = vcmp.gt.f32.partialorder %v10561_v22, %v4389_v38  ;;  %vm4599_vm9 = vcmp.eq.f32.partialorder %v10561_v22, %v4389_v38  ;;  %vm13929_vm6 = vcmp.ne.s32.totalorder %v10563_v15, %v10877_v62  ;;  %v11560_v38 = vadd.s32 232, %v10551_v48 }
0x1620   : > { %vm4662_vm2 = vmand %vm4598_vm11, %vm13676_vm5 }
0x1621   : > { %vm4664_vm14 = vmand %vm4600_vm3, %vm13675_vm10 }
0x1622   : > { %vm4726_vm1 = vmor %vm11398_vm12, %vm4662_vm2  ;;  %v4409_v24 = vpop.permute.xlu1 %4408 }
0x1623   : > { %vm4728_vm4 = vmor %vm4536_vm15, %vm4664_vm14  ;;  %vm4474_vm15 = vcmp.gt.f32.partialorder %v10577_v23, %v11346_v36  ;;  %vm13679_vm14 = vcmp.ne.s32.totalorder %v11090_v30, %v11421_v19 }
0x1624   : > { %vm7555_vm11 = vmpackc.low %vm4728_vm4, %vm4726_vm1  ;;  %vm4476_vm1 = vcmp.gt.f32.partialorder %v10577_v23, %v11406_v26  ;;  %vm13682_vm4 = vcmp.ne.s32.totalorder %v11090_v30, %v11424_v11 }
0x1625   : > { %7556 = vmatprep.mubr.msk.bf16.mxu0 %vm7555_vm11, %v13841_v8  ;;  %vm4725_vm3 = vmor %vm4469_vm13, %vm4597_vm7  ;;  %vm5314_vm11 = vcmp.gt.f32.partialorder %v10768_v13, %v5208_v44  ;;  %vm5442_vm13 = vcmp.eq.f32.partialorder %v10768_v13, %v5208_v44  ;;  %vm4602_vm7 = vcmp.eq.f32.partialorder %v10577_v23, %v11346_v36 }
0x1626   : > { %vm4727_vm12 = vmor %vm4471_vm0, %vm4599_vm9  ;;  %vm13685_vm0 = vcmp.lt.s32.totalorder %v11090_v30, %v11421_v19  ;;  %vm4604_vm9 = vcmp.eq.f32.partialorder %v10577_v23, %v11406_v26 }
0x1627   : > { %vm7557_vm2 = vmpackc.low %vm4727_vm12, %vm4725_vm3  ;;  %vm5316_vm3 = vcmp.gt.f32.partialorder %v10768_v13, %v5212_v52  ;;  %vm5444_vm12 = vcmp.eq.f32.partialorder %v10768_v13, %v5212_v52 }
0x1628   : > { %7558 = vmatmul.mubr.msk.bf16.gmra.mrb[88].mxu0 %vm7557_vm2, %v13841_v8  ;;  %vm11453_vm10 = vmand %vm4474_vm15, %vm13679_vm14  ;;  %vm13932_vm15 = vcmp.lt.s32.totalorder %v10563_v15, %v10877_v62 }
0x1629   : > { %vm11460_vm5 = vmand %vm4476_vm1, %vm13682_vm4  ;;  %vm13935_vm4 = vcmp.ne.s32.totalorder %v10563_v15, %v10845_v42 }
0x162a   : > { %vm11467_vm8 = vmand %vm5314_vm11, %vm13929_vm6  ;;  %vm13938_vm6 = vcmp.lt.s32.totalorder %v10563_v15, %v10845_v42 }
0x162b   : > { %v13931_v0 = vsel %vm11467_vm8, 4294967295, %v13930_v0  ;;  %vm11474_vm14 = vmand %vm5442_vm13, %vm13932_vm15  ;;  %vm13941_vm13 = vcmp.lt.s32.totalorder %v11090_v30, %v11424_v11  ;;  %vm5446_vm8 = vcmp.eq.f32.partialorder %v10768_v13, %v5216_v35 }
0x162c   : > { %vm4666_vm1 = vmand %vm4602_vm7, %vm13685_vm0  ;;  %vm5320_vm7 = vcmp.gt.f32.partialorder %v10768_v13, %v5220_v34  ;;  %vm5448_vm0 = vcmp.eq.f32.partialorder %v10768_v13, %v5220_v34 }
0x162d   : > { %vm11484_vm2 = vmand %vm5316_vm3, %vm13935_vm4  ;;  %vm5317_vm4 = vcmp.gt.f32.partialorder %v10852_v4, %v5212_v52  ;;  %v13946_v52 = vmov 0 }
0x162e   : > { %v13937_v29 = vsel %vm11484_vm2, 4294967295, %v13936_v29  ;;  %vm11491_vm11 = vmand %vm5444_vm12, %vm13938_vm6  ;;  %vm5318_vm12 = vcmp.gt.f32.partialorder %v10768_v13, %v5216_v35  ;;  %vm5315_vm6 = vcmp.gt.f32.partialorder %v10852_v4, %v5208_v44  ;;  %v13969_v44 = vmov 0 }
0x162f   : > { %v13940_v50 = vsel %vm11491_vm11, 4294967295, %v13939_v50  ;;  %vm4668_vm15 = vmand %vm4604_vm9, %vm13941_vm13  ;;  %vm13942_vm9 = vcmp.ne.s32.totalorder %v10563_v15, %v10912_v18 }
0x1630   : > { %vm4730_vm3 = vmor %vm11453_vm10, %vm4666_vm1  ;;  %vm13945_vm10 = vcmp.lt.s32.totalorder %v10563_v15, %v10912_v18 }
0x1631   : > { %vm4732_vm2 = vmor %vm11460_vm5, %vm4668_vm15  ;;  %vm4601_vm15 = vcmp.eq.f32.partialorder %v10561_v22, %v11346_v36 }
0x1632   : > { %vm7559_vm11 = vmpackc.low %vm4732_vm2, %vm4730_vm3  ;;  %vm4473_vm2 = vcmp.gt.f32.partialorder %v10561_v22, %v11346_v36 }
0x1633   : > { %vm11511_vm13 = vmand %vm5320_vm7, %vm13942_vm9  ;;  %7560 = vmatprep.mubr.msk.bf16.mxu0 %vm7559_vm11, %v13841_v8  ;;  %vm13948_vm7 = vcmp.ne.s32.totalorder %v10563_v15, %v10927_v51  ;;  %vm4603_vm11 = vcmp.eq.f32.partialorder %v10561_v22, %v11406_v26 }
0x1634   : > { %v13944_v2 = vsel %vm11511_vm13, 4294967295, %v13943_v2  ;;  %vm11518_vm1 = vmand %vm5448_vm0, %vm13945_vm10  ;;  %vm4475_vm0 = vcmp.gt.f32.partialorder %v10561_v22, %v11406_v26  ;;  %v11553_v26 = vadd.s32 224, %v10551_v48 }
0x1635   : > { %v13947_v52 = vsel %vm11518_vm1, 4294967295, %v13946_v52  ;;  %vm7687_vm5 = vmpackc.low %vm5317_vm4, %vm5315_vm6  ;;  %vm13951_vm4 = vcmp.lt.s32.totalorder %v10563_v15, %v10927_v51 }
0x1636   : > { %7688 = vmatprep.mubr.msk.bf16.mxu1 %vm7687_vm5, %v13841_v8  ;;  %vm11531_vm3 = vmand %vm5318_vm12, %vm13948_vm7  ;;  %vm5319_vm5 = vcmp.gt.f32.partialorder %v10852_v4, %v5216_v35  ;;  %vm13954_vm7 = vnez %v13931_v0  ;;  %v11563_v35 = vpop.permute.xlu1 %4413  ;;  %v13963_v0 = vmov 0 }
0x1637   : > { %vm11542_vm6 = vmand %vm5446_vm8, %vm13951_vm4  ;;  %vm13955_vm8 = vnez %v13940_v50  ;;  %vm13956_vm4 = vnez %v13937_v29  ;;  %v5224_v50 = vpop.permute.xlu0 %5223 }
0x1638   : > { %vm4729_vm9 = vmor %vm4473_vm2, %vm4601_vm15  ;;  %vm5321_vm2 = vcmp.gt.f32.partialorder %v10852_v4, %v5220_v34  ;;  %v11613_v34 = vadd.s32 240, %v10551_v48 }
0x1639   : > { %vm4731_vm10 = vmor %vm4475_vm0, %vm4603_vm11 }
0x163a   : > { %vm7561_vm12 = vmpackc.low %vm4731_vm10, %vm4729_vm9  ;;  %vm13690_vm9 = vcmp.ne.s32.totalorder %v11090_v30, %v11553_v26  ;;  %vm13958_vm10 = vnez %v13944_v2  ;;  %v4419_v29 = vpop.permute.xlu1 %4418  ;;  %v11609_v2 = vadd.s32 248, %v10551_v48 }
0x163b   : > { %7562 = vmatmul.mubr.msk.bf16.gmra.mrb[92].mxu0 %vm7561_vm12, %v13841_v8  ;;  %vm5570_vm13 = vmor %vm13954_vm7, %vm11474_vm14  ;;  %vm4478_vm14 = vcmp.gt.f32.partialorder %v10577_v23, %v11426_v39  ;;  %vm4606_vm7 = vcmp.eq.f32.partialorder %v10577_v23, %v11426_v39 }
0x163c   : > { %vm5572_vm1 = vmor %vm13956_vm4, %vm13955_vm8  ;;  %vm13688_vm4 = vcmp.lt.s32.totalorder %v11090_v30, %v11560_v38 }
0x163d   : > { %vm7689_vm15 = vmpackc.low %vm5572_vm1, %vm5570_vm13  ;;  %vm4480_vm13 = vcmp.gt.f32.partialorder %v10577_v23, %v4409_v24  ;;  %vm13957_vm1 = vnez %v13947_v52  ;;  %v13966_v52 = vmov 0 }
0x163e   : > { %7690 = vmatmul.mubr.msk.bf16.gmra.mrb[88].mxu1 %vm7689_vm15, %v13841_v8  ;;  %vm7691_vm0 = vmpackc.low %vm5321_vm2, %vm5319_vm5  ;;  %vm13687_vm5 = vcmp.ne.s32.totalorder %v11090_v30, %v11560_v38  ;;  %v5228_v32 = vpop.permute.xlu1 %5227 }
0x163f   : > { %7692 = vmatprep.mubr.msk.bf16.mxu1 %vm7691_vm0, %v13841_v8  ;;  %vm5574_vm11 = vmor %vm11531_vm3, %vm11542_vm6  ;;  %vm13689_vm3 = vcmp.lt.s32.totalorder %v11090_v30, %v11553_v26  ;;  %vm4608_vm6 = vcmp.eq.f32.partialorder %v10577_v23, %v4409_v24 }
0x1640   : > { %vm5576_vm12 = vmor %vm13958_vm10, %vm13957_vm1  ;;  %vm4477_vm10 = vcmp.gt.f32.partialorder %v10561_v22, %v11426_v39 }
0x1641   : > { %vm7693_vm8 = vmpackc.low %vm5576_vm12, %vm5574_vm11 }
0x1642   : > { %vm4542_vm2 = vmand %vm4478_vm14, %vm13690_vm9  ;;  %vm4605_vm14 = vcmp.eq.f32.partialorder %v10561_v22, %v11426_v39  ;;  %v13960_v39 = vmov 0  ;;  %v5236_v36 = vpop.permute.xlu1 %5235 }
0x1643   : > { %vm4544_vm15 = vmand %vm4480_vm13, %vm13687_vm5  ;;  %vm4479_vm13 = vcmp.gt.f32.partialorder %v10561_v22, %v4409_v24  ;;  %vm4607_vm5 = vcmp.eq.f32.partialorder %v10561_v22, %v4409_v24 }
0x1644   : > { %vm4670_vm0 = vmand %vm4606_vm7, %vm13689_vm3  ;;  %vm4250_vm3 = vcmp.lt.s32.totalorder %v11090_v30, %v11613_v34 }
0x1645   : > { %vm4672_vm11 = vmand %vm4608_vm6, %vm13688_vm4  ;;  %vm4612_vm4 = vcmp.eq.f32.partialorder %v10577_v23, %v4419_v29 }
0x1646   : > { %7694 = vmatmul.mubr.msk.bf16.gmra.mrb[92].mxu1 %vm7693_vm8, %v13841_v8  ;;  %vm4734_vm1 = vmor %vm4542_vm2, %vm4670_vm0  ;;  %vm5322_vm2 = vcmp.gt.f32.partialorder %v10768_v13, %v5224_v50  ;;  %vm4482_vm0 = vcmp.gt.f32.partialorder %v10577_v23, %v11563_v35 }
0x1647   : > { %vm4736_vm12 = vmor %vm4544_vm15, %vm4672_vm11  ;;  %vm5450_vm15 = vcmp.eq.f32.partialorder %v10768_v13, %v5224_v50 }
0x1648   : > { %vm7563_vm7 = vmpackc.low %vm4736_vm12, %vm4734_vm1  ;;  %vm4484_vm1 = vcmp.gt.f32.partialorder %v10577_v23, %v4419_v29  ;;  %vm5324_vm12 = vcmp.gt.f32.partialorder %v10768_v13, %v5228_v32 }
0x1649   : > { %7564 = vmatprep.mubr.msk.bf16.mxu0 %vm7563_vm7, %v13841_v8  ;;  %vm4733_vm8 = vmor %vm4477_vm10, %vm4605_vm14  ;;  %vm5452_vm10 = vcmp.eq.f32.partialorder %v10768_v13, %v5228_v32  ;;  %vm13692_vm14 = vcmp.ne.s32.totalorder %v11090_v30, %v11609_v2  ;;  %vm13959_vm7 = vcmp.ne.s32.totalorder %v10563_v15, %v11016_v58 }
0x164a   : > { %vm4735_vm6 = vmor %vm4479_vm13, %vm4607_vm5  ;;  %vm4610_vm5 = vcmp.eq.f32.partialorder %v10577_v23, %v11563_v35  ;;  %vm13691_vm13 = vcmp.ne.s32.totalorder %v11090_v30, %v11613_v34  ;;  %v5232_v23 = vpop.permute.xlu0 %5231 }
0x164b   : > { %vm7565_vm11 = vmpackc.low %vm4735_vm6, %vm4733_vm8  ;;  %vm13962_vm6 = vcmp.lt.s32.totalorder %v10563_v15, %v11016_v58 }
0x164c   : > { %7566 = vmatmul.mubr.msk.bf16.gmra.mrb[96].mxu0 %vm7565_vm11, %v13841_v8  ;;  %vm11632_vm8 = vmand %vm5322_vm2, %vm13959_vm7  ;;  %vm13965_vm2 = vcmp.ne.s32.totalorder %v10563_v15, %v10995_v63 }
0x164d   : > { %v13961_v39 = vsel %vm11632_vm8, 4294967295, %v13960_v39  ;;  %vm11639_vm11 = vmand %vm5450_vm15, %vm13962_vm6  ;;  %vm13968_vm15 = vcmp.lt.s32.totalorder %v10563_v15, %v10995_v63  ;;  %vm4483_vm8 = vcmp.gt.f32.partialorder %v10561_v22, %v4419_v29 }
0x164e   : > { %v13964_v0 = vsel %vm11639_vm11, 4294967295, %v13963_v0  ;;  %vm4546_vm9 = vmand %vm4482_vm0, %vm13691_vm13  ;;  %vm5325_vm11 = vcmp.gt.f32.partialorder %v10852_v4, %v5228_v32  ;;  %v5240_v24 = vpop.permute.xlu0 %5239 }
0x164f   : > { %vm11652_vm7 = vmand %vm5324_vm12, %vm13965_vm2  ;;  %vm13971_vm2 = vcmp.lt.s32.totalorder %v11090_v30, %v11609_v2 }
0x1650   : > { %v13967_v52 = vsel %vm11652_vm7, 4294967295, %v13966_v52  ;;  %vm11659_vm6 = vmand %vm5452_vm10, %vm13968_vm15  ;;  %vm4481_vm10 = vcmp.gt.f32.partialorder %v10561_v22, %v11563_v35  ;;  %vm4609_vm15 = vcmp.eq.f32.partialorder %v10561_v22, %v11563_v35  ;;  %v5244_v35 = vpop.permute.xlu1 %5243 }
0x1651   : > { %v13970_v44 = vsel %vm11659_vm6, 4294967295, %v13969_v44  ;;  %vm4548_vm0 = vmand %vm4484_vm1, %vm13692_vm14  ;;  %vm4611_vm1 = vcmp.eq.f32.partialorder %v10561_v22, %v4419_v29 }
0x1652   : > { %vm4674_vm12 = vmand %vm4610_vm5, %vm4250_vm3  ;;  %v5248_v32 = vpop.permute.xlu0 %5247 }
0x1653   : > { %vm4676_vm13 = vmand %vm4612_vm4, %vm13971_vm2 }
0x1654   : > { %vm4738_vm7 = vmor %vm4546_vm9, %vm4674_vm12  ;;  %vm5323_vm9 = vcmp.gt.f32.partialorder %v10852_v4, %v5224_v50 }
0x1655   : > { %vm4740_vm6 = vmor %vm4548_vm0, %vm4676_vm13  ;;  %vm5327_vm13 = vcmp.gt.f32.partialorder %v10852_v4, %v5232_v23  ;;  %vm13974_vm0 = vnez %v13970_v44 }
0x1656   : > { %vm7567_vm14 = vmpackc.low %vm4740_vm6, %vm4738_vm7  ;;  %vm13972_vm7 = vnez %v13964_v0 }
0x1657   : > { %7568 = vmatprep.mubr.msk.bf16.mxu0 %vm7567_vm14, %v13841_v8  ;;  %vm4737_vm5 = vmor %vm4481_vm10, %vm4609_vm15  ;;  %vm13973_vm14 = vnez %v13961_v39  ;;  %vm13975_vm10 = vnez %v13967_v52 }
0x1658   : > { %vm4739_vm4 = vmor %vm4483_vm8, %vm4611_vm1  ;;  %vm5329_vm8 = vcmp.gt.f32.partialorder %v10852_v4, %v5236_v36 }
0x1659   : > { %vm7569_vm12 = vmpackc.low %vm4739_vm4, %vm4737_vm5  ;;  %vm5457_vm5 = vcmp.eq.f32.partialorder %v10852_v4, %v5236_v36  ;;  %vm13976_vm4 = vcmp.ne.s32.totalorder %v11090_v30, %v11084_v37 }
0x165a   : > { %7570 = vmatmul.mubr.msk.bf16.gmra.mrb[100].mxu0 %vm7569_vm12, %v13841_v8  ;;  %vm7695_vm2 = vmpackc.low %vm5325_vm11, %vm5323_vm9  ;;  %vm5455_vm11 = vcmp.eq.f32.partialorder %v10852_v4, %v5232_v23  ;;  %vm13979_vm12 = vcmp.ne.s32.totalorder %v11090_v30, %v11087_v53 }
0x165b   : > { %8774 = vmatprep.mubr.bf16.mxu0 %v10319_v27  ;;  %7696 = vmatprep.mubr.msk.bf16.mxu1 %vm7695_vm2, %v13841_v8  ;;  %vm5578_vm6 = vmor %vm13973_vm14, %vm13972_vm7  ;;  %vm13982_vm7 = vcmp.lt.s32.totalorder %v11090_v30, %v11084_v37 }
0x165c   : > { %vm5580_vm15 = vmor %vm13975_vm10, %vm13974_vm0  ;;  %vm5326_vm10 = vcmp.gt.f32.partialorder %v10768_v13, %v5232_v23 }
0x165d   : > { %vm7697_vm1 = vmpackc.low %vm5580_vm15, %vm5578_vm6  ;;  %vm13983_vm6 = vcmp.lt.s32.totalorder %v11090_v30, %v11087_v53  ;;  %v13984_v53 = vmov 1065369472  }
0x165e   : > { %7698 = vmatmul.mubr.msk.bf16.gmra.mrb[96].mxu1 %vm7697_vm1, %v13841_v8  ;;  %vm11702_vm9 = vmand %vm5327_vm13, %vm13976_vm4  ;;  %vm5456_vm1 = vcmp.eq.f32.partialorder %v10768_v13, %v5236_v36  ;;  %vm5331_vm4 = vcmp.gt.f32.partialorder %v10852_v4, %v5240_v24 }
0x165f   : > { %vm11709_vm2 = vmand %vm5329_vm8, %vm13979_vm12  ;;  %vm5454_vm8 = vcmp.eq.f32.partialorder %v10768_v13, %v5232_v23  ;;  %vm5333_vm12 = vcmp.gt.f32.partialorder %v10852_v4, %v5244_v35 }
0x1660   : > { %vm5519_vm14 = vmand %vm5455_vm11, %vm13982_vm7  ;;  %vm5328_vm11 = vcmp.gt.f32.partialorder %v10768_v13, %v5236_v36 }
0x1661   : > { %vm5521_vm0 = vmand %vm5457_vm5, %vm13983_vm6  ;;  %vm5461_vm6 = vcmp.eq.f32.partialorder %v10852_v4, %v5244_v35 }
0x1662   : > { %vm5583_vm13 = vmor %vm11702_vm9, %vm5519_vm14  ;;  %8775 = vmatmul.mubr.bf16.vlgmr.msra.gmra.mrb[104].mxu0 %v10294_v31 }
0x1663   : > { %vm5585_vm15 = vmor %vm11709_vm2, %vm5521_vm0  ;;  %8778 = vmatprep.mubr.bf16.mxu0 %v10303_v20  ;;  %8811 = vmatpush3.bf16.msra.mxu0 %v13984_v53  ;;  %vm5459_vm2 = vcmp.eq.f32.partialorder %v10852_v4, %v5240_v24  ;;  %vm13985_vm0 = vcmp.ne.s32.totalorder %v11090_v30, %v11135_v1 }
0x1664   : > { %vm7699_vm5 = vmpackc.low %vm5585_vm15, %vm5583_vm13  ;;  %8812 = vmatprep.subr.bf16.mxu0 %v13984_v53  ;;  %vm13991_vm15 = vcmp.lt.s32.totalorder %v11090_v30, %v11135_v1  ;;  %v5252_v1 = vpop.permute.xlu1 %5251 }
0x1665   : > { %7700 = vmatprep.mubr.msk.bf16.mxu1 %vm7699_vm5, %v13841_v8  ;;  %vm5582_vm9 = vmor %vm5326_vm10, %vm5454_vm8  ;;  %vm13988_vm10 = vcmp.ne.s32.totalorder %v11090_v30, %v11138_v55 }
0x1666   : > { %vm5584_vm7 = vmor %vm5328_vm11, %vm5456_vm1  ;;  %vm13994_vm1 = vcmp.lt.s32.totalorder %v11090_v30, %v11138_v55 }
0x1667   : > { %vm7701_vm14 = vmpackc.low %vm5584_vm7, %vm5582_vm9  ;;  %8813 = vmatpush3.bf16.msra.mxu0 %v13984_v53  ;;  %v8115_v50 = vpop.f32.mrb[40].mxu0  ;;  %vm5330_vm9 = vcmp.gt.f32.partialorder %v10768_v13, %v5240_v24 }
0x1668   : > { %7702 = vmatmul.mubr.msk.bf16.gmra.mrb[100].mxu1 %vm7701_vm14, %v13841_v8  ;;  %vm11741_vm13 = vmand %vm5331_vm4, %vm13985_vm0  ;;  %8814 = vmatprep.subr.bf16.mxu0 %v13984_v53  ;;  %vm5460_vm14 = vcmp.eq.f32.partialorder %v10768_v13, %v5244_v35  ;;  %vm5335_vm0 = vcmp.gt.f32.partialorder %v10852_v4, %v5248_v32 }
0x1669   : > { %vm11749_vm8 = vmand %vm5333_vm12, %vm13988_vm10  ;;  %vm5458_vm12 = vcmp.eq.f32.partialorder %v10768_v13, %v5240_v24  ;;  %vm5337_vm10 = vcmp.gt.f32.partialorder %v10852_v4, %v5252_v1  ;;  %v5256_v24 = vpop.permute.xlu0 %5255 }
0x166a   : > { %vm11756_vm11 = vmand %vm5459_vm2, %vm13991_vm15  ;;  %8779 = vmatmul.mubr.bf16.gmra.mrb[108].mxu0 %v10301_v60  ;;  %v8116_v60 = vpop.f32.mrb[41].mxu0  ;;  %vm5332_vm2 = vcmp.gt.f32.partialorder %v10768_v13, %v5244_v35  ;;  %vm5463_vm15 = vcmp.eq.f32.partialorder %v10852_v4, %v5248_v32  ;;  %v5260_v35 = vpop.permute.xlu1 %5259 }
0x166b   : > { %vm11764_vm5 = vmand %vm5461_vm6, %vm13994_vm1  ;;  %8782 = vmatprep.mubr.bf16.mxu0 %v10308_v10  ;;  %8815 = vmatpush3.bf16.msra.mxu0 %v13984_v53  ;;  %v11783_v10 = vadd.f32 %v8116_v60, %v8115_v50  ;;  %v8118_v55 = vpop.f32.mrb[42].mxu0  ;;  %vm5465_vm1 = vcmp.eq.f32.partialorder %v10852_v4, %v5252_v1 }
0x166c   : > { %vm5587_vm4 = vmor %vm11741_vm13, %vm11756_vm11  ;;  %8816 = vmatprep.subr.bf16.mxu0 %v13984_v53  ;;  %v8119_v39 = vpop.f32.mrb[43].mxu0 }
0x166d   : > { %vm5589_vm7 = vmor %vm11749_vm8, %vm11764_vm5  ;;  %13997 = vst [vmem:[#allocation36_spill] sm:$0xff] %v11783_v10  ;;  %v11787_v0 = vadd.f32 %v8119_v39, %v8118_v55  ;;  %vm13999_vm5 = vcmp.ne.s32.totalorder %v11090_v30, %v11186_v46  ;;  %v5264_v50 = vpop.permute.xlu0 %5263 }
0x166e   : > { %vm7703_vm6 = vmpackc.low %vm5589_vm7, %vm5587_vm4  ;;  %vm14005_vm7 = vcmp.lt.s32.totalorder %v11090_v30, %v11186_v46 }
0x166f   : > { %7704 = vmatprep.mubr.msk.bf16.mxu1 %vm7703_vm6, %v13841_v8  ;;  %vm5586_vm13 = vmor %vm5330_vm9, %vm5458_vm12  ;;  %13998 = vst [vmem:[#allocation37_spill] sm:$0xff] %v11787_v0  ;;  %8817 = vmatpush3.bf16.msra.mxu0 %v13984_v53  ;;  %vm14002_vm9 = vcmp.ne.s32.totalorder %v11090_v30, %v11189_v33  ;;  %v8121_v23 = vpop.f32.mrb[44].mxu0 }
0x1670   : > { %vm5588_vm8 = vmor %vm5332_vm2, %vm5460_vm14  ;;  %8818 = vmatprep.subr.bf16.mxu0 %v13984_v53  ;;  %vm14008_vm14 = vcmp.lt.s32.totalorder %v11090_v30, %v11189_v33 }
0x1671   : > { %vm7705_vm11 = vmpackc.low %vm5588_vm8, %vm5586_vm13  ;;  %vm5334_vm13 = vcmp.gt.f32.partialorder %v10768_v13, %v5248_v32  ;;  %v5272_v39 = vpop.permute.xlu0 %5271 }
0x1672   : > { %7706 = vmatmul.mubr.msk.bf16.gmra.mrb[104].mxu1 %vm7705_vm11, %v13841_v8  ;;  %vm11798_vm4 = vmand %vm5335_vm0, %vm13999_vm5  ;;  %8783 = vmatmul.mubr.bf16.gmra.mrb[112].mxu0 %v10306_v9  ;;  %v8122_v9 = vpop.f32.mrb[45].mxu0  ;;  %vm5464_vm11 = vcmp.eq.f32.partialorder %v10768_v13, %v5252_v1  ;;  %vm5339_vm5 = vcmp.gt.f32.partialorder %v10852_v4, %v5256_v24 }
0x1673   : > { %vm11806_vm12 = vmand %vm5337_vm10, %vm14002_vm9  ;;  %8786 = vmatprep.mubr.bf16.mxu0 %v10312_v47  ;;  %8819 = vmatpush3.bf16.msra.mxu0 %v13984_v53  ;;  %v11827_v47 = vadd.f32 %v8122_v9, %v8121_v23  ;;  %v8124_v22 = vpop.f32.mrb[46].mxu0  ;;  %vm5462_vm10 = vcmp.eq.f32.partialorder %v10768_v13, %v5248_v32  ;;  %vm5341_vm9 = vcmp.gt.f32.partialorder %v10852_v4, %v5260_v35 }
0x1674   : > { %vm11815_vm2 = vmand %vm5463_vm15, %vm14005_vm7  ;;  %8820 = vmatprep.subr.bf16.mxu0 %v13984_v53  ;;  %v8125_v46 = vpop.f32.mrb[47].mxu0  ;;  %vm5336_vm15 = vcmp.gt.f32.partialorder %v10768_v13, %v5252_v1 }
0x1675   : > { %vm11823_vm6 = vmand %vm5465_vm1, %vm14008_vm14  ;;  %14011 = vst [vmem:[#allocation38_spill] sm:$0xff] %v11827_v47  ;;  %v11841_v33 = vadd.f32 %v8125_v46, %v8124_v22  ;;  %vm5469_vm14 = vcmp.eq.f32.partialorder %v10852_v4, %v5260_v35  ;;  %v5280_v27 = vpop.permute.xlu0 %5279  ;;  %v14096_v47 = vmov 1  }
0x1676   : > { %vm5591_vm0 = vmor %vm11798_vm4, %vm11815_vm2 }
0x1677   : > { %vm5593_vm8 = vmor %vm11806_vm12, %vm11823_vm6  ;;  %14012 = vst [vmem:[#allocation39_spill] sm:$0xff] %v11841_v33  ;;  %8821 = vmatpush3.bf16.msra.mxu0 %v13984_v53  ;;  %vm5467_vm12 = vcmp.eq.f32.partialorder %v10852_v4, %v5256_v24  ;;  %vm14013_vm6 = vcmp.ne.s32.totalorder %v11090_v30, %v11226_v45 }
0x1678   : > { %vm7707_vm1 = vmpackc.low %vm5593_vm8, %vm5591_vm0  ;;  %8822 = vmatprep.subr.bf16.mxu0 %v13984_v53  ;;  %vm14019_vm8 = vcmp.lt.s32.totalorder %v11090_v30, %v11226_v45 }
0x1679   : > { %7708 = vmatprep.mubr.msk.bf16.mxu1 %vm7707_vm1, %v13841_v8  ;;  %vm5590_vm4 = vmor %vm5334_vm13, %vm5462_vm10  ;;  %vm14016_vm13 = vcmp.ne.s32.totalorder %v11090_v30, %v11233_v59  ;;  %v8127_v29 = vpop.f32.mrb[48].mxu0 }
0x167a   : > { %vm5592_vm7 = vmor %vm5336_vm15, %vm5464_vm11  ;;  %8787 = vmatmul.mubr.bf16.gmra.mrb[116].mxu0 %v10310_v17  ;;  %vm14022_vm11 = vcmp.lt.s32.totalorder %v11090_v30, %v11233_v59  ;;  %v8128_v45 = vpop.f32.mrb[49].mxu0  ;;  %v5268_v59 = vpop.permute.xlu1 %5267 }
0x167b   : > { %vm7709_vm2 = vmpackc.low %vm5592_vm7, %vm5590_vm4  ;;  %8823 = vmatpush3.bf16.msra.mxu0 %v13984_v53  ;;  %vm5338_vm4 = vcmp.gt.f32.partialorder %v10768_v13, %v5256_v24  ;;  %v11896_v32 = vadd.f32 %v8128_v45, %v8127_v29  ;;  %v8130_v60 = vpop.f32.mrb[50].mxu0  ;;  %v5288_v45 = vpop.permute.xlu0 %5287 }
0x167c   : > { %7710 = vmatmul.mubr.msk.bf16.gmra.mrb[108].mxu1 %vm7709_vm2, %v13841_v8  ;;  %vm11856_vm0 = vmand %vm5339_vm5, %vm14013_vm6  ;;  %8824 = vmatprep.subr.bf16.mxu0 %v13984_v53  ;;  %vm5468_vm2 = vcmp.eq.f32.partialorder %v10768_v13, %v5260_v35  ;;  %v8131_v1 = vpop.f32.mrb[51].mxu0  ;;  %vm5343_vm6 = vcmp.gt.f32.partialorder %v10852_v4, %v5264_v50 }
0x167d   : > { %vm11864_vm10 = vmand %vm5341_vm9, %vm14016_vm13  ;;  %vm5466_vm9 = vcmp.eq.f32.partialorder %v10768_v13, %v5256_v24  ;;  %14025 = vst [vmem:[#allocation40_spill] sm:$0xff] %v11896_v32  ;;  %v11900_v55 = vadd.f32 %v8131_v1, %v8130_v60  ;;  %vm5345_vm13 = vcmp.gt.f32.partialorder %v10852_v4, %v5268_v59 }
0x167e   : > { %vm11871_vm15 = vmand %vm5467_vm12, %vm14019_vm8  ;;  %vm5340_vm12 = vcmp.gt.f32.partialorder %v10768_v13, %v5260_v35  ;;  %v5276_v52 = vpop.permute.xlu1 %5275 }
0x167f   : > { %vm11878_vm1 = vmand %vm5469_vm14, %vm14022_vm11  ;;  %8825 = vmatpush3.bf16.msra.mxu0 %v13984_v53  ;;  %14026 = vst [vmem:[#allocation41_spill] sm:$0xff] %v11900_v55  ;;  %vm5473_vm11 = vcmp.eq.f32.partialorder %v10852_v4, %v5268_v59 }
0x1680   : > { %vm5595_vm5 = vmor %vm11856_vm0, %vm11871_vm15  ;;  %8842 = vmatprep.subr.bf16.mxu0 %v13984_v53 }
0x1681   : > { %vm5597_vm7 = vmor %vm11864_vm10, %vm11878_vm1  ;;  %vm5471_vm10 = vcmp.eq.f32.partialorder %v10852_v4, %v5264_v50  ;;  %vm14027_vm1 = vcmp.ne.s32.totalorder %v11090_v30, %v11368_v7  ;;  %v8133_v44 = vpop.f32.mrb[52].mxu0 }
0x1682   : > { %vm7711_vm14 = vmpackc.low %vm5597_vm7, %vm5595_vm5  ;;  %vm14028_vm7 = vcmp.ne.s32.totalorder %v11090_v30, %v11372_v28  ;;  %v5284_v22 = vpop.permute.xlu1 %5283 }
0x1683   : > { %7712 = vmatprep.mubr.msk.bf16.mxu1 %vm7711_vm14, %v13841_v8  ;;  %vm5594_vm0 = vmor %vm5338_vm4, %vm5466_vm9  ;;  %vm14029_vm9 = vcmp.lt.s32.totalorder %v11090_v30, %v11368_v7  ;;  %v8134_v7 = vpop.f32.mrb[53].mxu0 }
0x1684   : > { %vm5596_vm8 = vmor %vm5340_vm12, %vm5468_vm2  ;;  %vm14030_vm12 = vcmp.lt.s32.totalorder %v11090_v30, %v11372_v28  ;;  %v11924_v28 = vadd.f32 %v8134_v7, %v8133_v44  ;;  %v8136_v23 = vpop.f32.mrb[54].mxu0 }
0x1685   : > { %vm7713_vm15 = vmpackc.low %vm5596_vm8, %vm5594_vm0  ;;  %vm5342_vm8 = vcmp.gt.f32.partialorder %v10768_v13, %v5264_v50  ;;  %v8137_v36 = vpop.f32.mrb[55].mxu0 }
0x1686   : > { %7714 = vmatmul.mubr.msk.bf16.gmra.mrb[112].mxu1 %vm7713_vm15, %v13841_v8  ;;  %vm5407_vm5 = vmand %vm5343_vm6, %vm14027_vm1  ;;  %vm5470_vm15 = vcmp.eq.f32.partialorder %v10768_v13, %v5264_v50  ;;  %vm5344_vm1 = vcmp.gt.f32.partialorder %v10768_v13, %v5268_v59  ;;  %14031 = vst [vmem:[#allocation42_spill] sm:$0xff] %v11924_v28  ;;  %v11928_v9 = vadd.f32 %v8137_v36, %v8136_v23  ;;  %v5292_v60 = vpop.permute.xlu1 %5291 }
0x1687   : > { %vm5409_vm4 = vmand %vm5345_vm13, %vm14028_vm7  ;;  %vm5472_vm13 = vcmp.eq.f32.partialorder %v10768_v13, %v5268_v59 }
0x1688   : > { %vm5535_vm14 = vmand %vm5471_vm10, %vm14029_vm9  ;;  %vm5347_vm10 = vcmp.gt.f32.partialorder %v10852_v4, %v5272_v39  ;;  %14032 = vst [vmem:[#allocation43_spill] sm:$0xff] %v11928_v9 }
0x1689   : > { %vm5537_vm2 = vmand %vm5473_vm11, %vm14030_vm12  ;;  %vm5477_vm12 = vcmp.eq.f32.partialorder %v10852_v4, %v5276_v52 }
0x168a   : > { %vm5599_vm0 = vmor %vm5407_vm5, %vm5535_vm14  ;;  %vm5349_vm5 = vcmp.gt.f32.partialorder %v10852_v4, %v5276_v52 }
0x168b   : > { %vm5601_vm6 = vmor %vm5409_vm4, %vm5537_vm2  ;;  %vm5475_vm4 = vcmp.eq.f32.partialorder %v10852_v4, %v5272_v39  ;;  %vm14033_vm2 = vcmp.ne.s32.totalorder %v11090_v30, %v11421_v19 }
0x168c   : > { %vm7715_vm7 = vmpackc.low %vm5601_vm6, %vm5599_vm0  ;;  %vm14035_vm6 = vcmp.lt.s32.totalorder %v11090_v30, %v11421_v19 }
0x168d   : > { %7716 = vmatprep.mubr.msk.bf16.mxu1 %vm7715_vm7, %v13841_v8  ;;  %vm5598_vm11 = vmor %vm5342_vm8, %vm5470_vm15  ;;  %vm14034_vm8 = vcmp.ne.s32.totalorder %v11090_v30, %v11424_v11  ;;  %v8139_v24 = vpop.f32.mrb[56].mxu0 }
0x168e   : > { %vm5600_vm9 = vmor %vm5344_vm1, %vm5472_vm13  ;;  %vm14036_vm13 = vcmp.lt.s32.totalorder %v11090_v30, %v11424_v11  ;;  %v8140_v19 = vpop.f32.mrb[57].mxu0 }
0x168f   : > { %vm7717_vm14 = vmpackc.low %vm5600_vm9, %vm5598_vm11  ;;  %vm5346_vm9 = vcmp.gt.f32.partialorder %v10768_v13, %v5272_v39  ;;  %v11950_v11 = vadd.f32 %v8140_v19, %v8139_v24  ;;  %v8142_v46 = vpop.f32.mrb[58].mxu0 }
0x1690   : > { %7718 = vmatmul.mubr.msk.bf16.gmra.mrb[116].mxu1 %vm7717_vm14, %v13841_v8  ;;  %vm5411_vm0 = vmand %vm5347_vm10, %vm14033_vm2  ;;  %vm5474_vm14 = vcmp.eq.f32.partialorder %v10768_v13, %v5272_v39  ;;  %vm5348_vm2 = vcmp.gt.f32.partialorder %v10768_v13, %v5276_v52  ;;  %v8143_v35 = vpop.f32.mrb[59].mxu0 }
0x1691   : > { %vm5413_vm15 = vmand %vm5349_vm5, %vm14034_vm8  ;;  %vm5476_vm5 = vcmp.eq.f32.partialorder %v10768_v13, %v5276_v52  ;;  %14037 = vst [vmem:[#allocation44_spill] sm:$0xff] %v11950_v11  ;;  %v11954_v31 = vadd.f32 %v8143_v35, %v8142_v46 }
0x1692   : > { %vm5539_vm1 = vmand %vm5475_vm4, %vm14035_vm6  ;;  %vm5351_vm4 = vcmp.gt.f32.partialorder %v10852_v4, %v5280_v27 }
0x1693   : > { %vm5541_vm7 = vmand %vm5477_vm12, %vm14036_vm13  ;;  %14038 = vst [vmem:[#allocation45_spill] sm:$0xff] %v11954_v31  ;;  %vm5481_vm13 = vcmp.eq.f32.partialorder %v10852_v4, %v5284_v22 }
0x1694   : > { %vm5603_vm11 = vmor %vm5411_vm0, %vm5539_vm1  ;;  %vm5353_vm0 = vcmp.gt.f32.partialorder %v10852_v4, %v5284_v22  ;;  %v8227_v29 = vpop.f32.mrb[68].mxu1 }
0x1695   : > { %vm5605_vm10 = vmor %vm5413_vm15, %vm5541_vm7  ;;  %vm5479_vm15 = vcmp.eq.f32.partialorder %v10852_v4, %v5280_v27  ;;  %vm14039_vm7 = vcmp.ne.s32.totalorder %v11090_v30, %v11553_v26  ;;  %v8228_v50 = vpop.f32.mrb[69].mxu1 }
0x1696   : > { %vm7719_vm8 = vmpackc.low %vm5605_vm10, %vm5603_vm11  ;;  %vm14045_vm10 = vcmp.lt.s32.totalorder %v11090_v30, %v11553_v26  ;;  %v8229_v26 = vadd.f32 %v8228_v50, %v8227_v29  ;;  %v8230_v59 = vpop.f32.mrb[70].mxu1 }
0x1697   : > { %7720 = vmatprep.mubr.msk.bf16.mxu1 %vm7719_vm8, %v13841_v8  ;;  %vm5602_vm12 = vmor %vm5346_vm9, %vm5474_vm14  ;;  %vm14042_vm9 = vcmp.ne.s32.totalorder %v11090_v30, %v11560_v38 }
0x1698   : > { %vm5604_vm6 = vmor %vm5348_vm2, %vm5476_vm5  ;;  %vm14048_vm5 = vcmp.lt.s32.totalorder %v11090_v30, %v11560_v38  ;;  %v8231_v38 = vpop.f32.mrb[71].mxu1 }
0x1699   : > { %vm7721_vm1 = vmpackc.low %vm5604_vm6, %vm5602_vm12  ;;  %vm5350_vm12 = vcmp.gt.f32.partialorder %v10768_v13, %v5280_v27  ;;  %v8232_v1 = vadd.f32 %v8231_v38, %v8230_v59  ;;  %v8145_v39 = vpop.f32.mrb[60].mxu0 }
0x169a   : > { %7722 = vmatmul.mubr.msk.bf16.gmra.mrb[120].mxu1 %vm7721_vm1, %v13841_v8  ;;  %vm11961_vm11 = vmand %vm5351_vm4, %vm14039_vm7  ;;  %vm5480_vm1 = vcmp.eq.f32.partialorder %v10768_v13, %v5284_v22  ;;  %vm5935_vm7 = vcmp.lt.f32.partialorder %v8229_v26, 100.0  ;;  %v8146_v52 = vpop.f32.mrb[61].mxu0 }
0x169b   : > { %vm11968_vm14 = vmand %vm5353_vm0, %vm14042_vm9  ;;  %vm5478_vm0 = vcmp.eq.f32.partialorder %v10768_v13, %v5280_v27  ;;  %v11997_v44 = vsel %vm5935_vm7, 1.0, %v13864_v49  ;;  %v12002_v23 = vadd.f32 %v8146_v52, %v8145_v39  ;;  %v8148_v36 = vpop.f32.mrb[62].mxu0 }
0x169c   : > { %vm11975_vm2 = vmand %vm5479_vm15, %vm14045_vm10  ;;  %vm5352_vm15 = vcmp.gt.f32.partialorder %v10768_v13, %v5284_v22  ;;  %vm5357_vm10 = vcmp.gt.f32.partialorder %v10852_v4, %v5292_v60  ;;  %v8149_v24 = vpop.f32.mrb[63].mxu0 }
0x169d   : > { %vm5545_vm8 = vmand %vm5481_vm13, %vm14048_vm5  ;;  %vm5936_vm5 = vcmp.lt.f32.partialorder %v8232_v1, 100.0  ;;  %14049 = vst [vmem:[#allocation46_spill] sm:$0xff] %v12002_v23  ;;  %v12022_v19 = vadd.f32 %v8149_v24, %v8148_v36 }
0x169e   : > { %vm5607_vm4 = vmor %vm11961_vm11, %vm11975_vm2  ;;  %vm5355_vm11 = vcmp.gt.f32.partialorder %v10852_v4, %v5288_v45  ;;  %v12000_v7 = vsel %vm5936_vm5, 1.0, %v13864_v49 }
0x169f   : > { %vm5609_vm6 = vmor %vm11968_vm14, %vm5545_vm8  ;;  %vm5483_vm14 = vcmp.eq.f32.partialorder %v10852_v4, %v5288_v45  ;;  %14054 = vst [vmem:[#allocation47_spill] sm:$0xff] %v12022_v19 }
0x16a0   : > { %vm7723_vm13 = vmpackc.low %vm5609_vm6, %vm5607_vm4  ;;  %vm5485_vm4 = vcmp.eq.f32.partialorder %v10852_v4, %v5292_v60  ;;  %vm14053_vm6 = vcmp.ne.s32.totalorder %v11090_v30, %v11609_v2 }
0x16a1   : > { %7724 = vmatprep.mubr.msk.bf16.mxu1 %vm7723_vm13, %v13841_v8  ;;  %vm5606_vm9 = vmor %vm5350_vm12, %vm5478_vm0  ;;  %vm14050_vm12 = vcmp.ne.s32.totalorder %v11090_v30, %v11613_v34  ;;  %vm14055_vm13 = vcmp.lt.s32.totalorder %v11090_v30, %v11609_v2  ;;  %v8151_v4 = vpop.f32.mrb[64].mxu0 }
0x16a2   : > { %vm5608_vm2 = vmor %vm5352_vm15, %vm5480_vm1  ;;  %v8152_v34 = vpop.f32.mrb[65].mxu0 }
0x16a3   : > { %vm7725_vm8 = vmpackc.low %vm5608_vm2, %vm5606_vm9  ;;  %vm5354_vm9 = vcmp.gt.f32.partialorder %v10768_v13, %v5288_v45  ;;  %vm5482_vm2 = vcmp.eq.f32.partialorder %v10768_v13, %v5288_v45  ;;  %v12037_v30 = vadd.f32 %v8152_v34, %v8151_v4  ;;  %v8154_v2 = vpop.f32.mrb[66].mxu0 }
0x16a4   : > { %7726 = vmatmul.mubr.msk.bf16.gmra.mrb[124].mxu1 %vm7725_vm8, %v13841_v8  ;;  %vm12011_vm0 = vmand %vm5355_vm11, %vm14050_vm12  ;;  %vm5484_vm8 = vcmp.eq.f32.partialorder %v10768_v13, %v5292_v60  ;;  %v8155_v46 = vpop.f32.mrb[67].mxu0 }
0x16a5   : > { %vm5421_vm15 = vmand %vm5357_vm10, %vm14053_vm6  ;;  %vm5356_vm10 = vcmp.gt.f32.partialorder %v10768_v13, %v5292_v60  ;;  %14056 = vst [vmem:[#allocation48_spill] sm:$0xff] %v12037_v30  ;;  %v12039_v35 = vadd.f32 %v8155_v46, %v8154_v2 }
0x16a6   : > { %vm5547_vm1 = vmand %vm5483_vm14, %vm4250_vm3 }
0x16a7   : > { %vm5549_vm7 = vmand %vm5485_vm4, %vm14055_vm13  ;;  %14057 = vst [vmem:[#allocation49_spill] sm:$0xff] %v12039_v35 }
0x16a8   : > { %vm5611_vm11 = vmor %vm12011_vm0, %vm5547_vm1  ;;  %vm14058_vm0 = vmmov 0  }
0x16a9   : > { %vm5613_vm5 = vmor %vm5421_vm15, %vm5549_vm7 }
0x16aa   : > { %vm7727_vm12 = vmpackc.low %vm5613_vm5, %vm5611_vm11  ;;  %v8233_v13 = vpop.f32.mrb[72].mxu1 }
0x16ab   : > { %7728 = vmatprep.mubr.msk.bf16.mxu1 %vm7727_vm12, %v13841_v8  ;;  %vm5610_vm3 = vmor %vm5354_vm9, %vm5482_vm2  ;;  %v8234_v17 = vpop.f32.mrb[73].mxu1 }
0x16ac   : > { %vm5612_vm14 = vmor %vm5356_vm10, %vm5484_vm8  ;;  %v8235_v20 = vadd.f32 %v8234_v17, %v8233_v13  ;;  %v8236_v37 = vpop.f32.mrb[74].mxu1 }
0x16ad   : > { %vm7729_vm4 = vmpackc.low %vm5612_vm14, %vm5610_vm3  ;;  %v8237_v29 = vpop.f32.mrb[75].mxu1 }
0x16ae   : > { %7730 = vmatmul.mubr.msk.bf16.gmra.mrb[128].mxu1 %vm7729_vm4, %v13841_v8  ;;  %vm5937_vm6 = vcmp.lt.f32.partialorder %v8235_v20, 100.0  ;;  %v8238_v50 = vadd.f32 %v8237_v29, %v8236_v37 }
0x16af   : > { %8806 = vmatprep.mubr.msk.bf16.mxu1 %vm14058_vm0, %v13864_v49  ;;  %v12046_v45 = vsel %vm5937_vm6, 1.0, %v13864_v49 }
0x16b0   : > { %vm5938_vm15 = vcmp.lt.f32.partialorder %v8238_v50, 100.0 }
0x16b1   : > { %v12049_v26 = vsel %vm5938_vm15, 1.0, %v13864_v49 }
0x16b4   : > { %v8157_v60 = vpop.f32.mrb[68].mxu0 }
0x16b5   : > { %v8158_v38 = vpop.f32.mrb[69].mxu0 }
0x16b6   : > { %8807 = vmatmul.mubr.bf16.vlgmr.msra.gmra.mrb[132].mxu1 %v10504_v12  ;;  %v12053_v1 = vadd.f32 %v8158_v38, %v8157_v60  ;;  %v8160_v39 = vpop.f32.mrb[70].mxu0 }
0x16b7   : > { %v8161_v52 = vpop.f32.mrb[71].mxu0 }
0x16b8   : > { %14059 = vst [vmem:[#allocation50_spill] sm:$0xff] %v12053_v1  ;;  %v12055_v36 = vadd.f32 %v8161_v52, %v8160_v39 }
0x16b9   : > { %v8239_v12 = vpop.f32.mrb[76].mxu1 }
0x16ba   : > { %14060 = vst [vmem:[#allocation51_spill] sm:$0xff] %v12055_v36  ;;  %v8240_v27 = vpop.f32.mrb[77].mxu1 }
0x16bb   : > { %v8241_v24 = vadd.f32 %v8240_v27, %v8239_v12  ;;  %v8242_v4 = vpop.f32.mrb[78].mxu1 }
0x16bc   : > { %v8243_v34 = vpop.f32.mrb[79].mxu1 }
0x16bd   : > { %vm5939_vm1 = vcmp.lt.f32.partialorder %v8241_v24, 100.0  ;;  %v8244_v2 = vadd.f32 %v8243_v34, %v8242_v4 }
0x16be   : > { %v12058_v46 = vsel %vm5939_vm1, 1.0, %v13864_v49  ;;  %vm14113_vm1 = vcmp.ne.s32.totalorder %v10563_v15, %v10614_v16 }
0x16bf   : > { %vm5940_vm13 = vcmp.lt.f32.partialorder %v8244_v2, 100.0 }
0x16c0   : > { %v12061_v13 = vsel %vm5940_vm13, 1.0, %v13864_v49 }
0x16c3   : > { %v8163_v20 = vpop.f32.mrb[72].mxu0 }
0x16c4   : > { %v8164_v37 = vpop.f32.mrb[73].mxu0 }
0x16c5   : > { %v12065_v29 = vadd.f32 %v8164_v37, %v8163_v20  ;;  %v8166_v50 = vpop.f32.mrb[74].mxu0 }
0x16c6   : > { %v8167_v60 = vpop.f32.mrb[75].mxu0 }
0x16c7   : > { %14061 = vst [vmem:[#allocation52_spill] sm:$0xff] %v12065_v29  ;;  %v12067_v38 = vadd.f32 %v8167_v60, %v8166_v50 }
0x16c9   : > { %14062 = vst [vmem:[#allocation53_spill] sm:$0xff] %v12067_v38 }
0x16cd   : > { %v8169_v39 = vpop.f32.mrb[76].mxu0 }
0x16ce   : > { %v8170_v52 = vpop.f32.mrb[77].mxu0 }
0x16cf   : > { %v12069_v12 = vadd.f32 %v8170_v52, %v8169_v39  ;;  %v8172_v27 = vpop.f32.mrb[78].mxu0 }
0x16d0   : > { %v8173_v24 = vpop.f32.mrb[79].mxu0 }
0x16d1   : > { %14063 = vst [vmem:[#allocation54_spill] sm:$0xff] %v12069_v12  ;;  %v12071_v4 = vadd.f32 %v8173_v24, %v8172_v27 }
0x16d3   : > { %14064 = vst [vmem:[#allocation55_spill] sm:$0xff] %v12071_v4 }
0x16d9   : > { %v8175_v34 = vpop.f32.mrb[80].mxu0 }
0x16da   : > { %v8176_v2 = vpop.f32.mrb[81].mxu0 }
0x16db   : > { %v12073_v59 = vadd.f32 %v8176_v2, %v8175_v34  ;;  %v8178_v17 = vpop.f32.mrb[82].mxu0 }
0x16dc   : > { %v8179_v22 = vpop.f32.mrb[83].mxu0 }
0x16dd   : > { %14065 = vst [vmem:[#allocation56_spill] sm:$0xff] %v12073_v59  ;;  %v12075_v20 = vadd.f32 %v8179_v22, %v8178_v17 }
0x16df   : > { %14066 = vst [vmem:[#allocation57_spill] sm:$0xff] %v12075_v20 }
0x16ea   : > { %v8245_v37 = vpop.f32.mrb[80].mxu1 }
0x16eb   : > { %v8246_v36 = vpop.f32.mrb[81].mxu1 }
0x16ec   : > { %v8247_v50 = vadd.f32 %v8246_v36, %v8245_v37  ;;  %v8248_v60 = vpop.f32.mrb[82].mxu1 }
0x16ed   : > { %v8249_v57 = vpop.f32.mrb[83].mxu1 }
0x16ee   : > { %vm5941_vm7 = vcmp.lt.f32.partialorder %v8247_v50, 100.0  ;;  %v8250_v39 = vadd.f32 %v8249_v57, %v8248_v60  ;;  %v8181_v52 = vpop.f32.mrb[84].mxu0 }
0x16ef   : > { %v8182_v12 = vpop.f32.mrb[85].mxu0  ;;  %v12080_v34 = vsel %vm5941_vm7, 1.0, %v13864_v49  ;;  %vm14116_vm7 = vcmp.lt.s32.totalorder %v10563_v15, %v10614_v16 }
0x16f0   : > { %vm5942_vm11 = vcmp.lt.f32.partialorder %v8250_v39, 100.0  ;;  %v12077_v27 = vadd.f32 %v8182_v12, %v8181_v52  ;;  %v8184_v24 = vpop.f32.mrb[86].mxu0 }
0x16f1   : > { %v12083_v2 = vsel %vm5942_vm11, 1.0, %v13864_v49  ;;  %v8185_v22 = vpop.f32.mrb[87].mxu0 }
0x16f2   : > { %14067 = vst [vmem:[#allocation58_spill] sm:$0xff] %v12077_v27  ;;  %v12087_v17 = vadd.f32 %v8185_v22, %v8184_v24  ;;  %v8251_v37 = vpop.f32.mrb[84].mxu1 }
0x16f3   : > { %v8252_v57 = vpop.f32.mrb[85].mxu1 }
0x16f4   : > { %14068 = vst [vmem:[#allocation59_spill] sm:$0xff] %v12087_v17  ;;  %v8253_v50 = vadd.f32 %v8252_v57, %v8251_v37  ;;  %v8254_v60 = vpop.f32.mrb[86].mxu1 }
0x16f5   : > { %v8255_v39 = vpop.f32.mrb[87].mxu1 }
0x16f6   : > { %vm5943_vm9 = vcmp.lt.f32.partialorder %v8253_v50, 100.0  ;;  %v8256_v12 = vadd.f32 %v8255_v39, %v8254_v60 }
0x16f7   : > { %v12090_v52 = vsel %vm5943_vm9, 1.0, %v13864_v49 }
0x16f8   : > { %vm5944_vm2 = vcmp.lt.f32.partialorder %v8256_v12, 100.0 }
0x16f9   : > { %v12093_v27 = vsel %vm5944_vm2, 1.0, %v13864_v49 }
0x16fb   : > { %v8187_v36 = vpop.f32.mrb[88].mxu0 }
0x16fc   : > { %v8188_v24 = vpop.f32.mrb[89].mxu0 }
0x16fd   : > { %v12097_v22 = vadd.f32 %v8188_v24, %v8187_v36  ;;  %v8190_v17 = vpop.f32.mrb[90].mxu0 }
0x16fe   : > { %v8191_v37 = vpop.f32.mrb[91].mxu0 }
0x16ff   : > { %14069 = vst [vmem:[#allocation60_spill] sm:$0xff] %v12097_v22  ;;  %v12099_v57 = vadd.f32 %v8191_v37, %v8190_v17 }
0x1701   : > { %14070 = vst [vmem:[#allocation61_spill] sm:$0xff] %v12099_v57 }
0x170e   : > { %v8193_v50 = vpop.f32.mrb[92].mxu0 }
0x170f   : > { %v8194_v60 = vpop.f32.mrb[93].mxu0 }
0x1710   : > { %v12101_v39 = vadd.f32 %v8194_v60, %v8193_v50  ;;  %v8196_v12 = vpop.f32.mrb[94].mxu0 }
0x1711   : > { %v8257_v59 = vpop.f32.mrb[88].mxu1  ;;  %v8197_v4 = vpop.f32.mrb[95].mxu0 }
0x1712   : > { %14071 = vst [vmem:[#allocation62_spill] sm:$0xff] %v12101_v39  ;;  %v8258_v38 = vpop.f32.mrb[89].mxu1  ;;  %v12103_v3 = vadd.f32 %v8197_v4, %v8196_v12 }
0x1713   : > { %v8259_v54 = vadd.f32 %v8258_v38, %v8257_v59  ;;  %v8260_v20 = vpop.f32.mrb[90].mxu1 }
0x1714   : > { %14072 = vst [vmem:[#allocation63_spill] sm:$0xff] %v12103_v3  ;;  %v8261_v29 = vpop.f32.mrb[91].mxu1 }
0x1715   : > { %vm5945_vm5 = vcmp.lt.f32.partialorder %v8259_v54, 100.0  ;;  %v8262_v36 = vadd.f32 %v8261_v29, %v8260_v20 }
0x1716   : > { %v12106_v24 = vsel %vm5945_vm5, 1.0, %v13864_v49 }
0x1717   : > { %vm5946_vm10 = vcmp.lt.f32.partialorder %v8262_v36, 100.0 }
0x1718   : > { %v12109_v17 = vsel %vm5946_vm10, 1.0, %v13864_v49 }
0x1719   : > { %v8263_v50 = vpop.f32.mrb[92].mxu1 }
0x171a   : > { %v8264_v60 = vpop.f32.mrb[93].mxu1 }
0x171b   : > { %v8265_v39 = vadd.f32 %v8264_v60, %v8263_v50  ;;  %v8266_v4 = vpop.f32.mrb[94].mxu1 }
0x171c   : > { %v8267_v12 = vpop.f32.mrb[95].mxu1 }
0x171d   : > { %vm5947_vm8 = vcmp.lt.f32.partialorder %v8265_v39, 100.0  ;;  %v8268_v59 = vadd.f32 %v8267_v12, %v8266_v4 }
0x171e   : > { %v12114_v54 = vsel %vm5947_vm8, 1.0, %v13864_v49  ;;  %vm14119_vm8 = vcmp.ne.s32.totalorder %v10563_v15, %v10551_v48 }
0x171f   : > { %v8199_v38 = vpop.f32.mrb[96].mxu0  ;;  %vm5948_vm12 = vcmp.lt.f32.partialorder %v8268_v59, 100.0 }
0x1720   : > { %v8200_v29 = vpop.f32.mrb[97].mxu0  ;;  %v12117_v20 = vsel %vm5948_vm12, 1.0, %v13864_v49 }
0x1721   : > { %v12119_v36 = vadd.f32 %v8200_v29, %v8199_v38  ;;  %v8202_v3 = vpop.f32.mrb[98].mxu0 }
0x1722   : > { %v8203_v50 = vpop.f32.mrb[99].mxu0 }
0x1723   : > { %14073 = vst [vmem:[#allocation64_spill] sm:$0xff] %v12119_v36  ;;  %v12123_v60 = vadd.f32 %v8203_v50, %v8202_v3 }
0x1725   : > { %14074 = vst [vmem:[#allocation65_spill] sm:$0xff] %v12123_v60 }
0x172d   : > { %v8205_v39 = vpop.f32.mrb[100].mxu0 }
0x172e   : > { %v8206_v4 = vpop.f32.mrb[101].mxu0 }
0x172f   : > { %v12125_v12 = vadd.f32 %v8206_v4, %v8205_v39  ;;  %v8208_v59 = vpop.f32.mrb[102].mxu0 }
0x1730   : > { %v8209_v57 = vpop.f32.mrb[103].mxu0 }
0x1731   : > { %14075 = vst [vmem:[#allocation66_spill] sm:$0xff] %v12125_v12  ;;  %v12127_v22 = vadd.f32 %v8209_v57, %v8208_v59  ;;  %v8269_v1 = vpop.f32.mrb[96].mxu1 }
0x1732   : > { %v8270_v35 = vpop.f32.mrb[97].mxu1 }
0x1733   : > { %14076 = vst [vmem:[#allocation67_spill] sm:$0xff] %v12127_v22  ;;  %v8271_v30 = vadd.f32 %v8270_v35, %v8269_v1  ;;  %v8272_v38 = vpop.f32.mrb[98].mxu1 }
0x1734   : > { %v8273_v29 = vpop.f32.mrb[99].mxu1 }
0x1735   : > { %vm5949_vm3 = vcmp.lt.f32.partialorder %v8271_v30, 100.0  ;;  %v8274_v36 = vadd.f32 %v8273_v29, %v8272_v38  ;;  %v12129_v37 = vpop.f32.mrb[104].mxu0 }
0x1736   : > { %14077 = vst [vmem:[#allocation68_spill] sm:$0xff] %v12129_v37  ;;  %6449 = vperm.xlu1 %9027, %v12129_v37   ;;  %v12132_v3 = vpop.f32.mrb[105].mxu0  ;;  %v12138_v57 = vsel %vm5949_vm3, 1.0, %v13864_v49 }
0x1737   : > { %14078 = vst [vmem:[#allocation69_spill] sm:$0xff] %v12132_v3  ;;  %vm5950_vm14 = vcmp.lt.f32.partialorder %v8274_v36, 100.0  ;;  %6439 = vperm.xlu0 %9028, %v12132_v3   ;;  %v12135_v50 = vpop.f32.mrb[106].mxu0 }
0x1738   : > { %14079 = vst [vmem:[#allocation70_spill] sm:$0xff] %v12135_v50  ;;  %v12141_v35 = vsel %vm5950_vm14, 1.0, %v13864_v49  ;;  %v12143_v1 = vpop.f32.mrb[107].mxu0  ;;  %vm14122_vm14 = vcmp.ne.s32.totalorder %v10563_v15, %v10570_v21 }
0x1739   : > { %14080 = vst [vmem:[#allocation71_spill] sm:$0xff] %v12143_v1 }
0x173a   : > { %6444 = vperm.xlu1 %9027, %v12143_v1  }
0x173b   : > { %v8275_v39 = vpop.f32.mrb[100].mxu1  ;;  %6454 = vperm.xlu0 %9028, %v12135_v50  }
0x173c   : > { %v8276_v36 = vpop.f32.mrb[101].mxu1 }
0x173d   : > { %v8277_v4 = vadd.f32 %v8276_v36, %v8275_v39  ;;  %v8278_v59 = vpop.f32.mrb[102].mxu1  ;;  %v12149_v38 = vpop.f32.mrb[108].mxu0 }
0x173e   : > { %14081 = vst [vmem:[#allocation72_spill] sm:$0xff] %v12149_v38  ;;  %v8279_v29 = vpop.f32.mrb[103].mxu1  ;;  %6469 = vperm.xlu1 %9027, %v12149_v38   ;;  %v12152_v22 = vpop.f32.mrb[109].mxu0 }
0x173f   : > { %14082 = vst [vmem:[#allocation73_spill] sm:$0xff] %v12152_v22  ;;  %vm5951_vm4 = vcmp.lt.f32.partialorder %v8277_v4, 100.0  ;;  %v8280_v12 = vadd.f32 %v8279_v29, %v8278_v59  ;;  %v12154_v60 = vpop.f32.mrb[110].mxu0 }
0x1740   : > { %14083 = vst [vmem:[#allocation74_spill] sm:$0xff] %v12154_v60  ;;  %6474 = vperm.xlu0 %9028, %v12154_v60   ;;  %v12157_v30 = vpop.f32.mrb[111].mxu0  ;;  %v12160_v19 = vsel %vm5951_vm4, 1.0, %v13864_v49 }
0x1741   : > { %14084 = vst [vmem:[#allocation75_spill] sm:$0xff] %v12157_v30  ;;  %vm5952_vm0 = vcmp.lt.f32.partialorder %v8280_v12, 100.0 }
0x1742   : > { %v12163_v39 = vsel %vm5952_vm0, 1.0, %v13864_v49  ;;  %6459 = vperm.xlu1 %9027, %v12152_v22  }
0x1744   : > { %6464 = vperm.xlu0 %9028, %v12157_v30  }
0x1745   : > { %v8281_v4 = vpop.f32.mrb[104].mxu1  ;;  %v12169_v59 = vpop.f32.mrb[112].mxu0 }
0x1746   : > { %14085 = vst [vmem:[#allocation76_spill] sm:$0xff] %v12169_v59  ;;  %v8282_v29 = vpop.f32.mrb[105].mxu1  ;;  %6489 = vperm.xlu1 %9027, %v12169_v59   ;;  %v12172_v12 = vpop.f32.mrb[113].mxu0 }
0x1747   : > { %14086 = vst [vmem:[#allocation77_spill] sm:$0xff] %v12172_v12  ;;  %v12174_v23 = vadd.f32 %v8282_v29, %v8281_v4  ;;  %v8284_v31 = vpop.f32.mrb[106].mxu1  ;;  %v12176_v11 = vpop.f32.mrb[114].mxu0 }
0x1748   : > { %14088 = vst [vmem:[#allocation79_spill] sm:$0xff] %v12176_v11  ;;  %v8285_v9 = vpop.f32.mrb[107].mxu1  ;;  %6494 = vperm.xlu0 %9028, %v12176_v11   ;;  %v12179_v49 = vpop.f32.mrb[115].mxu0 }
0x1749   : > { %14087 = vst [vmem:[#allocation78_spill] sm:$0xff] %v12174_v23  ;;  %14089 = vst [vmem:[#allocation80_spill] sm:$0xff] %v12179_v49  ;;  %v12181_v36 = vadd.f32 %v8285_v9, %v8284_v31 }
0x174a   : > { %6479 = vperm.xlu1 %9027, %v12172_v12  }
0x174b   : > { %14090 = vst [vmem:[#allocation81_spill] sm:$0xff] %v12181_v36 }
0x174c   : > { %6484 = vperm.xlu0 %9028, %v12179_v49  }
0x174d   : > { %v12185_v28 = vpop.f32.mrb[116].mxu0 }
0x174e   : > { %14091 = vst [vmem:[#allocation82_spill] sm:$0xff] %v12185_v28  ;;  %6509 = vperm.xlu1 %9027, %v12185_v28   ;;  %v12188_v4 = vpop.f32.mrb[117].mxu0 }
0x174f   : > { %14092 = vst [vmem:[#allocation83_spill] sm:$0xff] %v12188_v4  ;;  %v8287_v29 = vpop.f32.mrb[108].mxu1  ;;  %v12190_v23 = vpop.f32.mrb[118].mxu0 }
0x1750   : > { %14093 = vst [vmem:[#allocation84_spill] sm:$0xff] %v12190_v23  ;;  %v8288_v55 = vpop.f32.mrb[109].mxu1  ;;  %6514 = vperm.xlu0 %9028, %v12190_v23   ;;  %v12193_v32 = vpop.f32.mrb[119].mxu0 }
0x1751   : > { %14094 = vst [vmem:[#allocation85_spill] sm:$0xff] %v12193_v32  ;;  %v12195_v9 = vadd.f32 %v8288_v55, %v8287_v29  ;;  %v8290_v31 = vpop.f32.mrb[110].mxu1 }
0x1752   : > { %v8291_v36 = vpop.f32.mrb[111].mxu1  ;;  %6499 = vperm.xlu1 %9027, %v12188_v4  }
0x1753   : > { %14095 = vst [vmem:[#allocation86_spill] sm:$0xff] %v12195_v9  ;;  %v12198_v33 = vadd.f32 %v8291_v36, %v8290_v31 }
0x1754   : > { %6504 = vperm.xlu0 %9028, %v12193_v32  }
0x1756   : > { %9029 = vset.pattern.permute.xlu1 %v14096_v47 }
0x1757   : > { %6787 = vperm.xlu1 %9029, %v12132_v3  }
0x1758   : > { %9030 = vset.pattern.permute.xlu0 %v14096_v47 }
0x1759   : > { %v8293_v0 = vpop.f32.mrb[112].mxu1  ;;  %6791 = vperm.xlu0 %9030, %v12143_v1  }
0x175a   : > { %v8294_v10 = vpop.f32.mrb[113].mxu1 }
0x175b   : > { %v12205_v55 = vadd.f32 %v8294_v10, %v8293_v0  ;;  %v8296_v29 = vpop.f32.mrb[114].mxu1  ;;  %6795 = vperm.xlu1 %9029, %v12129_v37   ;;  %v14227_v37 = vld [vmem:[#allocation45_spill] sm:$0xff] }
0x175c   : > { %v8297_v9 = vpop.f32.mrb[115].mxu1 }
0x175d   : > { %v12208_v36 = vadd.f32 %v8297_v9, %v8296_v29  ;;  %6803 = vperm.xlu0 %9030, %v12152_v22  }
0x175f   : > { %6799 = vperm.xlu1 %9029, %v12135_v50  }
0x1761   : > { %6811 = vperm.xlu0 %9030, %v12149_v38  }
0x1763   : > { %v8299_v31 = vpop.f32.mrb[116].mxu1  ;;  %6807 = vperm.xlu1 %9029, %v12157_v30  }
0x1764   : > { %v8300_v47 = vpop.f32.mrb[117].mxu1 }
0x1765   : > { %v12214_v3 = vadd.f32 %v8300_v47, %v8299_v31  ;;  %v8302_v10 = vpop.f32.mrb[118].mxu1  ;;  %6819 = vperm.xlu0 %9030, %v12172_v12  }
0x1766   : > { %v8303_v0 = vpop.f32.mrb[119].mxu1 }
0x1767   : > { %14097 = vst [vmem:[#allocation87_spill] sm:$0xff] %v12214_v3  ;;  %v12217_v1 = vadd.f32 %v8303_v0, %v8302_v10  ;;  %6815 = vperm.xlu1 %9029, %v12154_v60   ;;  %v14100_v10 = vpack.i.bf16 %v12000_v7, %v11997_v44  ;;  %v14104_v44 = vpack.i.bf16 %v12049_v26, %v12046_v45 }
0x1768   : > { %v14105_v7 = vpack.i.bf16 %v12093_v27, %v12090_v52  ;;  %v14109_v26 = vpack.i.bf16 %v12109_v17, %v12106_v24 }
0x1769   : > { %14098 = vst [vmem:[#allocation88_spill] sm:$0xff] %v12217_v1  ;;  %6827 = vperm.xlu0 %9030, %v12169_v59   ;;  %v14219_v59 = vld [vmem:[#allocation43_spill] sm:$0xff] }
0x176b   : > { %6823 = vperm.xlu1 %9029, %v12179_v49  }
0x176d   : > { %v8305_v9 = vpop.f32.mrb[120].mxu1  ;;  %6835 = vperm.xlu0 %9030, %v12188_v4  }
0x176e   : > { %v8306_v29 = vpop.f32.mrb[121].mxu1 }
0x176f   : > { %v12223_v38 = vadd.f32 %v8306_v29, %v8305_v9  ;;  %v8308_v31 = vpop.f32.mrb[122].mxu1  ;;  %6831 = vperm.xlu1 %9029, %v12176_v11   ;;  %v14214_v11 = vld [vmem:[#allocation42_spill] sm:$0xff] }
0x1770   : > { %v8309_v47 = vpop.f32.mrb[123].mxu1 }
0x1771   : > { %v12226_v12 = vadd.f32 %v8309_v47, %v8308_v31  ;;  %6843 = vperm.xlu0 %9030, %v12185_v28   ;;  %v14102_v31 = vpack.i.bf16 %v12061_v13, %v12058_v46  ;;  %v14107_v13 = vpack.i.bf16 %v12117_v20, %v12114_v54 }
0x1773   : > { %14099 = vst [vmem:[#allocation89_spill] sm:$0xff] %v12226_v12  ;;  %6839 = vperm.xlu1 %9029, %v12193_v32   ;;  %v14213_v32 = vld [vmem:[#allocation41_spill] sm:$0xff] }
0x1775   : > { %9032 = vrot.lane.b32.xlu0 %v14100_v10, %s9253_s22  ;;  %v14106_v10 = vpack.i.bf16 %v12083_v2, %v12080_v34  ;;  %v14111_v34 = vpack.i.bf16 %v12163_v39, %v12160_v19  ;;  %v14112_v2 = vpack.i.bf16 %v12141_v35, %v12138_v57  ;;  %v14114_v19 = vmov 0 }
0x1777   : > { %v8311_v0 = vpop.f32.mrb[124].mxu1  ;;  %6847 = vperm.xlu1 %9029, %v12190_v23   ;;  %v14212_v23 = vld [vmem:[#allocation40_spill] sm:$0xff] }
0x1778   : > { %v8312_v9 = vpop.f32.mrb[125].mxu1 }
0x1779   : > { %v12235_v29 = vadd.f32 %v8312_v9, %v8311_v0  ;;  %v8314_v4 = vpop.f32.mrb[126].mxu1  ;;  %9042 = vrot.lane.b32.xlu0 %v14102_v31, %s9253_s22 }
0x177a   : > { %v8315_v47 = vpop.f32.mrb[127].mxu1 }
0x177b   : > { %14101 = vst [vmem:[#allocation90_spill] sm:$0xff] %v12235_v29  ;;  %v12241_v28 = vadd.f32 %v8315_v47, %v8314_v4  ;;  %9037 = vrot.lane.b32.xlu1 %v14104_v44, %s9253_s22  ;;  %v14233_v29 = vld [vmem:[#allocation47_spill] sm:$0xff] }
0x177d   : > { %14103 = vst [vmem:[#allocation91_spill] sm:$0xff] %v12241_v28  ;;  %9052 = vrot.lane.b32.xlu0 %v14105_v7, %s9253_s22  ;;  %v14228_v28 = vld [vmem:[#allocation46_spill] sm:$0xff] }
0x177f   : > { %9047 = vrot.lane.b32.xlu1 %v14106_v10, %s9253_s22 }
0x1781   : > { %v8317_v46 = vpop.f32.mrb[128].mxu1  ;;  %9062 = vrot.lane.b32.xlu0 %v14107_v13, %s9253_s22 }
0x1782   : > { %v8318_v4 = vpop.f32.mrb[129].mxu1 }
0x1783   : > { %v12259_v0 = vadd.f32 %v8318_v4, %v8317_v46  ;;  %v8320_v45 = vpop.f32.mrb[130].mxu1  ;;  %9057 = vrot.lane.b32.xlu1 %v14109_v26, %s9253_s22 }
0x1784   : > { %v8321_v27 = vpop.f32.mrb[131].mxu1 }
0x1785   : > { %14108 = vst [vmem:[#allocation92_spill] sm:$0xff] %v12259_v0  ;;  %v12265_v52 = vadd.f32 %v8321_v27, %v8320_v45  ;;  %9072 = vrot.lane.b32.xlu0 %v14111_v34, %s9253_s22 }
0x1787   : > { %14110 = vst [vmem:[#allocation93_spill] sm:$0xff] %v12265_v52  ;;  %9067 = vrot.lane.b32.xlu1 %v14112_v2, %s9253_s22 }
0x1789   : > { %v12275_v54 = vpop.f32.mrb[132].mxu1 }
0x178a   : > { %v8808_v20 = vpop.f32.mrb[133].mxu1  ;;  %v12279_v24 = vrot.slane %v12275_v54, %v10556_v6  ;;  %v14117_v6 = vmov 0 }
0x178b   : > { %v6430_v9 = vpop.f32.mrb[134].mxu1  ;;  %v14194_v20 = vmov 0 }
0x178c   : > { %v8809_v31 = vpop.f32.mrb[135].mxu1 }
0x17b5   : > { %v6450_v17 = vpop.permute.xlu1 %6449 }
0x17b6   : > { %vm6519_vm6 = vcmp.gt.f32.partialorder %v12279_v24, %v6450_v17  ;;  %v6440_v47 = vpop.permute.xlu0 %6439  ;;  %vm6551_vm15 = vcmp.eq.f32.partialorder %v12279_v24, %v6450_v17 }
0x17b7   : > { %vm12286_vm13 = vmand %vm6519_vm6, %vm14113_vm1  ;;  %vm6517_vm9 = vcmp.gt.f32.partialorder %v12279_v24, %v6440_v47  ;;  %vm6549_vm6 = vcmp.eq.f32.partialorder %v12279_v24, %v6440_v47 }
0x17b8   : > { %v14115_v19 = vsel %vm12286_vm13, 4294967295, %v14114_v19  ;;  %vm12293_vm11 = vmand %vm6551_vm15, %vm14116_vm7  ;;  %vm14125_vm15 = vcmp.lt.s32.totalorder %v10563_v15, %v10570_v21  ;;  %vm14126_vm7 = vcmp.ne.s32.totalorder %v10563_v15, %v10617_v56 }
0x17b9   : > { %v6445_v57 = vpop.permute.xlu1 %6444  ;;  %v14118_v6 = vsel %vm12293_vm11, 4294967295, %v14117_v6  ;;  %vm12307_vm12 = vmand %vm6517_vm9, %vm14119_vm8  ;;  %vm14127_vm8 = vcmp.lt.s32.totalorder %v10563_v15, %v10617_v56 }
0x17ba   : > { %v6455_v35 = vpop.permute.xlu0 %6454  ;;  %vm6518_vm2 = vcmp.gt.f32.partialorder %v12279_v24, %v6445_v57  ;;  %vm6550_vm5 = vcmp.eq.f32.partialorder %v12279_v24, %v6445_v57  ;;  %v14182_v57 = vmov 0 }
0x17bb   : > { %vm6520_vm3 = vcmp.gt.f32.partialorder %v12279_v24, %v6455_v35  ;;  %vm12315_vm4 = vmand %vm6518_vm2, %vm14122_vm14  ;;  %vm6552_vm0 = vcmp.eq.f32.partialorder %v12279_v24, %v6455_v35  ;;  %vm14128_vm14 = vcmp.lt.s32.totalorder %v10563_v15, %v10551_v48 }
0x17bc   : > { %vm6566_vm1 = vmand %vm6550_vm5, %vm14125_vm15  ;;  %vm14130_vm15 = vnez %v14118_v6 }
0x17bd   : > { %v6470_v44 = vpop.permute.xlu1 %6469  ;;  %vm6536_vm9 = vmand %vm6520_vm3, %vm14126_vm7  ;;  %vm14129_vm3 = vnez %v14115_v19 }
0x17be   : > { %vm6568_vm2 = vmand %vm6552_vm0, %vm14127_vm8 }
0x17bf   : > { %v6475_v10 = vpop.permute.xlu0 %6474  ;;  %vm6565_vm10 = vmand %vm6549_vm6, %vm14128_vm14  ;;  %vm6523_vm6 = vcmp.gt.f32.partialorder %v12279_v24, %v6470_v44  ;;  %vm14138_vm14 = vcmp.ne.s32.totalorder %v10563_v15, %v10710_v14 }
0x17c0   : > { %vm6584_vm11 = vmor %vm6536_vm9, %vm6568_vm2  ;;  %vm6555_vm9 = vcmp.eq.f32.partialorder %v12279_v24, %v6470_v44 }
0x17c1   : > { %v6460_v46 = vpop.permute.xlu1 %6459  ;;  %vm6582_vm13 = vmor %vm12315_vm4, %vm6566_vm1 }
0x17c2   : > { %vm6581_vm5 = vmor %vm12307_vm12, %vm6565_vm10  ;;  %vm6524_vm10 = vcmp.gt.f32.partialorder %v12279_v24, %v6475_v10  ;;  %vm14132_vm12 = vcmp.ne.s32.totalorder %v10563_v15, %v10707_v25  ;;  %vm6521_vm2 = vcmp.gt.f32.partialorder %v12279_v24, %v6460_v46 }
0x17c3   : > { %v6465_v13 = vpop.permute.xlu0 %6464  ;;  %vm14131_vm7 = vmor %vm14129_vm3, %vm14130_vm15  ;;  %vm14141_vm15 = vcmp.lt.s32.totalorder %v10563_v15, %v10710_v14 }
0x17c4   : > { %vm7781_vm0 = vmpackc.low %vm6584_vm11, %vm14131_vm7  ;;  %vm14135_vm11 = vcmp.lt.s32.totalorder %v10563_v15, %v10707_v25  ;;  %vm6522_vm3 = vcmp.gt.f32.partialorder %v12279_v24, %v6465_v13 }
0x17c5   : > { %v6490_v4 = vpop.permute.xlu1 %6489  ;;  %vm7779_vm8 = vmpackc.low %vm6582_vm13, %vm6581_vm5  ;;  %vm6556_vm13 = vcmp.eq.f32.partialorder %v12279_v24, %v6475_v10  ;;  %v12629_v10 = vrot.slane %v12275_v54, %v10730_v61  ;;  %v14207_v54 = vld [vmem:[#allocation36_spill] sm:$0xff] }
0x17c6   : > { %8826 = vmatprep.mubr.msk.bf16.mxu0 %vm7779_vm8, %v13841_v8  ;;  %vm12351_vm4 = vmand %vm6523_vm6, %vm14132_vm12  ;;  %vm14144_vm8 = vcmp.ne.s32.totalorder %v10563_v15, %v10668_v40 }
0x17c7   : > { %v6495_v45 = vpop.permute.xlu0 %6494  ;;  %8827 = vmatmul.mubr.msk.bf16.vlgmr.msra.gmra.mrb[120].mxu0 %vm7781_vm0, %v13841_v8  ;;  %vm12360_vm1 = vmand %vm6555_vm9, %vm14135_vm11  ;;  %vm6554_vm0 = vcmp.eq.f32.partialorder %v12279_v24, %v6465_v13  ;;  %vm6553_vm9 = vcmp.eq.f32.partialorder %v12279_v24, %v6460_v46  ;;  %v14208_v13 = vld [vmem:[#allocation37_spill] sm:$0xff] }
0x17c8   : > { %8843 = vmatpush3.bf16.msra.mxu0 %v13984_v53  ;;  %vm12368_vm5 = vmand %vm6524_vm10, %vm14138_vm14  ;;  %vm14147_vm10 = vcmp.ne.s32.totalorder %v10563_v15, %v10671_v41  ;;  %vm14153_vm14 = vcmp.lt.s32.totalorder %v10563_v15, %v10668_v40 }
0x17c9   : > { %v6480_v26 = vpop.permute.xlu1 %6479  ;;  %8844 = vmatprep.subr.bf16.mxu0 %v13984_v53  ;;  %vm12376_vm7 = vmand %vm6556_vm13, %vm14141_vm15  ;;  %vm14150_vm13 = vcmp.lt.s32.totalorder %v10563_v15, %v10671_v41  ;;  %vm6528_vm15 = vcmp.gt.f32.partialorder %v12279_v24, %v6495_v45 }
0x17ca   : > { %vm12385_vm6 = vmand %vm6521_vm2, %vm14144_vm8 }
0x17cb   : > { %v6485_v34 = vpop.permute.xlu0 %6484  ;;  %vm12396_vm12 = vmand %vm6522_vm3, %vm14147_vm10  ;;  %vm6559_vm10 = vcmp.eq.f32.partialorder %v12279_v24, %v6490_v4 }
0x17cc   : > { %8845 = vmatpush3.bf16.msra.mxu0 %v13984_v53  ;;  %vm12403_vm11 = vmand %vm6554_vm0, %vm14150_vm13  ;;  %vm6527_vm0 = vcmp.gt.f32.partialorder %v12279_v24, %v6490_v4  ;;  %vm14156_vm13 = vcmp.ne.s32.totalorder %v10563_v15, %v10877_v62  ;;  %v14209_v4 = vld [vmem:[#allocation38_spill] sm:$0xff] }
0x17cd   : > { %v6510_v9 = vpop.permute.xlu1 %6509  ;;  %8846 = vmatprep.subr.bf16.mxu0 %v13984_v53  ;;  %vm6587_vm2 = vmor %vm12351_vm4, %vm12360_vm1  ;;  %vm6558_vm4 = vcmp.eq.f32.partialorder %v12279_v24, %v6485_v34  ;;  %vm14172_vm1 = vcmp.lt.s32.totalorder %v10563_v15, %v10781_v43 }
0x17ce   : > { %vm12416_vm3 = vmand %vm6553_vm9, %vm14153_vm14 }
0x17cf   : > { %v12391_v47 = vpop.permute.xlu0 %6514  ;;  %vm6586_vm8 = vmor %vm12396_vm12, %vm12403_vm11  ;;  %vm6560_vm12 = vcmp.eq.f32.partialorder %v12279_v24, %v6495_v45 }
0x17d0   : > { %8847 = vmatpush3.bf16.msra.mxu0 %v13984_v53  ;;  %vm6585_vm9 = vmor %vm12385_vm6, %vm12416_vm3  ;;  %vm14159_vm6 = vcmp.lt.s32.totalorder %v10563_v15, %v10877_v62 }
0x17d1   : > { %v12407_v6 = vpop.permute.xlu1 %6499  ;;  %8848 = vmatprep.subr.bf16.mxu0 %v13984_v53  ;;  %vm12441_vm14 = vmand %vm6527_vm0, %vm14156_vm13  ;;  %vm14162_vm0 = vcmp.ne.s32.totalorder %v10563_v15, %v10845_v42 }
0x17d2   : > { %vm7783_vm11 = vmpackc.low %vm6586_vm8, %vm6585_vm9  ;;  %vm6525_vm8 = vcmp.gt.f32.partialorder %v12279_v24, %v6480_v26  ;;  %vm14165_vm9 = vcmp.lt.s32.totalorder %v10563_v15, %v10845_v42 }
0x17d3   : > { %v12427_v39 = vpop.permute.xlu0 %6504  ;;  %vm12454_vm3 = vmand %vm6559_vm10, %vm14159_vm6  ;;  %8830 = vmatprep.mubr.msk.bf16.mxu0 %vm7783_vm11, %v13841_v8  ;;  %vm6557_vm11 = vcmp.eq.f32.partialorder %v12279_v24, %v6480_v26  ;;  %vm6526_vm6 = vcmp.gt.f32.partialorder %v12279_v24, %v6485_v34  ;;  %v14188_v26 = vmov 0  ;;  %v14210_v34 = vld [vmem:[#allocation39_spill] sm:$0xff] }
0x17d4   : > { %8849 = vmatpush3.bf16.msra.mxu0 %v13984_v53  ;;  %vm12464_vm13 = vmand %vm6528_vm15, %vm14162_vm0  ;;  %vm14169_vm0 = vcmp.ne.s32.totalorder %v10563_v15, %v10781_v43 }
0x17d5   : > { %8850 = vmatprep.subr.bf16.mxu0 %v13984_v53  ;;  %vm12472_vm10 = vmand %vm6560_vm12, %vm14165_vm9 }
0x17d6   : > { %v12447_v7 = vpop.permute.xlu1 %6787  ;;  %vm14168_vm15 = vmor %vm12368_vm5, %vm12376_vm7  ;;  %vm14175_vm7 = vcmp.ne.s32.totalorder %v10563_v15, %v10746_v5 }
0x17d7   : > { %vm7785_vm12 = vmpackc.low %vm14168_vm15, %vm6587_vm2 }
0x17d8   : > { %v12459_v46 = vpop.permute.xlu0 %6791  ;;  %8851 = vmatpush3.bf16.msra.mxu0 %v13984_v53  ;;  %vm12495_vm9 = vmand %vm6525_vm8, %vm14169_vm0  ;;  %vm14178_vm8 = vcmp.lt.s32.totalorder %v10563_v15, %v10746_v5 }
0x17d9   : > { %8852 = vmatprep.subr.bf16.mxu0 %v13984_v53  ;;  %8831 = vmatmul.mubr.msk.bf16.gmra.mrb[124].mxu0 %vm7785_vm12, %v13841_v8  ;;  %vm12506_vm5 = vmand %vm6557_vm11, %vm14172_vm1  ;;  %vm14187_vm12 = vcmp.ne.s32.totalorder %v10563_v15, %v10995_v63 }
0x17da   : > { %v12478_v45 = vpop.permute.xlu1 %6795  ;;  %vm12513_vm2 = vmand %vm6526_vm6, %vm14175_vm7  ;;  %vm6531_vm6 = vcmp.gt.f32.partialorder %v12279_v24, %v6510_v9  ;;  %vm14181_vm7 = vcmp.ne.s32.totalorder %v10563_v15, %v11016_v58 }
0x17db   : > { %vm12523_vm15 = vmand %vm6558_vm4, %vm14178_vm8  ;;  %vm6563_vm4 = vcmp.eq.f32.partialorder %v12279_v24, %v6510_v9  ;;  %v14185_v9 = vmov 0 }
0x17dc   : > { %v12501_v27 = vpop.permute.xlu0 %6803  ;;  %8853 = vmatpush3.bf16.msra.mxu0 %v13984_v53  ;;  %vm6589_vm0 = vmor %vm12495_vm9, %vm12506_vm5  ;;  %vm6532_vm9 = vcmp.gt.f32.partialorder %v12279_v24, %v12391_v47  ;;  %vm14184_vm5 = vcmp.lt.s32.totalorder %v10563_v15, %v11016_v58 }
0x17dd   : > { %8854 = vmatprep.subr.bf16.mxu0 %v13984_v53  ;;  %vm6590_vm1 = vmor %vm12513_vm2, %vm12523_vm15  ;;  %vm6564_vm15 = vcmp.eq.f32.partialorder %v12279_v24, %v12391_v47  ;;  %v14191_v47 = vmov 0 }
0x17de   : > { %v12518_v31 = vpop.permute.xlu1 %6799  ;;  %vm12554_vm8 = vmand %vm6531_vm6, %vm14181_vm7  ;;  %vm6529_vm7 = vcmp.gt.f32.partialorder %v12279_v24, %v12407_v6 }
0x17df   : > { %v14183_v57 = vsel %vm12554_vm8, 4294967295, %v14182_v57  ;;  %vm12564_vm2 = vmand %vm6563_vm4, %vm14184_vm5  ;;  %vm14190_vm4 = vcmp.lt.s32.totalorder %v10563_v15, %v10995_v63  ;;  %vm6530_vm5 = vcmp.gt.f32.partialorder %v12279_v24, %v12427_v39  ;;  %vm6851_vm8 = vcmp.gt.f32.partialorder %v12629_v10, %v12459_v46 }
0x17e0   : > { %v12537_v17 = vpop.permute.xlu0 %6811  ;;  %8855 = vmatpush3.bf16.msra.mxu0 %v13984_v53  ;;  %v14186_v9 = vsel %vm12564_vm2, 4294967295, %v14185_v9  ;;  %vm7787_vm6 = vmpackc.low %vm6590_vm1, %vm6589_vm0  ;;  %vm6561_vm1 = vcmp.eq.f32.partialorder %v12279_v24, %v12407_v6  ;;  %v14199_v6 = vmov 0  ;;  %vm5069_vm2 = vcmp.lt.f32.partialorder %v14219_v59, 100.0  ;;  %v14226_v59 = vld [vmem:[#allocation44_spill] sm:$0xff] }
0x17e1   : > { %8856 = vmatprep.subr.bf16.mxu0 %v13984_v53  ;;  %vm12577_vm11 = vmand %vm6532_vm9, %vm14187_vm12  ;;  %8834 = vmatprep.mubr.msk.bf16.mxu0 %vm7787_vm6, %v13841_v8  ;;  %vm14193_vm12 = vcmp.ne.s32.totalorder %v10563_v15, %v10927_v51 }
0x17e2   : > { %v12549_v19 = vpop.permute.xlu1 %6807  ;;  %v14189_v26 = vsel %vm12577_vm11, 4294967295, %v14188_v26  ;;  %vm12588_vm0 = vmand %vm6564_vm15, %vm14190_vm4  ;;  %vm5068_vm11 = vcmp.lt.f32.partialorder %v14214_v11, 100.0 }
0x17e3   : > { %v14192_v47 = vsel %vm12588_vm0, 4294967295, %v14191_v47  ;;  %vm12597_vm9 = vmand %vm6529_vm7, %vm14193_vm12  ;;  %vm6562_vm7 = vcmp.eq.f32.partialorder %v12279_v24, %v12427_v39  ;;  %vm14198_vm12 = vcmp.lt.s32.totalorder %v10563_v15, %v10927_v51  ;;  %v14205_v39 = vmov 0  ;;  %v14241_v24 = vld [vmem:[#allocation49_spill] sm:$0xff] }
0x17e4   : > { %v12570_v35 = vpop.permute.xlu0 %6819  ;;  %8857 = vmatpush3.bf16.msra.mxu0 %v13984_v53  ;;  %v14195_v20 = vsel %vm12597_vm9, 4294967295, %v14194_v20  ;;  %vm14196_vm15 = vmor %vm12441_vm14, %vm12454_vm3  ;;  %vm14201_vm3 = vcmp.ne.s32.totalorder %v10563_v15, %v10912_v18  ;;  %vm6882_vm14 = vcmp.eq.f32.partialorder %v12629_v10, %v12447_v7  ;;  %vm5067_vm0 = vcmp.lt.f32.partialorder %v14213_v32, 100.0 }
0x17e5   : > { %vm14197_vm6 = vmor %vm12464_vm13, %vm12472_vm10  ;;  %vm14204_vm10 = vcmp.lt.s32.totalorder %v10563_v15, %v10912_v18 }
0x17e6   : > { %v12583_v2 = vpop.permute.xlu1 %6815  ;;  %vm7789_vm4 = vmpackc.low %vm14197_vm6, %vm14196_vm15  ;;  %vm5062_vm15 = vcmp.lt.f32.partialorder %v14207_v54, 100.0  ;;  %vm5066_vm6 = vcmp.lt.f32.partialorder %v14212_v23, 100.0 }
0x17e7   : > { %vm12620_vm9 = vmand %vm6561_vm1, %vm14198_vm12  ;;  %8835 = vmatmul.mubr.msk.bf16.gmra.mrb[128].mxu0 %vm7789_vm4, %v13841_v8  ;;  %vm5063_vm4 = vcmp.lt.f32.partialorder %v14208_v13, 100.0  ;;  %vm5064_vm12 = vcmp.lt.f32.partialorder %v14209_v4, 100.0  ;;  %v14215_v13 = vmov 0.0  }
0x17e8   : > { %v12603_v53 = vpop.permute.xlu0 %6827  ;;  %v14200_v6 = vsel %vm12620_vm9, 4294967295, %v14199_v6  ;;  %vm12638_vm13 = vmand %vm6530_vm5, %vm14201_vm3  ;;  %vm6850_vm5 = vcmp.gt.f32.partialorder %v12629_v10, %v12447_v7  ;;  %vm14211_vm3 = vnez %v14195_v20  ;;  %v7571_v4 = vsel %vm5062_vm15, 1.0, %v14215_v13  ;;  %v14262_v7 = vld [vmem:[#allocation53_spill] sm:$0xff] }
0x17e9   : > { %vm12645_vm1 = vmand %vm6562_vm7, %vm14204_vm10  ;;  %vm5065_vm7 = vcmp.lt.f32.partialorder %v14210_v34, 100.0  ;;  %vm14216_vm10 = vcmp.ne.s32.totalorder %v10563_v15, %v10551_v48  ;;  %v7572_v11 = vsel %vm5063_vm4, 1.0, %v14215_v13  ;;  %v12690_v23 = vsel %vm5064_vm12, 1.0, %v14215_v13 }
0x17ea   : > { %v12625_v44 = vpop.permute.xlu1 %6823  ;;  %v14206_v39 = vsel %vm12645_vm1, 4294967295, %v14205_v39  ;;  %vm12682_vm9 = vmand %vm6850_vm5, %vm14216_vm10  ;;  %v12693_v34 = vsel %vm5065_vm7, 1.0, %v14215_v13  ;;  %vm14220_vm15 = vcmp.lt.s32.totalorder %v10563_v15, %v10551_v48  ;;  %v7575_v60 = vsel %vm5066_vm6, 1.0, %v14215_v13 }
0x17eb   : > { %vm12699_vm1 = vmand %vm6882_vm14, %vm14220_vm15  ;;  %v7576_v30 = vsel %vm5067_vm0, 1.0, %v14215_v13  ;;  %v12706_v22 = vsel %vm5068_vm11, 1.0, %v14215_v13  ;;  %vm14223_vm5 = vcmp.ne.s32.totalorder %v10563_v15, %v10570_v21  ;;  %vm6883_vm14 = vcmp.eq.f32.partialorder %v12629_v10, %v12459_v46  ;;  %v14248_v46 = vld [vmem:[#allocation50_spill] sm:$0xff] }
0x17ec   : > { %v12649_v61 = vpop.permute.xlu0 %6835  ;;  %vm12711_vm4 = vmand %vm6851_vm8, %vm14223_vm5  ;;  %vm14229_vm11 = vnez %v14200_v6  ;;  %vm14231_vm8 = vnez %v14206_v39  ;;  %v12735_v52 = vsel %vm5069_vm2, 1.0, %v14215_v13  ;;  %vm14234_vm0 = vnez %v14183_v57  ;;  %v14240_v6 = vld [vmem:[#allocation48_spill] sm:$0xff]  ;;  %v14266_v57 = vld [vmem:[#allocation11_spill] sm:$0xff] }
0x17ed   : > { %vm14230_vm7 = vmor %vm14211_vm3, %vm14229_vm11  ;;  %vm14235_vm3 = vnez %v14186_v9  ;;  %vm14237_vm12 = vnez %v14189_v26  ;;  %vm13734_vm2 = vcmask 7168   ;;  %vm5074_vm6 = vcmp.lt.f32.partialorder %v14240_v6, 100.0 }
0x17ee   : > { %v12667_v54 = vpop.permute.xlu1 %6831  ;;  %vm14232_vm10 = vmor %vm12638_vm13, %vm14231_vm8  ;;  %vm14238_vm13 = vnez %v14192_v47  ;;  %vm14242_vm5 = vcmp.lt.s32.totalorder %v10563_v15, %v10570_v21 }
0x17ef   : > { %vm7791_vm15 = vmpackc.low %vm14232_vm10, %vm14230_vm7  ;;  %vm6884_vm10 = vcmp.eq.f32.partialorder %v12629_v10, %v12478_v45 }
0x17f0   : > { %v12686_v32 = vpop.permute.xlu0 %6843  ;;  %8838 = vmatprep.mubr.msk.bf16.mxu0 %vm7791_vm15, %v13841_v8  ;;  %vm14236_vm11 = vmor %vm14234_vm0, %vm14235_vm3  ;;  %vm5075_vm15 = vcmp.lt.f32.partialorder %v14241_v24, 100.0  ;;  %vm14246_vm3 = vcmp.lt.f32.partialorder %v14227_v37, 100.0  ;;  %v14254_v37 = vld [vmem:[#allocation52_spill] sm:$0xff] }
0x17f1   : > { %vm14239_vm7 = vmor %vm14237_vm12, %vm14238_vm13  ;;  %vm14245_vm12 = vcmp.lt.f32.partialorder %v14226_v59, 100.0  ;;  %v7580_v39 = vsel %vm14246_vm3, 1.0, %v14215_v13  ;;  %vm14250_vm13 = vcmp.gt.f32.partialorder %v12629_v10, %v12478_v45  ;;  %vm14255_vm3 = vcmp.lt.s32.totalorder %v10563_v15, %v10614_v16  ;;  %v14258_v45 = vld [vmem:[#allocation7_spill] sm:$0xff]  ;;  %v14273_v59 = vld [vmem:[#allocation13_spill] sm:$0xff] }
0x17f2   : > { %v12717_v48 = vpop.permute.xlu1 %6839  ;;  %vm7793_vm8 = vmpackc.low %vm14239_vm7, %vm14236_vm11  ;;  %v7579_v47 = vsel %vm14245_vm12, 1.0, %v14215_v13  ;;  %vm14247_vm11 = vcmp.lt.f32.partialorder %v14228_v28, 100.0  ;;  %vm5078_vm12 = vcmp.lt.f32.partialorder %v14254_v37, 100.0 }
0x17f3   : > { %vm12759_vm0 = vmand %vm6883_vm14, %vm14242_vm5  ;;  %8839 = vmatmul.mubr.msk.bf16.gmra.mrb[132].mxu0 %vm7793_vm8, %v13841_v8  ;;  %v12773_v21 = vsel %vm14247_vm11, 1.0, %v14215_v13  ;;  %vm5076_vm14 = vcmp.lt.f32.partialorder %v14248_v46, 100.0  ;;  %vm14249_vm5 = vcmp.ne.s32.totalorder %v10563_v15, %v10614_v16  ;;  %vm14253_vm8 = vcmp.lt.f32.partialorder %v14233_v29, 100.0 }
0x17f4   : > { %v9033_v20 = vpop.permute.xlu0 %9032  ;;  %vm12782_vm7 = vmand %vm14250_vm13, %vm14249_vm5  ;;  %v12791_v28 = vsel %vm14253_vm8, 1.0, %v14215_v13  ;;  %v12809_v29 = vsel %vm5074_vm6, 1.0, %v14215_v13  ;;  %v12814_v16 = vsel %vm5075_vm15, 1.0, %v14215_v13  ;;  %vm6853_vm15 = vcmp.gt.f32.partialorder %v12629_v10, %v12518_v31 }
0x17f5   : > { %v9035_v9 = vunpack.i.h.bf16 %v9033_v20  ;;  %v9034_v26 = vunpack.i.l.bf16 %v9033_v20  ;;  %vm12800_vm11 = vmand %vm6884_vm10, %vm14255_vm3  ;;  %v12832_v12 = vsel %vm5078_vm12, 1.0, %v14215_v13  ;;  %vm14260_vm13 = vcmask 15360  }
0x17f6   : > { %v12786_v20 = vpop.permute.xlu1 %6847  ;;  %vm6915_vm10 = vmor %vm12711_vm4, %vm12759_vm0  ;;  %vm6854_vm12 = vcmp.gt.f32.partialorder %v12629_v10, %v12501_v27  ;;  %vm14263_vm3 = vcmp.ne.s32.totalorder %v10563_v15, %v10617_v56  ;;  %vm6886_vm4 = vcmp.eq.f32.partialorder %v12629_v10, %v12501_v27  ;;  %vm14268_vm0 = vcmp.lt.s32.totalorder %v10563_v15, %v10617_v56 }
0x17f7   : > { %v6161_v0 = vsel %vm13734_vm2, %v7572_v11, %v9035_v9  ;;  %v6160_v1 = vsel %vm13734_vm2, %v7571_v4, %v9034_v26  ;;  %v14259_v11 = vld [vmem:[#allocation5_spill] sm:$0xff]  ;;  %v12823_v26 = vsel %vm5076_vm14, 1.0, %v14215_v13  ;;  %vm6914_vm6 = vmor %vm12682_vm9, %vm12699_vm1  ;;  %vm6885_vm14 = vcmp.eq.f32.partialorder %v12629_v10, %v12518_v31 }
0x17f8   : > { %v6193_v37 = vmul.f32 %v6161_v0, %v14258_v45  ;;  %v6192_v9 = vmul.f32 %v6160_v1, %v14259_v11  ;;  %v9043_v4 = vpop.permute.xlu0 %9042  ;;  %vm6916_vm5 = vmor %vm12782_vm7, %vm12800_vm11  ;;  %vm5079_vm9 = vcmp.lt.f32.partialorder %v14262_v7, 100.0  ;;  %vm14274_vm7 = vcmask 15360  }
0x17f9   : > { %v9045_v6 = vunpack.i.h.bf16 %v9043_v4  ;;  %v9044_v24 = vunpack.i.l.bf16 %v9043_v4  ;;  %vm14261_vm8 = vmmov %vm14260_vm13  ;;  %vm14275_vm11 = vcmp.ne.s32.totalorder %v10563_v15, %v10668_v40 }
0x17fa   : > { %v6225_v49 = vsel %vm14260_vm13, %v6193_v37, 0.0  ;;  %v6224_v1 = vsel %vm14261_vm8, %v6192_v9, 0.0  ;;  %v9038_v0 = vpop.permute.xlu1 %9037  ;;  %vm7827_vm1 = vmpackc.low %vm6915_vm10, %vm6914_vm6  ;;  %v14267_v37 = vld [vmem:[#allocation9_spill] sm:$0xff]  ;;  %vm6888_vm8 = vcmp.eq.f32.partialorder %v12629_v10, %v12537_v17 }
0x17fb   : > { %v6226_v45 = vadd.f32 %v6225_v49, %v6224_v1  ;;  %v6165_v11 = vsel %vm13734_vm2, %v7576_v30, %v9045_v6  ;;  %v6164_v4 = vsel %vm13734_vm2, %v7575_v60, %v9044_v24  ;;  %v9040_v3 = vunpack.i.h.bf16 %v9038_v0  ;;  %8858 = vmatprep.mubr.msk.bf16.mxu0 %vm7827_vm1, %v13841_v8  ;;  %vm12859_vm13 = vmand %vm6853_vm15, %vm14263_vm3 }
0x17fc   : > { %v6197_v30 = vmul.f32 %v6165_v11, %v14266_v57  ;;  %v6196_v60 = vmul.f32 %v6164_v4, %v14267_v37  ;;  %v9039_v9 = vunpack.i.l.bf16 %v9038_v0  ;;  %v9053_v6 = vpop.permute.xlu0 %9052  ;;  %vm6901_vm10 = vmand %vm6885_vm14, %vm14268_vm0  ;;  %vm6856_vm15 = vcmp.gt.f32.partialorder %v12629_v10, %v12537_v17  ;;  %v14269_v0 = vld [vmem:[#allocation6_spill] sm:$0xff]  ;;  %v14270_v4 = vld [vmem:[#allocation51_spill] sm:$0xff] }
0x17fd   : > { %v6163_v24 = vsel %vm13734_vm2, %v12693_v34, %v9040_v3  ;;  %v9055_v49 = vunpack.i.h.bf16 %v9053_v6  ;;  %v9054_v1 = vunpack.i.l.bf16 %v9053_v6  ;;  %vm6917_vm6 = vmor %vm12859_vm13, %vm6901_vm10  ;;  %vm5077_vm14 = vcmp.lt.f32.partialorder %v14270_v4, 100.0  ;;  %v14271_v3 = vld [vmem:[#allocation4_spill] sm:$0xff] }
0x17fe   : > { %v6195_v56 = vmul.f32 %v14269_v0, %v6163_v24  ;;  %v6162_v31 = vsel %vm13734_vm2, %v12690_v23, %v9039_v9  ;;  %v9048_v11 = vpop.permute.xlu1 %9047  ;;  %vm7829_vm1 = vmpackc.low %vm6917_vm6, %vm6916_vm5  ;;  %vm6855_vm3 = vcmp.gt.f32.partialorder %v12629_v10, %v12549_v19  ;;  %v14272_v23 = vld [vmem:[#allocation15_spill] sm:$0xff]  ;;  %vm6887_vm13 = vcmp.eq.f32.partialorder %v12629_v10, %v12549_v19  ;;  %v14301_v17 = vld [vmem:[#allocation12_spill] sm:$0xff] }
0x17ff   : > { %v6194_v34 = vmul.f32 %v14271_v3, %v6162_v31  ;;  %v6169_v50 = vsel %vm13734_vm2, %v7580_v39, %v9055_v49  ;;  %v6168_v57 = vsel %vm13734_vm2, %v7579_v47, %v9054_v1  ;;  %v9050_v37 = vunpack.i.h.bf16 %v9048_v11  ;;  %8859 = vmatmul.mubr.msk.bf16.vlgmr.msra.gmra.mrb[136].mxu0 %vm7829_vm1, %v13841_v8  ;;  %vm12911_vm5 = vmand %vm6854_vm12, %vm14275_vm11  ;;  %v14279_v3 = vld [vmem:[#allocation10_spill] sm:$0xff] }
0x1800   : > { %v12897_v9 = vmul.f32 %v6169_v50, %v14272_v23  ;;  %v12900_v6 = vmul.f32 %v6168_v57, %v14273_v59  ;;  %v9049_v46 = vunpack.i.l.bf16 %v9048_v11  ;;  %v9063_v24 = vpop.permute.xlu0 %9062  ;;  %vm14278_vm0 = vmmov %vm14274_vm7  ;;  %vm14280_vm10 = vcmp.lt.s32.totalorder %v10563_v15, %v10668_v40  ;;  %v14287_v23 = vld [vmem:[#allocation8_spill] sm:$0xff] }
0x1801   : > { %v6227_v0 = vsel %vm14274_vm7, %v6194_v34, 0.0  ;;  %v6167_v39 = vsel %vm13734_vm2, %v12735_v52, %v9050_v37  ;;  %v9065_v47 = vunpack.i.h.bf16 %v9063_v24  ;;  %v9064_v49 = vunpack.i.l.bf16 %v9063_v24  ;;  %vm12925_vm6 = vmand %vm6886_vm4, %vm14280_vm10 }
0x1802   : > { %v6229_v31 = vsel %vm14278_vm0, %v6195_v56, 0.0  ;;  %v6228_v11 = vadd.f32 %v6227_v0, %v6226_v45  ;;  %v6199_v52 = vmul.f32 %v14279_v3, %v6167_v39  ;;  %v9058_v34 = vpop.permute.xlu1 %9057  ;;  %v6166_v57 = vsel %vm13734_vm2, %v12706_v22, %v9049_v46  ;;  %vm14286_vm1 = vmmov %vm14278_vm0  ;;  %v14292_v0 = vld [vmem:[#allocation17_spill] sm:$0xff]  ;;  %v14296_v3 = vld [vmem:[#allocation14_spill] sm:$0xff] }
0x1803   : > { %v6173_v56 = vsel %vm13734_vm2, %v12814_v16, %v9065_v47  ;;  %v6172_v45 = vsel %vm13734_vm2, %v12809_v29, %v9064_v49  ;;  %v9060_v37 = vunpack.i.h.bf16 %v9058_v34  ;;  %vm14283_vm12 = vcmp.ne.s32.totalorder %v10563_v15, %v10707_v25  ;;  %v14288_v16 = vld [vmem:[#allocation19_spill] sm:$0xff] }
0x1804   : > { %vm12941_vm4 = vmand %vm6856_vm15, %vm14283_vm12  ;;  %v6231_v27 = vsel %vm14286_vm1, %v6196_v60, 0.0  ;;  %v6230_v22 = vadd.f32 %v6229_v31, %v6228_v11  ;;  %v6198_v59 = vmul.f32 %v14287_v23, %v6166_v57  ;;  %v12948_v46 = vmul.f32 %v6173_v56, %v14288_v16  ;;  %v9073_v29 = vpop.permute.xlu0 %9072 }
0x1805   : > { %vm14289_vm7 = vcmp.ne.s32.totalorder %v10563_v15, %v10671_v41  ;;  %v12961_v39 = vmul.f32 %v6172_v45, %v14292_v0  ;;  %v6171_v60 = vsel %vm13734_vm2, %v12791_v28, %v9060_v37  ;;  %v9059_v47 = vunpack.i.l.bf16 %v9058_v34  ;;  %vm6918_vm12 = vmor %vm12911_vm5, %vm12925_vm6 }
0x1806   : > { %vm12956_vm11 = vmand %vm6855_vm3, %vm14289_vm7  ;;  %v9075_v49 = vunpack.i.h.bf16 %v9073_v29  ;;  %v7588_v31 = vsel %vm5079_vm9, 1.0, %v14215_v13  ;;  %vm14293_vm15 = vcmp.lt.s32.totalorder %v10563_v15, %v10671_v41  ;;  %vm6857_vm0 = vcmp.gt.f32.partialorder %v12629_v10, %v12583_v2  ;;  %v9068_v57 = vpop.permute.xlu1 %9067 }
0x1807   : > { %vm12974_vm3 = vmand %vm6887_vm13, %vm14293_vm15  ;;  %v6232_v28 = vadd.f32 %v6231_v27, %v6230_v22  ;;  %v6203_v34 = vmul.f32 %v14296_v3, %v6171_v60  ;;  %vm14297_vm9 = vcmp.lt.s32.totalorder %v10563_v15, %v10707_v25  ;;  %v6170_v7 = vsel %vm13734_vm2, %v12773_v21, %v9059_v47  ;;  %v14302_v27 = vld [vmem:[#allocation23_spill] sm:$0xff]  ;;  %v14375_v60 = vld [vmem:[#allocation81_spill] sm:$0xff] }
0x1808   : > { %vm12987_vm10 = vmand %vm6888_vm8, %vm14297_vm9  ;;  %v6177_v56 = vsel %vm13734_vm2, %v7588_v31, %v9075_v49  ;;  %v9074_v45 = vunpack.i.l.bf16 %v9073_v29  ;;  %v6202_v37 = vmul.f32 %v14301_v17, %v6170_v7  ;;  %v9070_v23 = vunpack.i.h.bf16 %v9068_v57 }
0x1809   : > { %vm14300_vm13 = vmmov %vm14286_vm1  ;;  %vm6889_vm1 = vcmp.eq.f32.partialorder %v12629_v10, %v12583_v2  ;;  %v13003_v22 = vmul.f32 %v6177_v56, %v14302_v27  ;;  %v9069_v16 = vunpack.i.l.bf16 %v9068_v57  ;;  %v7586_v29 = vsel %vm5077_vm14, 1.0, %v14215_v13 }
0x180a   : > { %v6233_v19 = vsel %vm14300_vm13, %v6197_v30, 0.0  ;;  %vm14303_vm7 = vmmov %vm14300_vm13  ;;  %v6176_v30 = vsel %vm13734_vm2, %v12832_v12, %v9074_v45  ;;  %vm6858_vm9 = vcmp.gt.f32.partialorder %v12629_v10, %v12570_v35  ;;  %vm14304_vm13 = vcmp.ne.s32.totalorder %v10563_v15, %v10710_v14 }
0x180b   : > { %v6234_v25 = vadd.f32 %v6233_v19, %v6232_v28  ;;  %v6235_v21 = vsel %vm14303_vm7, %v6198_v59, 0.0  ;;  %vm13027_vm7 = vmand %vm6857_vm0, %vm14304_vm13  ;;  %v14307_v59 = vld [vmem:[#allocation21_spill] sm:$0xff]  ;;  %vm6890_vm14 = vcmp.eq.f32.partialorder %v12629_v10, %v12570_v35  ;;  %vm14308_vm15 = vcmp.lt.s32.totalorder %v10563_v15, %v10710_v14  ;;  %v14313_v35 = vld [vmem:[#allocation18_spill] sm:$0xff] }
0x180c   : > { %v6208_v0 = vmul.f32 %v6176_v30, %v14307_v59  ;;  %vm13040_vm8 = vmand %vm6889_vm1, %vm14308_vm15  ;;  %vm14311_vm0 = vcmask 15360   ;;  %v6175_v49 = vsel %vm13734_vm2, %v7586_v29, %v9070_v23  ;;  %v6174_v31 = vsel %vm13734_vm2, %v12823_v26, %v9069_v16  ;;  %v14374_v59 = vld [vmem:[#allocation78_spill] sm:$0xff] }
0x180d   : > { %v6236_v4 = vadd.f32 %v6235_v21, %v6234_v25  ;;  %v6237_v47 = vsel %vm14311_vm0, %v6199_v52, 0.0  ;;  %vm14312_vm1 = vmor %vm12956_vm11, %vm12974_vm3  ;;  %v6207_v2 = vmul.f32 %v14313_v35, %v6175_v49  ;;  %v14314_v52 = vld [vmem:[#allocation16_spill] sm:$0xff]  ;;  %vm14315_vm13 = vcmp.ne.s32.totalorder %v10563_v15, %v10781_v43 }
0x180e   : > { %vm7831_vm15 = vmpackc.low %vm14312_vm1, %vm6918_vm12  ;;  %v6206_v28 = vmul.f32 %v14314_v52, %v6174_v31  ;;  %vm6860_vm5 = vcmp.gt.f32.partialorder %v12629_v10, %v12603_v53  ;;  %vm14318_vm6 = vcmask 15360   ;;  %vm14319_vm11 = vcmp.lt.s32.totalorder %v10563_v15, %v10781_v43 }
0x180f   : > { %v6238_v14 = vadd.f32 %v6237_v47, %v6236_v4  ;;  %vm13063_vm0 = vmand %vm6858_vm9, %vm14315_vm13  ;;  %8862 = vmatprep.mubr.msk.bf16.mxu0 %vm7831_vm15, %v13841_v8  ;;  %v6239_v1 = vsel %vm14318_vm6, %v12900_v6, 0.0  ;;  %v14320_v50 = vmov 0  ;;  %vm6859_vm12 = vcmp.gt.f32.partialorder %v12629_v10, %v12625_v44 }
0x1810   : > { %vm13075_vm3 = vmand %vm6890_vm14, %vm14319_vm11  ;;  %vm6891_vm1 = vcmp.eq.f32.partialorder %v12629_v10, %v12625_v44  ;;  %vm14323_vm14 = vcmp.ne.s32.totalorder %v10563_v15, %v10877_v62  ;;  %v14350_v7 = vmov 0  ;;  %v14359_v45 = vmov 0 }
0x1811   : > { %v14321_v50 = vsel %vm13075_vm3, 4294967295, %v14320_v50  ;;  %v6240_v24 = vadd.f32 %v6239_v1, %v6238_v14  ;;  %vm6921_vm9 = vmor %vm13027_vm7, %vm13040_vm8  ;;  %vm6892_vm8 = vcmp.eq.f32.partialorder %v12629_v10, %v12603_v53  ;;  %vm14326_vm7 = vcmp.ne.s32.totalorder %v10563_v15, %v10746_v5 }
0x1812   : > { %vm14322_vm15 = vmmov %vm14318_vm6 }
0x1813   : > { %v6241_v6 = vsel %vm14322_vm15, %v12897_v9, 0.0  ;;  %vm13092_vm13 = vmand %vm6860_vm5, %vm14323_vm14  ;;  %vm14330_vm15 = vcmp.lt.s32.totalorder %v10563_v15, %v10746_v5 }
0x1814   : > { %v6242_v11 = vadd.f32 %v6241_v6, %v6240_v24  ;;  %vm13105_vm11 = vmand %vm6859_vm12, %vm14326_vm7  ;;  %vm6862_vm12 = vcmp.gt.f32.partialorder %v12629_v10, %v12649_v61  ;;  %v14376_v6 = vld [vmem:[#allocation86_spill] sm:$0xff] }
0x1815   : > { %vm14329_vm5 = vmmov %vm14318_vm6 }
0x1816   : > { %v6243_v9 = vsel %vm14329_vm5, %v6202_v37, 0.0  ;;  %vm13113_vm14 = vmand %vm6891_vm1, %vm14330_vm15  ;;  %vm6861_vm1 = vcmp.gt.f32.partialorder %v12629_v10, %v12667_v54 }
0x1817   : > { %v6244_v57 = vadd.f32 %v6243_v9, %v6242_v11  ;;  %vm14333_vm2 = vmor %vm12941_vm4, %vm12987_vm10  ;;  %vm6893_vm4 = vcmp.eq.f32.partialorder %v12629_v10, %v12667_v54 }
0x1818   : > { %vm7833_vm6 = vmpackc.low %vm6921_vm9, %vm14333_vm2  ;;  %vm14339_vm9 = vcmp.ne.s32.totalorder %v10563_v15, %v10927_v51 }
0x1819   : > { %vm14334_vm7 = vmmov %vm14329_vm5  ;;  %vm14335_vm5 = vcmp.lt.s32.totalorder %v10563_v15, %v10877_v62  ;;  %8863 = vmatmul.mubr.msk.bf16.gmra.mrb[140].mxu0 %vm7833_vm6, %v13841_v8  ;;  %vm6894_vm6 = vcmp.eq.f32.partialorder %v12629_v10, %v12649_v61 }
0x181a   : > { %v6245_v53 = vsel %vm14334_vm7, %v6203_v34, 0.0  ;;  %vm13128_vm3 = vmand %vm6892_vm8, %vm14335_vm5  ;;  %v14340_v34 = vmov 0 }
0x181b   : > { %v6246_v40 = vadd.f32 %v6245_v53, %v6244_v57  ;;  %vm6923_vm2 = vmor %vm13105_vm11, %vm13113_vm14  ;;  %vm14342_vm11 = vcmp.ne.s32.totalorder %v10563_v15, %v10845_v42 }
0x181c   : > { %vm14338_vm10 = vmmov %vm14334_vm7 }
0x181d   : > { %v6247_v62 = vsel %vm14338_vm10, %v12961_v39, 0.0  ;;  %vm13146_vm8 = vmand %vm6862_vm12, %vm14339_vm9  ;;  %vm6864_vm9 = vcmp.gt.f32.partialorder %v12629_v10, %v12686_v32  ;;  %vm6896_vm12 = vcmp.eq.f32.partialorder %v12629_v10, %v12686_v32  ;;  %v14356_v32 = vmov 0 }
0x181e   : > { %v14341_v34 = vsel %vm13146_vm8, 4294967295, %v14340_v34  ;;  %v6248_v41 = vadd.f32 %v6247_v62, %v6246_v40  ;;  %vm13155_vm15 = vmand %vm6861_vm1, %vm14342_vm11  ;;  %vm14349_vm1 = vcmp.lt.s32.totalorder %v10563_v15, %v10927_v51 }
0x181f   : > { %vm14345_vm14 = vmmov %vm14334_vm7  ;;  %vm14346_vm7 = vcmp.lt.s32.totalorder %v10563_v15, %v10845_v42 }
0x1820   : > { %v6249_v54 = vsel %vm14345_vm14, %v12948_v46, 0.0  ;;  %vm13168_vm5 = vmand %vm6893_vm4, %vm14346_vm7  ;;  %vm14353_vm4 = vnez %v14321_v50 }
0x1821   : > { %v6250_v39 = vadd.f32 %v6249_v54, %v6248_v41  ;;  %vm13175_vm10 = vmand %vm6894_vm6, %vm14349_vm1  ;;  %vm6863_vm1 = vcmp.gt.f32.partialorder %v12629_v10, %v12717_v48  ;;  %vm14361_vm6 = vcmask 15360   ;;  %v14377_v54 = vld [vmem:[#allocation87_spill] sm:$0xff] }
0x1822   : > { %v14351_v7 = vsel %vm13175_vm10, 4294967295, %v14350_v7  ;;  %vm14352_vm11 = vmmov %vm14345_vm14  ;;  %v6255_v25 = vsel %vm14361_vm6, %v6208_v0, 0.0  ;;  %vm6865_vm10 = vcmp.gt.f32.partialorder %v12629_v10, %v12786_v20 }
0x1823   : > { %v6251_v46 = vsel %vm14352_vm11, %v6206_v28, 0.0  ;;  %vm14354_vm14 = vmor %vm13063_vm0, %vm14353_vm4  ;;  %v6253_v51 = vsel %vm14352_vm11, %v6207_v2, 0.0  ;;  %vm14362_vm0 = vcmp.ne.s32.totalorder %v10563_v15, %v10912_v18 }
0x1824   : > { %vm7835_vm7 = vmpackc.low %vm6923_vm2, %vm14354_vm14  ;;  %v6252_v42 = vadd.f32 %v6251_v46, %v6250_v39  ;;  %vm14355_vm2 = vcmp.ne.s32.totalorder %v10563_v15, %v11016_v58  ;;  %vm6895_vm14 = vcmp.eq.f32.partialorder %v12629_v10, %v12717_v48  ;;  %v14378_v39 = vld [vmem:[#allocation89_spill] sm:$0xff]  ;;  %v14379_v46 = vld [vmem:[#allocation88_spill] sm:$0xff] }
0x1825   : > { %8866 = vmatprep.mubr.msk.bf16.mxu0 %vm7835_vm7, %v13841_v8  ;;  %vm13204_vm4 = vmand %vm6864_vm9, %vm14355_vm2  ;;  %vm14358_vm7 = vcmp.lt.s32.totalorder %v10563_v15, %v11016_v58  ;;  %vm14363_vm2 = vcmp.lt.s32.totalorder %v10563_v15, %v10912_v18 }
0x1826   : > { %v14357_v32 = vsel %vm13204_vm4, 4294967295, %v14356_v32  ;;  %v6254_v56 = vadd.f32 %v6253_v51, %v6252_v42  ;;  %vm13213_vm11 = vmand %vm6896_vm12, %vm14358_vm7  ;;  %vm6897_vm7 = vcmp.eq.f32.partialorder %v12629_v10, %v12786_v20 }
0x1827   : > { %v14360_v45 = vsel %vm13213_vm11, 4294967295, %v14359_v45  ;;  %vm6879_vm9 = vmand %vm6863_vm1, %vm14362_vm0  ;;  %vm14369_vm11 = vnez %v14341_v34 }
0x1828   : > { %v6256_v17 = vadd.f32 %v6255_v25, %v6254_v56  ;;  %vm6911_vm4 = vmand %vm6895_vm14, %vm14363_vm2  ;;  %vm14368_vm14 = vcmp.lt.s32.totalorder %v10563_v15, %v10995_v63 }
0x1829   : > { %vm14364_vm8 = vmmov %vm14361_vm6 }
0x182a   : > { %v6257_v58 = vsel %vm14364_vm8, %v13003_v22, 0.0  ;;  %vm6927_vm12 = vmor %vm6879_vm9, %vm6911_vm4  ;;  %vm14367_vm8 = vcmp.ne.s32.totalorder %v10563_v15, %v10995_v63 }
0x182b   : > { %v13230_v48 = vadd.f32 %v6257_v58, %v6256_v17  ;;  %vm14365_vm6 = vmor %vm13092_vm13, %vm13128_vm3  ;;  %vm14370_vm3 = vnez %v14351_v7 }
0x182c   : > { %vm14366_vm1 = vmor %vm13155_vm15, %vm13168_vm5  ;;  %vm14372_vm15 = vnez %v14360_v45 }
0x182d   : > { %vm7837_vm0 = vmpackc.low %vm14366_vm1, %vm14365_vm6  ;;  %vm14373_vm6 = vnez %v14357_v32 }
0x182e   : > { %8867 = vmatmul.mubr.msk.bf16.gmra.mrb[144].mxu0 %vm7837_vm0, %v13841_v8  ;;  %vm6881_vm4 = vmand %vm6865_vm10, %vm14367_vm8  ;;  %vm5953_vm10 = vcmp.lt.f32.partialorder %v14374_v59, 100.0 }
0x182f   : > { %vm6913_vm9 = vmand %vm6897_vm7, %vm14368_vm14  ;;  %v7749_v49 = vsel %vm5953_vm10, 1.0, %v14215_v13  ;;  %vm5957_vm14 = vcmp.lt.f32.partialorder %v12205_v55, 100.0  ;;  %vm5962_vm10 = vcmp.lt.f32.partialorder %v14378_v39, 100.0  ;;  %v14387_v39 = vld [vmem:[#allocation68_spill] sm:$0xff] }
0x1830   : > { %vm6929_vm2 = vmor %vm6881_vm4, %vm6913_vm9  ;;  %vm5955_vm9 = vcmp.lt.f32.partialorder %v14376_v6, 100.0  ;;  %v7753_v44 = vsel %vm5957_vm14, 1.0, %v14215_v13  ;;  %v7758_v17 = vsel %vm5962_vm10, 1.0, %v14215_v13 }
0x1831   : > { %vm14371_vm13 = vmor %vm14369_vm11, %vm14370_vm3  ;;  %vm5954_vm11 = vcmp.lt.f32.partialorder %v14375_v60, 100.0  ;;  %v7751_v57 = vsel %vm5955_vm9, 1.0, %v14215_v13 }
0x1832   : > { %vm7839_vm5 = vmpackc.low %vm6927_vm12, %vm14371_vm13  ;;  %v7750_v52 = vsel %vm5954_vm11, 1.0, %v14215_v13  ;;  %vm5956_vm13 = vcmp.lt.f32.partialorder %v12198_v33, 100.0 }
0x1833   : > { %vm6928_vm1 = vmor %vm14373_vm6, %vm14372_vm15  ;;  %8870 = vmatprep.mubr.msk.bf16.mxu0 %vm7839_vm5, %v13841_v8  ;;  %v7752_v33 = vsel %vm5956_vm13, 1.0, %v14215_v13 }
0x1834   : > { %vm7841_vm0 = vmpackc.low %vm6929_vm2, %vm6928_vm1  ;;  %vm5958_vm2 = vcmp.lt.f32.partialorder %v12208_v36, 100.0  ;;  %vm5961_vm1 = vcmp.lt.f32.partialorder %v12223_v38, 100.0 }
0x1835   : > { %v7754_v40 = vsel %vm5958_vm2, 1.0, %v14215_v13  ;;  %v7757_v42 = vsel %vm5961_vm1, 1.0, %v14215_v13 }
0x1836   : > { %8871 = vmatmul.mubr.msk.bf16.gmra.mrb[148].mxu0 %vm7841_vm0, %v13841_v8  ;;  %vm5959_vm0 = vcmp.lt.f32.partialorder %v14377_v54, 100.0 }
0x1837   : > { %v7755_v56 = vsel %vm5959_vm0, 1.0, %v14215_v13 }
0x189a   : > { %v13260_v18 = vpop.f32.mrb[120].mxu0 }
0x189b   : > { %v13262_v15 = vpop.f32.mrb[121].mxu0  ;;  %vm6736_vm0 = vcmp.lt.f32.partialorder %v13260_v18, 100.0 }
0x189c   : > { %v13264_v63 = vpop.f32.mrb[122].mxu0  ;;  %vm6734_vm10 = vcmp.lt.f32.partialorder %v13262_v15, 100.0 }
0x189d   : > { %v13266_v10 = vpop.f32.mrb[123].mxu0 }
0x18ac   : > { %v13268_v20 = vpop.f32.mrb[124].mxu0 }
0x18ad   : > { %v13270_v37 = vpop.f32.mrb[125].mxu0 }
0x18ae   : > { %v13272_v27 = vpop.f32.mrb[126].mxu0 }
0x18af   : > { %v13274_v22 = vpop.f32.mrb[127].mxu0 }
0x18ba   : > { %v13276_v21 = vpop.f32.mrb[128].mxu0 }
0x18bb   : > { %v13278_v30 = vpop.f32.mrb[129].mxu0 }
0x18bc   : > { %v13280_v8 = vpop.f32.mrb[130].mxu0 }
0x18bd   : > { %v13282_v23 = vpop.f32.mrb[131].mxu0 }
0x18c6   : > { %v13284_v16 = vpop.f32.mrb[132].mxu0 }
0x18c7   : > { %v13286_v29 = vpop.f32.mrb[133].mxu0 }
0x18c8   : > { %v13288_v12 = vpop.f32.mrb[134].mxu0 }
0x18c9   : > { %v13290_v4 = vpop.f32.mrb[135].mxu0 }
0x18d2   : > { %v8860_v0 = vpop.f32.mrb[136].mxu0 }
0x18d3   : > { %vm7069_vm12 = vcmp.lt.f32.partialorder %v8860_v0, 100.0  ;;  %v7004_v47 = vpop.f32.mrb[137].mxu0 }
0x18d4   : > { %v7845_v31 = vsel %vm7069_vm12, 1.0, %v14215_v13  ;;  %vm7067_vm7 = vcmp.lt.f32.partialorder %v7004_v47, 100.0  ;;  %v8861_v14 = vpop.f32.mrb[138].mxu0  ;;  %vm5960_vm12 = vcmp.lt.f32.partialorder %v14379_v46, 100.0  ;;  %v14388_v46 = vld [vmem:[#allocation20_spill] sm:$0xff] }
0x18d5   : > { %v9076_v35 = vpack.i.bf16 %v7845_v31, %v7749_v49  ;;  %vm7070_vm8 = vcmp.lt.f32.partialorder %v8861_v14, 100.0  ;;  %v7007_v2 = vpop.f32.mrb[139].mxu0  ;;  %v7843_v26 = vsel %vm7067_vm7, 1.0, %v14215_v13  ;;  %v7756_v0 = vsel %vm5960_vm12, 1.0, %v14215_v13  ;;  %v14380_v31 = vld [vmem:[#allocation92_spill] sm:$0xff]  ;;  %v14381_v14 = vld [vmem:[#allocation90_spill] sm:$0xff] }
0x18d6   : > { %v7846_v28 = vsel %vm7070_vm8, 1.0, %v14215_v13  ;;  %vm7068_vm4 = vcmp.lt.f32.partialorder %v7007_v2, 100.0  ;;  %vm5965_vm14 = vcmp.lt.f32.partialorder %v14380_v31, 100.0  ;;  %vm5963_vm9 = vcmp.lt.f32.partialorder %v14381_v14, 100.0  ;;  %v14382_v2 = vld [vmem:[#allocation93_spill] sm:$0xff] }
0x18d7   : > { %v9086_v1 = vpack.i.bf16 %v7846_v28, %v7750_v52  ;;  %v7844_v50 = vsel %vm7068_vm4, 1.0, %v14215_v13  ;;  %9077 = vrot.lane.b32.xlu0 %v9076_v35, %s9253_s22  ;;  %vm5966_vm2 = vcmp.lt.f32.partialorder %v14382_v2, 100.0  ;;  %v14383_v28 = vld [vmem:[#allocation91_spill] sm:$0xff]  ;;  %vm14385_vm12 = vcmask 7168  }
0x18d8   : > { %v9081_v24 = vpack.i.bf16 %v7844_v50, %v7843_v26  ;;  %vm5964_vm13 = vcmp.lt.f32.partialorder %v14383_v28, 100.0  ;;  %v7761_v26 = vsel %vm5965_vm14, 1.0, %v14215_v13  ;;  %vm14390_vm14 = vcmask 15360  }
0x18da   : > { %9082 = vrot.lane.b32.xlu1 %v9081_v24, %s9253_s22  ;;  %v7759_v24 = vsel %vm5963_vm9, 1.0, %v14215_v13 }
0x18de   : > { %9087 = vrot.lane.b32.xlu1 %v9086_v1, %s9253_s22 }
0x18ec   : > { %v8864_v43 = vpop.f32.mrb[140].mxu0 }
0x18ed   : > { %vm7073_vm3 = vcmp.lt.f32.partialorder %v8864_v43, 100.0  ;;  %v7020_v11 = vpop.f32.mrb[141].mxu0 }
0x18ee   : > { %v7849_v9 = vsel %vm7073_vm3, 1.0, %v14215_v13  ;;  %vm7071_vm5 = vcmp.lt.f32.partialorder %v7020_v11, 100.0  ;;  %v8865_v3 = vpop.f32.mrb[142].mxu0 }
0x18ef   : > { %v9096_v53 = vpack.i.bf16 %v7849_v9, %v7753_v44  ;;  %v7847_v55 = vsel %vm7071_vm5, 1.0, %v14215_v13  ;;  %vm7074_vm15 = vcmp.lt.f32.partialorder %v8865_v3, 100.0  ;;  %v7023_v5 = vpop.f32.mrb[143].mxu0  ;;  %v7762_v44 = vsel %vm5966_vm2, 1.0, %v14215_v13 }
0x18f0   : > { %v9091_v36 = vpack.i.bf16 %v7847_v55, %v7751_v57  ;;  %v7850_v62 = vsel %vm7074_vm15, 1.0, %v14215_v13  ;;  %vm7072_vm6 = vcmp.lt.f32.partialorder %v7023_v5, 100.0  ;;  %v7760_v57 = vsel %vm5964_vm13, 1.0, %v14215_v13 }
0x18f1   : > { %v9106_v34 = vpack.i.bf16 %v7850_v62, %v7754_v40  ;;  %v7848_v41 = vsel %vm7072_vm6, 1.0, %v14215_v13  ;;  %v14384_v40 = vld [vmem:[#allocation54_spill] sm:$0xff] }
0x18f2   : > { %v9101_v19 = vpack.i.bf16 %v7848_v41, %v7752_v33  ;;  %9092 = vrot.lane.b32.xlu0 %v9091_v36, %s9253_s22  ;;  %vm5080_vm1 = vcmp.lt.f32.partialorder %v14384_v40, 100.0  ;;  %v7797_v41 = vsel %vm6736_vm0, 1.0, %v14215_v13  ;;  %v14409_v40 = vld [vmem:[#allocation61_spill] sm:$0xff] }
0x18f4   : > { %9102 = vrot.lane.b32.xlu1 %v9101_v19, %s9253_s22 }
0x18f6   : > { %9097 = vrot.lane.b32.xlu0 %v9096_v53, %s9253_s22 }
0x18f8   : > { %9107 = vrot.lane.b32.xlu1 %v9106_v34, %s9253_s22  ;;  %v7589_v34 = vsel %vm5080_vm1, 1.0, %v14215_v13 }
0x1901   : > { %v8868_v61 = vpop.f32.mrb[144].mxu0 }
0x1902   : > { %vm7077_vm11 = vcmp.lt.f32.partialorder %v8868_v61, 100.0  ;;  %v7036_v7 = vpop.f32.mrb[145].mxu0 }
0x1903   : > { %v7853_v51 = vsel %vm7077_vm11, 1.0, %v14215_v13  ;;  %vm7075_vm7 = vcmp.lt.f32.partialorder %v7036_v7, 100.0  ;;  %v8869_v32 = vpop.f32.mrb[146].mxu0  ;;  %vm6735_vm11 = vcmp.lt.f32.partialorder %v13266_v10, 100.0 }
0x1904   : > { %v9116_v45 = vpack.i.bf16 %v7853_v51, %v7757_v42  ;;  %v7851_v38 = vsel %vm7075_vm7, 1.0, %v14215_v13  ;;  %vm7078_vm8 = vcmp.lt.f32.partialorder %v8869_v32, 100.0  ;;  %v7039_v25 = vpop.f32.mrb[147].mxu0  ;;  %vm14386_vm7 = vmmov %vm14385_vm12  ;;  %v14389_v32 = vld [vmem:[#allocation55_spill] sm:$0xff] }
0x1905   : > { %v9111_v58 = vpack.i.bf16 %v7851_v38, %v7755_v56  ;;  %v7854_v59 = vsel %vm7078_vm8, 1.0, %v14215_v13  ;;  %vm7076_vm4 = vcmp.lt.f32.partialorder %v7039_v25, 100.0  ;;  %vm5081_vm8 = vcmp.lt.f32.partialorder %v14389_v32, 100.0  ;;  %vm14391_vm9 = vmmov %vm14386_vm7 }
0x1906   : > { %v9126_v60 = vpack.i.bf16 %v7854_v59, %v7758_v17  ;;  %v7852_v47 = vsel %vm7076_vm4, 1.0, %v14215_v13  ;;  %v7795_v56 = vsel %vm6734_vm10, 1.0, %v14215_v13  ;;  %vm6737_vm4 = vcmp.lt.f32.partialorder %v13264_v63, 100.0  ;;  %vm14392_vm2 = vmmov %vm14386_vm7  ;;  %v14393_v17 = vld [vmem:[#allocation71_spill] sm:$0xff]  ;;  %v14394_v59 = vld [vmem:[#allocation69_spill] sm:$0xff] }
0x1907   : > { %v9121_v49 = vpack.i.bf16 %v7852_v47, %v7756_v0  ;;  %9112 = vrot.lane.b32.xlu0 %v9111_v58, %s9253_s22  ;;  %v7590_v31 = vsel %vm5081_vm8, 1.0, %v14215_v13  ;;  %v7798_v14 = vsel %vm6737_vm4, 1.0, %v14215_v13  ;;  %vm5087_vm4 = vcmp.lt.f32.partialorder %v14409_v40, 100.0 }
0x1909   : > { %v8872_v35 = vpop.f32.mrb[148].mxu0  ;;  %9122 = vrot.lane.b32.xlu1 %v9121_v49, %s9253_s22 }
0x190a   : > { %vm7081_vm3 = vcmp.lt.f32.partialorder %v8872_v35, 100.0  ;;  %v7052_v52 = vpop.f32.mrb[149].mxu0 }
0x190b   : > { %v7857_v1 = vsel %vm7081_vm3, 1.0, %v14215_v13  ;;  %vm7079_vm5 = vcmp.lt.f32.partialorder %v7052_v52, 100.0  ;;  %v8873_v50 = vpop.f32.mrb[150].mxu0  ;;  %9117 = vrot.lane.b32.xlu0 %v9116_v45, %s9253_s22  ;;  %v7796_v45 = vsel %vm6735_vm11, 1.0, %v14215_v13  ;;  %vm14395_vm3 = vmmov %vm14390_vm14 }
0x190c   : > { %v9141_v6 = vpack.i.bf16 %v7857_v1, %v7761_v26  ;;  %v7855_v43 = vsel %vm7079_vm5, 1.0, %v14215_v13  ;;  %vm7082_vm15 = vcmp.lt.f32.partialorder %v8873_v50, 100.0  ;;  %v7055_v11 = vpop.f32.mrb[151].mxu0  ;;  %vm14396_vm13 = vmmov %vm14395_vm3  ;;  %v14400_v26 = vld [vmem:[#allocation70_spill] sm:$0xff] }
0x190d   : > { %v9131_v9 = vpack.i.bf16 %v7855_v43, %v7759_v24  ;;  %v7858_v3 = vsel %vm7082_vm15, 1.0, %v14215_v13  ;;  %vm7080_vm6 = vcmp.lt.f32.partialorder %v7055_v11, 100.0  ;;  %9127 = vrot.lane.b32.xlu1 %v9126_v60, %s9253_s22  ;;  %vm14397_vm5 = vmmov %vm14392_vm2  ;;  %v14401_v50 = vld [vmem:[#allocation22_spill] sm:$0xff] }
0x190e   : > { %v9146_v53 = vpack.i.bf16 %v7858_v3, %v7762_v44  ;;  %v7856_v55 = vsel %vm7080_vm6, 1.0, %v14215_v13  ;;  %vm14398_vm15 = vmmov %vm14392_vm2  ;;  %v14404_v3 = vld [vmem:[#allocation56_spill] sm:$0xff] }
0x190f   : > { %v9136_v5 = vpack.i.bf16 %v7856_v55, %v7760_v57  ;;  %9132 = vrot.lane.b32.xlu0 %v9131_v9, %s9253_s22  ;;  %vm14399_vm6 = vmmov %vm14395_vm3  ;;  %vm5082_vm10 = vcmp.lt.f32.partialorder %v14404_v3, 100.0  ;;  %v14405_v57 = vld [vmem:[#allocation57_spill] sm:$0xff]  ;;  %v14407_v55 = vld [vmem:[#allocation59_spill] sm:$0xff] }
0x1910   : > { %vm14402_vm1 = vmmov %vm14395_vm3  ;;  %vm5083_vm11 = vcmp.lt.f32.partialorder %v14405_v57, 100.0  ;;  %v14429_v57 = vld [vmem:[#allocation72_spill] sm:$0xff] }
0x1911   : > { %9137 = vrot.lane.b32.xlu1 %v9136_v5, %s9253_s22  ;;  %vm14403_vm0 = vmmov %vm14402_vm1  ;;  %v14408_v5 = vld [vmem:[#allocation60_spill] sm:$0xff] }
0x1912   : > { %vm5086_vm8 = vcmp.lt.f32.partialorder %v14408_v5, 100.0 }
0x1913   : > { %9142 = vrot.lane.b32.xlu0 %v9141_v6, %s9253_s22 }
0x1915   : > { %9147 = vrot.lane.b32.xlu1 %v9146_v53, %s9253_s22  ;;  %v14406_v53 = vld [vmem:[#allocation58_spill] sm:$0xff] }
0x1949   : > { %v9078_v36 = vpop.permute.xlu0 %9077 }
0x194a   : > { %v9080_v62 = vunpack.i.h.bf16 %v9078_v36  ;;  %v9079_v33 = vunpack.i.l.bf16 %v9078_v36  ;;  %v14410_v36 = vld [vmem:[#allocation62_spill] sm:$0xff] }
0x194c   : > { %v7181_v19 = vsel %vm14385_vm12, %v7797_v41, %v9080_v62  ;;  %v6178_v54 = vsel %vm14386_vm7, %v7589_v34, %v9079_v33  ;;  %v9083_v61 = vpop.permute.xlu1 %9082  ;;  %vm5084_vm12 = vcmp.lt.f32.partialorder %v14406_v53, 100.0  ;;  %vm5085_vm7 = vcmp.lt.f32.partialorder %v14407_v55, 100.0  ;;  %v14411_v62 = vld [vmem:[#allocation63_spill] sm:$0xff]  ;;  %v14412_v33 = vld [vmem:[#allocation64_spill] sm:$0xff] }
0x194d   : > { %v7197_v7 = vmul.f32 %v14387_v39, %v7181_v19  ;;  %v6210_v18 = vmul.f32 %v14388_v46, %v6178_v54  ;;  %v9085_v42 = vunpack.i.h.bf16 %v9083_v61  ;;  %v9084_v51 = vunpack.i.l.bf16 %v9083_v61  ;;  %v14430_v55 = vld [vmem:[#allocation24_spill] sm:$0xff] }
0x194e   : > { %v7591_v34 = vsel %vm5082_vm10, 1.0, %v14215_v13  ;;  %v7592_v41 = vsel %vm5083_vm11, 1.0, %v14215_v13  ;;  %v7593_v19 = vsel %vm5084_vm12, 1.0, %v14215_v13  ;;  %v7594_v54 = vsel %vm5085_vm7, 1.0, %v14215_v13 }
0x194f   : > { %v6259_v15 = vsel %vm14390_vm14, %v6210_v18, 0.0  ;;  %v7180_v10 = vsel %vm14391_vm9, %v7796_v45, %v9085_v42  ;;  %v7179_v38 = vsel %vm14392_vm2, %v7795_v56, %v9084_v51  ;;  %v7214_v28 = vsel %vm14399_vm6, %v7197_v7, 0.0  ;;  %v14413_v51 = vld [vmem:[#allocation65_spill] sm:$0xff] }
0x1950   : > { %v6260_v25 = vadd.f32 %v6259_v15, %v13230_v48  ;;  %v7196_v58 = vmul.f32 %v7180_v10, %v14393_v17  ;;  %v7195_v0 = vmul.f32 %v7179_v38, %v14394_v59  ;;  %v9088_v60 = vpop.permute.xlu1 %9087  ;;  %vm5088_vm14 = vcmp.lt.f32.partialorder %v14410_v36, 100.0 }
0x1951   : > { %v9090_v47 = vunpack.i.h.bf16 %v9088_v60  ;;  %v9089_v49 = vunpack.i.l.bf16 %v9088_v60  ;;  %vm5089_vm9 = vcmp.lt.f32.partialorder %v14411_v62, 100.0  ;;  %vm5090_vm2 = vcmp.lt.f32.partialorder %v14412_v33, 100.0 }
0x1952   : > { %v7212_v63 = vsel %vm14395_vm3, %v7196_v58, 0.0  ;;  %v7211_v35 = vsel %vm14396_vm13, %v7195_v0, 0.0  ;;  %v13398_v61 = vsel %vm5086_vm8, 1.0, %v14215_v13  ;;  %vm6740_vm3 = vcmp.lt.f32.partialorder %v13268_v20, 100.0  ;;  %v14418_v0 = vld [vmem:[#allocation25_spill] sm:$0xff] }
0x1953   : > { %v7213_v2 = vadd.f32 %v7212_v63, %v7211_v35  ;;  %v7182_v52 = vsel %vm14397_vm5, %v7798_v14, %v9090_v47  ;;  %v6179_v48 = vsel %vm14398_vm15, %v7590_v31, %v9089_v49  ;;  %vm6738_vm13 = vcmp.lt.f32.partialorder %v13270_v37, 100.0  ;;  %v14414_v37 = vld [vmem:[#allocation66_spill] sm:$0xff] }
0x1954   : > { %v7198_v1 = vmul.f32 %v14400_v26, %v7182_v52  ;;  %v6211_v24 = vmul.f32 %v14401_v50, %v6179_v48  ;;  %v13403_v39 = vsel %vm5087_vm4, 1.0, %v14215_v13  ;;  %v13406_v7 = vsel %vm5088_vm14, 1.0, %v14215_v13  ;;  %v14423_v52 = vld [vmem:[#allocation75_spill] sm:$0xff] }
0x1955   : > { %v7215_v6 = vadd.f32 %v7214_v28, %v7213_v2  ;;  %v13409_v46 = vsel %vm5089_vm9, 1.0, %v14215_v13  ;;  %v13412_v18 = vsel %vm5090_vm2, 1.0, %v14215_v13  ;;  %vm5091_vm5 = vcmp.lt.f32.partialorder %v14413_v51, 100.0  ;;  %v14424_v28 = vld [vmem:[#allocation27_spill] sm:$0xff] }
0x1956   : > { %v7216_v43 = vsel %vm14402_vm1, %v7198_v1, 0.0  ;;  %v6261_v11 = vsel %vm14403_vm0, %v6211_v24, 0.0  ;;  %vm6739_vm15 = vcmp.lt.f32.partialorder %v13274_v22, 100.0  ;;  %vm5092_vm6 = vcmp.lt.f32.partialorder %v14414_v37, 100.0  ;;  %v14417_v22 = vld [vmem:[#allocation73_spill] sm:$0xff] }
0x1957   : > { %v6262_v44 = vadd.f32 %v6261_v11, %v6260_v25  ;;  %v7217_v9 = vadd.f32 %v7216_v43, %v7215_v6  ;;  %v7801_v56 = vsel %vm6740_vm3, 1.0, %v14215_v13  ;;  %v7799_v45 = vsel %vm6738_vm13, 1.0, %v14215_v13 }
0x1958   : > { %vm6741_vm1 = vcmp.lt.f32.partialorder %v13272_v27, 100.0  ;;  %vm14415_vm0 = vcmask 7168   ;;  %v7800_v58 = vsel %vm6739_vm15, 1.0, %v14215_v13  ;;  %vm6744_vm11 = vcmp.lt.f32.partialorder %v13276_v21, 100.0 }
0x1959   : > { %vm14416_vm10 = vmmov %vm14415_vm0  ;;  %vm14421_vm8 = vcmask 15360   ;;  %v13453_v51 = vsel %vm5092_vm6, 1.0, %v14215_v13  ;;  %v7805_v27 = vsel %vm6744_vm11, 1.0, %v14215_v13  ;;  %vm6747_vm6 = vcmp.lt.f32.partialorder %v13290_v4, 100.0  ;;  %v14447_v4 = vld [vmem:[#allocation31_spill] sm:$0xff] }
0x195a   : > { %vm14419_vm12 = vmmov %vm14415_vm0 }
0x195b   : > { %vm14420_vm7 = vmmov %vm14415_vm0 }
0x195c   : > { %vm14422_vm4 = vmmov %vm14421_vm8 }
0x195d   : > { %vm14425_vm14 = vmmov %vm14415_vm0 }
0x195e   : > { %vm14426_vm9 = vmmov %vm14415_vm0 }
0x195f   : > { %vm14427_vm2 = vmmov %vm14422_vm4 }
0x1960   : > { %vm14428_vm3 = vmmov %vm14427_vm2 }
0x1961   : > { %vm14431_vm13 = vmmov %vm14427_vm2 }
0x1962   : > { %vm14432_vm15 = vmmov %vm14427_vm2 }
0x1963   : > { %vm14438_vm11 = vmmov %vm14415_vm0 }
0x1964   : > { %v9093_v42 = vpop.permute.xlu0 %9092 }
0x1965   : > { %v9095_v20 = vunpack.i.h.bf16 %v9093_v42  ;;  %v9094_v32 = vunpack.i.l.bf16 %v9093_v42 }
0x1966   : > { %v9103_v15 = vpop.permute.xlu1 %9102 }
0x1967   : > { %v7183_v10 = vsel %vm14415_vm0, %v7799_v45, %v9095_v20  ;;  %v6180_v38 = vsel %vm14416_vm10, %v7591_v34, %v9094_v32  ;;  %v9105_v25 = vunpack.i.h.bf16 %v9103_v15  ;;  %v9104_v17 = vunpack.i.l.bf16 %v9103_v15  ;;  %vm14433_vm10 = vmmov %vm14415_vm0  ;;  %v14435_v15 = vld [vmem:[#allocation26_spill] sm:$0xff] }
0x1968   : > { %v7199_v59 = vmul.f32 %v7183_v10, %v14417_v22  ;;  %v6212_v60 = vmul.f32 %v6180_v38, %v14418_v0  ;;  %v9098_v47 = vpop.permute.xlu0 %9097 }
0x1969   : > { %v7184_v49 = vsel %vm14419_vm12, %v7800_v58, %v9105_v25  ;;  %v6181_v31 = vsel %vm14420_vm7, %v7592_v41, %v9104_v17  ;;  %v9100_v14 = vunpack.i.h.bf16 %v9098_v47  ;;  %v9099_v63 = vunpack.i.l.bf16 %v9098_v47 }
0x196a   : > { %v7218_v35 = vsel %vm14421_vm8, %v7199_v59, 0.0  ;;  %v6263_v2 = vsel %vm14422_vm4, %v6212_v60, 0.0  ;;  %v7200_v48 = vmul.f32 %v7184_v49, %v14423_v52  ;;  %v6213_v26 = vmul.f32 %v6181_v31, %v14424_v28  ;;  %v9108_v1 = vpop.permute.xlu1 %9107  ;;  %vm14436_vm4 = vmmov %vm14427_vm2 }
0x196b   : > { %v6264_v50 = vadd.f32 %v6263_v2, %v6262_v44  ;;  %v7219_v24 = vadd.f32 %v7218_v35, %v7217_v9  ;;  %v7185_v6 = vsel %vm14425_vm14, %v7801_v56, %v9100_v14  ;;  %v6182_v43 = vsel %vm14426_vm9, %v7593_v19, %v9099_v63  ;;  %v14434_v56 = vld [vmem:[#allocation74_spill] sm:$0xff]  ;;  %vm14437_vm14 = vmmov %vm14427_vm2  ;;  %v14440_v14 = vld [vmem:[#allocation77_spill] sm:$0xff] }
0x196c   : > { %v7220_v11 = vsel %vm14427_vm2, %v7200_v48, 0.0  ;;  %v6265_v3 = vsel %vm14428_vm3, %v6213_v26, 0.0  ;;  %v7201_v53 = vmul.f32 %v14429_v57, %v7185_v6  ;;  %v6214_v5 = vmul.f32 %v14430_v55, %v6182_v43  ;;  %vm14439_vm9 = vmmov %vm14415_vm0  ;;  %v14441_v35 = vld [vmem:[#allocation29_spill] sm:$0xff]  ;;  %v14449_v55 = vld [vmem:[#allocation67_spill] sm:$0xff] }
0x196d   : > { %v6266_v40 = vadd.f32 %v6265_v3, %v6264_v50  ;;  %v7221_v36 = vadd.f32 %v7220_v11, %v7219_v24  ;;  %v9110_v62 = vunpack.i.h.bf16 %v9108_v1  ;;  %v9109_v33 = vunpack.i.l.bf16 %v9108_v1  ;;  %vm14442_vm2 = vmmov %vm14415_vm0  ;;  %v14446_v50 = vld [vmem:[#allocation80_spill] sm:$0xff] }
0x196e   : > { %v13441_v44 = vsel %vm5091_vm5, 1.0, %v14215_v13  ;;  %v7802_v9 = vsel %vm6741_vm1, 1.0, %v14215_v13  ;;  %v7222_v34 = vsel %vm14431_vm13, %v7201_v53, 0.0  ;;  %v6267_v41 = vsel %vm14432_vm15, %v6214_v5, 0.0  ;;  %vm14443_vm3 = vmmov %vm14415_vm0 }
0x196f   : > { %v6268_v19 = vadd.f32 %v6267_v41, %v6266_v40  ;;  %v7223_v42 = vadd.f32 %v7222_v34, %v7221_v36  ;;  %v7186_v20 = vsel %vm14415_vm0, %v7802_v9, %v9110_v62  ;;  %v6183_v32 = vsel %vm14433_vm10, %v7594_v54, %v9109_v33  ;;  %vm14444_vm13 = vmmov %vm14436_vm4  ;;  %v14452_v40 = vld [vmem:[#allocation76_spill] sm:$0xff] }
0x1970   : > { %v7202_v45 = vmul.f32 %v14434_v56, %v7186_v20  ;;  %v6215_v10 = vmul.f32 %v14435_v15, %v6183_v32  ;;  %vm6742_vm5 = vcmp.lt.f32.partialorder %v13278_v30, 100.0  ;;  %vm6745_vm1 = vcmp.lt.f32.partialorder %v13280_v8, 100.0  ;;  %vm14445_vm15 = vmmov %vm14436_vm4  ;;  %v14453_v62 = vld [vmem:[#allocation28_spill] sm:$0xff] }
0x1971   : > { %vm6743_vm12 = vcmp.lt.f32.partialorder %v13282_v23, 100.0  ;;  %vm6748_vm7 = vcmp.lt.f32.partialorder %v13284_v16, 100.0  ;;  %vm6746_vm8 = vcmp.lt.f32.partialorder %v13286_v29, 100.0  ;;  %v7803_v30 = vsel %vm6742_vm5, 1.0, %v14215_v13  ;;  %vm14448_vm10 = vmmov %vm14415_vm0 }
0x1972   : > { %v7224_v54 = vsel %vm14436_vm4, %v7202_v45, 0.0  ;;  %v6269_v21 = vsel %vm14437_vm14, %v6215_v10, 0.0  ;;  %v7806_v8 = vsel %vm6745_vm1, 1.0, %v14215_v13  ;;  %v7804_v23 = vsel %vm6743_vm12, 1.0, %v14215_v13  ;;  %vm14450_vm12 = vmmov %vm14436_vm4 }
0x1973   : > { %v6270_v38 = vadd.f32 %v6269_v21, %v6268_v19  ;;  %v7225_v25 = vadd.f32 %v7224_v54, %v7223_v42  ;;  %v13472_v16 = vsel %vm6748_vm7, 1.0, %v14215_v13  ;;  %v7807_v49 = vsel %vm6746_vm8, 1.0, %v14215_v13  ;;  %vm14451_vm7 = vmmov %vm14436_vm4  ;;  %v14458_v21 = vld [vmem:[#allocation79_spill] sm:$0xff] }
0x1974   : > { %v7808_v31 = vsel %vm6747_vm6, 1.0, %v14215_v13  ;;  %vm5093_vm5 = vcmp.lt.f32.partialorder %v14449_v55, 100.0  ;;  %vm6749_vm1 = vcmp.lt.f32.partialorder %v13288_v12, 100.0  ;;  %vm14454_vm8 = vmmov %vm14436_vm4  ;;  %v14482_v12 = vld [vmem:[#allocation34_spill] sm:$0xff] }
0x1975   : > { %vm14455_vm6 = vmmov %vm14436_vm4 }
0x1976   : > { %vm14456_vm4 = vmmov %vm14415_vm0 }
0x1977   : > { %vm14457_vm14 = vmmov %vm14415_vm0 }
0x1979   : > { %v9113_v37 = vpop.permute.xlu0 %9112 }
0x197a   : > { %v9115_v17 = vunpack.i.h.bf16 %v9113_v37  ;;  %v9114_v58 = vunpack.i.l.bf16 %v9113_v37 }
0x197b   : > { %v9123_v22 = vpop.permute.xlu1 %9122 }
0x197c   : > { %v7187_v59 = vsel %vm14438_vm11, %v7803_v30, %v9115_v17  ;;  %v6184_v0 = vsel %vm14439_vm9, %v13398_v61, %v9114_v58  ;;  %v9125_v60 = vunpack.i.h.bf16 %v9123_v22  ;;  %v9124_v47 = vunpack.i.l.bf16 %v9123_v22  ;;  %vm14460_vm11 = vmmov %vm14415_vm0 }
0x197d   : > { %v7203_v63 = vmul.f32 %v7187_v59, %v14440_v14  ;;  %v6216_v2 = vmul.f32 %v6184_v0, %v14441_v35  ;;  %v9118_v52 = vpop.permute.xlu0 %9117  ;;  %vm14461_vm9 = vmmov %vm14415_vm0  ;;  %v14463_v59 = vld [vmem:[#allocation33_spill] sm:$0xff] }
0x197e   : > { %v7188_v48 = vsel %vm14442_vm2, %v7804_v23, %v9125_v60  ;;  %v6185_v61 = vsel %vm14443_vm3, %v13403_v39, %v9124_v47  ;;  %v9120_v28 = vunpack.i.h.bf16 %v9118_v52  ;;  %v9119_v26 = vunpack.i.l.bf16 %v9118_v52  ;;  %v14462_v23 = vld [vmem:[#allocation83_spill] sm:$0xff]  ;;  %vm14464_vm2 = vmmov %vm14455_vm6 }
0x197f   : > { %v7226_v1 = vsel %vm14444_vm13, %v7203_v63, 0.0  ;;  %v6271_v29 = vsel %vm14445_vm15, %v6216_v2, 0.0  ;;  %v7204_v24 = vmul.f32 %v7188_v48, %v14446_v50  ;;  %v6217_v6 = vmul.f32 %v6185_v61, %v14447_v4  ;;  %v9128_v43 = vpop.permute.xlu1 %9127  ;;  %vm14465_vm3 = vmmov %vm14464_vm2  ;;  %v14471_v50 = vld [vmem:[#allocation85_spill] sm:$0xff]  ;;  %v14472_v4 = vld [vmem:[#allocation35_spill] sm:$0xff] }
0x1980   : > { %v6272_v11 = vadd.f32 %v6271_v29, %v6270_v38  ;;  %v7227_v3 = vadd.f32 %v7226_v1, %v7225_v25  ;;  %v7189_v57 = vsel %vm14415_vm0, %v7805_v27, %v9120_v28  ;;  %v6186_v53 = vsel %vm14448_vm10, %v13406_v7, %v9119_v26  ;;  %v14459_v38 = vld [vmem:[#allocation30_spill] sm:$0xff]  ;;  %vm14466_vm13 = vmmov %vm14464_vm2 }
0x1981   : > { %v7228_v39 = vsel %vm14450_vm12, %v7204_v24, 0.0  ;;  %v6273_v5 = vsel %vm14451_vm7, %v6217_v6, 0.0  ;;  %v7205_v36 = vmul.f32 %v14452_v40, %v7189_v57  ;;  %v6218_v33 = vmul.f32 %v14453_v62, %v6186_v53  ;;  %v9133_v9 = vpop.permute.xlu0 %9132  ;;  %vm14467_vm15 = vmmov %vm14464_vm2 }
0x1982   : > { %v6274_v34 = vadd.f32 %v6273_v5, %v6272_v11  ;;  %v7229_v41 = vadd.f32 %v7228_v39, %v7227_v3  ;;  %v9130_v19 = vunpack.i.h.bf16 %v9128_v43  ;;  %v9129_v42 = vunpack.i.l.bf16 %v9128_v43  ;;  %vm14468_vm10 = vmmov %vm14415_vm0  ;;  %v14473_v43 = vld [vmem:[#allocation82_spill] sm:$0xff]  ;;  %v14474_v3 = vld [vmem:[#allocation32_spill] sm:$0xff] }
0x1983   : > { %v7230_v20 = vsel %vm14454_vm8, %v7205_v36, 0.0  ;;  %v6275_v7 = vsel %vm14455_vm6, %v6218_v33, 0.0  ;;  %v9135_v32 = vunpack.i.h.bf16 %v9133_v9  ;;  %v9134_v27 = vunpack.i.l.bf16 %v9133_v9  ;;  %v9138_v56 = vpop.permute.xlu1 %9137  ;;  %vm14469_vm12 = vmmov %vm14415_vm0 }
0x1984   : > { %v6276_v45 = vadd.f32 %v6275_v7, %v6274_v34  ;;  %v7231_v15 = vadd.f32 %v7230_v20, %v7229_v41  ;;  %v7190_v10 = vsel %vm14456_vm4, %v7806_v8, %v9130_v19  ;;  %v6187_v54 = vsel %vm14457_vm14, %v13409_v46, %v9129_v42  ;;  %vm14470_vm7 = vmmov %vm14415_vm0  ;;  %v14481_v41 = vld [vmem:[#allocation84_spill] sm:$0xff] }
0x1985   : > { %v7206_v37 = vmul.f32 %v14458_v21, %v7190_v10  ;;  %v6219_v25 = vmul.f32 %v14459_v38, %v6187_v54  ;;  %v7191_v17 = vsel %vm14460_vm11, %v7807_v49, %v9135_v32  ;;  %v6188_v58 = vsel %vm14461_vm9, %v13412_v18, %v9134_v27  ;;  %v9143_v30 = vpop.permute.xlu0 %9142  ;;  %vm14475_vm8 = vmmov %vm14464_vm2 }
0x1986   : > { %v7207_v22 = vmul.f32 %v7191_v17, %v14462_v23  ;;  %v6220_v0 = vmul.f32 %v6188_v58, %v14463_v59  ;;  %v9140_v60 = vunpack.i.h.bf16 %v9138_v56  ;;  %v9139_v47 = vunpack.i.l.bf16 %v9138_v56  ;;  %vm14476_vm6 = vmmov %vm14464_vm2  ;;  %v14485_v59 = vld [vmem:[#allocation3_spill] sm:$0xff] }
0x1987   : > { %v7232_v8 = vsel %vm14464_vm2, %v7206_v37, 0.0  ;;  %v6277_v46 = vsel %vm14465_vm3, %v6219_v25, 0.0  ;;  %v9145_v14 = vunpack.i.h.bf16 %v9143_v30  ;;  %v9144_v63 = vunpack.i.l.bf16 %v9143_v30  ;;  %v9148_v18 = vpop.permute.xlu1 %9147  ;;  %vm14477_vm4 = vmmov %vm14464_vm2 }
0x1988   : > { %v6278_v35 = vadd.f32 %v6277_v46, %v6276_v45  ;;  %v7233_v2 = vadd.f32 %v7232_v8, %v7231_v15  ;;  %v7234_v49 = vsel %vm14466_vm13, %v7207_v22, 0.0  ;;  %v6279_v52 = vsel %vm14467_vm15, %v6220_v0, 0.0  ;;  %vm14478_vm14 = vmmov %vm14464_vm2 }
0x1989   : > { %v7192_v48 = vsel %vm14415_vm0, %v7808_v31, %v9140_v60  ;;  %v6189_v61 = vsel %vm14468_vm10, %v13441_v44, %v9139_v47  ;;  %v7193_v28 = vsel %vm14469_vm12, %v13472_v16, %v9145_v14  ;;  %v6190_v26 = vsel %vm14470_vm7, %v13453_v51, %v9144_v63  ;;  %vm14479_vm11 = vmmov %vm14415_vm0 }
0x198a   : > { %v6280_v1 = vadd.f32 %v6279_v52, %v6278_v35  ;;  %v7235_v29 = vadd.f32 %v7234_v49, %v7233_v2  ;;  %v7208_v24 = vmul.f32 %v7192_v48, %v14471_v50  ;;  %v6221_v6 = vmul.f32 %v6189_v61, %v14472_v4  ;;  %vm14480_vm9 = vmmov %vm14415_vm0 }
0x198b   : > { %v7209_v11 = vmul.f32 %v14473_v43, %v7193_v28  ;;  %v6222_v57 = vmul.f32 %v14474_v3, %v6190_v26  ;;  %v9150_v31 = vunpack.i.h.bf16 %v9148_v18  ;;  %v9149_v53 = vunpack.i.l.bf16 %v9148_v18 }
0x198c   : > { %v7602_v44 = vsel %vm5093_vm5, 1.0, %v14215_v13  ;;  %v7810_v51 = vsel %vm6749_vm1, 1.0, %v14215_v13  ;;  %v7236_v16 = vsel %vm14475_vm8, %v7208_v24, 0.0  ;;  %v6281_v39 = vsel %vm14476_vm6, %v6221_v6, 0.0  ;;  %vm14483_vm5 = vmmov %vm14464_vm2 }
0x198d   : > { %v6282_v5 = vadd.f32 %v6281_v39, %v6280_v1  ;;  %v7237_v40 = vadd.f32 %v7236_v16, %v7235_v29  ;;  %v7238_v36 = vsel %vm14477_vm4, %v7209_v11, 0.0  ;;  %v6283_v62 = vsel %vm14478_vm14, %v6222_v57, 0.0  ;;  %vm14484_vm1 = vmmov %vm14464_vm2 }
0x198e   : > { %v7194_v33 = vsel %vm14479_vm11, %v7810_v51, %v9150_v31  ;;  %v6191_v9 = vsel %vm14480_vm9, %v7602_v44, %v9149_v53  ;;  %vm14486_vm2 = vmmov %vm14484_vm1 }
0x198f   : > { %v6284_v55 = vadd.f32 %v6283_v62, %v6282_v5  ;;  %v7239_v34 = vadd.f32 %v7238_v36, %v7237_v40  ;;  %v7210_v19 = vmul.f32 %v14481_v41, %v7194_v33  ;;  %v6223_v13 = vmul.f32 %v14482_v12, %v6191_v9 }
0x1991   : > { %v7240_v42 = vsel %vm14483_vm5, %v7210_v19, 0.0  ;;  %v6285_v20 = vsel %vm14484_vm1, %v6223_v13, 0.0 }
0x1992   : > { %v6286_v7 = vadd.f32 %v6285_v20, %v6284_v55  ;;  %v7241_v32 = vadd.f32 %v7240_v42, %v7239_v34 }
0x1994   : > { %v6287_v27 = vrot.slane %v6286_v7, 4  ;;  %v7242_v56 = vrot.slane %v7241_v32, 4 }
0x1996   : > { %v6288_v45 = vadd.f32 %v6287_v27, %v6286_v7  ;;  %v7243_v15 = vadd.f32 %v7242_v56, %v7241_v32 }
0x1998   : > { %v6289_v10 = vrot.slane %v6288_v45, 2  ;;  %v7244_v54 = vrot.slane %v7243_v15, 2 }
0x199a   : > { %v6290_v21 = vadd.f32 %v6289_v10, %v6288_v45  ;;  %v7245_v37 = vadd.f32 %v7244_v54, %v7243_v15 }
0x199c   : > { %v6291_v38 = vrot.slane %v6290_v21, 1  ;;  %v7246_v25 = vrot.slane %v7245_v37, 1 }
0x199e   : > { %v6292_v17 = vadd.f32 %v6291_v38, %v6290_v21  ;;  %v7247_v58 = vadd.f32 %v7246_v25, %v7245_v37 }
0x19a0   : > { %v6293_v30 = vmul.f32 0.01, %v6292_v17  ;;  %v7248_v23 = vmul.f32 0.01, %v7247_v58 }
0x19a2   : > { %v7249_v22 = vadd.f32 %v7248_v23, %v6293_v30 }
0x19a4   : > { %v7250_v0 = vmul.f32 %v14485_v59, %v7249_v22 }
0x19a6   : > { %v7251_v60 = vsel %vm14486_vm2, %v7250_v0, 0.0 }
0x19a7   : > { %7252 = vst [vmem:[%s9388_s23] sm:$0x1] %v7251_v60 }
0x19a8 PF: > { %s32_s26 = sadd.s32 1, %s9233_s26  }
0x19a9   : > { %p29_p6 = scmp.ge.s32.totalorder %s32_s26, 4  }
0x19ab   :  { %31 = sbr.rel (!%p29_p6) target bundleno = 8 (0x8), region = 139 }

</bundles_post_ra>
